<compile_context>
chip_gen: v5e
topology: v5e:2x2
jax: 0.10.0
libtpu: 0.0.40
codegen_flags: <defaults>
</compile_context>

<pallas_src>
import functools

import jax
import jax.numpy as jnp
from jax.experimental import pallas as pl
from jax.experimental.pallas import tpu as pltpu


# ------------------------- static conv4 patch plan ------------------------- #
# conv4: k=4, stride=3, pad=2, input 4x4 (conv3 out) -> output 2x2.
def _axis_entries(in_size, out_size, k, stride, pad):
    ents = []
    for a in range(out_size):
        for i in range(k):
            h = stride * a + i - pad
            if 0 <= h < in_size:
                ents.append((a, i, h))          # (out pos, tap, in pos)
    return ents


_A4 = _axis_entries(4, 2, 4, 3, 2)               # 5 valid (a, i, h) per axis
# Each entry: (conv4 output position p4 = ah*2+aw,
#              conv4 tap t = ih*4+iw,
#              conv3 output position pos3 = h3*4+w3).   25 entries total.
_CONV4_ENTRIES = [
    (ah * 2 + aw, ih * 4 + iw, h3 * 4 + w3)
    for (ah, ih, h3) in _A4
    for (aw, iw, w3) in _A4
]


def _conv4_gather_indices(n_batch):
    """Row indices into the (N*16, K) conv3 cols: duplicated, p4-patch order."""
    idx = []
    for (_, _, pos3) in _CONV4_ENTRIES:          # entry-major, batch-minor
        for nb in range(n_batch):
            idx.append(nb * 16 + pos3)
    return jnp.asarray(idx, dtype=jnp.int32)     # (25*N,)


# ----------------------------- Pallas kernels ------------------------------ #
def _fused_matmul_kernel(x_ref, w_ref, shift_ref, o_ref, *, act):
    """One M-tile of (tm,K)@(K,N) + shift -> activation (BN scale pre-folded)."""
    y = jnp.dot(x_ref[...], w_ref[...], preferred_element_type=jnp.float32)
    y = y + shift_ref[...]
    if act == "leaky":
        y = jnp.maximum(y, 0.2 * y)              # LeakyReLU(0.2): mul + max
    o_ref[...] = y.astype(o_ref.dtype)


def fused_matmul(x, w, shift, act="none", out_dtype=jnp.bfloat16, tm_max=2048):
    """(M,K)@(K,N) + shift -> act, tiled over M.  bf16 MXU inputs, f32 acc."""
    m, k = x.shape
    k2, n = w.shape
    assert k == k2 and shift.shape == (1, n)
    tm = m if m <= tm_max else tm_max            # tm_max is 8-aligned
    grid = pl.cdiv(m, tm)                        # partial edge block is masked
    return pl.pallas_call(
        functools.partial(_fused_matmul_kernel, act=act),
        out_shape=jax.ShapeDtypeStruct((m, n), out_dtype),
        grid=(grid,),
        in_specs=[
            pl.BlockSpec((tm, k), lambda i: (i, 0)),
            pl.BlockSpec((k, n), lambda i: (0, 0)),    # grid-invariant weight
            pl.BlockSpec((1, n), lambda i: (0, 0)),    # grid-invariant shift
        ],
        out_specs=pl.BlockSpec((tm, n), lambda i: (i, 0)),
        compiler_params=pltpu.CompilerParams(
            dimension_semantics=("parallel",),
            vmem_limit_bytes=32 * 1024 * 1024,
        ),
    )(x, w, shift)


def _tail_kernel(cols3_ref, w3_ref, b3_ref, w4_ref, b4_ref, w5_ref, b5_ref,
                 fcw_ref, fcb_ref, o_ref, cols4_ref):
    """Fused conv3 -> conv4 -> conv5 -> Flatten -> Dropout(id) -> Linear -> Sigmoid.

    cols3_ref : (25*N, 1024)  conv3 im2col rows, pre-duplicated/ordered so that
                entry e covers exactly one (conv4 position, conv4 tap) slot.
    cols4_ref : (4*N, 2048)   VMEM scratch = conv4 im2col, p4-major rows.
    w5_ref    : (4, 256, 512) conv5 taps (2+ah, 2+aw); stack index = ah*2+aw.
    """
    n = o_ref.shape[0]

    # conv3 + BN + LeakyReLU: one (25N, 1024) @ (1024, 128) dot.
    h3 = jnp.dot(cols3_ref[...], w3_ref[...],
                 preferred_element_type=jnp.float32) + b3_ref[...]
    h3 = jnp.maximum(h3, 0.2 * h3).astype(jnp.bfloat16)

    # In-kernel im2col for conv4: 25 static (N,128) block copies into scratch.
    cols4_ref[...] = jnp.zeros(cols4_ref.shape, cols4_ref.dtype)
    for e, (p4, tap, _) in enumerate(_CONV4_ENTRIES):
        cols4_ref[p4 * n:(p4 + 1) * n, tap * 128:(tap + 1) * 128] = \
            h3[e * n:(e + 1) * n, :]

    # conv4 + BN + LeakyReLU: single (4N, 2048) @ (2048, 256) dot.
    h4 = jnp.dot(cols4_ref[...], w4_ref[...],
                 preferred_element_type=jnp.float32) + b4_ref[...]
    h4 = jnp.maximum(h4, 0.2 * h4).astype(jnp.bfloat16)

    # conv5 (1x1 output): only taps (2..3, 2..3) see data; accumulate per
    # conv4 position (rows are p4-major, so slices are contiguous).
    acc = jnp.zeros((n, w5_ref.shape[2]), jnp.float32)
    for q in range(4):
        acc = acc + jnp.dot(h4[q * n:(q + 1) * n, :], w5_ref[q],
                            preferred_element_type=jnp.float32)
    y = acc + b5_ref[...]
    y = jnp.maximum(y, 0.2 * y)                  # LeakyReLU(0.2)

    # Flatten is trivial (1x1 spatial); Dropout(0.4) is identity in eval mode.
    logits = jnp.dot(y.astype(jnp.bfloat16), fcw_ref[...],
                     preferred_element_type=jnp.float32) + fcb_ref[...]
    o_ref[...] = 1.0 / (1.0 + jnp.exp(-logits))  # Sigmoid (exact, f32)


def tail_block(cols3dup, w3, b3, w4, b4, w5_stack, b5, fc_w, fc_b, n_batch):
    n_out = fc_w.shape[1]
    return pl.pallas_call(
        _tail_kernel,
        out_shape=jax.ShapeDtypeStruct((n_batch, n_out), jnp.float32),
        grid=(1,),
        in_specs=[
            pl.BlockSpec(cols3dup.shape, lambda i: (0, 0)),
            pl.BlockSpec(w3.shape, lambda i: (0, 0)),
            pl.BlockSpec(b3.shape, lambda i: (0, 0)),
            pl.BlockSpec(w4.shape, lambda i: (0, 0)),
            pl.BlockSpec(b4.shape, lambda i: (0, 0)),
            pl.BlockSpec(w5_stack.shape, lambda i: (0, 0, 0)),
            pl.BlockSpec(b5.shape, lambda i: (0, 0)),
            pl.BlockSpec(fc_w.shape, lambda i: (0, 0)),
            pl.BlockSpec(fc_b.shape, lambda i: (0, 0)),
        ],
        out_specs=pl.BlockSpec((n_batch, n_out), lambda i: (0, 0)),
        scratch_shapes=[pltpu.VMEM((4 * n_batch, 16 * 128), jnp.bfloat16)],
        compiler_params=pltpu.CompilerParams(
            dimension_semantics=("arbitrary",),
            vmem_limit_bytes=32 * 1024 * 1024,
        ),
    )(cols3dup, w3, b3, w4, b4, w5_stack, b5, fc_w, fc_b)


# ------------------------------ JAX glue ----------------------------------- #
def im2col_nhwc(x, kh, kw, stride, pad):
    """x: (N,H,W,C) -> (N*Ho*Wo, kh*kw*C), feature order (kh, kw, C)."""
    n, h, w, c = x.shape
    xp = jnp.pad(x, ((0, 0), (pad, pad), (pad, pad), (0, 0)))
    ho = (h + 2 * pad - kh) // stride + 1
    wo = (w + 2 * pad - kw) // stride + 1
    patches = []
    for i in range(kh):
        for j in range(kw):
            patches.append(
                xp[:, i:i + stride * (ho - 1) + 1:stride,
                      j:j + stride * (wo - 1) + 1:stride, :])   # (N,Ho,Wo,C)
    cols = jnp.stack(patches, axis=3)                           # (N,Ho,Wo,16,C)
    return cols.reshape(n * ho * wo, kh * kw * c), ho, wo


def conv_weight(w, scale=None):
    """(C_out,C_in,kh,kw) conv weight -> (kh*kw*C_in, C_out) matmul weight."""
    if scale is not None:
        w = w * scale[:, None, None, None]
    c_out, c_in, kh, kw = w.shape
    return w.transpose(2, 3, 1, 0).reshape(kh * kw * c_in, c_out)


def bn_fold(bn, eps=0.8):
    scale = bn["gamma"] / jnp.sqrt(bn["var"] + eps)
    shift = bn["beta"] - bn["mean"] * scale
    return scale, shift


def _conv1_tm_max():
    """Full-M tile (grid=1) on single-TC chips; 2-step 'parallel' grid on v7x."""
    try:
        kind = jax.devices()[0].device_kind.lower()
    except Exception:
        kind = ""
    return 1024 if "v7" in kind else 2048


# ---------------------------- parameters ----------------------------------- #
def init_params(key):
    keys = jax.random.split(key, 10)

    def nrm(k, shape, s=0.05):
        return s * jax.random.normal(k, shape, jnp.float32)

    params = {
        "emb":   nrm(keys[0], (10, 100), 1.0),     # nn.Embedding(10, 100)
        "lab_w": nrm(keys[1], (4096, 100)),        # nn.Linear(100, 64*64)
        "lab_b": nrm(keys[2], (4096,)),
        "w1":    nrm(keys[3], (32, 2, 4, 4)),      # Conv2d(2,32,4,2,1)
        "w2":    nrm(keys[4], (64, 32, 4, 4)),     # Conv2d(32,64,4,3,2)
        "w3":    nrm(keys[5], (128, 64, 4, 4)),    # Conv2d(64,128,4,3,2)
        "w4":    nrm(keys[6], (256, 128, 4, 4)),   # Conv2d(128,256,4,3,2)
        "w5":    nrm(keys[7], (512, 256, 4, 4)),   # Conv2d(256,512,4,3,2)
        "fc_w":  nrm(keys[8], (1, 512)),           # nn.Linear(512, 1)
        "fc_b":  nrm(keys[9], (1,)),
    }
    # BatchNorm2d at PyTorch fresh-init values (eval mode), eps=0.8
    for name, c in (("bn2", 64), ("bn3", 128), ("bn4", 256), ("bn5", 512)):
        params[name] = {
            "gamma": jnp.ones((c,), jnp.float32),
            "beta":  jnp.zeros((c,), jnp.float32),
            "mean":  jnp.zeros((c,), jnp.float32),
            "var":   jnp.ones((c,), jnp.float32),
        }
    return params


def prepare_inference_params(params):
    """One-time weight folding: BN into conv weights, label path into a table,
    bf16 casts, FC lane-padding.  Run once outside the per-batch forward."""
    # label_condition = Embedding(10,100) -> Linear(100,4096): a 10-row table.
    lab_table = jnp.dot(params["emb"], params["lab_w"].T) + params["lab_b"]

    s2, b2 = bn_fold(params["bn2"])
    s3, b3 = bn_fold(params["bn3"])
    s4, b4 = bn_fold(params["bn4"])
    s5, b5 = bn_fold(params["bn5"])

    # conv5 only ever sees its (2+ah, 2+aw) taps (1x1 output from a 2x2 input).
    w5s = params["w5"] * s5[:, None, None, None]
    w5_stack = w5s[:, :, 2:4, 2:4].transpose(2, 3, 1, 0).reshape(4, 256, 512)

    # Linear(512,1): pad output to 128 lanes (zeros); column 0 is the real one.
    fc_w_pad = jnp.zeros((512, 128), jnp.float32).at[:, 0].set(params["fc_w"][0])
    fc_b_pad = jnp.zeros((128,), jnp.float32).at[0].set(params["fc_b"][0])

    bf = jnp.bfloat16
    return {
        "lab_table": lab_table,                                   # (10, 4096) f32
        "w1": conv_weight(params["w1"]).astype(bf),               # (32, 32)
        "b1": jnp.zeros((1, 32), jnp.float32),
        "w2": conv_weight(params["w2"], scale=s2).astype(bf),     # (512, 64)
        "b2": b2.reshape(1, -1),
        "w3": conv_weight(params["w3"], scale=s3).astype(bf),     # (1024, 128)
        "b3": b3.reshape(1, -1),
        "w4": conv_weight(params["w4"], scale=s4).astype(bf),     # (2048, 256)
        "b4": b4.reshape(1, -1),
        "w5": w5_stack.astype(bf),                                # (4, 256, 512)
        "b5": b5.reshape(1, -1),
        "fc_w": fc_w_pad.astype(bf),                              # (512, 128)
        "fc_b": fc_b_pad.reshape(1, -1),
    }


# ------------------------------ forward ------------------------------------ #
def discriminator_forward(iparams, img, label):
    n = img.shape[0]

    # label path: gather from the pre-folded (10, 4096) table.
    lab = jnp.take(iparams["lab_table"], label, axis=0).reshape(n, 64, 64, 1)
    img_nhwc = jnp.transpose(img, (0, 2, 3, 1))                    # (N,64,64,1)
    x = jnp.concatenate([img_nhwc, lab], axis=-1).astype(jnp.bfloat16)

    # Conv(2->32, s2, p1) + LeakyReLU                               (N,32,32,32)
    cols1, h1, w1 = im2col_nhwc(x, 4, 4, 2, 1)                     # (2048, 32)
    y1 = fused_matmul(cols1, iparams["w1"], iparams["b1"], "leaky",
                      tm_max=_conv1_tm_max())
    y1 = y1.reshape(n, h1, w1, 32)

    # Conv(32->64, s3, p2) + BN + LeakyReLU                         (N,11,11,64)
    cols2, h2, w2 = im2col_nhwc(y1, 4, 4, 3, 2)                    # (242, 512)
    y2 = fused_matmul(cols2, iparams["w2"], iparams["b2"], "leaky")
    y2 = y2.reshape(n, h2, w2, 64)

    # Fused tail: conv3 + BN + LReLU, conv4 + BN + LReLU, conv5 + BN + LReLU,
    # Flatten, Dropout(0.4)=id, Linear(512,1) (lane-padded), Sigmoid.
    cols3, _, _ = im2col_nhwc(y2, 4, 4, 3, 2)                      # (N*16, 1024)
    cols3dup = jnp.take(cols3, _conv4_gather_indices(n), axis=0)   # (25N, 1024)
    out = tail_block(cols3dup, iparams["w3"], iparams["b3"],
                     iparams["w4"], iparams["b4"],
                     iparams["w5"], iparams["b5"],
                     iparams["fc_w"], iparams["fc_b"], n)          # (N, 128)
    return out[:, :1]                                              # (N, 1)


# -------------------------------- main -------------------------------------- #
if __name__ == "__main__":
    key = jax.random.PRNGKey(0)
    k_img, k_lab, k_par = jax.random.split(key, 3)

    img = jax.random.normal(k_img, (2, 1, 64, 64), jnp.float32)
    label = jax.random.randint(k_lab, (2,), 0, 10)

    params = init_params(k_par)
    iparams = prepare_inference_params(params)      # one-time weight folding

    out = jax.jit(discriminator_forward)(iparams, img, label)
    out = jax.block_until_ready(out)

    assert out.shape == (2, 1), out.shape
    assert bool(jnp.all(jnp.isfinite(out)))
    assert bool(jnp.all((out >= 0.0) & (out <= 1.0)))
    print("KERNEL_OK")
</pallas_src>

<mosaic_0001>
module attributes {stable_mosaic.version = 11 : i64} {
  func.func @_fused_matmul_kernel(%arg0: i32, %arg1: memref<2048x32xbf16, #tpu.memory_space<vmem>>, %arg2: memref<32x32xbf16, #tpu.memory_space<vmem>>, %arg3: memref<1x32xf32, #tpu.memory_space<vmem>>, %arg4: memref<2048x32xbf16, #tpu.memory_space<vmem>>) attributes {dimension_semantics = [#tpu.dimension_semantics<parallel>], iteration_bounds = array<i64: 1>, scalar_prefetch = 0 : i64, scratch_operands = 0 : i64, tpu.core_type = #tpu.core_type<tc>, window_params = [{transform_indices = @transform_0, window_bounds = array<i64: 2048, 32>}, {pipeline_mode = #tpu.pipeline_mode<synchronous>, transform_indices = @transform_1, window_bounds = array<i64: 32, 32>}, {pipeline_mode = #tpu.pipeline_mode<synchronous>, transform_indices = @transform_2, window_bounds = array<i64: 1, 32>}, {transform_indices = @transform_3, window_bounds = array<i64: 2048, 32>}]} {
    %c0 = arith.constant 0 : index
    %c0_0 = arith.constant 0 : index
    %0 = vector.load %arg1[%c0, %c0_0] : memref<2048x32xbf16, #tpu.memory_space<vmem>>, vector<2048x32xbf16>
    %c0_1 = arith.constant 0 : index
    %c0_2 = arith.constant 0 : index
    %1 = vector.load %arg2[%c0_1, %c0_2] : memref<32x32xbf16, #tpu.memory_space<vmem>>, vector<32x32xbf16>
    %cst = arith.constant dense<0.000000e+00> : vector<2048x32xf32>
    %2 = tpu.matmul %0, %1, %cst {dimension_numbers = #tpu.dot_dimension_numbers<[1], [0], [0], [1], [0, 0, 1, 1], [], []>} : vector<2048x32xbf16>, vector<32x32xbf16>, vector<2048x32xf32> -> vector<2048x32xf32>
    %c0_3 = arith.constant 0 : index
    %c0_4 = arith.constant 0 : index
    %3 = vector.load %arg3[%c0_3, %c0_4] : memref<1x32xf32, #tpu.memory_space<vmem>>, vector<1x32xf32>
    %4 = vector.broadcast %3 : vector<1x32xf32> to vector<2048x32xf32>
    %5 = arith.addf %2, %4 : vector<2048x32xf32>
    %cst_5 = arith.constant 2.000000e-01 : f32
    %6 = vector.broadcast %cst_5 : f32 to vector<2048x32xf32>
    %7 = arith.mulf %6, %5 : vector<2048x32xf32>
    %8 = arith.maximumf %5, %7 : vector<2048x32xf32>
    %9 = arith.truncf %8 : vector<2048x32xf32> to vector<2048x32xbf16>
    %c0_6 = arith.constant 0 : index
    %c0_7 = arith.constant 0 : index
    %10 = vector.load %arg4[%c0_6, %c0_7] : memref<2048x32xbf16, #tpu.memory_space<vmem>>, vector<2048x32xbf16>
    tpu.vector_store %arg4[%c0_6, %c0_7], %9 {strides = array<i32>} : memref<2048x32xbf16, #tpu.memory_space<vmem>>, vector<2048x32xbf16>,
    return
  }
  func.func @transform_0(%arg0: i32) -> (i32, i32) {
    %c0_i32 = arith.constant 0 : i32
    %c0_i32_0 = arith.constant 0 : i32
    return %arg0, %c0_i32 : i32, i32
  }
  func.func @transform_1(%arg0: i32) -> (i32, i32) {
    %c0_i32 = arith.constant 0 : i32
    %c0_i32_0 = arith.constant 0 : i32
    %c0_i32_1 = arith.constant 0 : i32
    return %c0_i32, %c0_i32_0 : i32, i32
  }
  func.func @transform_2(%arg0: i32) -> (i32, i32) {
    %c0_i32 = arith.constant 0 : i32
    %c0_i32_0 = arith.constant 0 : i32
    %c0_i32_1 = arith.constant 0 : i32
    return %c0_i32, %c0_i32_0 : i32, i32
  }
  func.func @transform_3(%arg0: i32) -> (i32, i32) {
    %c0_i32 = arith.constant 0 : i32
    %c0_i32_0 = arith.constant 0 : i32
    return %arg0, %c0_i32 : i32, i32
  }
}

module attributes {stable_mosaic.version = 11 : i64} {
  func.func @_fused_matmul_kernel(%arg0: i32, %arg1: memref<242x512xbf16, #tpu.memory_space<vmem>>, %arg2: memref<512x64xbf16, #tpu.memory_space<vmem>>, %arg3: memref<1x64xf32, #tpu.memory_space<vmem>>, %arg4: memref<242x64xbf16, #tpu.memory_space<vmem>>) attributes {dimension_semantics = [#tpu.dimension_semantics<parallel>], iteration_bounds = array<i64: 1>, scalar_prefetch = 0 : i64, scratch_operands = 0 : i64, tpu.core_type = #tpu.core_type<tc>, window_params = [{transform_indices = @transform_0, window_bounds = array<i64: 242, 512>}, {pipeline_mode = #tpu.pipeline_mode<synchronous>, transform_indices = @transform_1, window_bounds = array<i64: 512, 64>}, {pipeline_mode = #tpu.pipeline_mode<synchronous>, transform_indices = @transform_2, window_bounds = array<i64: 1, 64>}, {transform_indices = @transform_3, window_bounds = array<i64: 242, 64>}]} {
    %c0 = arith.constant 0 : index
    %c0_0 = arith.constant 0 : index
    %0 = vector.load %arg1[%c0, %c0_0] : memref<242x512xbf16, #tpu.memory_space<vmem>>, vector<242x512xbf16>
    %c0_1 = arith.constant 0 : index
    %c0_2 = arith.constant 0 : index
    %1 = vector.load %arg2[%c0_1, %c0_2] : memref<512x64xbf16, #tpu.memory_space<vmem>>, vector<512x64xbf16>
    %cst = arith.constant dense<0.000000e+00> : vector<242x64xf32>
    %2 = tpu.matmul %0, %1, %cst {dimension_numbers = #tpu.dot_dimension_numbers<[1], [0], [0], [1], [0, 0, 1, 1], [], []>} : vector<242x512xbf16>, vector<512x64xbf16>, vector<242x64xf32> -> vector<242x64xf32>
    %c0_3 = arith.constant 0 : index
    %c0_4 = arith.constant 0 : index
    %3 = vector.load %arg3[%c0_3, %c0_4] : memref<1x64xf32, #tpu.memory_space<vmem>>, vector<1x64xf32>
    %4 = vector.broadcast %3 : vector<1x64xf32> to vector<242x64xf32>
    %5 = arith.addf %2, %4 : vector<242x64xf32>
    %cst_5 = arith.constant 2.000000e-01 : f32
    %6 = vector.broadcast %cst_5 : f32 to vector<242x64xf32>
    %7 = arith.mulf %6, %5 : vector<242x64xf32>
    %8 = arith.maximumf %5, %7 : vector<242x64xf32>
    %9 = arith.truncf %8 : vector<242x64xf32> to vector<242x64xbf16>
    %c0_6 = arith.constant 0 : index
    %c0_7 = arith.constant 0 : index
    %10 = vector.load %arg4[%c0_6, %c0_7] : memref<242x64xbf16, #tpu.memory_space<vmem>>, vector<242x64xbf16>
    tpu.vector_store %arg4[%c0_6, %c0_7], %9 {strides = array<i32>} : memref<242x64xbf16, #tpu.memory_space<vmem>>, vector<242x64xbf16>,
    return
  }
  func.func @transform_0(%arg0: i32) -> (i32, i32) {
    %c0_i32 = arith.constant 0 : i32
    %c0_i32_0 = arith.constant 0 : i32
    return %arg0, %c0_i32 : i32, i32
  }
  func.func @transform_1(%arg0: i32) -> (i32, i32) {
    %c0_i32 = arith.constant 0 : i32
    %c0_i32_0 = arith.constant 0 : i32
    %c0_i32_1 = arith.constant 0 : i32
    return %c0_i32, %c0_i32_0 : i32, i32
  }
  func.func @transform_2(%arg0: i32) -> (i32, i32) {
    %c0_i32 = arith.constant 0 : i32
    %c0_i32_0 = arith.constant 0 : i32
    %c0_i32_1 = arith.constant 0 : i32
    return %c0_i32, %c0_i32_0 : i32, i32
  }
  func.func @transform_3(%arg0: i32) -> (i32, i32) {
    %c0_i32 = arith.constant 0 : i32
    %c0_i32_0 = arith.constant 0 : i32
    return %arg0, %c0_i32 : i32, i32
  }
}

module attributes {stable_mosaic.version = 11 : i64} {
  func.func @_tail_kernel(%arg0: i32, %arg1: memref<50x1024xbf16, #tpu.memory_space<vmem>>, %arg2: memref<1024x128xbf16, #tpu.memory_space<vmem>>, %arg3: memref<1x128xf32, #tpu.memory_space<vmem>>, %arg4: memref<2048x256xbf16, #tpu.memory_space<vmem>>, %arg5: memref<1x256xf32, #tpu.memory_space<vmem>>, %arg6: memref<4x256x512xbf16, #tpu.memory_space<vmem>>, %arg7: memref<1x512xf32, #tpu.memory_space<vmem>>, %arg8: memref<512x128xbf16, #tpu.memory_space<vmem>>, %arg9: memref<1x128xf32, #tpu.memory_space<vmem>>, %arg10: memref<2x128xf32, #tpu.memory_space<vmem>>, %arg11: memref<8x2048xbf16, #tpu.memory_space<vmem>>) attributes {dimension_semantics = [#tpu.dimension_semantics<arbitrary>], iteration_bounds = array<i64: 1>, scalar_prefetch = 0 : i64, scratch_operands = 1 : i64, tpu.core_type = #tpu.core_type<tc>, window_params = [{pipeline_mode = #tpu.pipeline_mode<synchronous>, transform_indices = @transform_0, window_bounds = array<i64: 50, 1024>}, {pipeline_mode = #tpu.pipeline_mode<synchronous>, transform_indices = @transform_1, window_bounds = array<i64: 1024, 128>}, {pipeline_mode = #tpu.pipeline_mode<synchronous>, transform_indices = @transform_2, window_bounds = array<i64: 1, 128>}, {pipeline_mode = #tpu.pipeline_mode<synchronous>, transform_indices = @transform_3, window_bounds = array<i64: 2048, 256>}, {pipeline_mode = #tpu.pipeline_mode<synchronous>, transform_indices = @transform_4, window_bounds = array<i64: 1, 256>}, {pipeline_mode = #tpu.pipeline_mode<synchronous>, transform_indices = @transform_5, window_bounds = array<i64: 4, 256, 512>}, {pipeline_mode = #tpu.pipeline_mode<synchronous>, transform_indices = @transform_6, window_bounds = array<i64: 1, 512>}, {pipeline_mode = #tpu.pipeline_mode<synchronous>, transform_indices = @transform_7, window_bounds = array<i64: 512, 128>}, {pipeline_mode = #tpu.pipeline_mode<synchronous>, transform_indices = @transform_8, window_bounds = array<i64: 1, 128>}, {pipeline_mode = #tpu.pipeline_mode<synchronous>, transform_indices = @transform_9, window_bounds = array<i64: 2, 128>}]} {
    %c0 = arith.constant 0 : index
    %c0_0 = arith.constant 0 : index
    %0 = vector.load %arg1[%c0, %c0_0] : memref<50x1024xbf16, #tpu.memory_space<vmem>>, vector<50x1024xbf16>
    %c0_1 = arith.constant 0 : index
    %c0_2 = arith.constant 0 : index
    %1 = vector.load %arg2[%c0_1, %c0_2] : memref<1024x128xbf16, #tpu.memory_space<vmem>>, vector<1024x128xbf16>
    %cst = arith.constant dense<0.000000e+00> : vector<50x128xf32>
    %2 = tpu.matmul %0, %1, %cst {dimension_numbers = #tpu.dot_dimension_numbers<[1], [0], [0], [1], [0, 0, 1, 1], [], []>} : vector<50x1024xbf16>, vector<1024x128xbf16>, vector<50x128xf32> -> vector<50x128xf32>
    %c0_3 = arith.constant 0 : index
    %c0_4 = arith.constant 0 : index
    %3 = vector.load %arg3[%c0_3, %c0_4] : memref<1x128xf32, #tpu.memory_space<vmem>>, vector<1x128xf32>
    %4 = vector.broadcast %3 : vector<1x128xf32> to vector<50x128xf32>
    %5 = arith.addf %2, %4 : vector<50x128xf32>
    %cst_5 = arith.constant 2.000000e-01 : f32
    %6 = vector.broadcast %cst_5 : f32 to vector<50x128xf32>
    %7 = arith.mulf %6, %5 : vector<50x128xf32>
    %8 = arith.maximumf %5, %7 : vector<50x128xf32>
    %9 = arith.truncf %8 : vector<50x128xf32> to vector<50x128xbf16>
    %cst_6 = arith.constant 0.000000e+00 : bf16
    %10 = vector.broadcast %cst_6 : bf16 to vector<8x2048xbf16>
    %c0_7 = arith.constant 0 : index
    %c0_8 = arith.constant 0 : index
    %11 = vector.load %arg11[%c0_7, %c0_8] : memref<8x2048xbf16, #tpu.memory_space<vmem>>, vector<8x2048xbf16>
    tpu.vector_store %arg11[%c0_7, %c0_8], %10 {strides = array<i32>} : memref<8x2048xbf16, #tpu.memory_space<vmem>>, vector<8x2048xbf16>,
    %12 = vector.extract_strided_slice %9 {offsets = [0, 0], sizes = [2, 128], strides = [1, 1]} : vector<50x128xbf16> to vector<2x128xbf16>
    %c0_9 = arith.constant 0 : index
    %c1280 = arith.constant 1280 : index
    %13 = vector.load %arg11[%c0_9, %c1280] : memref<8x2048xbf16, #tpu.memory_space<vmem>>, vector<2x128xbf16>
    tpu.vector_store %arg11[%c0_9, %c1280], %12 {strides = array<i32>} : memref<8x2048xbf16, #tpu.memory_space<vmem>>, vector<2x128xbf16>,
    %14 = vector.extract_strided_slice %9 {offsets = [2, 0], sizes = [2, 128], strides = [1, 1]} : vector<50x128xbf16> to vector<2x128xbf16>
    %c0_10 = arith.constant 0 : index
    %c1408 = arith.constant 1408 : index
    %15 = vector.load %arg11[%c0_10, %c1408] : memref<8x2048xbf16, #tpu.memory_space<vmem>>, vector<2x128xbf16>
    tpu.vector_store %arg11[%c0_10, %c1408], %14 {strides = array<i32>} : memref<8x2048xbf16, #tpu.memory_space<vmem>>, vector<2x128xbf16>,
    %16 = vector.extract_strided_slice %9 {offsets = [4, 0], sizes = [2, 128], strides = [1, 1]} : vector<50x128xbf16> to vector<2x128xbf16>
    %c2 = arith.constant 2 : index
    %c1024 = arith.constant 1024 : index
    %17 = vector.load %arg11[%c2, %c1024] : memref<8x2048xbf16, #tpu.memory_space<vmem>>, vector<2x128xbf16>
    tpu.vector_store %arg11[%c2, %c1024], %16 {strides = array<i32>} : memref<8x2048xbf16, #tpu.memory_space<vmem>>, vector<2x128xbf16>,
    %18 = vector.extract_strided_slice %9 {offsets = [6, 0], sizes = [2, 128], strides = [1, 1]} : vector<50x128xbf16> to vector<2x128xbf16>
    %c2_11 = arith.constant 2 : index
    %c1152 = arith.constant 1152 : index
    %19 = vector.load %arg11[%c2_11, %c1152] : memref<8x2048xbf16, #tpu.memory_space<vmem>>, vector<2x128xbf16>
    tpu.vector_store %arg11[%c2_11, %c1152], %18 {strides = array<i32>} : memref<8x2048xbf16, #tpu.memory_space<vmem>>, vector<2x128xbf16>,
    %20 = vector.extract_strided_slice %9 {offsets = [8, 0], sizes = [2, 128], strides = [1, 1]} : vector<50x128xbf16> to vector<2x128xbf16>
    %c2_12 = arith.constant 2 : index
    %c1280_13 = arith.constant 1280 : index
    %21 = vector.load %arg11[%c2_12, %c1280_13] : memref<8x2048xbf16, #tpu.memory_space<vmem>>, vector<2x128xbf16>
    tpu.vector_store %arg11[%c2_12, %c1280_13], %20 {strides = array<i32>} : memref<8x2048xbf16, #tpu.memory_space<vmem>>, vector<2x128xbf16>,
    %22 = vector.extract_strided_slice %9 {offsets = [10, 0], sizes = [2, 128], strides = [1, 1]} : vector<50x128xbf16> to vector<2x128xbf16>
    %c0_14 = arith.constant 0 : index
    %c1792 = arith.constant 1792 : index
    %23 = vector.load %arg11[%c0_14, %c1792] : memref<8x2048xbf16, #tpu.memory_space<vmem>>, vector<2x128xbf16>
    tpu.vector_store %arg11[%c0_14, %c1792], %22 {strides = array<i32>} : memref<8x2048xbf16, #tpu.memory_space<vmem>>, vector<2x128xbf16>,
    %24 = vector.extract_strided_slice %9 {offsets = [12, 0], sizes = [2, 128], strides = [1, 1]} : vector<50x128xbf16> to vector<2x128xbf16>
    %c0_15 = arith.constant 0 : index
    %c1920 = arith.constant 1920 : index
    %25 = vector.load %arg11[%c0_15, %c1920] : memref<8x2048xbf16, #tpu.memory_space<vmem>>, vector<2x128xbf16>
    tpu.vector_store %arg11[%c0_15, %c1920], %24 {strides = array<i32>} : memref<8x2048xbf16, #tpu.memory_space<vmem>>, vector<2x128xbf16>,
    %26 = vector.extract_strided_slice %9 {offsets = [14, 0], sizes = [2, 128], strides = [1, 1]} : vector<50x128xbf16> to vector<2x128xbf16>
    %c2_16 = arith.constant 2 : index
    %c1536 = arith.constant 1536 : index
    %27 = vector.load %arg11[%c2_16, %c1536] : memref<8x2048xbf16, #tpu.memory_space<vmem>>, vector<2x128xbf16>
    tpu.vector_store %arg11[%c2_16, %c1536], %26 {strides = array<i32>} : memref<8x2048xbf16, #tpu.memory_space<vmem>>, vector<2x128xbf16>,
    %28 = vector.extract_strided_slice %9 {offsets = [16, 0], sizes = [2, 128], strides = [1, 1]} : vector<50x128xbf16> to vector<2x128xbf16>
    %c2_17 = arith.constant 2 : index
    %c1664 = arith.constant 1664 : index
    %29 = vector.load %arg11[%c2_17, %c1664] : memref<8x2048xbf16, #tpu.memory_space<vmem>>, vector<2x128xbf16>
    tpu.vector_store %arg11[%c2_17, %c1664], %28 {strides = array<i32>} : memref<8x2048xbf16, #tpu.memory_space<vmem>>, vector<2x128xbf16>,
    %30 = vector.extract_strided_slice %9 {offsets = [18, 0], sizes = [2, 128], strides = [1, 1]} : vector<50x128xbf16> to vector<2x128xbf16>
    %c2_18 = arith.constant 2 : index
    %c1792_19 = arith.constant 1792 : index
    %31 = vector.load %arg11[%c2_18, %c1792_19] : memref<8x2048xbf16, #tpu.memory_space<vmem>>, vector<2x128xbf16>
    tpu.vector_store %arg11[%c2_18, %c1792_19], %30 {strides = array<i32>} : memref<8x2048xbf16, #tpu.memory_space<vmem>>, vector<2x128xbf16>,
    %32 = vector.extract_strided_slice %9 {offsets = [20, 0], sizes = [2, 128], strides = [1, 1]} : vector<50x128xbf16> to vector<2x128xbf16>
    %c4 = arith.constant 4 : index
    %c256 = arith.constant 256 : index
    %33 = vector.load %arg11[%c4, %c256] : memref<8x2048xbf16, #tpu.memory_space<vmem>>, vector<2x128xbf16>
    tpu.vector_store %arg11[%c4, %c256], %32 {strides = array<i32>} : memref<8x2048xbf16, #tpu.memory_space<vmem>>, vector<2x128xbf16>,
    %34 = vector.extract_strided_slice %9 {offsets = [22, 0], sizes = [2, 128], strides = [1, 1]} : vector<50x128xbf16> to vector<2x128xbf16>
    %c4_20 = arith.constant 4 : index
    %c384 = arith.constant 384 : index
    %35 = vector.load %arg11[%c4_20, %c384] : memref<8x2048xbf16, #tpu.memory_space<vmem>>, vector<2x128xbf16>
    tpu.vector_store %arg11[%c4_20, %c384], %34 {strides = array<i32>} : memref<8x2048xbf16, #tpu.memory_space<vmem>>, vector<2x128xbf16>,
    %36 = vector.extract_strided_slice %9 {offsets = [24, 0], sizes = [2, 128], strides = [1, 1]} : vector<50x128xbf16> to vector<2x128xbf16>
    %c6 = arith.constant 6 : index
    %c0_21 = arith.constant 0 : index
    %37 = vector.load %arg11[%c6, %c0_21] : memref<8x2048xbf16, #tpu.memory_space<vmem>>, vector<2x128xbf16>
    tpu.vector_store %arg11[%c6, %c0_21], %36 {strides = array<i32>} : memref<8x2048xbf16, #tpu.memory_space<vmem>>, vector<2x128xbf16>,
    %38 = vector.extract_strided_slice %9 {offsets = [26, 0], sizes = [2, 128], strides = [1, 1]} : vector<50x128xbf16> to vector<2x128xbf16>
    %c6_22 = arith.constant 6 : index
    %c128 = arith.constant 128 : index
    %39 = vector.load %arg11[%c6_22, %c128] : memref<8x2048xbf16, #tpu.memory_space<vmem>>, vector<2x128xbf16>
    tpu.vector_store %arg11[%c6_22, %c128], %38 {strides = array<i32>} : memref<8x2048xbf16, #tpu.memory_space<vmem>>, vector<2x128xbf16>,
    %40 = vector.extract_strided_slice %9 {offsets = [28, 0], sizes = [2, 128], strides = [1, 1]} : vector<50x128xbf16> to vector<2x128xbf16>
    %c6_23 = arith.constant 6 : index
    %c256_24 = arith.constant 256 : index
    %41 = vector.load %arg11[%c6_23, %c256_24] : memref<8x2048xbf16, #tpu.memory_space<vmem>>, vector<2x128xbf16>
    tpu.vector_store %arg11[%c6_23, %c256_24], %40 {strides = array<i32>} : memref<8x2048xbf16, #tpu.memory_space<vmem>>, vector<2x128xbf16>,
    %42 = vector.extract_strided_slice %9 {offsets = [30, 0], sizes = [2, 128], strides = [1, 1]} : vector<50x128xbf16> to vector<2x128xbf16>
    %c4_25 = arith.constant 4 : index
    %c768 = arith.constant 768 : index
    %43 = vector.load %arg11[%c4_25, %c768] : memref<8x2048xbf16, #tpu.memory_space<vmem>>, vector<2x128xbf16>
    tpu.vector_store %arg11[%c4_25, %c768], %42 {strides = array<i32>} : memref<8x2048xbf16, #tpu.memory_space<vmem>>, vector<2x128xbf16>,
    %44 = vector.extract_strided_slice %9 {offsets = [32, 0], sizes = [2, 128], strides = [1, 1]} : vector<50x128xbf16> to vector<2x128xbf16>
    %c4_26 = arith.constant 4 : index
    %c896 = arith.constant 896 : index
    %45 = vector.load %arg11[%c4_26, %c896] : memref<8x2048xbf16, #tpu.memory_space<vmem>>, vector<2x128xbf16>
    tpu.vector_store %arg11[%c4_26, %c896], %44 {strides = array<i32>} : memref<8x2048xbf16, #tpu.memory_space<vmem>>, vector<2x128xbf16>,
    %46 = vector.extract_strided_slice %9 {offsets = [34, 0], sizes = [2, 128], strides = [1, 1]} : vector<50x128xbf16> to vector<2x128xbf16>
    %c6_27 = arith.constant 6 : index
    %c512 = arith.constant 512 : index
    %47 = vector.load %arg11[%c6_27, %c512] : memref<8x2048xbf16, #tpu.memory_space<vmem>>, vector<2x128xbf16>
    tpu.vector_store %arg11[%c6_27, %c512], %46 {strides = array<i32>} : memref<8x2048xbf16, #tpu.memory_space<vmem>>, vector<2x128xbf16>,
    %48 = vector.extract_strided_slice %9 {offsets = [36, 0], sizes = [2, 128], strides = [1, 1]} : vector<50x128xbf16> to vector<2x128xbf16>
    %c6_28 = arith.constant 6 : index
    %c640 = arith.constant 640 : index
    %49 = vector.load %arg11[%c6_28, %c640] : memref<8x2048xbf16, #tpu.memory_space<vmem>>, vector<2x128xbf16>
    tpu.vector_store %arg11[%c6_28, %c640], %48 {strides = array<i32>} : memref<8x2048xbf16, #tpu.memory_space<vmem>>, vector<2x128xbf16>,
    %50 = vector.extract_strided_slice %9 {offsets = [38, 0], sizes = [2, 128], strides = [1, 1]} : vector<50x128xbf16> to vector<2x128xbf16>
    %c6_29 = arith.constant 6 : index
    %c768_30 = arith.constant 768 : index
    %51 = vector.load %arg11[%c6_29, %c768_30] : memref<8x2048xbf16, #tpu.memory_space<vmem>>, vector<2x128xbf16>
    tpu.vector_store %arg11[%c6_29, %c768_30], %50 {strides = array<i32>} : memref<8x2048xbf16, #tpu.memory_space<vmem>>, vector<2x128xbf16>,
    %52 = vector.extract_strided_slice %9 {offsets = [40, 0], sizes = [2, 128], strides = [1, 1]} : vector<50x128xbf16> to vector<2x128xbf16>
    %c4_31 = arith.constant 4 : index
    %c1280_32 = arith.constant 1280 : index
    %53 = vector.load %arg11[%c4_31, %c1280_32] : memref<8x2048xbf16, #tpu.memory_space<vmem>>, vector<2x128xbf16>
    tpu.vector_store %arg11[%c4_31, %c1280_32], %52 {strides = array<i32>} : memref<8x2048xbf16, #tpu.memory_space<vmem>>, vector<2x128xbf16>,
    %54 = vector.extract_strided_slice %9 {offsets = [42, 0], sizes = [2, 128], strides = [1, 1]} : vector<50x128xbf16> to vector<2x128xbf16>
    %c4_33 = arith.constant 4 : index
    %c1408_34 = arith.constant 1408 : index
    %55 = vector.load %arg11[%c4_33, %c1408_34] : memref<8x2048xbf16, #tpu.memory_space<vmem>>, vector<2x128xbf16>
    tpu.vector_store %arg11[%c4_33, %c1408_34], %54 {strides = array<i32>} : memref<8x2048xbf16, #tpu.memory_space<vmem>>, vector<2x128xbf16>,
    %56 = vector.extract_strided_slice %9 {offsets = [44, 0], sizes = [2, 128], strides = [1, 1]} : vector<50x128xbf16> to vector<2x128xbf16>
    %c6_35 = arith.constant 6 : index
    %c1024_36 = arith.constant 1024 : index
    %57 = vector.load %arg11[%c6_35, %c1024_36] : memref<8x2048xbf16, #tpu.memory_space<vmem>>, vector<2x128xbf16>
    tpu.vector_store %arg11[%c6_35, %c1024_36], %56 {strides = array<i32>} : memref<8x2048xbf16, #tpu.memory_space<vmem>>, vector<2x128xbf16>,
    %58 = vector.extract_strided_slice %9 {offsets = [46, 0], sizes = [2, 128], strides = [1, 1]} : vector<50x128xbf16> to vector<2x128xbf16>
    %c6_37 = arith.constant 6 : index
    %c1152_38 = arith.constant 1152 : index
    %59 = vector.load %arg11[%c6_37, %c1152_38] : memref<8x2048xbf16, #tpu.memory_space<vmem>>, vector<2x128xbf16>
    tpu.vector_store %arg11[%c6_37, %c1152_38], %58 {strides = array<i32>} : memref<8x2048xbf16, #tpu.memory_space<vmem>>, vector<2x128xbf16>,
    %60 = vector.extract_strided_slice %9 {offsets = [48, 0], sizes = [2, 128], strides = [1, 1]} : vector<50x128xbf16> to vector<2x128xbf16>
    %c6_39 = arith.constant 6 : index
    %c1280_40 = arith.constant 1280 : index
    %61 = vector.load %arg11[%c6_39, %c1280_40] : memref<8x2048xbf16, #tpu.memory_space<vmem>>, vector<2x128xbf16>
    tpu.vector_store %arg11[%c6_39, %c1280_40], %60 {strides = array<i32>} : memref<8x2048xbf16, #tpu.memory_space<vmem>>, vector<2x128xbf16>,
    %c0_41 = arith.constant 0 : index
    %c0_42 = arith.constant 0 : index
    %62 = vector.load %arg11[%c0_41, %c0_42] : memref<8x2048xbf16, #tpu.memory_space<vmem>>, vector<8x2048xbf16>
    %c0_43 = arith.constant 0 : index
    %c0_44 = arith.constant 0 : index
    %63 = vector.load %arg4[%c0_43, %c0_44] : memref<2048x256xbf16, #tpu.memory_space<vmem>>, vector<2048x256xbf16>
    %cst_45 = arith.constant dense<0.000000e+00> : vector<8x256xf32>
    %64 = tpu.matmul %62, %63, %cst_45 {dimension_numbers = #tpu.dot_dimension_numbers<[1], [0], [0], [1], [0, 0, 1, 1], [], []>} : vector<8x2048xbf16>, vector<2048x256xbf16>, vector<8x256xf32> -> vector<8x256xf32>
    %c0_46 = arith.constant 0 : index
    %c0_47 = arith.constant 0 : index
    %65 = vector.load %arg5[%c0_46, %c0_47] : memref<1x256xf32, #tpu.memory_space<vmem>>, vector<1x256xf32>
    %66 = vector.broadcast %65 : vector<1x256xf32> to vector<8x256xf32>
    %67 = arith.addf %64, %66 : vector<8x256xf32>
    %cst_48 = arith.constant 2.000000e-01 : f32
    %68 = vector.broadcast %cst_48 : f32 to vector<8x256xf32>
    %69 = arith.mulf %68, %67 : vector<8x256xf32>
    %70 = arith.maximumf %67, %69 : vector<8x256xf32>
    %71 = arith.truncf %70 : vector<8x256xf32> to vector<8x256xbf16>
    %cst_49 = arith.constant 0.000000e+00 : f32
    %72 = vector.broadcast %cst_49 : f32 to vector<2x512xf32>
    %73 = vector.extract_strided_slice %71 {offsets = [0, 0], sizes = [2, 256], strides = [1, 1]} : vector<8x256xbf16> to vector<2x256xbf16>
    %c0_50 = arith.constant 0 : index
    %c0_51 = arith.constant 0 : index
    %c0_52 = arith.constant 0 : index
    %74 = vector.load %arg6[%c0_50, %c0_51, %c0_52] : memref<4x256x512xbf16, #tpu.memory_space<vmem>>, vector<1x256x512xbf16>
    %75 = vector.shape_cast %74 : vector<1x256x512xbf16> to vector<256x512xbf16>
    %cst_53 = arith.constant dense<0.000000e+00> : vector<2x512xf32>
    %76 = tpu.matmul %73, %75, %cst_53 {dimension_numbers = #tpu.dot_dimension_numbers<[1], [0], [0], [1], [0, 0, 1, 1], [], []>} : vector<2x256xbf16>, vector<256x512xbf16>, vector<2x512xf32> -> vector<2x512xf32>
    %77 = arith.addf %72, %76 : vector<2x512xf32>
    %78 = vector.extract_strided_slice %71 {offsets = [2, 0], sizes = [2, 256], strides = [1, 1]} : vector<8x256xbf16> to vector<2x256xbf16>
    %c1 = arith.constant 1 : index
    %c0_54 = arith.constant 0 : index
    %c0_55 = arith.constant 0 : index
    %79 = vector.load %arg6[%c1, %c0_54, %c0_55] : memref<4x256x512xbf16, #tpu.memory_space<vmem>>, vector<1x256x512xbf16>
    %80 = vector.shape_cast %79 : vector<1x256x512xbf16> to vector<256x512xbf16>
    %cst_56 = arith.constant dense<0.000000e+00> : vector<2x512xf32>
    %81 = tpu.matmul %78, %80, %cst_56 {dimension_numbers = #tpu.dot_dimension_numbers<[1], [0], [0], [1], [0, 0, 1, 1], [], []>} : vector<2x256xbf16>, vector<256x512xbf16>, vector<2x512xf32> -> vector<2x512xf32>
    %82 = arith.addf %77, %81 : vector<2x512xf32>
    %83 = vector.extract_strided_slice %71 {offsets = [4, 0], sizes = [2, 256], strides = [1, 1]} : vector<8x256xbf16> to vector<2x256xbf16>
    %c2_57 = arith.constant 2 : index
    %c0_58 = arith.constant 0 : index
    %c0_59 = arith.constant 0 : index
    %84 = vector.load %arg6[%c2_57, %c0_58, %c0_59] : memref<4x256x512xbf16, #tpu.memory_space<vmem>>, vector<1x256x512xbf16>
    %85 = vector.shape_cast %84 : vector<1x256x512xbf16> to vector<256x512xbf16>
    %cst_60 = arith.constant dense<0.000000e+00> : vector<2x512xf32>
    %86 = tpu.matmul %83, %85, %cst_60 {dimension_numbers = #tpu.dot_dimension_numbers<[1], [0], [0], [1], [0, 0, 1, 1], [], []>} : vector<2x256xbf16>, vector<256x512xbf16>, vector<2x512xf32> -> vector<2x512xf32>
    %87 = arith.addf %82, %86 : vector<2x512xf32>
    %88 = vector.extract_strided_slice %71 {offsets = [6, 0], sizes = [2, 256], strides = [1, 1]} : vector<8x256xbf16> to vector<2x256xbf16>
    %c3 = arith.constant 3 : index
    %c0_61 = arith.constant 0 : index
    %c0_62 = arith.constant 0 : index
    %89 = vector.load %arg6[%c3, %c0_61, %c0_62] : memref<4x256x512xbf16, #tpu.memory_space<vmem>>, vector<1x256x512xbf16>
    %90 = vector.shape_cast %89 : vector<1x256x512xbf16> to vector<256x512xbf16>
    %cst_63 = arith.constant dense<0.000000e+00> : vector<2x512xf32>
    %91 = tpu.matmul %88, %90, %cst_63 {dimension_numbers = #tpu.dot_dimension_numbers<[1], [0], [0], [1], [0, 0, 1, 1], [], []>} : vector<2x256xbf16>, vector<256x512xbf16>, vector<2x512xf32> -> vector<2x512xf32>
    %92 = arith.addf %87, %91 : vector<2x512xf32>
    %c0_64 = arith.constant 0 : index
    %c0_65 = arith.constant 0 : index
    %93 = vector.load %arg7[%c0_64, %c0_65] : memref<1x512xf32, #tpu.memory_space<vmem>>, vector<1x512xf32>
    %94 = vector.broadcast %93 : vector<1x512xf32> to vector<2x512xf32>
    %95 = arith.addf %92, %94 : vector<2x512xf32>
    %cst_66 = arith.constant 2.000000e-01 : f32
    %96 = vector.broadcast %cst_66 : f32 to vector<2x512xf32>
    %97 = arith.mulf %96, %95 : vector<2x512xf32>
    %98 = arith.maximumf %95, %97 : vector<2x512xf32>
    %99 = arith.truncf %98 : vector<2x512xf32> to vector<2x512xbf16>
    %c0_67 = arith.constant 0 : index
    %c0_68 = arith.constant 0 : index
    %100 = vector.load %arg8[%c0_67, %c0_68] : memref<512x128xbf16, #tpu.memory_space<vmem>>, vector<512x128xbf16>
    %cst_69 = arith.constant dense<0.000000e+00> : vector<2x128xf32>
    %101 = tpu.matmul %99, %100, %cst_69 {dimension_numbers = #tpu.dot_dimension_numbers<[1], [0], [0], [1], [0, 0, 1, 1], [], []>} : vector<2x512xbf16>, vector<512x128xbf16>, vector<2x128xf32> -> vector<2x128xf32>
    %c0_70 = arith.constant 0 : index
    %c0_71 = arith.constant 0 : index
    %102 = vector.load %arg9[%c0_70, %c0_71] : memref<1x128xf32, #tpu.memory_space<vmem>>, vector<1x128xf32>
    %103 = vector.broadcast %102 : vector<1x128xf32> to vector<2x128xf32>
    %104 = arith.addf %101, %103 : vector<2x128xf32>
    %cst_72 = arith.constant 0.000000e+00 : f32
    %105 = vector.broadcast %cst_72 : f32 to vector<2x128xf32>
    %106 = arith.subf %105, %104 : vector<2x128xf32>
    %107 = math.exp %106 : vector<2x128xf32>
    %cst_73 = arith.constant 1.000000e+00 : f32
    %108 = vector.broadcast %cst_73 : f32 to vector<2x128xf32>
    %109 = arith.addf %108, %107 : vector<2x128xf32>
    %cst_74 = arith.constant 1.000000e+00 : f32
    %110 = vector.broadcast %cst_74 : f32 to vector<2x128xf32>
    %111 = arith.divf %110, %109 : vector<2x128xf32>
    %c0_75 = arith.constant 0 : index
    %c0_76 = arith.constant 0 : index
    %112 = vector.load %arg10[%c0_75, %c0_76] : memref<2x128xf32, #tpu.memory_space<vmem>>, vector<2x128xf32>
    tpu.vector_store %arg10[%c0_75, %c0_76], %111 {strides = array<i32>} : memref<2x128xf32, #tpu.memory_space<vmem>>, vector<2x128xf32>,
    return
  }
  func.func @transform_0(%arg0: i32) -> (i32, i32) {
    %c0_i32 = arith.constant 0 : i32
    %c0_i32_0 = arith.constant 0 : i32
    %c0_i32_1 = arith.constant 0 : i32
    return %c0_i32, %c0_i32_0 : i32, i32
  }
  func.func @transform_1(%arg0: i32) -> (i32, i32) {
    %c0_i32 = arith.constant 0 : i32
    %c0_i32_0 = arith.constant 0 : i32
    %c0_i32_1 = arith.constant 0 : i32
    return %c0_i32, %c0_i32_0 : i32, i32
  }
  func.func @transform_2(%arg0: i32) -> (i32, i32) {
    %c0_i32 = arith.constant 0 : i32
    %c0_i32_0 = arith.constant 0 : i32
    %c0_i32_1 = arith.constant 0 : i32
    return %c0_i32, %c0_i32_0 : i32, i32
  }
  func.func @transform_3(%arg0: i32) -> (i32, i32) {
    %c0_i32 = arith.constant 0 : i32
    %c0_i32_0 = arith.constant 0 : i32
    %c0_i32_1 = arith.constant 0 : i32
    return %c0_i32, %c0_i32_0 : i32, i32
  }
  func.func @transform_4(%arg0: i32) -> (i32, i32) {
    %c0_i32 = arith.constant 0 : i32
    %c0_i32_0 = arith.constant 0 : i32
    %c0_i32_1 = arith.constant 0 : i32
    return %c0_i32, %c0_i32_0 : i32, i32
  }
  func.func @transform_5(%arg0: i32) -> (i32, i32, i32) {
    %c0_i32 = arith.constant 0 : i32
    %c0_i32_0 = arith.constant 0 : i32
    %c0_i32_1 = arith.constant 0 : i32
    %c0_i32_2 = arith.constant 0 : i32
    return %c0_i32, %c0_i32_0, %c0_i32_1 : i32, i32, i32
  }
  func.func @transform_6(%arg0: i32) -> (i32, i32) {
    %c0_i32 = arith.constant 0 : i32
    %c0_i32_0 = arith.constant 0 : i32
    %c0_i32_1 = arith.constant 0 : i32
    return %c0_i32, %c0_i32_0 : i32, i32
  }
  func.func @transform_7(%arg0: i32) -> (i32, i32) {
    %c0_i32 = arith.constant 0 : i32
    %c0_i32_0 = arith.constant 0 : i32
    %c0_i32_1 = arith.constant 0 : i32
    return %c0_i32, %c0_i32_0 : i32, i32
  }
  func.func @transform_8(%arg0: i32) -> (i32, i32) {
    %c0_i32 = arith.constant 0 : i32
    %c0_i32_0 = arith.constant 0 : i32
    %c0_i32_1 = arith.constant 0 : i32
    return %c0_i32, %c0_i32_0 : i32, i32
  }
  func.func @transform_9(%arg0: i32) -> (i32, i32) {
    %c0_i32 = arith.constant 0 : i32
    %c0_i32_0 = arith.constant 0 : i32
    %c0_i32_1 = arith.constant 0 : i32
    return %c0_i32, %c0_i32_0 : i32, i32
  }
}

</mosaic_0001>

<bundles_post_ra>
// kernel: discriminator_forward.3
= control target key start
LH: loop header
LB: loop body
LE: loop exit
PB: predicated region body
PF: predicated region fallthrough
CT: control target
= control target key end

     0   :  { %vm931_vm0 = vcmask 261120   ;;  %vm2733_vm1 = vcmask 257024   ;;  %s5620_s1 = inlined_call_operand.vmem [shape: bf16[32,32], index: 1, kind: input, shape index: {}]   ;;  %s5621_s0 = inlined_call_operand.vmem [shape: bf16[2048,32], index: 0, kind: input, shape index: {}]   ;;  %s5622_s2 = inlined_call_operand.vmem [shape: f32[1,32], index: 2, kind: input, shape index: {}]   ;;  %s5623_s3 = inlined_call_operand.vmem [shape: bf16[2048,32], index: 3, kind: output, shape index: {}]  }
   0x1   :  { %v3771_v0 = vld [vmem:[%s5620_s1 + $0x8] sm:$0xff]  ;;  %v3770_v1 = vld [vmem:[%s5620_s1] sm:$0xff]  ;;  %v3644_v10 = vld [vmem:[%s5621_s0 + $0x10] sm:$0xff] }
   0x2   :  { %1322 = vmatpush.bf16.msra.mxu0 %v3771_v0  ;;  %3772 = vmatpush.bf16.msra.mxu1 %v3771_v0  ;;  %v3642_v2 = vld [vmem:[%s5621_s0] sm:$0xff]  ;;  %v3643_v6 = vld [vmem:[%s5621_s0 + $0x8] sm:$0xff]  ;;  %v3676_v11 = vld [vmem:[%s5621_s0 + $0x110] sm:$0xff] }
   0x3   :  { %3773 = vmatpush.bf16.msra.mxu2 %v3771_v0  ;;  %3774 = vmatpush.bf16.msra.mxu3 %v3771_v0  ;;  %v3674_v3 = vld [vmem:[%s5621_s0 + $0x100] sm:$0xff]  ;;  %v3675_v7 = vld [vmem:[%s5621_s0 + $0x108] sm:$0xff]  ;;  %v3708_v12 = vld [vmem:[%s5621_s0 + $0x210] sm:$0xff] }
   0x4   :  { %v3706_v4 = vld [vmem:[%s5621_s0 + $0x200] sm:$0xff]  ;;  %v3707_v8 = vld [vmem:[%s5621_s0 + $0x208] sm:$0xff]  ;;  %v3740_v13 = vld [vmem:[%s5621_s0 + $0x310] sm:$0xff] }
   0x5   :  { %v3738_v5 = vld [vmem:[%s5621_s0 + $0x300] sm:$0xff]  ;;  %v3739_v9 = vld [vmem:[%s5621_s0 + $0x308] sm:$0xff]  ;;  %v3645_v14 = vld [vmem:[%s5621_s0 + $0x18] sm:$0xff] }
   0x6   :  { %1323 = vmatpush.bf16.msra.mxu0 %v3770_v1  ;;  %3775 = vmatpush.bf16.msra.mxu1 %v3770_v1  ;;  %v3677_v15 = vld [vmem:[%s5621_s0 + $0x118] sm:$0xff]  ;;  %v3646_v18 = vld [vmem:[%s5621_s0 + $0x20] sm:$0xff]  ;;  %v3647_v22 = vld [vmem:[%s5621_s0 + $0x28] sm:$0xff] }
   0x7   :  { %3776 = vmatpush.bf16.msra.mxu2 %v3770_v1  ;;  %3777 = vmatpush.bf16.msra.mxu3 %v3770_v1  ;;  %v3709_v16 = vld [vmem:[%s5621_s0 + $0x218] sm:$0xff]  ;;  %v3678_v19 = vld [vmem:[%s5621_s0 + $0x120] sm:$0xff]  ;;  %v3679_v23 = vld [vmem:[%s5621_s0 + $0x128] sm:$0xff] }
   0x8   :  { %v3741_v17 = vld [vmem:[%s5621_s0 + $0x318] sm:$0xff]  ;;  %v3710_v20 = vld [vmem:[%s5621_s0 + $0x220] sm:$0xff]  ;;  %v3711_v24 = vld [vmem:[%s5621_s0 + $0x228] sm:$0xff] }
   0x9   :  { %3514 = vmatmul.msk.bf16.vlgmr.msra.gmra.mxu0 %vm931_vm0, %v3642_v2  ;;  %3546 = vmatmul.msk.bf16.vlgmr.msra.gmra.mxu1 %vm931_vm0, %v3674_v3  ;;  %v3742_v21 = vld [vmem:[%s5621_s0 + $0x320] sm:$0xff]  ;;  %v3743_v25 = vld [vmem:[%s5621_s0 + $0x328] sm:$0xff]  ;;  %v3648_v26 = vld [vmem:[%s5621_s0 + $0x30] sm:$0xff] }
   0xa   :  { %3578 = vmatmul.msk.bf16.vlgmr.msra.gmra.mxu2 %vm931_vm0, %v3706_v4  ;;  %3610 = vmatmul.msk.bf16.vlgmr.msra.gmra.mxu3 %vm931_vm0, %v3738_v5  ;;  %v3680_v27 = vld [vmem:[%s5621_s0 + $0x130] sm:$0xff]  ;;  %v3649_v30 = vld [vmem:[%s5621_s0 + $0x38] sm:$0xff]  ;;  %v3939_v34 = vld [vmem:[%s5622_s2] ss:$0 sm:$0xff] }
   0xb   :  { %v3712_v28 = vld [vmem:[%s5621_s0 + $0x230] sm:$0xff]  ;;  %v3681_v31 = vld [vmem:[%s5621_s0 + $0x138] sm:$0xff]  ;;  %v3650_v35 = vld [vmem:[%s5621_s0 + $0x40] sm:$0xff] }
   0xc   :  { %v3744_v29 = vld [vmem:[%s5621_s0 + $0x330] sm:$0xff]  ;;  %v3713_v32 = vld [vmem:[%s5621_s0 + $0x238] sm:$0xff]  ;;  %v3682_v36 = vld [vmem:[%s5621_s0 + $0x140] sm:$0xff] }
   0xd   :  { %v3745_v33 = vld [vmem:[%s5621_s0 + $0x338] sm:$0xff]  ;;  %v3714_v39 = vld [vmem:[%s5621_s0 + $0x240] sm:$0xff] }
   0xe   :  { %v3746_v40 = vld [vmem:[%s5621_s0 + $0x340] sm:$0xff] }
  0x19   :  { %3515 = vmatmul.msk.bf16.gmra.mxu0 %vm931_vm0, %v3643_v6  ;;  %3547 = vmatmul.msk.bf16.gmra.mxu1 %vm931_vm0, %v3675_v7  ;;  %v3651_v7 = vld [vmem:[%s5621_s0 + $0x48] sm:$0xff] }
  0x1a   :  { %3579 = vmatmul.msk.bf16.gmra.mxu2 %vm931_vm0, %v3707_v8  ;;  %3611 = vmatmul.msk.bf16.gmra.mxu3 %vm931_vm0, %v3739_v9  ;;  %v3683_v8 = vld [vmem:[%s5621_s0 + $0x148] sm:$0xff] }
  0x29   :  { %3516 = vmatmul.msk.bf16.gmra.mxu0 %vm931_vm0, %v3644_v10  ;;  %3548 = vmatmul.msk.bf16.gmra.mxu1 %vm931_vm0, %v3676_v11 }
  0x2a   :  { %3580 = vmatmul.msk.bf16.gmra.mxu2 %vm931_vm0, %v3708_v12  ;;  %3612 = vmatmul.msk.bf16.gmra.mxu3 %vm931_vm0, %v3740_v13  ;;  %v3715_v13 = vld [vmem:[%s5621_s0 + $0x248] sm:$0xff] }
  0x39   :  { %3517 = vmatmul.msk.bf16.gmra.mxu0 %vm931_vm0, %v3645_v14  ;;  %3549 = vmatmul.msk.bf16.gmra.mxu1 %vm931_vm0, %v3677_v15  ;;  %v3747_v14 = vld [vmem:[%s5621_s0 + $0x348] sm:$0xff] }
  0x3a   :  { %3581 = vmatmul.msk.bf16.gmra.mxu2 %vm931_vm0, %v3709_v16  ;;  %3613 = vmatmul.msk.bf16.gmra.mxu3 %vm931_vm0, %v3741_v17 }
  0x49   :  { %3518 = vmatmul.msk.bf16.gmra.mxu0 %vm931_vm0, %v3646_v18  ;;  %3550 = vmatmul.msk.bf16.gmra.mxu1 %vm931_vm0, %v3678_v19 }
  0x4a   :  { %3582 = vmatmul.msk.bf16.gmra.mxu2 %vm931_vm0, %v3710_v20  ;;  %3614 = vmatmul.msk.bf16.gmra.mxu3 %vm931_vm0, %v3742_v21 }
  0x59   :  { %3519 = vmatmul.msk.bf16.gmra.mxu0 %vm931_vm0, %v3647_v22  ;;  %3551 = vmatmul.msk.bf16.gmra.mxu1 %vm931_vm0, %v3679_v23 }
  0x5a   :  { %3583 = vmatmul.msk.bf16.gmra.mxu2 %vm931_vm0, %v3711_v24  ;;  %3615 = vmatmul.msk.bf16.gmra.mxu3 %vm931_vm0, %v3743_v25 }
  0x69   :  { %3520 = vmatmul.msk.bf16.gmra.mxu0 %vm931_vm0, %v3648_v26  ;;  %3552 = vmatmul.msk.bf16.gmra.mxu1 %vm931_vm0, %v3680_v27 }
  0x6a   :  { %3584 = vmatmul.msk.bf16.gmra.mxu2 %vm931_vm0, %v3712_v28  ;;  %3616 = vmatmul.msk.bf16.gmra.mxu3 %vm931_vm0, %v3744_v29 }
  0x79   :  { %3521 = vmatmul.msk.bf16.gmra.mxu0 %vm931_vm0, %v3649_v30  ;;  %3553 = vmatmul.msk.bf16.gmra.mxu1 %vm931_vm0, %v3681_v31 }
  0x7a   :  { %3585 = vmatmul.msk.bf16.gmra.mxu2 %vm931_vm0, %v3713_v32  ;;  %3617 = vmatmul.msk.bf16.gmra.mxu3 %vm931_vm0, %v3745_v33 }
  0x86   :  { %v1325_v37 = vpop.f32.mrf.mxu0  ;;  %v1485_v38 = vpop.f32.mrf.mxu1 }
  0x87   :  { %v1326_v41 = vadd.f32 %v3939_v34, %v1325_v37  ;;  %v1486_v42 = vadd.f32 %v3939_v34, %v1485_v38 }
  0x89   :  { %v1965_v43 = vmul.f32 0.2, %v1326_v41  ;;  %v2029_v44 = vmul.f32 0.2, %v1486_v42  ;;  %3522 = vmatmul.msk.bf16.gmra.mxu0 %vm931_vm0, %v3650_v35  ;;  %3554 = vmatmul.msk.bf16.gmra.mxu1 %vm931_vm0, %v3682_v36 }
  0x8a   :  { %3586 = vmatmul.msk.bf16.gmra.mxu2 %vm931_vm0, %v3714_v39  ;;  %3618 = vmatmul.msk.bf16.gmra.mxu3 %vm931_vm0, %v3746_v40 }
  0x8b   :  { %v2221_v45 = vmax.f32 %v1326_v41, %v1965_v43  ;;  %v2285_v46 = vmax.f32 %v1486_v42, %v2029_v44 }
  0x8d   :  { %v2477_v47 = vpack.c.bf16 %v2221_v45, %v2221_v45  ;;  %v2541_v48 = vpack.c.bf16 %v2285_v46, %v2285_v46  ;;  %v1645_v49 = vpop.f32.mrf.mxu2  ;;  %v1805_v50 = vpop.f32.mrf.mxu3 }
  0x8e   :  { %v1646_v51 = vadd.f32 %v3939_v34, %v1645_v49  ;;  %v1806_v52 = vadd.f32 %v3939_v34, %v1805_v50  ;;  %v1327_v53 = vpop.f32.mrf.mxu0  ;;  %v1487_v54 = vpop.f32.mrf.mxu1 }
  0x8f   :  { %2734 = vst.msk [vmem:[%s5623_s3] sm:$0xf] %vm2733_vm1, %v2477_v47  ;;  %v1328_v55 = vadd.f32 %v3939_v34, %v1327_v53  ;;  %v1488_v56 = vadd.f32 %v3939_v34, %v1487_v54  ;;  %v3684_v53 = vld [vmem:[%s5621_s0 + $0x150] sm:$0xff] }
  0x90   :  { %2798 = vst.msk [vmem:[%s5623_s3 + $0x100] sm:$0xf] %vm2733_vm1, %v2541_v48  ;;  %v2093_v57 = vmul.f32 0.2, %v1646_v51  ;;  %v2157_v58 = vmul.f32 0.2, %v1806_v52 }
  0x91   :  { %v1966_v59 = vmul.f32 0.2, %v1328_v55  ;;  %v2030_v60 = vmul.f32 0.2, %v1488_v56 }
  0x92   :  { %v2349_v61 = vmax.f32 %v1646_v51, %v2093_v57  ;;  %v2413_v62 = vmax.f32 %v1806_v52, %v2157_v58  ;;  %v3652_v52 = vld [vmem:[%s5621_s0 + $0x50] sm:$0xff] }
  0x93   :  { %v2222_v63 = vmax.f32 %v1328_v55, %v1966_v59  ;;  %v2286_v0 = vmax.f32 %v1488_v56, %v2030_v60  ;;  %v3716_v58 = vld [vmem:[%s5621_s0 + $0x250] sm:$0xff] }
  0x94   :  { %v2605_v1 = vpack.c.bf16 %v2349_v61, %v2349_v61  ;;  %v2669_v2 = vpack.c.bf16 %v2413_v62, %v2413_v62  ;;  %v3748_v59 = vld [vmem:[%s5621_s0 + $0x350] sm:$0xff] }
  0x95   :  { %v2478_v3 = vpack.c.bf16 %v2222_v63, %v2222_v63  ;;  %v2542_v4 = vpack.c.bf16 %v2286_v0, %v2286_v0  ;;  %v1647_v5 = vpop.f32.mrf.mxu2  ;;  %v1807_v6 = vpop.f32.mrf.mxu3 }
  0x96   :  { %2862 = vst.msk [vmem:[%s5623_s3 + $0x200] sm:$0xf] %vm2733_vm1, %v2605_v1  ;;  %v1648_v9 = vadd.f32 %v3939_v34, %v1647_v5  ;;  %v1808_v10 = vadd.f32 %v3939_v34, %v1807_v6  ;;  %v1330_v11 = vpop.f32.mrf.mxu0  ;;  %v1490_v12 = vpop.f32.mrf.mxu1 }
  0x97   :  { %2926 = vst.msk [vmem:[%s5623_s3 + $0x300] sm:$0xf] %vm2733_vm1, %v2669_v2  ;;  %v1331_v15 = vadd.f32 %v3939_v34, %v1330_v11  ;;  %v1491_v16 = vadd.f32 %v3939_v34, %v1490_v12 }
  0x98   :  { %2735 = vst.msk [vmem:[%s5623_s3 + $0x4] sm:$0xf] %vm2733_vm1, %v2478_v3  ;;  %v2094_v17 = vmul.f32 0.2, %v1648_v9  ;;  %v2158_v18 = vmul.f32 0.2, %v1808_v10 }
  0x99   :  { %2799 = vst.msk [vmem:[%s5623_s3 + $0x104] sm:$0xf] %vm2733_vm1, %v2542_v4  ;;  %v1967_v19 = vmul.f32 0.2, %v1331_v15  ;;  %v2031_v20 = vmul.f32 0.2, %v1491_v16  ;;  %3523 = vmatmul.msk.bf16.gmra.mxu0 %vm931_vm0, %v3651_v7  ;;  %3555 = vmatmul.msk.bf16.gmra.mxu1 %vm931_vm0, %v3683_v8 }
  0x9a   :  { %v2350_v21 = vmax.f32 %v1648_v9, %v2094_v17  ;;  %v2414_v22 = vmax.f32 %v1808_v10, %v2158_v18  ;;  %3587 = vmatmul.msk.bf16.gmra.mxu2 %vm931_vm0, %v3715_v13  ;;  %3619 = vmatmul.msk.bf16.gmra.mxu3 %vm931_vm0, %v3747_v14 }
  0x9b   :  { %v2223_v23 = vmax.f32 %v1331_v15, %v1967_v19  ;;  %v2287_v24 = vmax.f32 %v1491_v16, %v2031_v20 }
  0x9c   :  { %v2606_v25 = vpack.c.bf16 %v2350_v21, %v2350_v21  ;;  %v2670_v26 = vpack.c.bf16 %v2414_v22, %v2414_v22 }
  0x9d   :  { %v2479_v27 = vpack.c.bf16 %v2223_v23, %v2223_v23  ;;  %v2543_v28 = vpack.c.bf16 %v2287_v24, %v2287_v24  ;;  %v1650_v29 = vpop.f32.mrf.mxu2  ;;  %v1810_v30 = vpop.f32.mrf.mxu3 }
  0x9e   :  { %2863 = vst.msk [vmem:[%s5623_s3 + $0x204] sm:$0xf] %vm2733_vm1, %v2606_v25  ;;  %v1651_v31 = vadd.f32 %v3939_v34, %v1650_v29  ;;  %v1811_v32 = vadd.f32 %v3939_v34, %v1810_v30  ;;  %v1332_v33 = vpop.f32.mrf.mxu0  ;;  %v1492_v35 = vpop.f32.mrf.mxu1 }
  0x9f   :  { %2927 = vst.msk [vmem:[%s5623_s3 + $0x304] sm:$0xf] %vm2733_vm1, %v2670_v26  ;;  %v1333_v36 = vadd.f32 %v3939_v34, %v1332_v33  ;;  %v1493_v37 = vadd.f32 %v3939_v34, %v1492_v35  ;;  %v3685_v33 = vld [vmem:[%s5621_s0 + $0x158] sm:$0xff] }
  0xa0   :  { %2736 = vst.msk [vmem:[%s5623_s3 + $0x8] sm:$0xf] %vm2733_vm1, %v2479_v27  ;;  %v2095_v38 = vmul.f32 0.2, %v1651_v31  ;;  %v2159_v39 = vmul.f32 0.2, %v1811_v32 }
  0xa1   :  { %2800 = vst.msk [vmem:[%s5623_s3 + $0x108] sm:$0xf] %vm2733_vm1, %v2543_v28  ;;  %v1968_v40 = vmul.f32 0.2, %v1333_v36  ;;  %v2032_v41 = vmul.f32 0.2, %v1493_v37 }
  0xa2   :  { %v2351_v42 = vmax.f32 %v1651_v31, %v2095_v38  ;;  %v2415_v43 = vmax.f32 %v1811_v32, %v2159_v39  ;;  %v3653_v32 = vld [vmem:[%s5621_s0 + $0x58] sm:$0xff] }
  0xa3   :  { %v2224_v44 = vmax.f32 %v1333_v36, %v1968_v40  ;;  %v2288_v45 = vmax.f32 %v1493_v37, %v2032_v41  ;;  %v3717_v39 = vld [vmem:[%s5621_s0 + $0x258] sm:$0xff] }
  0xa4   :  { %v2607_v46 = vpack.c.bf16 %v2351_v42, %v2351_v42  ;;  %v2671_v47 = vpack.c.bf16 %v2415_v43, %v2415_v43  ;;  %v3749_v40 = vld [vmem:[%s5621_s0 + $0x358] sm:$0xff] }
  0xa5   :  { %v2480_v48 = vpack.c.bf16 %v2224_v44, %v2224_v44  ;;  %v2544_v49 = vpack.c.bf16 %v2288_v45, %v2288_v45  ;;  %v1652_v50 = vpop.f32.mrf.mxu2  ;;  %v1812_v51 = vpop.f32.mrf.mxu3 }
  0xa6   :  { %2864 = vst.msk [vmem:[%s5623_s3 + $0x208] sm:$0xf] %vm2733_vm1, %v2607_v46  ;;  %v1653_v54 = vadd.f32 %v3939_v34, %v1652_v50  ;;  %v1813_v55 = vadd.f32 %v3939_v34, %v1812_v51  ;;  %v1335_v56 = vpop.f32.mrf.mxu0  ;;  %v1495_v57 = vpop.f32.mrf.mxu1 }
  0xa7   :  { %2928 = vst.msk [vmem:[%s5623_s3 + $0x308] sm:$0xf] %vm2733_vm1, %v2671_v47  ;;  %v1336_v60 = vadd.f32 %v3939_v34, %v1335_v56  ;;  %v1496_v61 = vadd.f32 %v3939_v34, %v1495_v57 }
  0xa8   :  { %2737 = vst.msk [vmem:[%s5623_s3 + $0xc] sm:$0xf] %vm2733_vm1, %v2480_v48  ;;  %v2096_v62 = vmul.f32 0.2, %v1653_v54  ;;  %v2160_v63 = vmul.f32 0.2, %v1813_v55 }
  0xa9   :  { %2801 = vst.msk [vmem:[%s5623_s3 + $0x10c] sm:$0xf] %vm2733_vm1, %v2544_v49  ;;  %v1969_v0 = vmul.f32 0.2, %v1336_v60  ;;  %v2033_v1 = vmul.f32 0.2, %v1496_v61  ;;  %3524 = vmatmul.msk.bf16.gmra.mxu0 %vm931_vm0, %v3652_v52  ;;  %3556 = vmatmul.msk.bf16.gmra.mxu1 %vm931_vm0, %v3684_v53 }
  0xaa   :  { %v2352_v2 = vmax.f32 %v1653_v54, %v2096_v62  ;;  %v2416_v3 = vmax.f32 %v1813_v55, %v2160_v63  ;;  %3588 = vmatmul.msk.bf16.gmra.mxu2 %vm931_vm0, %v3716_v58  ;;  %3620 = vmatmul.msk.bf16.gmra.mxu3 %vm931_vm0, %v3748_v59 }
  0xab   :  { %v2225_v4 = vmax.f32 %v1336_v60, %v1969_v0  ;;  %v2289_v5 = vmax.f32 %v1496_v61, %v2033_v1 }
  0xac   :  { %v2608_v6 = vpack.c.bf16 %v2352_v2, %v2352_v2  ;;  %v2672_v7 = vpack.c.bf16 %v2416_v3, %v2416_v3 }
  0xad   :  { %v2481_v8 = vpack.c.bf16 %v2225_v4, %v2225_v4  ;;  %v2545_v9 = vpack.c.bf16 %v2289_v5, %v2289_v5  ;;  %v1655_v10 = vpop.f32.mrf.mxu2  ;;  %v1815_v11 = vpop.f32.mrf.mxu3 }
  0xae   :  { %2865 = vst.msk [vmem:[%s5623_s3 + $0x20c] sm:$0xf] %vm2733_vm1, %v2608_v6  ;;  %v1656_v12 = vadd.f32 %v3939_v34, %v1655_v10  ;;  %v1816_v13 = vadd.f32 %v3939_v34, %v1815_v11  ;;  %v1337_v14 = vpop.f32.mrf.mxu0  ;;  %v1497_v15 = vpop.f32.mrf.mxu1 }
  0xaf   :  { %2929 = vst.msk [vmem:[%s5623_s3 + $0x30c] sm:$0xf] %vm2733_vm1, %v2672_v7  ;;  %v1338_v16 = vadd.f32 %v3939_v34, %v1337_v14  ;;  %v1498_v17 = vadd.f32 %v3939_v34, %v1497_v15  ;;  %v3686_v14 = vld [vmem:[%s5621_s0 + $0x160] sm:$0xff] }
  0xb0   :  { %2738 = vst.msk [vmem:[%s5623_s3 + $0x10] sm:$0xf] %vm2733_vm1, %v2481_v8  ;;  %v2097_v18 = vmul.f32 0.2, %v1656_v12  ;;  %v2161_v19 = vmul.f32 0.2, %v1816_v13 }
  0xb1   :  { %2802 = vst.msk [vmem:[%s5623_s3 + $0x110] sm:$0xf] %vm2733_vm1, %v2545_v9  ;;  %v1970_v20 = vmul.f32 0.2, %v1338_v16  ;;  %v2034_v21 = vmul.f32 0.2, %v1498_v17 }
  0xb2   :  { %v2353_v22 = vmax.f32 %v1656_v12, %v2097_v18  ;;  %v2417_v23 = vmax.f32 %v1816_v13, %v2161_v19  ;;  %v3654_v13 = vld [vmem:[%s5621_s0 + $0x60] sm:$0xff] }
  0xb3   :  { %v2226_v24 = vmax.f32 %v1338_v16, %v1970_v20  ;;  %v2290_v25 = vmax.f32 %v1498_v17, %v2034_v21  ;;  %v3718_v19 = vld [vmem:[%s5621_s0 + $0x260] sm:$0xff] }
  0xb4   :  { %v2609_v26 = vpack.c.bf16 %v2353_v22, %v2353_v22  ;;  %v2673_v27 = vpack.c.bf16 %v2417_v23, %v2417_v23  ;;  %v3750_v20 = vld [vmem:[%s5621_s0 + $0x360] sm:$0xff] }
  0xb5   :  { %v2482_v28 = vpack.c.bf16 %v2226_v24, %v2226_v24  ;;  %v2546_v29 = vpack.c.bf16 %v2290_v25, %v2290_v25  ;;  %v1657_v30 = vpop.f32.mrf.mxu2  ;;  %v1817_v31 = vpop.f32.mrf.mxu3 }
  0xb6   :  { %2866 = vst.msk [vmem:[%s5623_s3 + $0x210] sm:$0xf] %vm2733_vm1, %v2609_v26  ;;  %v1658_v35 = vadd.f32 %v3939_v34, %v1657_v30  ;;  %v1818_v36 = vadd.f32 %v3939_v34, %v1817_v31  ;;  %v1340_v37 = vpop.f32.mrf.mxu0  ;;  %v1500_v38 = vpop.f32.mrf.mxu1 }
  0xb7   :  { %2930 = vst.msk [vmem:[%s5623_s3 + $0x310] sm:$0xf] %vm2733_vm1, %v2673_v27  ;;  %v1341_v41 = vadd.f32 %v3939_v34, %v1340_v37  ;;  %v1501_v42 = vadd.f32 %v3939_v34, %v1500_v38 }
  0xb8   :  { %2739 = vst.msk [vmem:[%s5623_s3 + $0x14] sm:$0xf] %vm2733_vm1, %v2482_v28  ;;  %v2098_v43 = vmul.f32 0.2, %v1658_v35  ;;  %v2162_v44 = vmul.f32 0.2, %v1818_v36 }
  0xb9   :  { %2803 = vst.msk [vmem:[%s5623_s3 + $0x114] sm:$0xf] %vm2733_vm1, %v2546_v29  ;;  %v1971_v45 = vmul.f32 0.2, %v1341_v41  ;;  %v2035_v46 = vmul.f32 0.2, %v1501_v42  ;;  %3525 = vmatmul.msk.bf16.gmra.mxu0 %vm931_vm0, %v3653_v32  ;;  %3557 = vmatmul.msk.bf16.gmra.mxu1 %vm931_vm0, %v3685_v33 }
  0xba   :  { %v2354_v47 = vmax.f32 %v1658_v35, %v2098_v43  ;;  %v2418_v48 = vmax.f32 %v1818_v36, %v2162_v44  ;;  %3589 = vmatmul.msk.bf16.gmra.mxu2 %vm931_vm0, %v3717_v39  ;;  %3621 = vmatmul.msk.bf16.gmra.mxu3 %vm931_vm0, %v3749_v40 }
  0xbb   :  { %v2227_v49 = vmax.f32 %v1341_v41, %v1971_v45  ;;  %v2291_v50 = vmax.f32 %v1501_v42, %v2035_v46 }
  0xbc   :  { %v2610_v51 = vpack.c.bf16 %v2354_v47, %v2354_v47  ;;  %v2674_v52 = vpack.c.bf16 %v2418_v48, %v2418_v48 }
  0xbd   :  { %v2483_v53 = vpack.c.bf16 %v2227_v49, %v2227_v49  ;;  %v2547_v54 = vpack.c.bf16 %v2291_v50, %v2291_v50  ;;  %v1660_v55 = vpop.f32.mrf.mxu2  ;;  %v1820_v56 = vpop.f32.mrf.mxu3 }
  0xbe   :  { %2867 = vst.msk [vmem:[%s5623_s3 + $0x214] sm:$0xf] %vm2733_vm1, %v2610_v51  ;;  %v1661_v57 = vadd.f32 %v3939_v34, %v1660_v55  ;;  %v1821_v58 = vadd.f32 %v3939_v34, %v1820_v56  ;;  %v1342_v59 = vpop.f32.mrf.mxu0  ;;  %v1502_v60 = vpop.f32.mrf.mxu1 }
  0xbf   :  { %2931 = vst.msk [vmem:[%s5623_s3 + $0x314] sm:$0xf] %vm2733_vm1, %v2674_v52  ;;  %v1343_v61 = vadd.f32 %v3939_v34, %v1342_v59  ;;  %v1503_v62 = vadd.f32 %v3939_v34, %v1502_v60  ;;  %v3687_v59 = vld [vmem:[%s5621_s0 + $0x168] sm:$0xff] }
  0xc0   :  { %2740 = vst.msk [vmem:[%s5623_s3 + $0x18] sm:$0xf] %vm2733_vm1, %v2483_v53  ;;  %v2099_v63 = vmul.f32 0.2, %v1661_v57  ;;  %v2163_v0 = vmul.f32 0.2, %v1821_v58 }
  0xc1   :  { %2804 = vst.msk [vmem:[%s5623_s3 + $0x118] sm:$0xf] %vm2733_vm1, %v2547_v54  ;;  %v1972_v1 = vmul.f32 0.2, %v1343_v61  ;;  %v2036_v2 = vmul.f32 0.2, %v1503_v62 }
  0xc2   :  { %v2355_v3 = vmax.f32 %v1661_v57, %v2099_v63  ;;  %v2419_v4 = vmax.f32 %v1821_v58, %v2163_v0  ;;  %v3655_v58 = vld [vmem:[%s5621_s0 + $0x68] sm:$0xff] }
  0xc3   :  { %v2228_v5 = vmax.f32 %v1343_v61, %v1972_v1  ;;  %v2292_v6 = vmax.f32 %v1503_v62, %v2036_v2  ;;  %v3719_v0 = vld [vmem:[%s5621_s0 + $0x268] sm:$0xff] }
  0xc4   :  { %v2611_v7 = vpack.c.bf16 %v2355_v3, %v2355_v3  ;;  %v2675_v8 = vpack.c.bf16 %v2419_v4, %v2419_v4  ;;  %v3751_v1 = vld [vmem:[%s5621_s0 + $0x368] sm:$0xff] }
  0xc5   :  { %v2484_v9 = vpack.c.bf16 %v2228_v5, %v2228_v5  ;;  %v2548_v10 = vpack.c.bf16 %v2292_v6, %v2292_v6  ;;  %v1662_v11 = vpop.f32.mrf.mxu2  ;;  %v1822_v12 = vpop.f32.mrf.mxu3 }
  0xc6   :  { %2868 = vst.msk [vmem:[%s5623_s3 + $0x218] sm:$0xf] %vm2733_vm1, %v2611_v7  ;;  %v1663_v15 = vadd.f32 %v3939_v34, %v1662_v11  ;;  %v1823_v16 = vadd.f32 %v3939_v34, %v1822_v12  ;;  %v1345_v17 = vpop.f32.mrf.mxu0  ;;  %v1505_v18 = vpop.f32.mrf.mxu1 }
  0xc7   :  { %2932 = vst.msk [vmem:[%s5623_s3 + $0x318] sm:$0xf] %vm2733_vm1, %v2675_v8  ;;  %v1346_v21 = vadd.f32 %v3939_v34, %v1345_v17  ;;  %v1506_v22 = vadd.f32 %v3939_v34, %v1505_v18 }
  0xc8   :  { %2741 = vst.msk [vmem:[%s5623_s3 + $0x1c] sm:$0xf] %vm2733_vm1, %v2484_v9  ;;  %v2100_v23 = vmul.f32 0.2, %v1663_v15  ;;  %v2164_v24 = vmul.f32 0.2, %v1823_v16 }
  0xc9   :  { %2805 = vst.msk [vmem:[%s5623_s3 + $0x11c] sm:$0xf] %vm2733_vm1, %v2548_v10  ;;  %v1973_v25 = vmul.f32 0.2, %v1346_v21  ;;  %v2037_v26 = vmul.f32 0.2, %v1506_v22  ;;  %3526 = vmatmul.msk.bf16.gmra.mxu0 %vm931_vm0, %v3654_v13  ;;  %3558 = vmatmul.msk.bf16.gmra.mxu1 %vm931_vm0, %v3686_v14 }
  0xca   :  { %v2356_v27 = vmax.f32 %v1663_v15, %v2100_v23  ;;  %v2420_v28 = vmax.f32 %v1823_v16, %v2164_v24  ;;  %3590 = vmatmul.msk.bf16.gmra.mxu2 %vm931_vm0, %v3718_v19  ;;  %3622 = vmatmul.msk.bf16.gmra.mxu3 %vm931_vm0, %v3750_v20 }
  0xcb   :  { %v2229_v29 = vmax.f32 %v1346_v21, %v1973_v25  ;;  %v2293_v30 = vmax.f32 %v1506_v22, %v2037_v26 }
  0xcc   :  { %v2612_v31 = vpack.c.bf16 %v2356_v27, %v2356_v27  ;;  %v2676_v32 = vpack.c.bf16 %v2420_v28, %v2420_v28 }
  0xcd   :  { %v2485_v33 = vpack.c.bf16 %v2229_v29, %v2229_v29  ;;  %v2549_v35 = vpack.c.bf16 %v2293_v30, %v2293_v30  ;;  %v1665_v36 = vpop.f32.mrf.mxu2  ;;  %v1825_v37 = vpop.f32.mrf.mxu3 }
  0xce   :  { %2869 = vst.msk [vmem:[%s5623_s3 + $0x21c] sm:$0xf] %vm2733_vm1, %v2612_v31  ;;  %v1666_v38 = vadd.f32 %v3939_v34, %v1665_v36  ;;  %v1826_v39 = vadd.f32 %v3939_v34, %v1825_v37  ;;  %v1347_v40 = vpop.f32.mrf.mxu0  ;;  %v1507_v41 = vpop.f32.mrf.mxu1 }
  0xcf   :  { %2933 = vst.msk [vmem:[%s5623_s3 + $0x31c] sm:$0xf] %vm2733_vm1, %v2676_v32  ;;  %v1348_v42 = vadd.f32 %v3939_v34, %v1347_v40  ;;  %v1508_v43 = vadd.f32 %v3939_v34, %v1507_v41  ;;  %v3688_v40 = vld [vmem:[%s5621_s0 + $0x170] sm:$0xff] }
  0xd0   :  { %2742 = vst.msk [vmem:[%s5623_s3 + $0x20] sm:$0xf] %vm2733_vm1, %v2485_v33  ;;  %v2101_v44 = vmul.f32 0.2, %v1666_v38  ;;  %v2165_v45 = vmul.f32 0.2, %v1826_v39 }
  0xd1   :  { %2806 = vst.msk [vmem:[%s5623_s3 + $0x120] sm:$0xf] %vm2733_vm1, %v2549_v35  ;;  %v1974_v46 = vmul.f32 0.2, %v1348_v42  ;;  %v2038_v47 = vmul.f32 0.2, %v1508_v43 }
  0xd2   :  { %v2357_v48 = vmax.f32 %v1666_v38, %v2101_v44  ;;  %v2421_v49 = vmax.f32 %v1826_v39, %v2165_v45  ;;  %v3656_v39 = vld [vmem:[%s5621_s0 + $0x70] sm:$0xff] }
  0xd3   :  { %v2230_v50 = vmax.f32 %v1348_v42, %v1974_v46  ;;  %v2294_v51 = vmax.f32 %v1508_v43, %v2038_v47  ;;  %v3720_v45 = vld [vmem:[%s5621_s0 + $0x270] sm:$0xff] }
  0xd4   :  { %v2613_v52 = vpack.c.bf16 %v2357_v48, %v2357_v48  ;;  %v2677_v53 = vpack.c.bf16 %v2421_v49, %v2421_v49  ;;  %v3752_v46 = vld [vmem:[%s5621_s0 + $0x370] sm:$0xff] }
  0xd5   :  { %v2486_v54 = vpack.c.bf16 %v2230_v50, %v2230_v50  ;;  %v2550_v55 = vpack.c.bf16 %v2294_v51, %v2294_v51  ;;  %v1667_v56 = vpop.f32.mrf.mxu2  ;;  %v1827_v57 = vpop.f32.mrf.mxu3 }
  0xd6   :  { %2870 = vst.msk [vmem:[%s5623_s3 + $0x220] sm:$0xf] %vm2733_vm1, %v2613_v52  ;;  %v1668_v60 = vadd.f32 %v3939_v34, %v1667_v56  ;;  %v1828_v61 = vadd.f32 %v3939_v34, %v1827_v57  ;;  %v1350_v62 = vpop.f32.mrf.mxu0  ;;  %v1510_v63 = vpop.f32.mrf.mxu1 }
  0xd7   :  { %2934 = vst.msk [vmem:[%s5623_s3 + $0x320] sm:$0xf] %vm2733_vm1, %v2677_v53  ;;  %v1351_v2 = vadd.f32 %v3939_v34, %v1350_v62  ;;  %v1511_v3 = vadd.f32 %v3939_v34, %v1510_v63 }
  0xd8   :  { %2743 = vst.msk [vmem:[%s5623_s3 + $0x24] sm:$0xf] %vm2733_vm1, %v2486_v54  ;;  %v2102_v4 = vmul.f32 0.2, %v1668_v60  ;;  %v2166_v5 = vmul.f32 0.2, %v1828_v61 }
  0xd9   :  { %2807 = vst.msk [vmem:[%s5623_s3 + $0x124] sm:$0xf] %vm2733_vm1, %v2550_v55  ;;  %v1975_v6 = vmul.f32 0.2, %v1351_v2  ;;  %v2039_v7 = vmul.f32 0.2, %v1511_v3  ;;  %3527 = vmatmul.msk.bf16.gmra.mxu0 %vm931_vm0, %v3655_v58  ;;  %3559 = vmatmul.msk.bf16.gmra.mxu1 %vm931_vm0, %v3687_v59 }
  0xda   :  { %v2358_v8 = vmax.f32 %v1668_v60, %v2102_v4  ;;  %v2422_v9 = vmax.f32 %v1828_v61, %v2166_v5  ;;  %3591 = vmatmul.msk.bf16.gmra.mxu2 %vm931_vm0, %v3719_v0  ;;  %3623 = vmatmul.msk.bf16.gmra.mxu3 %vm931_vm0, %v3751_v1 }
  0xdb   :  { %v2231_v10 = vmax.f32 %v1351_v2, %v1975_v6  ;;  %v2295_v11 = vmax.f32 %v1511_v3, %v2039_v7 }
  0xdc   :  { %v2614_v12 = vpack.c.bf16 %v2358_v8, %v2358_v8  ;;  %v2678_v13 = vpack.c.bf16 %v2422_v9, %v2422_v9 }
  0xdd   :  { %v2487_v14 = vpack.c.bf16 %v2231_v10, %v2231_v10  ;;  %v2551_v15 = vpack.c.bf16 %v2295_v11, %v2295_v11  ;;  %v1670_v16 = vpop.f32.mrf.mxu2  ;;  %v1830_v17 = vpop.f32.mrf.mxu3 }
  0xde   :  { %2871 = vst.msk [vmem:[%s5623_s3 + $0x224] sm:$0xf] %vm2733_vm1, %v2614_v12  ;;  %v1671_v18 = vadd.f32 %v3939_v34, %v1670_v16  ;;  %v1831_v19 = vadd.f32 %v3939_v34, %v1830_v17  ;;  %v1352_v20 = vpop.f32.mrf.mxu0  ;;  %v1512_v21 = vpop.f32.mrf.mxu1 }
  0xdf   :  { %2935 = vst.msk [vmem:[%s5623_s3 + $0x324] sm:$0xf] %vm2733_vm1, %v2678_v13  ;;  %v1353_v22 = vadd.f32 %v3939_v34, %v1352_v20  ;;  %v1513_v23 = vadd.f32 %v3939_v34, %v1512_v21  ;;  %v3689_v20 = vld [vmem:[%s5621_s0 + $0x178] sm:$0xff] }
  0xe0   :  { %2744 = vst.msk [vmem:[%s5623_s3 + $0x28] sm:$0xf] %vm2733_vm1, %v2487_v14  ;;  %v2103_v24 = vmul.f32 0.2, %v1671_v18  ;;  %v2167_v25 = vmul.f32 0.2, %v1831_v19 }
  0xe1   :  { %2808 = vst.msk [vmem:[%s5623_s3 + $0x128] sm:$0xf] %vm2733_vm1, %v2551_v15  ;;  %v1976_v26 = vmul.f32 0.2, %v1353_v22  ;;  %v2040_v27 = vmul.f32 0.2, %v1513_v23 }
  0xe2   :  { %v2359_v28 = vmax.f32 %v1671_v18, %v2103_v24  ;;  %v2423_v29 = vmax.f32 %v1831_v19, %v2167_v25  ;;  %v3657_v19 = vld [vmem:[%s5621_s0 + $0x78] sm:$0xff] }
  0xe3   :  { %v2232_v30 = vmax.f32 %v1353_v22, %v1976_v26  ;;  %v2296_v31 = vmax.f32 %v1513_v23, %v2040_v27  ;;  %v3721_v25 = vld [vmem:[%s5621_s0 + $0x278] sm:$0xff] }
  0xe4   :  { %v2615_v32 = vpack.c.bf16 %v2359_v28, %v2359_v28  ;;  %v2679_v33 = vpack.c.bf16 %v2423_v29, %v2423_v29  ;;  %v3753_v26 = vld [vmem:[%s5621_s0 + $0x378] sm:$0xff] }
  0xe5   :  { %v2488_v35 = vpack.c.bf16 %v2232_v30, %v2232_v30  ;;  %v2552_v36 = vpack.c.bf16 %v2296_v31, %v2296_v31  ;;  %v1672_v37 = vpop.f32.mrf.mxu2  ;;  %v1832_v38 = vpop.f32.mrf.mxu3 }
  0xe6   :  { %2872 = vst.msk [vmem:[%s5623_s3 + $0x228] sm:$0xf] %vm2733_vm1, %v2615_v32  ;;  %v1673_v41 = vadd.f32 %v3939_v34, %v1672_v37  ;;  %v1833_v42 = vadd.f32 %v3939_v34, %v1832_v38  ;;  %v1355_v43 = vpop.f32.mrf.mxu0  ;;  %v1515_v44 = vpop.f32.mrf.mxu1 }
  0xe7   :  { %2936 = vst.msk [vmem:[%s5623_s3 + $0x328] sm:$0xf] %vm2733_vm1, %v2679_v33  ;;  %v1356_v47 = vadd.f32 %v3939_v34, %v1355_v43  ;;  %v1516_v48 = vadd.f32 %v3939_v34, %v1515_v44 }
  0xe8   :  { %2745 = vst.msk [vmem:[%s5623_s3 + $0x2c] sm:$0xf] %vm2733_vm1, %v2488_v35  ;;  %v2104_v49 = vmul.f32 0.2, %v1673_v41  ;;  %v2168_v50 = vmul.f32 0.2, %v1833_v42 }
  0xe9   :  { %2809 = vst.msk [vmem:[%s5623_s3 + $0x12c] sm:$0xf] %vm2733_vm1, %v2552_v36  ;;  %v1977_v51 = vmul.f32 0.2, %v1356_v47  ;;  %v2041_v52 = vmul.f32 0.2, %v1516_v48  ;;  %3528 = vmatmul.msk.bf16.gmra.mxu0 %vm931_vm0, %v3656_v39  ;;  %3560 = vmatmul.msk.bf16.gmra.mxu1 %vm931_vm0, %v3688_v40 }
  0xea   :  { %v2360_v53 = vmax.f32 %v1673_v41, %v2104_v49  ;;  %v2424_v54 = vmax.f32 %v1833_v42, %v2168_v50  ;;  %3592 = vmatmul.msk.bf16.gmra.mxu2 %vm931_vm0, %v3720_v45  ;;  %3624 = vmatmul.msk.bf16.gmra.mxu3 %vm931_vm0, %v3752_v46 }
  0xeb   :  { %v2233_v55 = vmax.f32 %v1356_v47, %v1977_v51  ;;  %v2297_v56 = vmax.f32 %v1516_v48, %v2041_v52 }
  0xec   :  { %v2616_v57 = vpack.c.bf16 %v2360_v53, %v2360_v53  ;;  %v2680_v58 = vpack.c.bf16 %v2424_v54, %v2424_v54 }
  0xed   :  { %v2489_v59 = vpack.c.bf16 %v2233_v55, %v2233_v55  ;;  %v2553_v60 = vpack.c.bf16 %v2297_v56, %v2297_v56  ;;  %v1675_v61 = vpop.f32.mrf.mxu2  ;;  %v1835_v62 = vpop.f32.mrf.mxu3 }
  0xee   :  { %2873 = vst.msk [vmem:[%s5623_s3 + $0x22c] sm:$0xf] %vm2733_vm1, %v2616_v57  ;;  %v1676_v63 = vadd.f32 %v3939_v34, %v1675_v61  ;;  %v1836_v0 = vadd.f32 %v3939_v34, %v1835_v62  ;;  %v1357_v1 = vpop.f32.mrf.mxu0  ;;  %v1517_v2 = vpop.f32.mrf.mxu1 }
  0xef   :  { %2937 = vst.msk [vmem:[%s5623_s3 + $0x32c] sm:$0xf] %vm2733_vm1, %v2680_v58  ;;  %v1358_v3 = vadd.f32 %v3939_v34, %v1357_v1  ;;  %v1518_v4 = vadd.f32 %v3939_v34, %v1517_v2  ;;  %v3690_v1 = vld [vmem:[%s5621_s0 + $0x180] sm:$0xff] }
  0xf0   :  { %2746 = vst.msk [vmem:[%s5623_s3 + $0x30] sm:$0xf] %vm2733_vm1, %v2489_v59  ;;  %v2105_v5 = vmul.f32 0.2, %v1676_v63  ;;  %v2169_v6 = vmul.f32 0.2, %v1836_v0 }
  0xf1   :  { %2810 = vst.msk [vmem:[%s5623_s3 + $0x130] sm:$0xf] %vm2733_vm1, %v2553_v60  ;;  %v1978_v7 = vmul.f32 0.2, %v1358_v3  ;;  %v2042_v8 = vmul.f32 0.2, %v1518_v4 }
  0xf2   :  { %v2361_v9 = vmax.f32 %v1676_v63, %v2105_v5  ;;  %v2425_v10 = vmax.f32 %v1836_v0, %v2169_v6  ;;  %v3658_v0 = vld [vmem:[%s5621_s0 + $0x80] sm:$0xff] }
  0xf3   :  { %v2234_v11 = vmax.f32 %v1358_v3, %v1978_v7  ;;  %v2298_v12 = vmax.f32 %v1518_v4, %v2042_v8  ;;  %v3722_v6 = vld [vmem:[%s5621_s0 + $0x280] sm:$0xff] }
  0xf4   :  { %v2617_v13 = vpack.c.bf16 %v2361_v9, %v2361_v9  ;;  %v2681_v14 = vpack.c.bf16 %v2425_v10, %v2425_v10  ;;  %v3754_v7 = vld [vmem:[%s5621_s0 + $0x380] sm:$0xff] }
  0xf5   :  { %v2490_v15 = vpack.c.bf16 %v2234_v11, %v2234_v11  ;;  %v2554_v16 = vpack.c.bf16 %v2298_v12, %v2298_v12  ;;  %v1677_v17 = vpop.f32.mrf.mxu2  ;;  %v1837_v18 = vpop.f32.mrf.mxu3 }
  0xf6   :  { %2874 = vst.msk [vmem:[%s5623_s3 + $0x230] sm:$0xf] %vm2733_vm1, %v2617_v13  ;;  %v1678_v21 = vadd.f32 %v3939_v34, %v1677_v17  ;;  %v1838_v22 = vadd.f32 %v3939_v34, %v1837_v18  ;;  %v1360_v23 = vpop.f32.mrf.mxu0  ;;  %v1520_v24 = vpop.f32.mrf.mxu1 }
  0xf7   :  { %2938 = vst.msk [vmem:[%s5623_s3 + $0x330] sm:$0xf] %vm2733_vm1, %v2681_v14  ;;  %v1361_v27 = vadd.f32 %v3939_v34, %v1360_v23  ;;  %v1521_v28 = vadd.f32 %v3939_v34, %v1520_v24 }
  0xf8   :  { %2747 = vst.msk [vmem:[%s5623_s3 + $0x34] sm:$0xf] %vm2733_vm1, %v2490_v15  ;;  %v2106_v29 = vmul.f32 0.2, %v1678_v21  ;;  %v2170_v30 = vmul.f32 0.2, %v1838_v22 }
  0xf9   :  { %2811 = vst.msk [vmem:[%s5623_s3 + $0x134] sm:$0xf] %vm2733_vm1, %v2554_v16  ;;  %v1979_v31 = vmul.f32 0.2, %v1361_v27  ;;  %v2043_v32 = vmul.f32 0.2, %v1521_v28  ;;  %3529 = vmatmul.msk.bf16.gmra.mxu0 %vm931_vm0, %v3657_v19  ;;  %3561 = vmatmul.msk.bf16.gmra.mxu1 %vm931_vm0, %v3689_v20 }
  0xfa   :  { %v2362_v33 = vmax.f32 %v1678_v21, %v2106_v29  ;;  %v2426_v35 = vmax.f32 %v1838_v22, %v2170_v30  ;;  %3593 = vmatmul.msk.bf16.gmra.mxu2 %vm931_vm0, %v3721_v25  ;;  %3625 = vmatmul.msk.bf16.gmra.mxu3 %vm931_vm0, %v3753_v26 }
  0xfb   :  { %v2235_v36 = vmax.f32 %v1361_v27, %v1979_v31  ;;  %v2299_v37 = vmax.f32 %v1521_v28, %v2043_v32 }
  0xfc   :  { %v2618_v38 = vpack.c.bf16 %v2362_v33, %v2362_v33  ;;  %v2682_v39 = vpack.c.bf16 %v2426_v35, %v2426_v35 }
  0xfd   :  { %v2491_v40 = vpack.c.bf16 %v2235_v36, %v2235_v36  ;;  %v2555_v41 = vpack.c.bf16 %v2299_v37, %v2299_v37  ;;  %v1680_v42 = vpop.f32.mrf.mxu2  ;;  %v1840_v43 = vpop.f32.mrf.mxu3 }
  0xfe   :  { %2875 = vst.msk [vmem:[%s5623_s3 + $0x234] sm:$0xf] %vm2733_vm1, %v2618_v38  ;;  %v1681_v44 = vadd.f32 %v3939_v34, %v1680_v42  ;;  %v1841_v45 = vadd.f32 %v3939_v34, %v1840_v43  ;;  %v1362_v46 = vpop.f32.mrf.mxu0  ;;  %v1522_v47 = vpop.f32.mrf.mxu1 }
  0xff   :  { %2939 = vst.msk [vmem:[%s5623_s3 + $0x334] sm:$0xf] %vm2733_vm1, %v2682_v39  ;;  %v1363_v48 = vadd.f32 %v3939_v34, %v1362_v46  ;;  %v1523_v49 = vadd.f32 %v3939_v34, %v1522_v47  ;;  %v3691_v46 = vld [vmem:[%s5621_s0 + $0x188] sm:$0xff] }
 0x100   :  { %2748 = vst.msk [vmem:[%s5623_s3 + $0x38] sm:$0xf] %vm2733_vm1, %v2491_v40  ;;  %v2107_v50 = vmul.f32 0.2, %v1681_v44  ;;  %v2171_v51 = vmul.f32 0.2, %v1841_v45 }
 0x101   :  { %2812 = vst.msk [vmem:[%s5623_s3 + $0x138] sm:$0xf] %vm2733_vm1, %v2555_v41  ;;  %v1980_v52 = vmul.f32 0.2, %v1363_v48  ;;  %v2044_v53 = vmul.f32 0.2, %v1523_v49 }
 0x102   :  { %v2363_v54 = vmax.f32 %v1681_v44, %v2107_v50  ;;  %v2427_v55 = vmax.f32 %v1841_v45, %v2171_v51  ;;  %v3659_v45 = vld [vmem:[%s5621_s0 + $0x88] sm:$0xff] }
 0x103   :  { %v2236_v56 = vmax.f32 %v1363_v48, %v1980_v52  ;;  %v2300_v57 = vmax.f32 %v1523_v49, %v2044_v53  ;;  %v3723_v51 = vld [vmem:[%s5621_s0 + $0x288] sm:$0xff] }
 0x104   :  { %v2619_v58 = vpack.c.bf16 %v2363_v54, %v2363_v54  ;;  %v2683_v59 = vpack.c.bf16 %v2427_v55, %v2427_v55  ;;  %v3755_v52 = vld [vmem:[%s5621_s0 + $0x388] sm:$0xff] }
 0x105   :  { %v2492_v60 = vpack.c.bf16 %v2236_v56, %v2236_v56  ;;  %v2556_v61 = vpack.c.bf16 %v2300_v57, %v2300_v57  ;;  %v1682_v62 = vpop.f32.mrf.mxu2  ;;  %v1842_v63 = vpop.f32.mrf.mxu3 }
 0x106   :  { %2876 = vst.msk [vmem:[%s5623_s3 + $0x238] sm:$0xf] %vm2733_vm1, %v2619_v58  ;;  %v1683_v2 = vadd.f32 %v3939_v34, %v1682_v62  ;;  %v1843_v3 = vadd.f32 %v3939_v34, %v1842_v63  ;;  %v1365_v4 = vpop.f32.mrf.mxu0  ;;  %v1525_v5 = vpop.f32.mrf.mxu1 }
 0x107   :  { %2940 = vst.msk [vmem:[%s5623_s3 + $0x338] sm:$0xf] %vm2733_vm1, %v2683_v59  ;;  %v1366_v8 = vadd.f32 %v3939_v34, %v1365_v4  ;;  %v1526_v9 = vadd.f32 %v3939_v34, %v1525_v5  ;;  %v4462_v4 = vld [vmem:[%s5622_s2] ss:$0 sm:$0xff] }
 0x108   :  { %2749 = vst.msk [vmem:[%s5623_s3 + $0x3c] sm:$0xf] %vm2733_vm1, %v2492_v60  ;;  %v2108_v10 = vmul.f32 0.2, %v1683_v2  ;;  %v2172_v11 = vmul.f32 0.2, %v1843_v3 }
 0x109   :  { %2813 = vst.msk [vmem:[%s5623_s3 + $0x13c] sm:$0xf] %vm2733_vm1, %v2556_v61  ;;  %v1981_v12 = vmul.f32 0.2, %v1366_v8  ;;  %v2045_v13 = vmul.f32 0.2, %v1526_v9  ;;  %3530 = vmatmul.msk.bf16.gmra.mxu0 %vm931_vm0, %v3658_v0  ;;  %3562 = vmatmul.msk.bf16.gmra.mxu1 %vm931_vm0, %v3690_v1 }
 0x10a   :  { %v2364_v14 = vmax.f32 %v1683_v2, %v2108_v10  ;;  %v2428_v15 = vmax.f32 %v1843_v3, %v2172_v11  ;;  %3594 = vmatmul.msk.bf16.gmra.mxu2 %vm931_vm0, %v3722_v6  ;;  %3626 = vmatmul.msk.bf16.gmra.mxu3 %vm931_vm0, %v3754_v7 }
 0x10b   :  { %v2237_v16 = vmax.f32 %v1366_v8, %v1981_v12  ;;  %v2301_v17 = vmax.f32 %v1526_v9, %v2045_v13 }
 0x10c   :  { %v2620_v18 = vpack.c.bf16 %v2364_v14, %v2364_v14  ;;  %v2684_v19 = vpack.c.bf16 %v2428_v15, %v2428_v15 }
 0x10d   :  { %v2493_v20 = vpack.c.bf16 %v2237_v16, %v2237_v16  ;;  %v2557_v21 = vpack.c.bf16 %v2301_v17, %v2301_v17  ;;  %v1685_v22 = vpop.f32.mrf.mxu2  ;;  %v1845_v23 = vpop.f32.mrf.mxu3 }
 0x10e   :  { %2877 = vst.msk [vmem:[%s5623_s3 + $0x23c] sm:$0xf] %vm2733_vm1, %v2620_v18  ;;  %v1686_v24 = vadd.f32 %v3939_v34, %v1685_v22  ;;  %v1846_v25 = vadd.f32 %v3939_v34, %v1845_v23  ;;  %v1367_v26 = vpop.f32.mrf.mxu0  ;;  %v1527_v27 = vpop.f32.mrf.mxu1 }
 0x10f   :  { %2941 = vst.msk [vmem:[%s5623_s3 + $0x33c] sm:$0xf] %vm2733_vm1, %v2684_v19  ;;  %v1368_v28 = vadd.f32 %v3939_v34, %v1367_v26  ;;  %v1528_v29 = vadd.f32 %v3939_v34, %v1527_v27  ;;  %v3692_v26 = vld [vmem:[%s5621_s0 + $0x190] sm:$0xff] }
 0x110   :  { %2750 = vst.msk [vmem:[%s5623_s3 + $0x40] sm:$0xf] %vm2733_vm1, %v2493_v20  ;;  %v2109_v30 = vmul.f32 0.2, %v1686_v24  ;;  %v2173_v31 = vmul.f32 0.2, %v1846_v25 }
 0x111   :  { %2814 = vst.msk [vmem:[%s5623_s3 + $0x140] sm:$0xf] %vm2733_vm1, %v2557_v21  ;;  %v1982_v32 = vmul.f32 0.2, %v1368_v28  ;;  %v2046_v33 = vmul.f32 0.2, %v1528_v29 }
 0x112   :  { %v2365_v35 = vmax.f32 %v1686_v24, %v2109_v30  ;;  %v2429_v36 = vmax.f32 %v1846_v25, %v2173_v31  ;;  %v3660_v25 = vld [vmem:[%s5621_s0 + $0x90] sm:$0xff] }
 0x113   :  { %v2238_v37 = vmax.f32 %v1368_v28, %v1982_v32  ;;  %v2302_v38 = vmax.f32 %v1528_v29, %v2046_v33  ;;  %v3724_v31 = vld [vmem:[%s5621_s0 + $0x290] sm:$0xff] }
 0x114   :  { %v2621_v39 = vpack.c.bf16 %v2365_v35, %v2365_v35  ;;  %v2685_v40 = vpack.c.bf16 %v2429_v36, %v2429_v36  ;;  %v3756_v32 = vld [vmem:[%s5621_s0 + $0x390] sm:$0xff] }
 0x115   :  { %v2494_v41 = vpack.c.bf16 %v2238_v37, %v2238_v37  ;;  %v2558_v42 = vpack.c.bf16 %v2302_v38, %v2302_v38  ;;  %v1687_v43 = vpop.f32.mrf.mxu2  ;;  %v1847_v44 = vpop.f32.mrf.mxu3 }
 0x116   :  { %2878 = vst.msk [vmem:[%s5623_s3 + $0x240] sm:$0xf] %vm2733_vm1, %v2621_v39  ;;  %v1688_v47 = vadd.f32 %v3939_v34, %v1687_v43  ;;  %v1848_v48 = vadd.f32 %v3939_v34, %v1847_v44  ;;  %v1370_v49 = vpop.f32.mrf.mxu0  ;;  %v1530_v50 = vpop.f32.mrf.mxu1 }
 0x117   :  { %2942 = vst.msk [vmem:[%s5623_s3 + $0x340] sm:$0xf] %vm2733_vm1, %v2685_v40  ;;  %v1371_v53 = vadd.f32 %v3939_v34, %v1370_v49  ;;  %v1531_v54 = vadd.f32 %v3939_v34, %v1530_v50 }
 0x118   :  { %2751 = vst.msk [vmem:[%s5623_s3 + $0x44] sm:$0xf] %vm2733_vm1, %v2494_v41  ;;  %v2110_v55 = vmul.f32 0.2, %v1688_v47  ;;  %v2174_v56 = vmul.f32 0.2, %v1848_v48 }
 0x119   :  { %2815 = vst.msk [vmem:[%s5623_s3 + $0x144] sm:$0xf] %vm2733_vm1, %v2558_v42  ;;  %v1983_v57 = vmul.f32 0.2, %v1371_v53  ;;  %v2047_v58 = vmul.f32 0.2, %v1531_v54  ;;  %3531 = vmatmul.msk.bf16.gmra.mxu0 %vm931_vm0, %v3659_v45  ;;  %3563 = vmatmul.msk.bf16.gmra.mxu1 %vm931_vm0, %v3691_v46 }
 0x11a   :  { %v2366_v59 = vmax.f32 %v1688_v47, %v2110_v55  ;;  %v2430_v34 = vmax.f32 %v1848_v48, %v2174_v56  ;;  %3595 = vmatmul.msk.bf16.gmra.mxu2 %vm931_vm0, %v3723_v51  ;;  %3627 = vmatmul.msk.bf16.gmra.mxu3 %vm931_vm0, %v3755_v52 }
 0x11b   :  { %v2239_v60 = vmax.f32 %v1371_v53, %v1983_v57  ;;  %v2303_v61 = vmax.f32 %v1531_v54, %v2047_v58 }
 0x11c   :  { %v2622_v62 = vpack.c.bf16 %v2366_v59, %v2366_v59  ;;  %v2686_v63 = vpack.c.bf16 %v2430_v34, %v2430_v34 }
 0x11d   :  { %v2495_v0 = vpack.c.bf16 %v2239_v60, %v2239_v60  ;;  %v2559_v1 = vpack.c.bf16 %v2303_v61, %v2303_v61  ;;  %v1690_v2 = vpop.f32.mrf.mxu2  ;;  %v1850_v3 = vpop.f32.mrf.mxu3 }
 0x11e   :  { %2879 = vst.msk [vmem:[%s5623_s3 + $0x244] sm:$0xf] %vm2733_vm1, %v2622_v62  ;;  %v1691_v5 = vadd.f32 %v4462_v4, %v1690_v2  ;;  %v1851_v6 = vadd.f32 %v4462_v4, %v1850_v3  ;;  %v1372_v7 = vpop.f32.mrf.mxu0  ;;  %v1532_v8 = vpop.f32.mrf.mxu1 }
 0x11f   :  { %2943 = vst.msk [vmem:[%s5623_s3 + $0x344] sm:$0xf] %vm2733_vm1, %v2686_v63  ;;  %v1373_v9 = vadd.f32 %v4462_v4, %v1372_v7  ;;  %v1533_v10 = vadd.f32 %v4462_v4, %v1532_v8  ;;  %v3693_v7 = vld [vmem:[%s5621_s0 + $0x198] sm:$0xff] }
 0x120   :  { %2752 = vst.msk [vmem:[%s5623_s3 + $0x48] sm:$0xf] %vm2733_vm1, %v2495_v0  ;;  %v2111_v11 = vmul.f32 0.2, %v1691_v5  ;;  %v2175_v12 = vmul.f32 0.2, %v1851_v6 }
 0x121   :  { %2816 = vst.msk [vmem:[%s5623_s3 + $0x148] sm:$0xf] %vm2733_vm1, %v2559_v1  ;;  %v1984_v13 = vmul.f32 0.2, %v1373_v9  ;;  %v2048_v14 = vmul.f32 0.2, %v1533_v10 }
 0x122   :  { %v2367_v15 = vmax.f32 %v1691_v5, %v2111_v11  ;;  %v2431_v16 = vmax.f32 %v1851_v6, %v2175_v12  ;;  %v3661_v6 = vld [vmem:[%s5621_s0 + $0x98] sm:$0xff] }
 0x123   :  { %v2240_v17 = vmax.f32 %v1373_v9, %v1984_v13  ;;  %v2304_v18 = vmax.f32 %v1533_v10, %v2048_v14  ;;  %v3725_v12 = vld [vmem:[%s5621_s0 + $0x298] sm:$0xff] }
 0x124   :  { %v2623_v19 = vpack.c.bf16 %v2367_v15, %v2367_v15  ;;  %v2687_v20 = vpack.c.bf16 %v2431_v16, %v2431_v16  ;;  %v3757_v13 = vld [vmem:[%s5621_s0 + $0x398] sm:$0xff] }
 0x125   :  { %v2496_v21 = vpack.c.bf16 %v2240_v17, %v2240_v17  ;;  %v2560_v22 = vpack.c.bf16 %v2304_v18, %v2304_v18  ;;  %v1692_v23 = vpop.f32.mrf.mxu2  ;;  %v1852_v24 = vpop.f32.mrf.mxu3 }
 0x126   :  { %2880 = vst.msk [vmem:[%s5623_s3 + $0x248] sm:$0xf] %vm2733_vm1, %v2623_v19  ;;  %v1693_v27 = vadd.f32 %v4462_v4, %v1692_v23  ;;  %v1853_v28 = vadd.f32 %v4462_v4, %v1852_v24  ;;  %v1375_v29 = vpop.f32.mrf.mxu0  ;;  %v1535_v30 = vpop.f32.mrf.mxu1 }
 0x127   :  { %2944 = vst.msk [vmem:[%s5623_s3 + $0x348] sm:$0xf] %vm2733_vm1, %v2687_v20  ;;  %v1376_v33 = vadd.f32 %v4462_v4, %v1375_v29  ;;  %v1536_v35 = vadd.f32 %v4462_v4, %v1535_v30 }
 0x128   :  { %2753 = vst.msk [vmem:[%s5623_s3 + $0x4c] sm:$0xf] %vm2733_vm1, %v2496_v21  ;;  %v2112_v36 = vmul.f32 0.2, %v1693_v27  ;;  %v2176_v37 = vmul.f32 0.2, %v1853_v28 }
 0x129   :  { %2817 = vst.msk [vmem:[%s5623_s3 + $0x14c] sm:$0xf] %vm2733_vm1, %v2560_v22  ;;  %v1985_v38 = vmul.f32 0.2, %v1376_v33  ;;  %v2049_v39 = vmul.f32 0.2, %v1536_v35  ;;  %3532 = vmatmul.msk.bf16.gmra.mxu0 %vm931_vm0, %v3660_v25  ;;  %3564 = vmatmul.msk.bf16.gmra.mxu1 %vm931_vm0, %v3692_v26 }
 0x12a   :  { %v2368_v40 = vmax.f32 %v1693_v27, %v2112_v36  ;;  %v2432_v41 = vmax.f32 %v1853_v28, %v2176_v37  ;;  %3596 = vmatmul.msk.bf16.gmra.mxu2 %vm931_vm0, %v3724_v31  ;;  %3628 = vmatmul.msk.bf16.gmra.mxu3 %vm931_vm0, %v3756_v32 }
 0x12b   :  { %v2241_v42 = vmax.f32 %v1376_v33, %v1985_v38  ;;  %v2305_v43 = vmax.f32 %v1536_v35, %v2049_v39 }
 0x12c   :  { %v2624_v44 = vpack.c.bf16 %v2368_v40, %v2368_v40  ;;  %v2688_v45 = vpack.c.bf16 %v2432_v41, %v2432_v41 }
 0x12d   :  { %v2497_v46 = vpack.c.bf16 %v2241_v42, %v2241_v42  ;;  %v2561_v47 = vpack.c.bf16 %v2305_v43, %v2305_v43  ;;  %v1695_v48 = vpop.f32.mrf.mxu2  ;;  %v1855_v49 = vpop.f32.mrf.mxu3 }
 0x12e   :  { %2881 = vst.msk [vmem:[%s5623_s3 + $0x24c] sm:$0xf] %vm2733_vm1, %v2624_v44  ;;  %v1696_v50 = vadd.f32 %v4462_v4, %v1695_v48  ;;  %v1856_v51 = vadd.f32 %v4462_v4, %v1855_v49  ;;  %v1377_v52 = vpop.f32.mrf.mxu0  ;;  %v1537_v53 = vpop.f32.mrf.mxu1 }
 0x12f   :  { %2945 = vst.msk [vmem:[%s5623_s3 + $0x34c] sm:$0xf] %vm2733_vm1, %v2688_v45  ;;  %v1378_v54 = vadd.f32 %v4462_v4, %v1377_v52  ;;  %v1538_v55 = vadd.f32 %v4462_v4, %v1537_v53  ;;  %v3694_v52 = vld [vmem:[%s5621_s0 + $0x1a0] sm:$0xff] }
 0x130   :  { %2754 = vst.msk [vmem:[%s5623_s3 + $0x50] sm:$0xf] %vm2733_vm1, %v2497_v46  ;;  %v2113_v56 = vmul.f32 0.2, %v1696_v50  ;;  %v2177_v57 = vmul.f32 0.2, %v1856_v51 }
 0x131   :  { %2818 = vst.msk [vmem:[%s5623_s3 + $0x150] sm:$0xf] %vm2733_vm1, %v2561_v47  ;;  %v1986_v58 = vmul.f32 0.2, %v1378_v54  ;;  %v2050_v59 = vmul.f32 0.2, %v1538_v55 }
 0x132   :  { %v2369_v34 = vmax.f32 %v1696_v50, %v2113_v56  ;;  %v2433_v60 = vmax.f32 %v1856_v51, %v2177_v57  ;;  %v3662_v51 = vld [vmem:[%s5621_s0 + $0xa0] sm:$0xff] }
 0x133   :  { %v2242_v61 = vmax.f32 %v1378_v54, %v1986_v58  ;;  %v2306_v62 = vmax.f32 %v1538_v55, %v2050_v59  ;;  %v3726_v57 = vld [vmem:[%s5621_s0 + $0x2a0] sm:$0xff] }
 0x134   :  { %v2625_v63 = vpack.c.bf16 %v2369_v34, %v2369_v34  ;;  %v2689_v0 = vpack.c.bf16 %v2433_v60, %v2433_v60  ;;  %v3758_v58 = vld [vmem:[%s5621_s0 + $0x3a0] sm:$0xff] }
 0x135   :  { %v2498_v1 = vpack.c.bf16 %v2242_v61, %v2242_v61  ;;  %v2562_v2 = vpack.c.bf16 %v2306_v62, %v2306_v62  ;;  %v1697_v3 = vpop.f32.mrf.mxu2  ;;  %v1857_v5 = vpop.f32.mrf.mxu3 }
 0x136   :  { %2882 = vst.msk [vmem:[%s5623_s3 + $0x250] sm:$0xf] %vm2733_vm1, %v2625_v63  ;;  %v1698_v8 = vadd.f32 %v4462_v4, %v1697_v3  ;;  %v1858_v9 = vadd.f32 %v4462_v4, %v1857_v5  ;;  %v1380_v10 = vpop.f32.mrf.mxu0  ;;  %v1540_v11 = vpop.f32.mrf.mxu1 }
 0x137   :  { %2946 = vst.msk [vmem:[%s5623_s3 + $0x350] sm:$0xf] %vm2733_vm1, %v2689_v0  ;;  %v1381_v14 = vadd.f32 %v4462_v4, %v1380_v10  ;;  %v1541_v15 = vadd.f32 %v4462_v4, %v1540_v11 }
 0x138   :  { %2755 = vst.msk [vmem:[%s5623_s3 + $0x54] sm:$0xf] %vm2733_vm1, %v2498_v1  ;;  %v2114_v16 = vmul.f32 0.2, %v1698_v8  ;;  %v2178_v17 = vmul.f32 0.2, %v1858_v9 }
 0x139   :  { %2819 = vst.msk [vmem:[%s5623_s3 + $0x154] sm:$0xf] %vm2733_vm1, %v2562_v2  ;;  %v1987_v18 = vmul.f32 0.2, %v1381_v14  ;;  %v2051_v19 = vmul.f32 0.2, %v1541_v15  ;;  %3533 = vmatmul.msk.bf16.gmra.mxu0 %vm931_vm0, %v3661_v6  ;;  %3565 = vmatmul.msk.bf16.gmra.mxu1 %vm931_vm0, %v3693_v7 }
 0x13a   :  { %v2370_v20 = vmax.f32 %v1698_v8, %v2114_v16  ;;  %v2434_v21 = vmax.f32 %v1858_v9, %v2178_v17  ;;  %3597 = vmatmul.msk.bf16.gmra.mxu2 %vm931_vm0, %v3725_v12  ;;  %3629 = vmatmul.msk.bf16.gmra.mxu3 %vm931_vm0, %v3757_v13 }
 0x13b   :  { %v2243_v22 = vmax.f32 %v1381_v14, %v1987_v18  ;;  %v2307_v23 = vmax.f32 %v1541_v15, %v2051_v19 }
 0x13c   :  { %v2626_v24 = vpack.c.bf16 %v2370_v20, %v2370_v20  ;;  %v2690_v25 = vpack.c.bf16 %v2434_v21, %v2434_v21 }
 0x13d   :  { %v2499_v26 = vpack.c.bf16 %v2243_v22, %v2243_v22  ;;  %v2563_v27 = vpack.c.bf16 %v2307_v23, %v2307_v23  ;;  %v1700_v28 = vpop.f32.mrf.mxu2  ;;  %v1860_v29 = vpop.f32.mrf.mxu3 }
 0x13e   :  { %2883 = vst.msk [vmem:[%s5623_s3 + $0x254] sm:$0xf] %vm2733_vm1, %v2626_v24  ;;  %v1701_v30 = vadd.f32 %v4462_v4, %v1700_v28  ;;  %v1861_v31 = vadd.f32 %v4462_v4, %v1860_v29  ;;  %v1382_v32 = vpop.f32.mrf.mxu0  ;;  %v1542_v33 = vpop.f32.mrf.mxu1 }
 0x13f   :  { %2947 = vst.msk [vmem:[%s5623_s3 + $0x354] sm:$0xf] %vm2733_vm1, %v2690_v25  ;;  %v1383_v35 = vadd.f32 %v4462_v4, %v1382_v32  ;;  %v1543_v36 = vadd.f32 %v4462_v4, %v1542_v33  ;;  %v3695_v32 = vld [vmem:[%s5621_s0 + $0x1a8] sm:$0xff] }
 0x140   :  { %2756 = vst.msk [vmem:[%s5623_s3 + $0x58] sm:$0xf] %vm2733_vm1, %v2499_v26  ;;  %v2115_v37 = vmul.f32 0.2, %v1701_v30  ;;  %v2179_v38 = vmul.f32 0.2, %v1861_v31 }
 0x141   :  { %2820 = vst.msk [vmem:[%s5623_s3 + $0x158] sm:$0xf] %vm2733_vm1, %v2563_v27  ;;  %v1988_v39 = vmul.f32 0.2, %v1383_v35  ;;  %v2052_v40 = vmul.f32 0.2, %v1543_v36 }
 0x142   :  { %v2371_v41 = vmax.f32 %v1701_v30, %v2115_v37  ;;  %v2435_v42 = vmax.f32 %v1861_v31, %v2179_v38  ;;  %v3663_v31 = vld [vmem:[%s5621_s0 + $0xa8] sm:$0xff] }
 0x143   :  { %v2244_v43 = vmax.f32 %v1383_v35, %v1988_v39  ;;  %v2308_v44 = vmax.f32 %v1543_v36, %v2052_v40  ;;  %v3727_v38 = vld [vmem:[%s5621_s0 + $0x2a8] sm:$0xff] }
 0x144   :  { %v2627_v45 = vpack.c.bf16 %v2371_v41, %v2371_v41  ;;  %v2691_v46 = vpack.c.bf16 %v2435_v42, %v2435_v42  ;;  %v3759_v39 = vld [vmem:[%s5621_s0 + $0x3a8] sm:$0xff] }
 0x145   :  { %v2500_v47 = vpack.c.bf16 %v2244_v43, %v2244_v43  ;;  %v2564_v48 = vpack.c.bf16 %v2308_v44, %v2308_v44  ;;  %v1702_v49 = vpop.f32.mrf.mxu2  ;;  %v1862_v50 = vpop.f32.mrf.mxu3 }
 0x146   :  { %2884 = vst.msk [vmem:[%s5623_s3 + $0x258] sm:$0xf] %vm2733_vm1, %v2627_v45  ;;  %v1703_v53 = vadd.f32 %v4462_v4, %v1702_v49  ;;  %v1863_v54 = vadd.f32 %v4462_v4, %v1862_v50  ;;  %v1385_v55 = vpop.f32.mrf.mxu0  ;;  %v1545_v56 = vpop.f32.mrf.mxu1 }
 0x147   :  { %2948 = vst.msk [vmem:[%s5623_s3 + $0x358] sm:$0xf] %vm2733_vm1, %v2691_v46  ;;  %v1386_v59 = vadd.f32 %v4462_v4, %v1385_v55  ;;  %v1546_v34 = vadd.f32 %v4462_v4, %v1545_v56 }
 0x148   :  { %2757 = vst.msk [vmem:[%s5623_s3 + $0x5c] sm:$0xf] %vm2733_vm1, %v2500_v47  ;;  %v2116_v60 = vmul.f32 0.2, %v1703_v53  ;;  %v2180_v61 = vmul.f32 0.2, %v1863_v54 }
 0x149   :  { %2821 = vst.msk [vmem:[%s5623_s3 + $0x15c] sm:$0xf] %vm2733_vm1, %v2564_v48  ;;  %v1989_v62 = vmul.f32 0.2, %v1386_v59  ;;  %v2053_v63 = vmul.f32 0.2, %v1546_v34  ;;  %3534 = vmatmul.msk.bf16.gmra.mxu0 %vm931_vm0, %v3662_v51  ;;  %3566 = vmatmul.msk.bf16.gmra.mxu1 %vm931_vm0, %v3694_v52 }
 0x14a   :  { %v2372_v0 = vmax.f32 %v1703_v53, %v2116_v60  ;;  %v2436_v1 = vmax.f32 %v1863_v54, %v2180_v61  ;;  %3598 = vmatmul.msk.bf16.gmra.mxu2 %vm931_vm0, %v3726_v57  ;;  %3630 = vmatmul.msk.bf16.gmra.mxu3 %vm931_vm0, %v3758_v58 }
 0x14b   :  { %v2245_v2 = vmax.f32 %v1386_v59, %v1989_v62  ;;  %v2309_v3 = vmax.f32 %v1546_v34, %v2053_v63 }
 0x14c   :  { %v2628_v5 = vpack.c.bf16 %v2372_v0, %v2372_v0  ;;  %v2692_v6 = vpack.c.bf16 %v2436_v1, %v2436_v1 }
 0x14d   :  { %v2501_v7 = vpack.c.bf16 %v2245_v2, %v2245_v2  ;;  %v2565_v8 = vpack.c.bf16 %v2309_v3, %v2309_v3  ;;  %v1705_v9 = vpop.f32.mrf.mxu2  ;;  %v1865_v10 = vpop.f32.mrf.mxu3 }
 0x14e   :  { %2885 = vst.msk [vmem:[%s5623_s3 + $0x25c] sm:$0xf] %vm2733_vm1, %v2628_v5  ;;  %v1706_v11 = vadd.f32 %v4462_v4, %v1705_v9  ;;  %v1866_v12 = vadd.f32 %v4462_v4, %v1865_v10  ;;  %v1387_v13 = vpop.f32.mrf.mxu0  ;;  %v1547_v14 = vpop.f32.mrf.mxu1 }
 0x14f   :  { %2949 = vst.msk [vmem:[%s5623_s3 + $0x35c] sm:$0xf] %vm2733_vm1, %v2692_v6  ;;  %v1388_v15 = vadd.f32 %v4462_v4, %v1387_v13  ;;  %v1548_v16 = vadd.f32 %v4462_v4, %v1547_v14  ;;  %v3696_v13 = vld [vmem:[%s5621_s0 + $0x1b0] sm:$0xff] }
 0x150   :  { %2758 = vst.msk [vmem:[%s5623_s3 + $0x60] sm:$0xf] %vm2733_vm1, %v2501_v7  ;;  %v2117_v17 = vmul.f32 0.2, %v1706_v11  ;;  %v2181_v18 = vmul.f32 0.2, %v1866_v12 }
 0x151   :  { %2822 = vst.msk [vmem:[%s5623_s3 + $0x160] sm:$0xf] %vm2733_vm1, %v2565_v8  ;;  %v1990_v19 = vmul.f32 0.2, %v1388_v15  ;;  %v2054_v20 = vmul.f32 0.2, %v1548_v16 }
 0x152   :  { %v2373_v21 = vmax.f32 %v1706_v11, %v2117_v17  ;;  %v2437_v22 = vmax.f32 %v1866_v12, %v2181_v18  ;;  %v3664_v12 = vld [vmem:[%s5621_s0 + $0xb0] sm:$0xff] }
 0x153   :  { %v2246_v23 = vmax.f32 %v1388_v15, %v1990_v19  ;;  %v2310_v24 = vmax.f32 %v1548_v16, %v2054_v20  ;;  %v3728_v18 = vld [vmem:[%s5621_s0 + $0x2b0] sm:$0xff] }
 0x154   :  { %v2629_v25 = vpack.c.bf16 %v2373_v21, %v2373_v21  ;;  %v2693_v26 = vpack.c.bf16 %v2437_v22, %v2437_v22  ;;  %v3760_v19 = vld [vmem:[%s5621_s0 + $0x3b0] sm:$0xff] }
 0x155   :  { %v2502_v27 = vpack.c.bf16 %v2246_v23, %v2246_v23  ;;  %v2566_v28 = vpack.c.bf16 %v2310_v24, %v2310_v24  ;;  %v1707_v29 = vpop.f32.mrf.mxu2  ;;  %v1867_v30 = vpop.f32.mrf.mxu3 }
 0x156   :  { %2886 = vst.msk [vmem:[%s5623_s3 + $0x260] sm:$0xf] %vm2733_vm1, %v2629_v25  ;;  %v1708_v33 = vadd.f32 %v4462_v4, %v1707_v29  ;;  %v1868_v35 = vadd.f32 %v4462_v4, %v1867_v30  ;;  %v1390_v36 = vpop.f32.mrf.mxu0  ;;  %v1550_v37 = vpop.f32.mrf.mxu1 }
 0x157   :  { %2950 = vst.msk [vmem:[%s5623_s3 + $0x360] sm:$0xf] %vm2733_vm1, %v2693_v26  ;;  %v1391_v40 = vadd.f32 %v4462_v4, %v1390_v36  ;;  %v1551_v41 = vadd.f32 %v4462_v4, %v1550_v37 }
 0x158   :  { %2759 = vst.msk [vmem:[%s5623_s3 + $0x64] sm:$0xf] %vm2733_vm1, %v2502_v27  ;;  %v2118_v42 = vmul.f32 0.2, %v1708_v33  ;;  %v2182_v43 = vmul.f32 0.2, %v1868_v35 }
 0x159   :  { %2823 = vst.msk [vmem:[%s5623_s3 + $0x164] sm:$0xf] %vm2733_vm1, %v2566_v28  ;;  %v1991_v44 = vmul.f32 0.2, %v1391_v40  ;;  %v2055_v45 = vmul.f32 0.2, %v1551_v41  ;;  %3535 = vmatmul.msk.bf16.gmra.mxu0 %vm931_vm0, %v3663_v31  ;;  %3567 = vmatmul.msk.bf16.gmra.mxu1 %vm931_vm0, %v3695_v32 }
 0x15a   :  { %v2374_v46 = vmax.f32 %v1708_v33, %v2118_v42  ;;  %v2438_v47 = vmax.f32 %v1868_v35, %v2182_v43  ;;  %3599 = vmatmul.msk.bf16.gmra.mxu2 %vm931_vm0, %v3727_v38  ;;  %3631 = vmatmul.msk.bf16.gmra.mxu3 %vm931_vm0, %v3759_v39 }
 0x15b   :  { %v2247_v48 = vmax.f32 %v1391_v40, %v1991_v44  ;;  %v2311_v49 = vmax.f32 %v1551_v41, %v2055_v45 }
 0x15c   :  { %v2630_v50 = vpack.c.bf16 %v2374_v46, %v2374_v46  ;;  %v2694_v51 = vpack.c.bf16 %v2438_v47, %v2438_v47 }
 0x15d   :  { %v2503_v52 = vpack.c.bf16 %v2247_v48, %v2247_v48  ;;  %v2567_v53 = vpack.c.bf16 %v2311_v49, %v2311_v49  ;;  %v1710_v54 = vpop.f32.mrf.mxu2  ;;  %v1870_v55 = vpop.f32.mrf.mxu3 }
 0x15e   :  { %2887 = vst.msk [vmem:[%s5623_s3 + $0x264] sm:$0xf] %vm2733_vm1, %v2630_v50  ;;  %v1711_v56 = vadd.f32 %v4462_v4, %v1710_v54  ;;  %v1871_v57 = vadd.f32 %v4462_v4, %v1870_v55  ;;  %v1392_v58 = vpop.f32.mrf.mxu0  ;;  %v1552_v59 = vpop.f32.mrf.mxu1 }
 0x15f   :  { %2951 = vst.msk [vmem:[%s5623_s3 + $0x364] sm:$0xf] %vm2733_vm1, %v2694_v51  ;;  %v1393_v34 = vadd.f32 %v4462_v4, %v1392_v58  ;;  %v1553_v60 = vadd.f32 %v4462_v4, %v1552_v59  ;;  %v3697_v58 = vld [vmem:[%s5621_s0 + $0x1b8] sm:$0xff] }
 0x160   :  { %2760 = vst.msk [vmem:[%s5623_s3 + $0x68] sm:$0xf] %vm2733_vm1, %v2503_v52  ;;  %v2119_v61 = vmul.f32 0.2, %v1711_v56  ;;  %v2183_v62 = vmul.f32 0.2, %v1871_v57 }
 0x161   :  { %2824 = vst.msk [vmem:[%s5623_s3 + $0x168] sm:$0xf] %vm2733_vm1, %v2567_v53  ;;  %v1992_v63 = vmul.f32 0.2, %v1393_v34  ;;  %v2056_v0 = vmul.f32 0.2, %v1553_v60 }
 0x162   :  { %v2375_v1 = vmax.f32 %v1711_v56, %v2119_v61  ;;  %v2439_v2 = vmax.f32 %v1871_v57, %v2183_v62  ;;  %v3665_v57 = vld [vmem:[%s5621_s0 + $0xb8] sm:$0xff] }
 0x163   :  { %v2248_v3 = vmax.f32 %v1393_v34, %v1992_v63  ;;  %v2312_v5 = vmax.f32 %v1553_v60, %v2056_v0  ;;  %v3729_v62 = vld [vmem:[%s5621_s0 + $0x2b8] sm:$0xff] }
 0x164   :  { %v2631_v6 = vpack.c.bf16 %v2375_v1, %v2375_v1  ;;  %v2695_v7 = vpack.c.bf16 %v2439_v2, %v2439_v2  ;;  %v3761_v63 = vld [vmem:[%s5621_s0 + $0x3b8] sm:$0xff] }
 0x165   :  { %v2504_v8 = vpack.c.bf16 %v2248_v3, %v2248_v3  ;;  %v2568_v9 = vpack.c.bf16 %v2312_v5, %v2312_v5  ;;  %v1712_v10 = vpop.f32.mrf.mxu2  ;;  %v1872_v11 = vpop.f32.mrf.mxu3 }
 0x166   :  { %2888 = vst.msk [vmem:[%s5623_s3 + $0x268] sm:$0xf] %vm2733_vm1, %v2631_v6  ;;  %v1713_v14 = vadd.f32 %v4462_v4, %v1712_v10  ;;  %v1873_v15 = vadd.f32 %v4462_v4, %v1872_v11  ;;  %v1395_v16 = vpop.f32.mrf.mxu0  ;;  %v1555_v17 = vpop.f32.mrf.mxu1 }
 0x167   :  { %2952 = vst.msk [vmem:[%s5623_s3 + $0x368] sm:$0xf] %vm2733_vm1, %v2695_v7  ;;  %v1396_v20 = vadd.f32 %v4462_v4, %v1395_v16  ;;  %v1556_v21 = vadd.f32 %v4462_v4, %v1555_v17 }
 0x168   :  { %2761 = vst.msk [vmem:[%s5623_s3 + $0x6c] sm:$0xf] %vm2733_vm1, %v2504_v8  ;;  %v2120_v22 = vmul.f32 0.2, %v1713_v14  ;;  %v2184_v23 = vmul.f32 0.2, %v1873_v15 }
 0x169   :  { %2825 = vst.msk [vmem:[%s5623_s3 + $0x16c] sm:$0xf] %vm2733_vm1, %v2568_v9  ;;  %v1993_v24 = vmul.f32 0.2, %v1396_v20  ;;  %v2057_v25 = vmul.f32 0.2, %v1556_v21  ;;  %3536 = vmatmul.msk.bf16.gmra.mxu0 %vm931_vm0, %v3664_v12  ;;  %3568 = vmatmul.msk.bf16.gmra.mxu1 %vm931_vm0, %v3696_v13 }
 0x16a   :  { %v2376_v26 = vmax.f32 %v1713_v14, %v2120_v22  ;;  %v2440_v27 = vmax.f32 %v1873_v15, %v2184_v23  ;;  %3600 = vmatmul.msk.bf16.gmra.mxu2 %vm931_vm0, %v3728_v18  ;;  %3632 = vmatmul.msk.bf16.gmra.mxu3 %vm931_vm0, %v3760_v19 }
 0x16b   :  { %v2249_v28 = vmax.f32 %v1396_v20, %v1993_v24  ;;  %v2313_v29 = vmax.f32 %v1556_v21, %v2057_v25 }
 0x16c   :  { %v2632_v30 = vpack.c.bf16 %v2376_v26, %v2376_v26  ;;  %v2696_v31 = vpack.c.bf16 %v2440_v27, %v2440_v27 }
 0x16d   :  { %v2505_v32 = vpack.c.bf16 %v2249_v28, %v2249_v28  ;;  %v2569_v33 = vpack.c.bf16 %v2313_v29, %v2313_v29  ;;  %v1715_v35 = vpop.f32.mrf.mxu2  ;;  %v1875_v36 = vpop.f32.mrf.mxu3 }
 0x16e   :  { %2889 = vst.msk [vmem:[%s5623_s3 + $0x26c] sm:$0xf] %vm2733_vm1, %v2632_v30  ;;  %v1716_v37 = vadd.f32 %v4462_v4, %v1715_v35  ;;  %v1876_v38 = vadd.f32 %v4462_v4, %v1875_v36  ;;  %v1397_v39 = vpop.f32.mrf.mxu0  ;;  %v1557_v40 = vpop.f32.mrf.mxu1 }
 0x16f   :  { %2953 = vst.msk [vmem:[%s5623_s3 + $0x36c] sm:$0xf] %vm2733_vm1, %v2696_v31  ;;  %v1398_v41 = vadd.f32 %v4462_v4, %v1397_v39  ;;  %v1558_v42 = vadd.f32 %v4462_v4, %v1557_v40  ;;  %v3698_v39 = vld [vmem:[%s5621_s0 + $0x1c0] sm:$0xff] }
 0x170   :  { %2762 = vst.msk [vmem:[%s5623_s3 + $0x70] sm:$0xf] %vm2733_vm1, %v2505_v32  ;;  %v2121_v43 = vmul.f32 0.2, %v1716_v37  ;;  %v2185_v44 = vmul.f32 0.2, %v1876_v38 }
 0x171   :  { %2826 = vst.msk [vmem:[%s5623_s3 + $0x170] sm:$0xf] %vm2733_vm1, %v2569_v33  ;;  %v1994_v45 = vmul.f32 0.2, %v1398_v41  ;;  %v2058_v46 = vmul.f32 0.2, %v1558_v42 }
 0x172   :  { %v2377_v47 = vmax.f32 %v1716_v37, %v2121_v43  ;;  %v2441_v48 = vmax.f32 %v1876_v38, %v2185_v44  ;;  %v3666_v38 = vld [vmem:[%s5621_s0 + $0xc0] sm:$0xff] }
 0x173   :  { %v2250_v49 = vmax.f32 %v1398_v41, %v1994_v45  ;;  %v2314_v50 = vmax.f32 %v1558_v42, %v2058_v46  ;;  %v3730_v44 = vld [vmem:[%s5621_s0 + $0x2c0] sm:$0xff] }
 0x174   :  { %v2633_v51 = vpack.c.bf16 %v2377_v47, %v2377_v47  ;;  %v2697_v52 = vpack.c.bf16 %v2441_v48, %v2441_v48  ;;  %v3762_v45 = vld [vmem:[%s5621_s0 + $0x3c0] sm:$0xff] }
 0x175   :  { %v2506_v53 = vpack.c.bf16 %v2250_v49, %v2250_v49  ;;  %v2570_v54 = vpack.c.bf16 %v2314_v50, %v2314_v50  ;;  %v1717_v55 = vpop.f32.mrf.mxu2  ;;  %v1877_v56 = vpop.f32.mrf.mxu3 }
 0x176   :  { %2890 = vst.msk [vmem:[%s5623_s3 + $0x270] sm:$0xf] %vm2733_vm1, %v2633_v51  ;;  %v1718_v59 = vadd.f32 %v4462_v4, %v1717_v55  ;;  %v1878_v34 = vadd.f32 %v4462_v4, %v1877_v56  ;;  %v1400_v60 = vpop.f32.mrf.mxu0  ;;  %v1560_v61 = vpop.f32.mrf.mxu1 }
 0x177   :  { %2954 = vst.msk [vmem:[%s5623_s3 + $0x370] sm:$0xf] %vm2733_vm1, %v2697_v52  ;;  %v1401_v0 = vadd.f32 %v4462_v4, %v1400_v60  ;;  %v1561_v1 = vadd.f32 %v4462_v4, %v1560_v61 }
 0x178   :  { %2763 = vst.msk [vmem:[%s5623_s3 + $0x74] sm:$0xf] %vm2733_vm1, %v2506_v53  ;;  %v2122_v2 = vmul.f32 0.2, %v1718_v59  ;;  %v2186_v3 = vmul.f32 0.2, %v1878_v34 }
 0x179   :  { %2827 = vst.msk [vmem:[%s5623_s3 + $0x174] sm:$0xf] %vm2733_vm1, %v2570_v54  ;;  %v1995_v5 = vmul.f32 0.2, %v1401_v0  ;;  %v2059_v6 = vmul.f32 0.2, %v1561_v1  ;;  %3537 = vmatmul.msk.bf16.gmra.mxu0 %vm931_vm0, %v3665_v57  ;;  %3569 = vmatmul.msk.bf16.gmra.mxu1 %vm931_vm0, %v3697_v58 }
 0x17a   :  { %v2378_v7 = vmax.f32 %v1718_v59, %v2122_v2  ;;  %v2442_v8 = vmax.f32 %v1878_v34, %v2186_v3  ;;  %3601 = vmatmul.msk.bf16.gmra.mxu2 %vm931_vm0, %v3729_v62  ;;  %3633 = vmatmul.msk.bf16.gmra.mxu3 %vm931_vm0, %v3761_v63 }
 0x17b   :  { %v2251_v9 = vmax.f32 %v1401_v0, %v1995_v5  ;;  %v2315_v10 = vmax.f32 %v1561_v1, %v2059_v6 }
 0x17c   :  { %v2634_v11 = vpack.c.bf16 %v2378_v7, %v2378_v7  ;;  %v2698_v12 = vpack.c.bf16 %v2442_v8, %v2442_v8 }
 0x17d   :  { %v2507_v13 = vpack.c.bf16 %v2251_v9, %v2251_v9  ;;  %v2571_v14 = vpack.c.bf16 %v2315_v10, %v2315_v10  ;;  %v1720_v15 = vpop.f32.mrf.mxu2  ;;  %v1880_v16 = vpop.f32.mrf.mxu3 }
 0x17e   :  { %2891 = vst.msk [vmem:[%s5623_s3 + $0x274] sm:$0xf] %vm2733_vm1, %v2634_v11  ;;  %v1721_v17 = vadd.f32 %v4462_v4, %v1720_v15  ;;  %v1881_v18 = vadd.f32 %v4462_v4, %v1880_v16  ;;  %v1402_v19 = vpop.f32.mrf.mxu0  ;;  %v1562_v20 = vpop.f32.mrf.mxu1 }
 0x17f   :  { %2955 = vst.msk [vmem:[%s5623_s3 + $0x374] sm:$0xf] %vm2733_vm1, %v2698_v12  ;;  %v1403_v21 = vadd.f32 %v4462_v4, %v1402_v19  ;;  %v1563_v22 = vadd.f32 %v4462_v4, %v1562_v20  ;;  %v3699_v19 = vld [vmem:[%s5621_s0 + $0x1c8] sm:$0xff] }
 0x180   :  { %2764 = vst.msk [vmem:[%s5623_s3 + $0x78] sm:$0xf] %vm2733_vm1, %v2507_v13  ;;  %v2123_v23 = vmul.f32 0.2, %v1721_v17  ;;  %v2187_v24 = vmul.f32 0.2, %v1881_v18 }
 0x181   :  { %2828 = vst.msk [vmem:[%s5623_s3 + $0x178] sm:$0xf] %vm2733_vm1, %v2571_v14  ;;  %v1996_v25 = vmul.f32 0.2, %v1403_v21  ;;  %v2060_v26 = vmul.f32 0.2, %v1563_v22 }
 0x182   :  { %v2379_v27 = vmax.f32 %v1721_v17, %v2123_v23  ;;  %v2443_v28 = vmax.f32 %v1881_v18, %v2187_v24  ;;  %v3667_v18 = vld [vmem:[%s5621_s0 + $0xc8] sm:$0xff] }
 0x183   :  { %v2252_v29 = vmax.f32 %v1403_v21, %v1996_v25  ;;  %v2316_v30 = vmax.f32 %v1563_v22, %v2060_v26  ;;  %v3731_v24 = vld [vmem:[%s5621_s0 + $0x2c8] sm:$0xff] }
 0x184   :  { %v2635_v31 = vpack.c.bf16 %v2379_v27, %v2379_v27  ;;  %v2699_v32 = vpack.c.bf16 %v2443_v28, %v2443_v28  ;;  %v3763_v25 = vld [vmem:[%s5621_s0 + $0x3c8] sm:$0xff] }
 0x185   :  { %v2508_v33 = vpack.c.bf16 %v2252_v29, %v2252_v29  ;;  %v2572_v35 = vpack.c.bf16 %v2316_v30, %v2316_v30  ;;  %v1722_v36 = vpop.f32.mrf.mxu2  ;;  %v1882_v37 = vpop.f32.mrf.mxu3 }
 0x186   :  { %2892 = vst.msk [vmem:[%s5623_s3 + $0x278] sm:$0xf] %vm2733_vm1, %v2635_v31  ;;  %v1723_v40 = vadd.f32 %v4462_v4, %v1722_v36  ;;  %v1883_v41 = vadd.f32 %v4462_v4, %v1882_v37  ;;  %v1405_v42 = vpop.f32.mrf.mxu0  ;;  %v1565_v43 = vpop.f32.mrf.mxu1 }
 0x187   :  { %2956 = vst.msk [vmem:[%s5623_s3 + $0x378] sm:$0xf] %vm2733_vm1, %v2699_v32  ;;  %v1406_v46 = vadd.f32 %v4462_v4, %v1405_v42  ;;  %v1566_v47 = vadd.f32 %v4462_v4, %v1565_v43 }
 0x188   :  { %2765 = vst.msk [vmem:[%s5623_s3 + $0x7c] sm:$0xf] %vm2733_vm1, %v2508_v33  ;;  %v2124_v48 = vmul.f32 0.2, %v1723_v40  ;;  %v2188_v49 = vmul.f32 0.2, %v1883_v41 }
 0x189   :  { %2829 = vst.msk [vmem:[%s5623_s3 + $0x17c] sm:$0xf] %vm2733_vm1, %v2572_v35  ;;  %v1997_v50 = vmul.f32 0.2, %v1406_v46  ;;  %v2061_v51 = vmul.f32 0.2, %v1566_v47  ;;  %3538 = vmatmul.msk.bf16.gmra.mxu0 %vm931_vm0, %v3666_v38  ;;  %3570 = vmatmul.msk.bf16.gmra.mxu1 %vm931_vm0, %v3698_v39 }
 0x18a   :  { %v2380_v52 = vmax.f32 %v1723_v40, %v2124_v48  ;;  %v2444_v53 = vmax.f32 %v1883_v41, %v2188_v49  ;;  %3602 = vmatmul.msk.bf16.gmra.mxu2 %vm931_vm0, %v3730_v44  ;;  %3634 = vmatmul.msk.bf16.gmra.mxu3 %vm931_vm0, %v3762_v45 }
 0x18b   :  { %v2253_v54 = vmax.f32 %v1406_v46, %v1997_v50  ;;  %v2317_v55 = vmax.f32 %v1566_v47, %v2061_v51 }
 0x18c   :  { %v2636_v56 = vpack.c.bf16 %v2380_v52, %v2380_v52  ;;  %v2700_v57 = vpack.c.bf16 %v2444_v53, %v2444_v53 }
 0x18d   :  { %v2509_v58 = vpack.c.bf16 %v2253_v54, %v2253_v54  ;;  %v2573_v59 = vpack.c.bf16 %v2317_v55, %v2317_v55  ;;  %v1725_v34 = vpop.f32.mrf.mxu2  ;;  %v1885_v60 = vpop.f32.mrf.mxu3 }
 0x18e   :  { %2893 = vst.msk [vmem:[%s5623_s3 + $0x27c] sm:$0xf] %vm2733_vm1, %v2636_v56  ;;  %v1726_v61 = vadd.f32 %v4462_v4, %v1725_v34  ;;  %v1886_v62 = vadd.f32 %v4462_v4, %v1885_v60  ;;  %v1407_v63 = vpop.f32.mrf.mxu0  ;;  %v1567_v0 = vpop.f32.mrf.mxu1 }
 0x18f   :  { %2957 = vst.msk [vmem:[%s5623_s3 + $0x37c] sm:$0xf] %vm2733_vm1, %v2700_v57  ;;  %v1408_v1 = vadd.f32 %v4462_v4, %v1407_v63  ;;  %v1568_v2 = vadd.f32 %v4462_v4, %v1567_v0  ;;  %v3700_v63 = vld [vmem:[%s5621_s0 + $0x1d0] sm:$0xff] }
 0x190   :  { %2766 = vst.msk [vmem:[%s5623_s3 + $0x80] sm:$0xf] %vm2733_vm1, %v2509_v58  ;;  %v2125_v3 = vmul.f32 0.2, %v1726_v61  ;;  %v2189_v5 = vmul.f32 0.2, %v1886_v62 }
 0x191   :  { %2830 = vst.msk [vmem:[%s5623_s3 + $0x180] sm:$0xf] %vm2733_vm1, %v2573_v59  ;;  %v1998_v6 = vmul.f32 0.2, %v1408_v1  ;;  %v2062_v7 = vmul.f32 0.2, %v1568_v2 }
 0x192   :  { %v2381_v8 = vmax.f32 %v1726_v61, %v2125_v3  ;;  %v2445_v9 = vmax.f32 %v1886_v62, %v2189_v5  ;;  %v3668_v62 = vld [vmem:[%s5621_s0 + $0xd0] sm:$0xff] }
 0x193   :  { %v2254_v10 = vmax.f32 %v1408_v1, %v1998_v6  ;;  %v2318_v11 = vmax.f32 %v1568_v2, %v2062_v7  ;;  %v3732_v5 = vld [vmem:[%s5621_s0 + $0x2d0] sm:$0xff] }
 0x194   :  { %v2637_v12 = vpack.c.bf16 %v2381_v8, %v2381_v8  ;;  %v2701_v13 = vpack.c.bf16 %v2445_v9, %v2445_v9  ;;  %v3764_v6 = vld [vmem:[%s5621_s0 + $0x3d0] sm:$0xff] }
 0x195   :  { %v2510_v14 = vpack.c.bf16 %v2254_v10, %v2254_v10  ;;  %v2574_v15 = vpack.c.bf16 %v2318_v11, %v2318_v11  ;;  %v1727_v16 = vpop.f32.mrf.mxu2  ;;  %v1887_v17 = vpop.f32.mrf.mxu3 }
 0x196   :  { %2894 = vst.msk [vmem:[%s5623_s3 + $0x280] sm:$0xf] %vm2733_vm1, %v2637_v12  ;;  %v1728_v20 = vadd.f32 %v4462_v4, %v1727_v16  ;;  %v1888_v21 = vadd.f32 %v4462_v4, %v1887_v17  ;;  %v1410_v22 = vpop.f32.mrf.mxu0  ;;  %v1570_v23 = vpop.f32.mrf.mxu1 }
 0x197   :  { %2958 = vst.msk [vmem:[%s5623_s3 + $0x380] sm:$0xf] %vm2733_vm1, %v2701_v13  ;;  %v1411_v26 = vadd.f32 %v4462_v4, %v1410_v22  ;;  %v1571_v27 = vadd.f32 %v4462_v4, %v1570_v23 }
 0x198   :  { %2767 = vst.msk [vmem:[%s5623_s3 + $0x84] sm:$0xf] %vm2733_vm1, %v2510_v14  ;;  %v2126_v28 = vmul.f32 0.2, %v1728_v20  ;;  %v2190_v29 = vmul.f32 0.2, %v1888_v21 }
 0x199   :  { %2831 = vst.msk [vmem:[%s5623_s3 + $0x184] sm:$0xf] %vm2733_vm1, %v2574_v15  ;;  %v1999_v30 = vmul.f32 0.2, %v1411_v26  ;;  %v2063_v31 = vmul.f32 0.2, %v1571_v27  ;;  %3539 = vmatmul.msk.bf16.gmra.mxu0 %vm931_vm0, %v3667_v18  ;;  %3571 = vmatmul.msk.bf16.gmra.mxu1 %vm931_vm0, %v3699_v19 }
 0x19a   :  { %v2382_v32 = vmax.f32 %v1728_v20, %v2126_v28  ;;  %v2446_v33 = vmax.f32 %v1888_v21, %v2190_v29  ;;  %3603 = vmatmul.msk.bf16.gmra.mxu2 %vm931_vm0, %v3731_v24  ;;  %3635 = vmatmul.msk.bf16.gmra.mxu3 %vm931_vm0, %v3763_v25 }
 0x19b   :  { %v2255_v35 = vmax.f32 %v1411_v26, %v1999_v30  ;;  %v2319_v36 = vmax.f32 %v1571_v27, %v2063_v31 }
 0x19c   :  { %v2638_v37 = vpack.c.bf16 %v2382_v32, %v2382_v32  ;;  %v2702_v38 = vpack.c.bf16 %v2446_v33, %v2446_v33 }
 0x19d   :  { %v2511_v39 = vpack.c.bf16 %v2255_v35, %v2255_v35  ;;  %v2575_v40 = vpack.c.bf16 %v2319_v36, %v2319_v36  ;;  %v1730_v41 = vpop.f32.mrf.mxu2  ;;  %v1890_v42 = vpop.f32.mrf.mxu3 }
 0x19e   :  { %2895 = vst.msk [vmem:[%s5623_s3 + $0x284] sm:$0xf] %vm2733_vm1, %v2638_v37  ;;  %v1731_v43 = vadd.f32 %v4462_v4, %v1730_v41  ;;  %v1891_v44 = vadd.f32 %v4462_v4, %v1890_v42  ;;  %v1412_v45 = vpop.f32.mrf.mxu0  ;;  %v1572_v46 = vpop.f32.mrf.mxu1 }
 0x19f   :  { %2959 = vst.msk [vmem:[%s5623_s3 + $0x384] sm:$0xf] %vm2733_vm1, %v2702_v38  ;;  %v1413_v47 = vadd.f32 %v4462_v4, %v1412_v45  ;;  %v1573_v48 = vadd.f32 %v4462_v4, %v1572_v46  ;;  %v4997_v45 = vld [vmem:[%s5622_s2] ss:$0 sm:$0xff] }
 0x1a0   :  { %2768 = vst.msk [vmem:[%s5623_s3 + $0x88] sm:$0xf] %vm2733_vm1, %v2511_v39  ;;  %v2127_v49 = vmul.f32 0.2, %v1731_v43  ;;  %v2191_v50 = vmul.f32 0.2, %v1891_v44 }
 0x1a1   :  { %2832 = vst.msk [vmem:[%s5623_s3 + $0x188] sm:$0xf] %vm2733_vm1, %v2575_v40  ;;  %v2000_v51 = vmul.f32 0.2, %v1413_v47  ;;  %v2064_v52 = vmul.f32 0.2, %v1573_v48 }
 0x1a2   :  { %v2383_v53 = vmax.f32 %v1731_v43, %v2127_v49  ;;  %v2447_v54 = vmax.f32 %v1891_v44, %v2191_v50  ;;  %v3669_v43 = vld [vmem:[%s5621_s0 + $0xd8] sm:$0xff] }
 0x1a3   :  { %v2256_v55 = vmax.f32 %v1413_v47, %v2000_v51  ;;  %v2320_v56 = vmax.f32 %v1573_v48, %v2064_v52  ;;  %v3701_v44 = vld [vmem:[%s5621_s0 + $0x1d8] sm:$0xff] }
 0x1a4   :  { %v2639_v57 = vpack.c.bf16 %v2383_v53, %v2383_v53  ;;  %v2703_v58 = vpack.c.bf16 %v2447_v54, %v2447_v54  ;;  %v3733_v50 = vld [vmem:[%s5621_s0 + $0x2d8] sm:$0xff] }
 0x1a5   :  { %v2512_v59 = vpack.c.bf16 %v2256_v55, %v2256_v55  ;;  %v2576_v34 = vpack.c.bf16 %v2320_v56, %v2320_v56  ;;  %v1732_v60 = vpop.f32.mrf.mxu2  ;;  %v1892_v61 = vpop.f32.mrf.mxu3  ;;  %v3765_v51 = vld [vmem:[%s5621_s0 + $0x3d8] sm:$0xff] }
 0x1a6   :  { %2896 = vst.msk [vmem:[%s5623_s3 + $0x288] sm:$0xf] %vm2733_vm1, %v2639_v57  ;;  %v1733_v0 = vadd.f32 %v4462_v4, %v1732_v60  ;;  %v1893_v1 = vadd.f32 %v4462_v4, %v1892_v61  ;;  %v1415_v2 = vpop.f32.mrf.mxu0  ;;  %v1575_v3 = vpop.f32.mrf.mxu1 }
 0x1a7   :  { %2960 = vst.msk [vmem:[%s5623_s3 + $0x388] sm:$0xf] %vm2733_vm1, %v2703_v58  ;;  %v1416_v7 = vadd.f32 %v4462_v4, %v1415_v2  ;;  %v1576_v8 = vadd.f32 %v4462_v4, %v1575_v3 }
 0x1a8   :  { %2769 = vst.msk [vmem:[%s5623_s3 + $0x8c] sm:$0xf] %vm2733_vm1, %v2512_v59  ;;  %v2128_v9 = vmul.f32 0.2, %v1733_v0  ;;  %v2192_v10 = vmul.f32 0.2, %v1893_v1 }
 0x1a9   :  { %2833 = vst.msk [vmem:[%s5623_s3 + $0x18c] sm:$0xf] %vm2733_vm1, %v2576_v34  ;;  %v2001_v11 = vmul.f32 0.2, %v1416_v7  ;;  %v2065_v12 = vmul.f32 0.2, %v1576_v8  ;;  %3540 = vmatmul.msk.bf16.gmra.mxu0 %vm931_vm0, %v3668_v62  ;;  %3572 = vmatmul.msk.bf16.gmra.mxu1 %vm931_vm0, %v3700_v63 }
 0x1aa   :  { %v2384_v13 = vmax.f32 %v1733_v0, %v2128_v9  ;;  %v2448_v14 = vmax.f32 %v1893_v1, %v2192_v10  ;;  %3604 = vmatmul.msk.bf16.gmra.mxu2 %vm931_vm0, %v3732_v5  ;;  %3636 = vmatmul.msk.bf16.gmra.mxu3 %vm931_vm0, %v3764_v6 }
 0x1ab   :  { %v2257_v15 = vmax.f32 %v1416_v7, %v2001_v11  ;;  %v2321_v16 = vmax.f32 %v1576_v8, %v2065_v12 }
 0x1ac   :  { %v2640_v17 = vpack.c.bf16 %v2384_v13, %v2384_v13  ;;  %v2704_v18 = vpack.c.bf16 %v2448_v14, %v2448_v14 }
 0x1ad   :  { %v2513_v19 = vpack.c.bf16 %v2257_v15, %v2257_v15  ;;  %v2577_v20 = vpack.c.bf16 %v2321_v16, %v2321_v16  ;;  %v1735_v21 = vpop.f32.mrf.mxu2  ;;  %v1895_v22 = vpop.f32.mrf.mxu3 }
 0x1ae   :  { %2897 = vst.msk [vmem:[%s5623_s3 + $0x28c] sm:$0xf] %vm2733_vm1, %v2640_v17  ;;  %v1736_v23 = vadd.f32 %v4462_v4, %v1735_v21  ;;  %v1896_v24 = vadd.f32 %v4462_v4, %v1895_v22  ;;  %v1417_v25 = vpop.f32.mrf.mxu0  ;;  %v1577_v26 = vpop.f32.mrf.mxu1 }
 0x1af   :  { %2961 = vst.msk [vmem:[%s5623_s3 + $0x38c] sm:$0xf] %vm2733_vm1, %v2704_v18  ;;  %v1418_v27 = vadd.f32 %v4462_v4, %v1417_v25  ;;  %v1578_v28 = vadd.f32 %v4462_v4, %v1577_v26  ;;  %v3702_v25 = vld [vmem:[%s5621_s0 + $0x1e0] sm:$0xff] }
 0x1b0   :  { %2770 = vst.msk [vmem:[%s5623_s3 + $0x90] sm:$0xf] %vm2733_vm1, %v2513_v19  ;;  %v2129_v29 = vmul.f32 0.2, %v1736_v23  ;;  %v2193_v30 = vmul.f32 0.2, %v1896_v24 }
 0x1b1   :  { %2834 = vst.msk [vmem:[%s5623_s3 + $0x190] sm:$0xf] %vm2733_vm1, %v2577_v20  ;;  %v2002_v31 = vmul.f32 0.2, %v1418_v27  ;;  %v2066_v32 = vmul.f32 0.2, %v1578_v28 }
 0x1b2   :  { %v2385_v33 = vmax.f32 %v1736_v23, %v2129_v29  ;;  %v2449_v35 = vmax.f32 %v1896_v24, %v2193_v30  ;;  %v3670_v24 = vld [vmem:[%s5621_s0 + $0xe0] sm:$0xff] }
 0x1b3   :  { %v2258_v36 = vmax.f32 %v1418_v27, %v2002_v31  ;;  %v2322_v37 = vmax.f32 %v1578_v28, %v2066_v32  ;;  %v3734_v30 = vld [vmem:[%s5621_s0 + $0x2e0] sm:$0xff] }
 0x1b4   :  { %v2641_v38 = vpack.c.bf16 %v2385_v33, %v2385_v33  ;;  %v2705_v4 = vpack.c.bf16 %v2449_v35, %v2449_v35  ;;  %v3766_v31 = vld [vmem:[%s5621_s0 + $0x3e0] sm:$0xff] }
 0x1b5   :  { %v2514_v39 = vpack.c.bf16 %v2258_v36, %v2258_v36  ;;  %v2578_v40 = vpack.c.bf16 %v2322_v37, %v2322_v37  ;;  %v1737_v41 = vpop.f32.mrf.mxu2  ;;  %v1897_v42 = vpop.f32.mrf.mxu3 }
 0x1b6   :  { %2898 = vst.msk [vmem:[%s5623_s3 + $0x290] sm:$0xf] %vm2733_vm1, %v2641_v38  ;;  %v1738_v46 = vadd.f32 %v4997_v45, %v1737_v41  ;;  %v1898_v47 = vadd.f32 %v4997_v45, %v1897_v42  ;;  %v1420_v48 = vpop.f32.mrf.mxu0  ;;  %v1580_v49 = vpop.f32.mrf.mxu1 }
 0x1b7   :  { %2962 = vst.msk [vmem:[%s5623_s3 + $0x390] sm:$0xf] %vm2733_vm1, %v2705_v4  ;;  %v1421_v52 = vadd.f32 %v4997_v45, %v1420_v48  ;;  %v1581_v53 = vadd.f32 %v4997_v45, %v1580_v49 }
 0x1b8   :  { %2771 = vst.msk [vmem:[%s5623_s3 + $0x94] sm:$0xf] %vm2733_vm1, %v2514_v39  ;;  %v2130_v54 = vmul.f32 0.2, %v1738_v46  ;;  %v2194_v55 = vmul.f32 0.2, %v1898_v47 }
 0x1b9   :  { %2835 = vst.msk [vmem:[%s5623_s3 + $0x194] sm:$0xf] %vm2733_vm1, %v2578_v40  ;;  %v2003_v56 = vmul.f32 0.2, %v1421_v52  ;;  %v2067_v57 = vmul.f32 0.2, %v1581_v53  ;;  %3541 = vmatmul.msk.bf16.gmra.mxu0 %vm931_vm0, %v3669_v43  ;;  %3573 = vmatmul.msk.bf16.gmra.mxu1 %vm931_vm0, %v3701_v44 }
 0x1ba   :  { %v2386_v58 = vmax.f32 %v1738_v46, %v2130_v54  ;;  %v2450_v59 = vmax.f32 %v1898_v47, %v2194_v55  ;;  %3605 = vmatmul.msk.bf16.gmra.mxu2 %vm931_vm0, %v3733_v50  ;;  %3637 = vmatmul.msk.bf16.gmra.mxu3 %vm931_vm0, %v3765_v51 }
 0x1bb   :  { %v2259_v34 = vmax.f32 %v1421_v52, %v2003_v56  ;;  %v2323_v60 = vmax.f32 %v1581_v53, %v2067_v57 }
 0x1bc   :  { %v2642_v61 = vpack.c.bf16 %v2386_v58, %v2386_v58  ;;  %v2706_v62 = vpack.c.bf16 %v2450_v59, %v2450_v59 }
 0x1bd   :  { %v2515_v63 = vpack.c.bf16 %v2259_v34, %v2259_v34  ;;  %v2579_v0 = vpack.c.bf16 %v2323_v60, %v2323_v60  ;;  %v1740_v1 = vpop.f32.mrf.mxu2  ;;  %v1900_v2 = vpop.f32.mrf.mxu3 }
 0x1be   :  { %2899 = vst.msk [vmem:[%s5623_s3 + $0x294] sm:$0xf] %vm2733_vm1, %v2642_v61  ;;  %v1741_v3 = vadd.f32 %v4997_v45, %v1740_v1  ;;  %v1901_v5 = vadd.f32 %v4997_v45, %v1900_v2  ;;  %v1422_v6 = vpop.f32.mrf.mxu0  ;;  %v1582_v7 = vpop.f32.mrf.mxu1 }
 0x1bf   :  { %2963 = vst.msk [vmem:[%s5623_s3 + $0x394] sm:$0xf] %vm2733_vm1, %v2706_v62  ;;  %v1423_v8 = vadd.f32 %v4997_v45, %v1422_v6  ;;  %v1583_v9 = vadd.f32 %v4997_v45, %v1582_v7  ;;  %v3703_v6 = vld [vmem:[%s5621_s0 + $0x1e8] sm:$0xff] }
 0x1c0   :  { %2772 = vst.msk [vmem:[%s5623_s3 + $0x98] sm:$0xf] %vm2733_vm1, %v2515_v63  ;;  %v2131_v10 = vmul.f32 0.2, %v1741_v3  ;;  %v2195_v11 = vmul.f32 0.2, %v1901_v5 }
 0x1c1   :  { %2836 = vst.msk [vmem:[%s5623_s3 + $0x198] sm:$0xf] %vm2733_vm1, %v2579_v0  ;;  %v2004_v12 = vmul.f32 0.2, %v1423_v8  ;;  %v2068_v13 = vmul.f32 0.2, %v1583_v9 }
 0x1c2   :  { %v2387_v14 = vmax.f32 %v1741_v3, %v2131_v10  ;;  %v2451_v15 = vmax.f32 %v1901_v5, %v2195_v11  ;;  %v3671_v5 = vld [vmem:[%s5621_s0 + $0xe8] sm:$0xff] }
 0x1c3   :  { %v2260_v16 = vmax.f32 %v1423_v8, %v2004_v12  ;;  %v2324_v17 = vmax.f32 %v1583_v9, %v2068_v13  ;;  %v3735_v11 = vld [vmem:[%s5621_s0 + $0x2e8] sm:$0xff] }
 0x1c4   :  { %v2643_v18 = vpack.c.bf16 %v2387_v14, %v2387_v14  ;;  %v2707_v19 = vpack.c.bf16 %v2451_v15, %v2451_v15  ;;  %v3767_v12 = vld [vmem:[%s5621_s0 + $0x3e8] sm:$0xff] }
 0x1c5   :  { %v2516_v20 = vpack.c.bf16 %v2260_v16, %v2260_v16  ;;  %v2580_v21 = vpack.c.bf16 %v2324_v17, %v2324_v17  ;;  %v1742_v22 = vpop.f32.mrf.mxu2  ;;  %v1902_v23 = vpop.f32.mrf.mxu3 }
 0x1c6   :  { %2900 = vst.msk [vmem:[%s5623_s3 + $0x298] sm:$0xf] %vm2733_vm1, %v2643_v18  ;;  %v1743_v26 = vadd.f32 %v4997_v45, %v1742_v22  ;;  %v1903_v27 = vadd.f32 %v4997_v45, %v1902_v23  ;;  %v1425_v28 = vpop.f32.mrf.mxu0  ;;  %v1585_v29 = vpop.f32.mrf.mxu1 }
 0x1c7   :  { %2964 = vst.msk [vmem:[%s5623_s3 + $0x398] sm:$0xf] %vm2733_vm1, %v2707_v19  ;;  %v1426_v32 = vadd.f32 %v4997_v45, %v1425_v28  ;;  %v1586_v33 = vadd.f32 %v4997_v45, %v1585_v29 }
 0x1c8   :  { %2773 = vst.msk [vmem:[%s5623_s3 + $0x9c] sm:$0xf] %vm2733_vm1, %v2516_v20  ;;  %v2132_v35 = vmul.f32 0.2, %v1743_v26  ;;  %v2196_v36 = vmul.f32 0.2, %v1903_v27 }
 0x1c9   :  { %2837 = vst.msk [vmem:[%s5623_s3 + $0x19c] sm:$0xf] %vm2733_vm1, %v2580_v21  ;;  %v2005_v37 = vmul.f32 0.2, %v1426_v32  ;;  %v2069_v38 = vmul.f32 0.2, %v1586_v33  ;;  %3542 = vmatmul.msk.bf16.gmra.mxu0 %vm931_vm0, %v3670_v24  ;;  %3574 = vmatmul.msk.bf16.gmra.mxu1 %vm931_vm0, %v3702_v25 }
 0x1ca   :  { %v2388_v4 = vmax.f32 %v1743_v26, %v2132_v35  ;;  %v2452_v39 = vmax.f32 %v1903_v27, %v2196_v36  ;;  %3606 = vmatmul.msk.bf16.gmra.mxu2 %vm931_vm0, %v3734_v30  ;;  %3638 = vmatmul.msk.bf16.gmra.mxu3 %vm931_vm0, %v3766_v31 }
 0x1cb   :  { %v2261_v40 = vmax.f32 %v1426_v32, %v2005_v37  ;;  %v2325_v41 = vmax.f32 %v1586_v33, %v2069_v38 }
 0x1cc   :  { %v2644_v42 = vpack.c.bf16 %v2388_v4, %v2388_v4  ;;  %v2708_v43 = vpack.c.bf16 %v2452_v39, %v2452_v39 }
 0x1cd   :  { %v2517_v44 = vpack.c.bf16 %v2261_v40, %v2261_v40  ;;  %v2581_v46 = vpack.c.bf16 %v2325_v41, %v2325_v41  ;;  %v1745_v47 = vpop.f32.mrf.mxu2  ;;  %v1905_v48 = vpop.f32.mrf.mxu3 }
 0x1ce   :  { %2901 = vst.msk [vmem:[%s5623_s3 + $0x29c] sm:$0xf] %vm2733_vm1, %v2644_v42  ;;  %v1746_v49 = vadd.f32 %v4997_v45, %v1745_v47  ;;  %v1906_v50 = vadd.f32 %v4997_v45, %v1905_v48  ;;  %v1427_v51 = vpop.f32.mrf.mxu0  ;;  %v1587_v52 = vpop.f32.mrf.mxu1 }
 0x1cf   :  { %2965 = vst.msk [vmem:[%s5623_s3 + $0x39c] sm:$0xf] %vm2733_vm1, %v2708_v43  ;;  %v1428_v53 = vadd.f32 %v4997_v45, %v1427_v51  ;;  %v1588_v54 = vadd.f32 %v4997_v45, %v1587_v52  ;;  %v3704_v51 = vld [vmem:[%s5621_s0 + $0x1f0] sm:$0xff] }
 0x1d0   :  { %2774 = vst.msk [vmem:[%s5623_s3 + $0xa0] sm:$0xf] %vm2733_vm1, %v2517_v44  ;;  %v2133_v55 = vmul.f32 0.2, %v1746_v49  ;;  %v2197_v56 = vmul.f32 0.2, %v1906_v50 }
 0x1d1   :  { %2838 = vst.msk [vmem:[%s5623_s3 + $0x1a0] sm:$0xf] %vm2733_vm1, %v2581_v46  ;;  %v2006_v57 = vmul.f32 0.2, %v1428_v53  ;;  %v2070_v58 = vmul.f32 0.2, %v1588_v54 }
 0x1d2   :  { %v2389_v59 = vmax.f32 %v1746_v49, %v2133_v55  ;;  %v2453_v34 = vmax.f32 %v1906_v50, %v2197_v56  ;;  %v3672_v50 = vld [vmem:[%s5621_s0 + $0xf0] sm:$0xff] }
 0x1d3   :  { %v2262_v60 = vmax.f32 %v1428_v53, %v2006_v57  ;;  %v2326_v61 = vmax.f32 %v1588_v54, %v2070_v58  ;;  %v3736_v56 = vld [vmem:[%s5621_s0 + $0x2f0] sm:$0xff] }
 0x1d4   :  { %v2645_v62 = vpack.c.bf16 %v2389_v59, %v2389_v59  ;;  %v2709_v63 = vpack.c.bf16 %v2453_v34, %v2453_v34  ;;  %v3768_v57 = vld [vmem:[%s5621_s0 + $0x3f0] sm:$0xff] }
 0x1d5   :  { %v2518_v0 = vpack.c.bf16 %v2262_v60, %v2262_v60  ;;  %v2582_v1 = vpack.c.bf16 %v2326_v61, %v2326_v61  ;;  %v1747_v2 = vpop.f32.mrf.mxu2  ;;  %v1907_v3 = vpop.f32.mrf.mxu3 }
 0x1d6   :  { %2902 = vst.msk [vmem:[%s5623_s3 + $0x2a0] sm:$0xf] %vm2733_vm1, %v2645_v62  ;;  %v1748_v7 = vadd.f32 %v4997_v45, %v1747_v2  ;;  %v1908_v8 = vadd.f32 %v4997_v45, %v1907_v3  ;;  %v1430_v9 = vpop.f32.mrf.mxu0  ;;  %v1590_v10 = vpop.f32.mrf.mxu1 }
 0x1d7   :  { %2966 = vst.msk [vmem:[%s5623_s3 + $0x3a0] sm:$0xf] %vm2733_vm1, %v2709_v63  ;;  %v1431_v13 = vadd.f32 %v4997_v45, %v1430_v9  ;;  %v1591_v14 = vadd.f32 %v4997_v45, %v1590_v10 }
 0x1d8   :  { %2775 = vst.msk [vmem:[%s5623_s3 + $0xa4] sm:$0xf] %vm2733_vm1, %v2518_v0  ;;  %v2134_v15 = vmul.f32 0.2, %v1748_v7  ;;  %v2198_v16 = vmul.f32 0.2, %v1908_v8 }
 0x1d9   :  { %2839 = vst.msk [vmem:[%s5623_s3 + $0x1a4] sm:$0xf] %vm2733_vm1, %v2582_v1  ;;  %v2007_v17 = vmul.f32 0.2, %v1431_v13  ;;  %v2071_v18 = vmul.f32 0.2, %v1591_v14  ;;  %3543 = vmatmul.msk.bf16.gmra.mxu0 %vm931_vm0, %v3671_v5  ;;  %3575 = vmatmul.msk.bf16.gmra.mxu1 %vm931_vm0, %v3703_v6 }
 0x1da   :  { %v2390_v19 = vmax.f32 %v1748_v7, %v2134_v15  ;;  %v2454_v20 = vmax.f32 %v1908_v8, %v2198_v16  ;;  %3607 = vmatmul.msk.bf16.gmra.mxu2 %vm931_vm0, %v3735_v11  ;;  %3639 = vmatmul.msk.bf16.gmra.mxu3 %vm931_vm0, %v3767_v12 }
 0x1db   :  { %v2263_v21 = vmax.f32 %v1431_v13, %v2007_v17  ;;  %v2327_v22 = vmax.f32 %v1591_v14, %v2071_v18 }
 0x1dc   :  { %v2646_v23 = vpack.c.bf16 %v2390_v19, %v2390_v19  ;;  %v2710_v24 = vpack.c.bf16 %v2454_v20, %v2454_v20 }
 0x1dd   :  { %v2519_v25 = vpack.c.bf16 %v2263_v21, %v2263_v21  ;;  %v2583_v26 = vpack.c.bf16 %v2327_v22, %v2327_v22  ;;  %v1750_v27 = vpop.f32.mrf.mxu2  ;;  %v1910_v28 = vpop.f32.mrf.mxu3 }
 0x1de   :  { %2903 = vst.msk [vmem:[%s5623_s3 + $0x2a4] sm:$0xf] %vm2733_vm1, %v2646_v23  ;;  %v1751_v29 = vadd.f32 %v4997_v45, %v1750_v27  ;;  %v1911_v30 = vadd.f32 %v4997_v45, %v1910_v28  ;;  %v1432_v31 = vpop.f32.mrf.mxu0  ;;  %v1592_v32 = vpop.f32.mrf.mxu1 }
 0x1df   :  { %2967 = vst.msk [vmem:[%s5623_s3 + $0x3a4] sm:$0xf] %vm2733_vm1, %v2710_v24  ;;  %v1433_v33 = vadd.f32 %v4997_v45, %v1432_v31  ;;  %v1593_v35 = vadd.f32 %v4997_v45, %v1592_v32  ;;  %v3705_v31 = vld [vmem:[%s5621_s0 + $0x1f8] sm:$0xff] }
 0x1e0   :  { %2776 = vst.msk [vmem:[%s5623_s3 + $0xa8] sm:$0xf] %vm2733_vm1, %v2519_v25  ;;  %v2135_v36 = vmul.f32 0.2, %v1751_v29  ;;  %v2199_v37 = vmul.f32 0.2, %v1911_v30 }
 0x1e1   :  { %2840 = vst.msk [vmem:[%s5623_s3 + $0x1a8] sm:$0xf] %vm2733_vm1, %v2583_v26  ;;  %v2008_v38 = vmul.f32 0.2, %v1433_v33  ;;  %v2072_v4 = vmul.f32 0.2, %v1593_v35 }
 0x1e2   :  { %v2391_v39 = vmax.f32 %v1751_v29, %v2135_v36  ;;  %v2455_v40 = vmax.f32 %v1911_v30, %v2199_v37  ;;  %v3673_v30 = vld [vmem:[%s5621_s0 + $0xf8] sm:$0xff] }
 0x1e3   :  { %v2264_v41 = vmax.f32 %v1433_v33, %v2008_v38  ;;  %v2328_v42 = vmax.f32 %v1593_v35, %v2072_v4  ;;  %v3737_v37 = vld [vmem:[%s5621_s0 + $0x2f8] sm:$0xff] }
 0x1e4   :  { %v2647_v43 = vpack.c.bf16 %v2391_v39, %v2391_v39  ;;  %v2711_v44 = vpack.c.bf16 %v2455_v40, %v2455_v40  ;;  %v3769_v38 = vld [vmem:[%s5621_s0 + $0x3f8] sm:$0xff] }
 0x1e5   :  { %v2520_v46 = vpack.c.bf16 %v2264_v41, %v2264_v41  ;;  %v2584_v47 = vpack.c.bf16 %v2328_v42, %v2328_v42  ;;  %v1752_v48 = vpop.f32.mrf.mxu2  ;;  %v1912_v49 = vpop.f32.mrf.mxu3 }
 0x1e6   :  { %2904 = vst.msk [vmem:[%s5623_s3 + $0x2a8] sm:$0xf] %vm2733_vm1, %v2647_v43  ;;  %v1753_v52 = vadd.f32 %v4997_v45, %v1752_v48  ;;  %v1913_v53 = vadd.f32 %v4997_v45, %v1912_v49  ;;  %v1435_v54 = vpop.f32.mrf.mxu0  ;;  %v1595_v55 = vpop.f32.mrf.mxu1 }
 0x1e7   :  { %2968 = vst.msk [vmem:[%s5623_s3 + $0x3a8] sm:$0xf] %vm2733_vm1, %v2711_v44  ;;  %v1436_v58 = vadd.f32 %v4997_v45, %v1435_v54  ;;  %v1596_v59 = vadd.f32 %v4997_v45, %v1595_v55 }
 0x1e8   :  { %2777 = vst.msk [vmem:[%s5623_s3 + $0xac] sm:$0xf] %vm2733_vm1, %v2520_v46  ;;  %v2136_v34 = vmul.f32 0.2, %v1753_v52  ;;  %v2200_v60 = vmul.f32 0.2, %v1913_v53 }
 0x1e9   :  { %2841 = vst.msk [vmem:[%s5623_s3 + $0x1ac] sm:$0xf] %vm2733_vm1, %v2584_v47  ;;  %v2009_v61 = vmul.f32 0.2, %v1436_v58  ;;  %v2073_v62 = vmul.f32 0.2, %v1596_v59  ;;  %3544 = vmatmul.msk.bf16.gmra.mxu0 %vm931_vm0, %v3672_v50  ;;  %3576 = vmatmul.msk.bf16.gmra.mxu1 %vm931_vm0, %v3704_v51 }
 0x1ea   :  { %v2392_v63 = vmax.f32 %v1753_v52, %v2136_v34  ;;  %v2456_v0 = vmax.f32 %v1913_v53, %v2200_v60  ;;  %3608 = vmatmul.msk.bf16.gmra.mxu2 %vm931_vm0, %v3736_v56  ;;  %3640 = vmatmul.msk.bf16.gmra.mxu3 %vm931_vm0, %v3768_v57 }
 0x1eb   :  { %v2265_v1 = vmax.f32 %v1436_v58, %v2009_v61  ;;  %v2329_v2 = vmax.f32 %v1596_v59, %v2073_v62 }
 0x1ec   :  { %v2648_v3 = vpack.c.bf16 %v2392_v63, %v2392_v63  ;;  %v2712_v5 = vpack.c.bf16 %v2456_v0, %v2456_v0 }
 0x1ed   :  { %v2521_v6 = vpack.c.bf16 %v2265_v1, %v2265_v1  ;;  %v2585_v7 = vpack.c.bf16 %v2329_v2, %v2329_v2  ;;  %v1755_v8 = vpop.f32.mrf.mxu2  ;;  %v1915_v9 = vpop.f32.mrf.mxu3 }
 0x1ee   :  { %2905 = vst.msk [vmem:[%s5623_s3 + $0x2ac] sm:$0xf] %vm2733_vm1, %v2648_v3  ;;  %v1756_v10 = vadd.f32 %v4997_v45, %v1755_v8  ;;  %v1916_v11 = vadd.f32 %v4997_v45, %v1915_v9  ;;  %v1437_v12 = vpop.f32.mrf.mxu0  ;;  %v1597_v13 = vpop.f32.mrf.mxu1 }
 0x1ef   :  { %2969 = vst.msk [vmem:[%s5623_s3 + $0x3ac] sm:$0xf] %vm2733_vm1, %v2712_v5  ;;  %v1438_v14 = vadd.f32 %v4997_v45, %v1437_v12  ;;  %v1598_v15 = vadd.f32 %v4997_v45, %v1597_v13 }
 0x1f0   :  { %2778 = vst.msk [vmem:[%s5623_s3 + $0xb0] sm:$0xf] %vm2733_vm1, %v2521_v6  ;;  %v2137_v16 = vmul.f32 0.2, %v1756_v10  ;;  %v2201_v17 = vmul.f32 0.2, %v1916_v11 }
 0x1f1   :  { %2842 = vst.msk [vmem:[%s5623_s3 + $0x1b0] sm:$0xf] %vm2733_vm1, %v2585_v7  ;;  %v2010_v18 = vmul.f32 0.2, %v1438_v14  ;;  %v2074_v19 = vmul.f32 0.2, %v1598_v15 }
 0x1f2   :  { %v2393_v20 = vmax.f32 %v1756_v10, %v2137_v16  ;;  %v2457_v21 = vmax.f32 %v1916_v11, %v2201_v17 }
 0x1f3   :  { %v2266_v22 = vmax.f32 %v1438_v14, %v2010_v18  ;;  %v2330_v23 = vmax.f32 %v1598_v15, %v2074_v19 }
 0x1f4   :  { %v2649_v24 = vpack.c.bf16 %v2393_v20, %v2393_v20  ;;  %v2713_v25 = vpack.c.bf16 %v2457_v21, %v2457_v21 }
 0x1f5   :  { %v2522_v26 = vpack.c.bf16 %v2266_v22, %v2266_v22  ;;  %v2586_v27 = vpack.c.bf16 %v2330_v23, %v2330_v23  ;;  %v1757_v28 = vpop.f32.mrf.mxu2  ;;  %v1917_v29 = vpop.f32.mrf.mxu3 }
 0x1f6   :  { %2906 = vst.msk [vmem:[%s5623_s3 + $0x2b0] sm:$0xf] %vm2733_vm1, %v2649_v24  ;;  %v1758_v32 = vadd.f32 %v4997_v45, %v1757_v28  ;;  %v1918_v33 = vadd.f32 %v4997_v45, %v1917_v29  ;;  %v1440_v35 = vpop.f32.mrf.mxu0  ;;  %v1600_v36 = vpop.f32.mrf.mxu1 }
 0x1f7   :  { %2970 = vst.msk [vmem:[%s5623_s3 + $0x3b0] sm:$0xf] %vm2733_vm1, %v2713_v25  ;;  %v1441_v4 = vadd.f32 %v4997_v45, %v1440_v35  ;;  %v1601_v39 = vadd.f32 %v4997_v45, %v1600_v36 }
 0x1f8   :  { %2779 = vst.msk [vmem:[%s5623_s3 + $0xb4] sm:$0xf] %vm2733_vm1, %v2522_v26  ;;  %v2138_v40 = vmul.f32 0.2, %v1758_v32  ;;  %v2202_v41 = vmul.f32 0.2, %v1918_v33 }
 0x1f9   :  { %2843 = vst.msk [vmem:[%s5623_s3 + $0x1b4] sm:$0xf] %vm2733_vm1, %v2586_v27  ;;  %v2011_v42 = vmul.f32 0.2, %v1441_v4  ;;  %v2075_v43 = vmul.f32 0.2, %v1601_v39  ;;  %3545 = vmatmul.msk.bf16.gmra.mxu0 %vm931_vm0, %v3673_v30  ;;  %3577 = vmatmul.msk.bf16.gmra.mxu1 %vm931_vm0, %v3705_v31 }
 0x1fa   :  { %v2394_v44 = vmax.f32 %v1758_v32, %v2138_v40  ;;  %v2458_v46 = vmax.f32 %v1918_v33, %v2202_v41  ;;  %3609 = vmatmul.msk.bf16.gmra.mxu2 %vm931_vm0, %v3737_v37  ;;  %3641 = vmatmul.msk.bf16.gmra.mxu3 %vm931_vm0, %v3769_v38 }
 0x1fb   :  { %v2267_v47 = vmax.f32 %v1441_v4, %v2011_v42  ;;  %v2331_v48 = vmax.f32 %v1601_v39, %v2075_v43 }
 0x1fc   :  { %v2650_v49 = vpack.c.bf16 %v2394_v44, %v2394_v44  ;;  %v2714_v50 = vpack.c.bf16 %v2458_v46, %v2458_v46 }
 0x1fd   :  { %v2523_v51 = vpack.c.bf16 %v2267_v47, %v2267_v47  ;;  %v2587_v52 = vpack.c.bf16 %v2331_v48, %v2331_v48  ;;  %v1760_v53 = vpop.f32.mrf.mxu2  ;;  %v1920_v54 = vpop.f32.mrf.mxu3 }
 0x1fe   :  { %2907 = vst.msk [vmem:[%s5623_s3 + $0x2b4] sm:$0xf] %vm2733_vm1, %v2650_v49  ;;  %v1761_v55 = vadd.f32 %v4997_v45, %v1760_v53  ;;  %v1921_v56 = vadd.f32 %v4997_v45, %v1920_v54  ;;  %v1442_v57 = vpop.f32.mrf.mxu0  ;;  %v1602_v58 = vpop.f32.mrf.mxu1 }
 0x1ff   :  { %2971 = vst.msk [vmem:[%s5623_s3 + $0x3b4] sm:$0xf] %vm2733_vm1, %v2714_v50  ;;  %v1443_v59 = vadd.f32 %v4997_v45, %v1442_v57  ;;  %v1603_v34 = vadd.f32 %v4997_v45, %v1602_v58 }
 0x200   :  { %2780 = vst.msk [vmem:[%s5623_s3 + $0xb8] sm:$0xf] %vm2733_vm1, %v2523_v51  ;;  %v2139_v60 = vmul.f32 0.2, %v1761_v55  ;;  %v2203_v61 = vmul.f32 0.2, %v1921_v56 }
 0x201   :  { %2844 = vst.msk [vmem:[%s5623_s3 + $0x1b8] sm:$0xf] %vm2733_vm1, %v2587_v52  ;;  %v2012_v62 = vmul.f32 0.2, %v1443_v59  ;;  %v2076_v63 = vmul.f32 0.2, %v1603_v34 }
 0x202   :  { %v2395_v0 = vmax.f32 %v1761_v55, %v2139_v60  ;;  %v2459_v1 = vmax.f32 %v1921_v56, %v2203_v61 }
 0x203   :  { %v2268_v2 = vmax.f32 %v1443_v59, %v2012_v62  ;;  %v2332_v3 = vmax.f32 %v1603_v34, %v2076_v63 }
 0x204   :  { %v2651_v5 = vpack.c.bf16 %v2395_v0, %v2395_v0  ;;  %v2715_v6 = vpack.c.bf16 %v2459_v1, %v2459_v1 }
 0x205   :  { %v2524_v7 = vpack.c.bf16 %v2268_v2, %v2268_v2  ;;  %v2588_v8 = vpack.c.bf16 %v2332_v3, %v2332_v3  ;;  %v1762_v9 = vpop.f32.mrf.mxu2  ;;  %v1922_v10 = vpop.f32.mrf.mxu3 }
 0x206   :  { %2908 = vst.msk [vmem:[%s5623_s3 + $0x2b8] sm:$0xf] %vm2733_vm1, %v2651_v5  ;;  %v1763_v11 = vadd.f32 %v4997_v45, %v1762_v9  ;;  %v1923_v12 = vadd.f32 %v4997_v45, %v1922_v10  ;;  %v1445_v13 = vpop.f32.mrf.mxu0  ;;  %v1605_v14 = vpop.f32.mrf.mxu1 }
 0x207   :  { %2972 = vst.msk [vmem:[%s5623_s3 + $0x3b8] sm:$0xf] %vm2733_vm1, %v2715_v6  ;;  %v1446_v15 = vadd.f32 %v4997_v45, %v1445_v13  ;;  %v1606_v16 = vadd.f32 %v4997_v45, %v1605_v14 }
 0x208   :  { %2781 = vst.msk [vmem:[%s5623_s3 + $0xbc] sm:$0xf] %vm2733_vm1, %v2524_v7  ;;  %v2140_v17 = vmul.f32 0.2, %v1763_v11  ;;  %v2204_v18 = vmul.f32 0.2, %v1923_v12 }
 0x209   :  { %2845 = vst.msk [vmem:[%s5623_s3 + $0x1bc] sm:$0xf] %vm2733_vm1, %v2588_v8  ;;  %v2013_v19 = vmul.f32 0.2, %v1446_v15  ;;  %v2077_v20 = vmul.f32 0.2, %v1606_v16 }
 0x20a   :  { %v2396_v21 = vmax.f32 %v1763_v11, %v2140_v17  ;;  %v2460_v22 = vmax.f32 %v1923_v12, %v2204_v18 }
 0x20b   :  { %v2269_v23 = vmax.f32 %v1446_v15, %v2013_v19  ;;  %v2333_v24 = vmax.f32 %v1606_v16, %v2077_v20 }
 0x20c   :  { %v2652_v25 = vpack.c.bf16 %v2396_v21, %v2396_v21  ;;  %v2716_v26 = vpack.c.bf16 %v2460_v22, %v2460_v22 }
 0x20d   :  { %v2525_v27 = vpack.c.bf16 %v2269_v23, %v2269_v23  ;;  %v2589_v28 = vpack.c.bf16 %v2333_v24, %v2333_v24  ;;  %v1765_v29 = vpop.f32.mrf.mxu2  ;;  %v1925_v30 = vpop.f32.mrf.mxu3 }
 0x20e   :  { %2909 = vst.msk [vmem:[%s5623_s3 + $0x2bc] sm:$0xf] %vm2733_vm1, %v2652_v25  ;;  %v1766_v31 = vadd.f32 %v4997_v45, %v1765_v29  ;;  %v1926_v32 = vadd.f32 %v4997_v45, %v1925_v30  ;;  %v1447_v33 = vpop.f32.mrf.mxu0  ;;  %v1607_v35 = vpop.f32.mrf.mxu1 }
 0x20f   :  { %2973 = vst.msk [vmem:[%s5623_s3 + $0x3bc] sm:$0xf] %vm2733_vm1, %v2716_v26  ;;  %v1448_v36 = vadd.f32 %v4997_v45, %v1447_v33  ;;  %v1608_v37 = vadd.f32 %v4997_v45, %v1607_v35 }
 0x210   :  { %2782 = vst.msk [vmem:[%s5623_s3 + $0xc0] sm:$0xf] %vm2733_vm1, %v2525_v27  ;;  %v2141_v38 = vmul.f32 0.2, %v1766_v31  ;;  %v2205_v4 = vmul.f32 0.2, %v1926_v32 }
 0x211   :  { %2846 = vst.msk [vmem:[%s5623_s3 + $0x1c0] sm:$0xf] %vm2733_vm1, %v2589_v28  ;;  %v2014_v39 = vmul.f32 0.2, %v1448_v36  ;;  %v2078_v40 = vmul.f32 0.2, %v1608_v37 }
 0x212   :  { %v2397_v41 = vmax.f32 %v1766_v31, %v2141_v38  ;;  %v2461_v42 = vmax.f32 %v1926_v32, %v2205_v4 }
 0x213   :  { %v2270_v43 = vmax.f32 %v1448_v36, %v2014_v39  ;;  %v2334_v44 = vmax.f32 %v1608_v37, %v2078_v40 }
 0x214   :  { %v2653_v46 = vpack.c.bf16 %v2397_v41, %v2397_v41  ;;  %v2717_v47 = vpack.c.bf16 %v2461_v42, %v2461_v42 }
 0x215   :  { %v2526_v48 = vpack.c.bf16 %v2270_v43, %v2270_v43  ;;  %v2590_v49 = vpack.c.bf16 %v2334_v44, %v2334_v44  ;;  %v1767_v50 = vpop.f32.mrf.mxu2  ;;  %v1927_v51 = vpop.f32.mrf.mxu3 }
 0x216   :  { %2910 = vst.msk [vmem:[%s5623_s3 + $0x2c0] sm:$0xf] %vm2733_vm1, %v2653_v46  ;;  %v1768_v52 = vadd.f32 %v4997_v45, %v1767_v50  ;;  %v1928_v53 = vadd.f32 %v4997_v45, %v1927_v51  ;;  %v1450_v54 = vpop.f32.mrf.mxu0  ;;  %v1610_v55 = vpop.f32.mrf.mxu1 }
 0x217   :  { %2974 = vst.msk [vmem:[%s5623_s3 + $0x3c0] sm:$0xf] %vm2733_vm1, %v2717_v47  ;;  %v1451_v56 = vadd.f32 %v4997_v45, %v1450_v54  ;;  %v1611_v57 = vadd.f32 %v4997_v45, %v1610_v55 }
 0x218   :  { %2783 = vst.msk [vmem:[%s5623_s3 + $0xc4] sm:$0xf] %vm2733_vm1, %v2526_v48  ;;  %v2142_v58 = vmul.f32 0.2, %v1768_v52  ;;  %v2206_v59 = vmul.f32 0.2, %v1928_v53 }
 0x219   :  { %2847 = vst.msk [vmem:[%s5623_s3 + $0x1c4] sm:$0xf] %vm2733_vm1, %v2590_v49  ;;  %v2015_v34 = vmul.f32 0.2, %v1451_v56  ;;  %v2079_v60 = vmul.f32 0.2, %v1611_v57 }
 0x21a   :  { %v2398_v61 = vmax.f32 %v1768_v52, %v2142_v58  ;;  %v2462_v62 = vmax.f32 %v1928_v53, %v2206_v59 }
 0x21b   :  { %v2271_v63 = vmax.f32 %v1451_v56, %v2015_v34  ;;  %v2335_v0 = vmax.f32 %v1611_v57, %v2079_v60 }
 0x21c   :  { %v2654_v1 = vpack.c.bf16 %v2398_v61, %v2398_v61  ;;  %v2718_v2 = vpack.c.bf16 %v2462_v62, %v2462_v62 }
 0x21d   :  { %v2527_v3 = vpack.c.bf16 %v2271_v63, %v2271_v63  ;;  %v2591_v5 = vpack.c.bf16 %v2335_v0, %v2335_v0  ;;  %v1770_v6 = vpop.f32.mrf.mxu2  ;;  %v1930_v7 = vpop.f32.mrf.mxu3 }
 0x21e   :  { %2911 = vst.msk [vmem:[%s5623_s3 + $0x2c4] sm:$0xf] %vm2733_vm1, %v2654_v1  ;;  %v1771_v8 = vadd.f32 %v4997_v45, %v1770_v6  ;;  %v1931_v9 = vadd.f32 %v4997_v45, %v1930_v7  ;;  %v1452_v10 = vpop.f32.mrf.mxu0  ;;  %v1612_v11 = vpop.f32.mrf.mxu1 }
 0x21f   :  { %2975 = vst.msk [vmem:[%s5623_s3 + $0x3c4] sm:$0xf] %vm2733_vm1, %v2718_v2  ;;  %v1453_v12 = vadd.f32 %v4997_v45, %v1452_v10  ;;  %v1613_v13 = vadd.f32 %v4997_v45, %v1612_v11 }
 0x220   :  { %2784 = vst.msk [vmem:[%s5623_s3 + $0xc8] sm:$0xf] %vm2733_vm1, %v2527_v3  ;;  %v2143_v14 = vmul.f32 0.2, %v1771_v8  ;;  %v2207_v15 = vmul.f32 0.2, %v1931_v9 }
 0x221   :  { %2848 = vst.msk [vmem:[%s5623_s3 + $0x1c8] sm:$0xf] %vm2733_vm1, %v2591_v5  ;;  %v2016_v16 = vmul.f32 0.2, %v1453_v12  ;;  %v2080_v17 = vmul.f32 0.2, %v1613_v13 }
 0x222   :  { %v2399_v18 = vmax.f32 %v1771_v8, %v2143_v14  ;;  %v2463_v19 = vmax.f32 %v1931_v9, %v2207_v15 }
 0x223   :  { %v2272_v20 = vmax.f32 %v1453_v12, %v2016_v16  ;;  %v2336_v21 = vmax.f32 %v1613_v13, %v2080_v17 }
 0x224   :  { %v2655_v22 = vpack.c.bf16 %v2399_v18, %v2399_v18  ;;  %v2719_v23 = vpack.c.bf16 %v2463_v19, %v2463_v19 }
 0x225   :  { %v2528_v24 = vpack.c.bf16 %v2272_v20, %v2272_v20  ;;  %v2592_v25 = vpack.c.bf16 %v2336_v21, %v2336_v21  ;;  %v1772_v26 = vpop.f32.mrf.mxu2  ;;  %v1932_v27 = vpop.f32.mrf.mxu3 }
 0x226   :  { %2912 = vst.msk [vmem:[%s5623_s3 + $0x2c8] sm:$0xf] %vm2733_vm1, %v2655_v22  ;;  %v1773_v28 = vadd.f32 %v4997_v45, %v1772_v26  ;;  %v1933_v29 = vadd.f32 %v4997_v45, %v1932_v27  ;;  %v1455_v30 = vpop.f32.mrf.mxu0  ;;  %v1615_v31 = vpop.f32.mrf.mxu1 }
 0x227   :  { %2976 = vst.msk [vmem:[%s5623_s3 + $0x3c8] sm:$0xf] %vm2733_vm1, %v2719_v23  ;;  %v1456_v32 = vadd.f32 %v4997_v45, %v1455_v30  ;;  %v1616_v33 = vadd.f32 %v4997_v45, %v1615_v31 }
 0x228   :  { %2785 = vst.msk [vmem:[%s5623_s3 + $0xcc] sm:$0xf] %vm2733_vm1, %v2528_v24  ;;  %v2144_v35 = vmul.f32 0.2, %v1773_v28  ;;  %v2208_v36 = vmul.f32 0.2, %v1933_v29 }
 0x229   :  { %2849 = vst.msk [vmem:[%s5623_s3 + $0x1cc] sm:$0xf] %vm2733_vm1, %v2592_v25  ;;  %v2017_v37 = vmul.f32 0.2, %v1456_v32  ;;  %v2081_v38 = vmul.f32 0.2, %v1616_v33 }
 0x22a   :  { %v2400_v4 = vmax.f32 %v1773_v28, %v2144_v35  ;;  %v2464_v39 = vmax.f32 %v1933_v29, %v2208_v36 }
 0x22b   :  { %v2273_v40 = vmax.f32 %v1456_v32, %v2017_v37  ;;  %v2337_v41 = vmax.f32 %v1616_v33, %v2081_v38 }
 0x22c   :  { %v2656_v42 = vpack.c.bf16 %v2400_v4, %v2400_v4  ;;  %v2720_v43 = vpack.c.bf16 %v2464_v39, %v2464_v39 }
 0x22d   :  { %v2529_v44 = vpack.c.bf16 %v2273_v40, %v2273_v40  ;;  %v2593_v46 = vpack.c.bf16 %v2337_v41, %v2337_v41  ;;  %v1775_v47 = vpop.f32.mrf.mxu2  ;;  %v1935_v48 = vpop.f32.mrf.mxu3 }
 0x22e   :  { %2913 = vst.msk [vmem:[%s5623_s3 + $0x2cc] sm:$0xf] %vm2733_vm1, %v2656_v42  ;;  %v1776_v49 = vadd.f32 %v4997_v45, %v1775_v47  ;;  %v1936_v50 = vadd.f32 %v4997_v45, %v1935_v48  ;;  %v1457_v51 = vpop.f32.mrf.mxu0  ;;  %v1617_v52 = vpop.f32.mrf.mxu1 }
 0x22f   :  { %2977 = vst.msk [vmem:[%s5623_s3 + $0x3cc] sm:$0xf] %vm2733_vm1, %v2720_v43  ;;  %v1458_v53 = vadd.f32 %v4997_v45, %v1457_v51  ;;  %v1618_v54 = vadd.f32 %v4997_v45, %v1617_v52 }
 0x230   :  { %2786 = vst.msk [vmem:[%s5623_s3 + $0xd0] sm:$0xf] %vm2733_vm1, %v2529_v44  ;;  %v2145_v55 = vmul.f32 0.2, %v1776_v49  ;;  %v2209_v56 = vmul.f32 0.2, %v1936_v50 }
 0x231   :  { %2850 = vst.msk [vmem:[%s5623_s3 + $0x1d0] sm:$0xf] %vm2733_vm1, %v2593_v46  ;;  %v2018_v57 = vmul.f32 0.2, %v1458_v53  ;;  %v2082_v58 = vmul.f32 0.2, %v1618_v54 }
 0x232   :  { %v2401_v59 = vmax.f32 %v1776_v49, %v2145_v55  ;;  %v2465_v34 = vmax.f32 %v1936_v50, %v2209_v56 }
 0x233   :  { %v2274_v60 = vmax.f32 %v1458_v53, %v2018_v57  ;;  %v2338_v61 = vmax.f32 %v1618_v54, %v2082_v58 }
 0x234   :  { %v2657_v62 = vpack.c.bf16 %v2401_v59, %v2401_v59  ;;  %v2721_v63 = vpack.c.bf16 %v2465_v34, %v2465_v34 }
 0x235   :  { %v2530_v0 = vpack.c.bf16 %v2274_v60, %v2274_v60  ;;  %v2594_v1 = vpack.c.bf16 %v2338_v61, %v2338_v61  ;;  %v1777_v2 = vpop.f32.mrf.mxu2  ;;  %v1937_v3 = vpop.f32.mrf.mxu3 }
 0x236   :  { %2914 = vst.msk [vmem:[%s5623_s3 + $0x2d0] sm:$0xf] %vm2733_vm1, %v2657_v62  ;;  %v1778_v5 = vadd.f32 %v4997_v45, %v1777_v2  ;;  %v1938_v6 = vadd.f32 %v4997_v45, %v1937_v3  ;;  %v1460_v7 = vpop.f32.mrf.mxu0  ;;  %v1620_v8 = vpop.f32.mrf.mxu1 }
 0x237   :  { %2978 = vst.msk [vmem:[%s5623_s3 + $0x3d0] sm:$0xf] %vm2733_vm1, %v2721_v63  ;;  %v1461_v9 = vadd.f32 %v4997_v45, %v1460_v7  ;;  %v1621_v10 = vadd.f32 %v4997_v45, %v1620_v8 }
 0x238   :  { %2787 = vst.msk [vmem:[%s5623_s3 + $0xd4] sm:$0xf] %vm2733_vm1, %v2530_v0  ;;  %v2146_v11 = vmul.f32 0.2, %v1778_v5  ;;  %v2210_v12 = vmul.f32 0.2, %v1938_v6 }
 0x239   :  { %2851 = vst.msk [vmem:[%s5623_s3 + $0x1d4] sm:$0xf] %vm2733_vm1, %v2594_v1  ;;  %v2019_v13 = vmul.f32 0.2, %v1461_v9  ;;  %v2083_v14 = vmul.f32 0.2, %v1621_v10 }
 0x23a   :  { %v2402_v15 = vmax.f32 %v1778_v5, %v2146_v11  ;;  %v2466_v16 = vmax.f32 %v1938_v6, %v2210_v12 }
 0x23b   :  { %v2275_v17 = vmax.f32 %v1461_v9, %v2019_v13  ;;  %v2339_v18 = vmax.f32 %v1621_v10, %v2083_v14 }
 0x23c   :  { %v2658_v19 = vpack.c.bf16 %v2402_v15, %v2402_v15  ;;  %v2722_v20 = vpack.c.bf16 %v2466_v16, %v2466_v16 }
 0x23d   :  { %v2531_v21 = vpack.c.bf16 %v2275_v17, %v2275_v17  ;;  %v2595_v22 = vpack.c.bf16 %v2339_v18, %v2339_v18  ;;  %v1780_v23 = vpop.f32.mrf.mxu2  ;;  %v1940_v24 = vpop.f32.mrf.mxu3 }
 0x23e   :  { %2915 = vst.msk [vmem:[%s5623_s3 + $0x2d4] sm:$0xf] %vm2733_vm1, %v2658_v19  ;;  %v1781_v25 = vadd.f32 %v4997_v45, %v1780_v23  ;;  %v1941_v26 = vadd.f32 %v4997_v45, %v1940_v24  ;;  %v1462_v27 = vpop.f32.mrf.mxu0  ;;  %v1622_v28 = vpop.f32.mrf.mxu1 }
 0x23f   :  { %2979 = vst.msk [vmem:[%s5623_s3 + $0x3d4] sm:$0xf] %vm2733_vm1, %v2722_v20  ;;  %v1463_v29 = vadd.f32 %v4997_v45, %v1462_v27  ;;  %v1623_v30 = vadd.f32 %v4997_v45, %v1622_v28 }
 0x240   :  { %2788 = vst.msk [vmem:[%s5623_s3 + $0xd8] sm:$0xf] %vm2733_vm1, %v2531_v21  ;;  %v2147_v31 = vmul.f32 0.2, %v1781_v25  ;;  %v2211_v32 = vmul.f32 0.2, %v1941_v26 }
 0x241   :  { %2852 = vst.msk [vmem:[%s5623_s3 + $0x1d8] sm:$0xf] %vm2733_vm1, %v2595_v22  ;;  %v2020_v33 = vmul.f32 0.2, %v1463_v29  ;;  %v2084_v35 = vmul.f32 0.2, %v1623_v30 }
 0x242   :  { %v2403_v36 = vmax.f32 %v1781_v25, %v2147_v31  ;;  %v2467_v37 = vmax.f32 %v1941_v26, %v2211_v32  ;;  %v5476_v21 = vld [vmem:[%s5622_s2] ss:$0 sm:$0xff] }
 0x243   :  { %v2276_v38 = vmax.f32 %v1463_v29, %v2020_v33  ;;  %v2340_v4 = vmax.f32 %v1623_v30, %v2084_v35 }
 0x244   :  { %v2659_v39 = vpack.c.bf16 %v2403_v36, %v2403_v36  ;;  %v2723_v40 = vpack.c.bf16 %v2467_v37, %v2467_v37 }
 0x245   :  { %v2532_v41 = vpack.c.bf16 %v2276_v38, %v2276_v38  ;;  %v2596_v42 = vpack.c.bf16 %v2340_v4, %v2340_v4  ;;  %v1782_v43 = vpop.f32.mrf.mxu2  ;;  %v1942_v44 = vpop.f32.mrf.mxu3 }
 0x246   :  { %2916 = vst.msk [vmem:[%s5623_s3 + $0x2d8] sm:$0xf] %vm2733_vm1, %v2659_v39  ;;  %v1783_v46 = vadd.f32 %v4997_v45, %v1782_v43  ;;  %v1943_v47 = vadd.f32 %v4997_v45, %v1942_v44  ;;  %v1465_v48 = vpop.f32.mrf.mxu0  ;;  %v1625_v49 = vpop.f32.mrf.mxu1 }
 0x247   :  { %2980 = vst.msk [vmem:[%s5623_s3 + $0x3d8] sm:$0xf] %vm2733_vm1, %v2723_v40  ;;  %v1466_v50 = vadd.f32 %v4997_v45, %v1465_v48  ;;  %v1626_v51 = vadd.f32 %v4997_v45, %v1625_v49 }
 0x248   :  { %2789 = vst.msk [vmem:[%s5623_s3 + $0xdc] sm:$0xf] %vm2733_vm1, %v2532_v41  ;;  %v2148_v52 = vmul.f32 0.2, %v1783_v46  ;;  %v2212_v53 = vmul.f32 0.2, %v1943_v47 }
 0x249   :  { %2853 = vst.msk [vmem:[%s5623_s3 + $0x1dc] sm:$0xf] %vm2733_vm1, %v2596_v42  ;;  %v2021_v54 = vmul.f32 0.2, %v1466_v50  ;;  %v2085_v55 = vmul.f32 0.2, %v1626_v51 }
 0x24a   :  { %v2404_v56 = vmax.f32 %v1783_v46, %v2148_v52  ;;  %v2468_v57 = vmax.f32 %v1943_v47, %v2212_v53 }
 0x24b   :  { %v2277_v58 = vmax.f32 %v1466_v50, %v2021_v54  ;;  %v2341_v59 = vmax.f32 %v1626_v51, %v2085_v55 }
 0x24c   :  { %v2660_v34 = vpack.c.bf16 %v2404_v56, %v2404_v56  ;;  %v2724_v60 = vpack.c.bf16 %v2468_v57, %v2468_v57 }
 0x24d   :  { %v2533_v61 = vpack.c.bf16 %v2277_v58, %v2277_v58  ;;  %v2597_v62 = vpack.c.bf16 %v2341_v59, %v2341_v59  ;;  %v1785_v63 = vpop.f32.mrf.mxu2  ;;  %v1945_v0 = vpop.f32.mrf.mxu3 }
 0x24e   :  { %2917 = vst.msk [vmem:[%s5623_s3 + $0x2dc] sm:$0xf] %vm2733_vm1, %v2660_v34  ;;  %v1786_v1 = vadd.f32 %v4997_v45, %v1785_v63  ;;  %v1946_v2 = vadd.f32 %v4997_v45, %v1945_v0  ;;  %v1467_v3 = vpop.f32.mrf.mxu0  ;;  %v1627_v5 = vpop.f32.mrf.mxu1 }
 0x24f   :  { %2981 = vst.msk [vmem:[%s5623_s3 + $0x3dc] sm:$0xf] %vm2733_vm1, %v2724_v60  ;;  %v1468_v6 = vadd.f32 %v4997_v45, %v1467_v3  ;;  %v1628_v7 = vadd.f32 %v4997_v45, %v1627_v5 }
 0x250   :  { %2790 = vst.msk [vmem:[%s5623_s3 + $0xe0] sm:$0xf] %vm2733_vm1, %v2533_v61  ;;  %v2149_v8 = vmul.f32 0.2, %v1786_v1  ;;  %v2213_v9 = vmul.f32 0.2, %v1946_v2 }
 0x251   :  { %2854 = vst.msk [vmem:[%s5623_s3 + $0x1e0] sm:$0xf] %vm2733_vm1, %v2597_v62  ;;  %v2022_v10 = vmul.f32 0.2, %v1468_v6  ;;  %v2086_v11 = vmul.f32 0.2, %v1628_v7 }
 0x252   :  { %v2405_v12 = vmax.f32 %v1786_v1, %v2149_v8  ;;  %v2469_v13 = vmax.f32 %v1946_v2, %v2213_v9 }
 0x253   :  { %v2278_v14 = vmax.f32 %v1468_v6, %v2022_v10  ;;  %v2342_v15 = vmax.f32 %v1628_v7, %v2086_v11 }
 0x254   :  { %v2661_v16 = vpack.c.bf16 %v2405_v12, %v2405_v12  ;;  %v2725_v45 = vpack.c.bf16 %v2469_v13, %v2469_v13 }
 0x255   :  { %v2534_v17 = vpack.c.bf16 %v2278_v14, %v2278_v14  ;;  %v2598_v18 = vpack.c.bf16 %v2342_v15, %v2342_v15  ;;  %v1787_v19 = vpop.f32.mrf.mxu2  ;;  %v1947_v20 = vpop.f32.mrf.mxu3 }
 0x256   :  { %2918 = vst.msk [vmem:[%s5623_s3 + $0x2e0] sm:$0xf] %vm2733_vm1, %v2661_v16  ;;  %v1788_v22 = vadd.f32 %v5476_v21, %v1787_v19  ;;  %v1948_v23 = vadd.f32 %v5476_v21, %v1947_v20  ;;  %v1470_v24 = vpop.f32.mrf.mxu0  ;;  %v1630_v25 = vpop.f32.mrf.mxu1 }
 0x257   :  { %2982 = vst.msk [vmem:[%s5623_s3 + $0x3e0] sm:$0xf] %vm2733_vm1, %v2725_v45  ;;  %v1471_v26 = vadd.f32 %v5476_v21, %v1470_v24  ;;  %v1631_v27 = vadd.f32 %v5476_v21, %v1630_v25 }
 0x258   :  { %2791 = vst.msk [vmem:[%s5623_s3 + $0xe4] sm:$0xf] %vm2733_vm1, %v2534_v17  ;;  %v2150_v28 = vmul.f32 0.2, %v1788_v22  ;;  %v2214_v29 = vmul.f32 0.2, %v1948_v23 }
 0x259   :  { %2855 = vst.msk [vmem:[%s5623_s3 + $0x1e4] sm:$0xf] %vm2733_vm1, %v2598_v18  ;;  %v2023_v30 = vmul.f32 0.2, %v1471_v26  ;;  %v2087_v31 = vmul.f32 0.2, %v1631_v27 }
 0x25a   :  { %v2406_v32 = vmax.f32 %v1788_v22, %v2150_v28  ;;  %v2470_v33 = vmax.f32 %v1948_v23, %v2214_v29 }
 0x25b   :  { %v2279_v35 = vmax.f32 %v1471_v26, %v2023_v30  ;;  %v2343_v36 = vmax.f32 %v1631_v27, %v2087_v31 }
 0x25c   :  { %v2662_v37 = vpack.c.bf16 %v2406_v32, %v2406_v32  ;;  %v2726_v38 = vpack.c.bf16 %v2470_v33, %v2470_v33 }
 0x25d   :  { %v2535_v4 = vpack.c.bf16 %v2279_v35, %v2279_v35  ;;  %v2599_v39 = vpack.c.bf16 %v2343_v36, %v2343_v36  ;;  %v1790_v40 = vpop.f32.mrf.mxu2  ;;  %v1950_v41 = vpop.f32.mrf.mxu3 }
 0x25e   :  { %2919 = vst.msk [vmem:[%s5623_s3 + $0x2e4] sm:$0xf] %vm2733_vm1, %v2662_v37  ;;  %v1791_v42 = vadd.f32 %v5476_v21, %v1790_v40  ;;  %v1951_v43 = vadd.f32 %v5476_v21, %v1950_v41  ;;  %v1472_v44 = vpop.f32.mrf.mxu0  ;;  %v1632_v46 = vpop.f32.mrf.mxu1 }
 0x25f   :  { %2983 = vst.msk [vmem:[%s5623_s3 + $0x3e4] sm:$0xf] %vm2733_vm1, %v2726_v38  ;;  %v1473_v47 = vadd.f32 %v5476_v21, %v1472_v44  ;;  %v1633_v48 = vadd.f32 %v5476_v21, %v1632_v46 }
 0x260   :  { %2792 = vst.msk [vmem:[%s5623_s3 + $0xe8] sm:$0xf] %vm2733_vm1, %v2535_v4  ;;  %v2151_v49 = vmul.f32 0.2, %v1791_v42  ;;  %v2215_v50 = vmul.f32 0.2, %v1951_v43 }
 0x261   :  { %2856 = vst.msk [vmem:[%s5623_s3 + $0x1e8] sm:$0xf] %vm2733_vm1, %v2599_v39  ;;  %v2024_v51 = vmul.f32 0.2, %v1473_v47  ;;  %v2088_v52 = vmul.f32 0.2, %v1633_v48 }
 0x262   :  { %v2407_v53 = vmax.f32 %v1791_v42, %v2151_v49  ;;  %v2471_v54 = vmax.f32 %v1951_v43, %v2215_v50 }
 0x263   :  { %v2280_v55 = vmax.f32 %v1473_v47, %v2024_v51  ;;  %v2344_v56 = vmax.f32 %v1633_v48, %v2088_v52 }
 0x264   :  { %v2663_v57 = vpack.c.bf16 %v2407_v53, %v2407_v53  ;;  %v2727_v58 = vpack.c.bf16 %v2471_v54, %v2471_v54 }
 0x265   :  { %v2536_v59 = vpack.c.bf16 %v2280_v55, %v2280_v55  ;;  %v2600_v34 = vpack.c.bf16 %v2344_v56, %v2344_v56  ;;  %v1792_v60 = vpop.f32.mrf.mxu2  ;;  %v1952_v61 = vpop.f32.mrf.mxu3 }
 0x266   :  { %2920 = vst.msk [vmem:[%s5623_s3 + $0x2e8] sm:$0xf] %vm2733_vm1, %v2663_v57  ;;  %v1793_v62 = vadd.f32 %v5476_v21, %v1792_v60  ;;  %v1953_v63 = vadd.f32 %v5476_v21, %v1952_v61  ;;  %v1475_v0 = vpop.f32.mrf.mxu0  ;;  %v1635_v1 = vpop.f32.mrf.mxu1 }
 0x267   :  { %2984 = vst.msk [vmem:[%s5623_s3 + $0x3e8] sm:$0xf] %vm2733_vm1, %v2727_v58  ;;  %v1476_v2 = vadd.f32 %v5476_v21, %v1475_v0  ;;  %v1636_v3 = vadd.f32 %v5476_v21, %v1635_v1 }
 0x268   :  { %2793 = vst.msk [vmem:[%s5623_s3 + $0xec] sm:$0xf] %vm2733_vm1, %v2536_v59  ;;  %v2152_v5 = vmul.f32 0.2, %v1793_v62  ;;  %v2216_v6 = vmul.f32 0.2, %v1953_v63 }
 0x269   :  { %2857 = vst.msk [vmem:[%s5623_s3 + $0x1ec] sm:$0xf] %vm2733_vm1, %v2600_v34  ;;  %v2025_v7 = vmul.f32 0.2, %v1476_v2  ;;  %v2089_v8 = vmul.f32 0.2, %v1636_v3 }
 0x26a   :  { %v2408_v9 = vmax.f32 %v1793_v62, %v2152_v5  ;;  %v2472_v10 = vmax.f32 %v1953_v63, %v2216_v6 }
 0x26b   :  { %v2281_v11 = vmax.f32 %v1476_v2, %v2025_v7  ;;  %v2345_v12 = vmax.f32 %v1636_v3, %v2089_v8 }
 0x26c   :  { %v2664_v13 = vpack.c.bf16 %v2408_v9, %v2408_v9  ;;  %v2728_v14 = vpack.c.bf16 %v2472_v10, %v2472_v10 }
 0x26d   :  { %v2537_v15 = vpack.c.bf16 %v2281_v11, %v2281_v11  ;;  %v2601_v16 = vpack.c.bf16 %v2345_v12, %v2345_v12  ;;  %v1795_v45 = vpop.f32.mrf.mxu2  ;;  %v1955_v17 = vpop.f32.mrf.mxu3 }
 0x26e   :  { %2921 = vst.msk [vmem:[%s5623_s3 + $0x2ec] sm:$0xf] %vm2733_vm1, %v2664_v13  ;;  %v1796_v18 = vadd.f32 %v5476_v21, %v1795_v45  ;;  %v1956_v19 = vadd.f32 %v5476_v21, %v1955_v17  ;;  %v1477_v20 = vpop.f32.mrf.mxu0  ;;  %v1637_v22 = vpop.f32.mrf.mxu1 }
 0x26f   :  { %2985 = vst.msk [vmem:[%s5623_s3 + $0x3ec] sm:$0xf] %vm2733_vm1, %v2728_v14  ;;  %v1478_v23 = vadd.f32 %v5476_v21, %v1477_v20  ;;  %v1638_v24 = vadd.f32 %v5476_v21, %v1637_v22 }
 0x270   :  { %2794 = vst.msk [vmem:[%s5623_s3 + $0xf0] sm:$0xf] %vm2733_vm1, %v2537_v15  ;;  %v2153_v25 = vmul.f32 0.2, %v1796_v18  ;;  %v2217_v26 = vmul.f32 0.2, %v1956_v19 }
 0x271   :  { %2858 = vst.msk [vmem:[%s5623_s3 + $0x1f0] sm:$0xf] %vm2733_vm1, %v2601_v16  ;;  %v2026_v27 = vmul.f32 0.2, %v1478_v23  ;;  %v2090_v28 = vmul.f32 0.2, %v1638_v24 }
 0x272   :  { %v2409_v29 = vmax.f32 %v1796_v18, %v2153_v25  ;;  %v2473_v30 = vmax.f32 %v1956_v19, %v2217_v26 }
 0x273   :  { %v2282_v31 = vmax.f32 %v1478_v23, %v2026_v27  ;;  %v2346_v32 = vmax.f32 %v1638_v24, %v2090_v28 }
 0x274   :  { %v2665_v33 = vpack.c.bf16 %v2409_v29, %v2409_v29  ;;  %v2729_v35 = vpack.c.bf16 %v2473_v30, %v2473_v30 }
 0x275   :  { %v2538_v36 = vpack.c.bf16 %v2282_v31, %v2282_v31  ;;  %v2602_v37 = vpack.c.bf16 %v2346_v32, %v2346_v32  ;;  %v1797_v38 = vpop.f32.mrf.mxu2  ;;  %v1957_v4 = vpop.f32.mrf.mxu3 }
 0x276   :  { %2922 = vst.msk [vmem:[%s5623_s3 + $0x2f0] sm:$0xf] %vm2733_vm1, %v2665_v33  ;;  %v1798_v39 = vadd.f32 %v5476_v21, %v1797_v38  ;;  %v1958_v40 = vadd.f32 %v5476_v21, %v1957_v4  ;;  %v1480_v41 = vpop.f32.mrf.mxu0  ;;  %v1640_v42 = vpop.f32.mrf.mxu1 }
 0x277   :  { %2986 = vst.msk [vmem:[%s5623_s3 + $0x3f0] sm:$0xf] %vm2733_vm1, %v2729_v35  ;;  %v1481_v43 = vadd.f32 %v5476_v21, %v1480_v41  ;;  %v1641_v44 = vadd.f32 %v5476_v21, %v1640_v42 }
 0x278   :  { %2795 = vst.msk [vmem:[%s5623_s3 + $0xf4] sm:$0xf] %vm2733_vm1, %v2538_v36  ;;  %v2154_v46 = vmul.f32 0.2, %v1798_v39  ;;  %v2218_v47 = vmul.f32 0.2, %v1958_v40 }
 0x279   :  { %2859 = vst.msk [vmem:[%s5623_s3 + $0x1f4] sm:$0xf] %vm2733_vm1, %v2602_v37  ;;  %v2027_v48 = vmul.f32 0.2, %v1481_v43  ;;  %v2091_v49 = vmul.f32 0.2, %v1641_v44 }
 0x27a   :  { %v2410_v50 = vmax.f32 %v1798_v39, %v2154_v46  ;;  %v2474_v51 = vmax.f32 %v1958_v40, %v2218_v47 }
 0x27b   :  { %v2283_v52 = vmax.f32 %v1481_v43, %v2027_v48  ;;  %v2347_v53 = vmax.f32 %v1641_v44, %v2091_v49 }
 0x27c   :  { %v2666_v54 = vpack.c.bf16 %v2410_v50, %v2410_v50  ;;  %v2730_v55 = vpack.c.bf16 %v2474_v51, %v2474_v51 }
 0x27d   :  { %v2539_v56 = vpack.c.bf16 %v2283_v52, %v2283_v52  ;;  %v2603_v57 = vpack.c.bf16 %v2347_v53, %v2347_v53  ;;  %v1800_v58 = vpop.f32.mrf.mxu2  ;;  %v1960_v59 = vpop.f32.mrf.mxu3 }
 0x27e   :  { %2923 = vst.msk [vmem:[%s5623_s3 + $0x2f4] sm:$0xf] %vm2733_vm1, %v2666_v54  ;;  %v1801_v34 = vadd.f32 %v5476_v21, %v1800_v58  ;;  %v1961_v60 = vadd.f32 %v5476_v21, %v1960_v59  ;;  %v1482_v61 = vpop.f32.mrf.mxu0  ;;  %v1642_v62 = vpop.f32.mrf.mxu1 }
 0x27f   :  { %2987 = vst.msk [vmem:[%s5623_s3 + $0x3f4] sm:$0xf] %vm2733_vm1, %v2730_v55  ;;  %v1483_v63 = vadd.f32 %v5476_v21, %v1482_v61  ;;  %v1643_v0 = vadd.f32 %v5476_v21, %v1642_v62 }
 0x280   :  { %2796 = vst.msk [vmem:[%s5623_s3 + $0xf8] sm:$0xf] %vm2733_vm1, %v2539_v56  ;;  %v2155_v1 = vmul.f32 0.2, %v1801_v34  ;;  %v2219_v2 = vmul.f32 0.2, %v1961_v60 }
 0x281   :  { %2860 = vst.msk [vmem:[%s5623_s3 + $0x1f8] sm:$0xf] %vm2733_vm1, %v2603_v57  ;;  %v2028_v3 = vmul.f32 0.2, %v1483_v63  ;;  %v2092_v5 = vmul.f32 0.2, %v1643_v0 }
 0x282   :  { %v2411_v6 = vmax.f32 %v1801_v34, %v2155_v1  ;;  %v2475_v7 = vmax.f32 %v1961_v60, %v2219_v2 }
 0x283   :  { %v2284_v8 = vmax.f32 %v1483_v63, %v2028_v3  ;;  %v2348_v9 = vmax.f32 %v1643_v0, %v2092_v5 }
 0x284   :  { %v2667_v10 = vpack.c.bf16 %v2411_v6, %v2411_v6  ;;  %v2731_v11 = vpack.c.bf16 %v2475_v7, %v2475_v7 }
 0x285   :  { %v2540_v12 = vpack.c.bf16 %v2284_v8, %v2284_v8  ;;  %v2604_v13 = vpack.c.bf16 %v2348_v9, %v2348_v9  ;;  %v1802_v14 = vpop.f32.mrf.mxu2  ;;  %v1962_v15 = vpop.f32.mrf.mxu3 }
 0x286   :  { %2924 = vst.msk [vmem:[%s5623_s3 + $0x2f8] sm:$0xf] %vm2733_vm1, %v2667_v10  ;;  %v1803_v16 = vadd.f32 %v5476_v21, %v1802_v14  ;;  %v1963_v45 = vadd.f32 %v5476_v21, %v1962_v15 }
 0x287   :  { %2988 = vst.msk [vmem:[%s5623_s3 + $0x3f8] sm:$0xf] %vm2733_vm1, %v2731_v11 }
 0x288   :  { %2797 = vst.msk [vmem:[%s5623_s3 + $0xfc] sm:$0xf] %vm2733_vm1, %v2540_v12  ;;  %v2156_v17 = vmul.f32 0.2, %v1803_v16  ;;  %v2220_v18 = vmul.f32 0.2, %v1963_v45 }
 0x289   :  { %2861 = vst.msk [vmem:[%s5623_s3 + $0x1fc] sm:$0xf] %vm2733_vm1, %v2604_v13 }
 0x28a   :  { %v2412_v19 = vmax.f32 %v1803_v16, %v2156_v17  ;;  %v2476_v20 = vmax.f32 %v1963_v45, %v2220_v18 }
 0x28c   :  { %v2668_v21 = vpack.c.bf16 %v2412_v19, %v2412_v19  ;;  %v2732_v22 = vpack.c.bf16 %v2476_v20, %v2476_v20 }
 0x28e   :  { %2925 = vst.msk [vmem:[%s5623_s3 + $0x2fc] sm:$0xf] %vm2733_vm1, %v2668_v21 }
 0x28f   :  { %2989 = vst.msk [vmem:[%s5623_s3 + $0x3fc] sm:$0xf] %vm2733_vm1, %v2732_v22 }

// kernel: discriminator_forward.4
= control target key start
LH: loop header
LB: loop body
LE: loop exit
PB: predicated region body
PF: predicated region fallthrough
CT: control target
= control target key end

     0   :  { %vm1095_vm0 = vcmask 519168   ;;  %vm1126_vm1 = vcmask 516096   ;;  %s2234_s1 = inlined_call_operand.vmem [shape: bf16[512,64], index: 1, kind: input, shape index: {}]   ;;  %s2235_s2 = inlined_call_operand.vmem [shape: f32[1,64], index: 2, kind: input, shape index: {}]   ;;  %s2236_s0 = inlined_call_operand.vmem [shape: bf16[242,512], index: 0, kind: input, shape index: {}]   ;;  %s2237_s3 = inlined_call_operand.vmem [shape: bf16[242,64], index: 3, kind: output, shape index: {}]  }
   0x1   :  { %v1567_v0 = vld [vmem:[%s2234_s1 + $0x38] sm:$0xff]  ;;  %v1566_v4 = vld [vmem:[%s2234_s1 + $0x30] sm:$0xff]  ;;  %v1565_v8 = vld [vmem:[%s2234_s1 + $0x28] sm:$0xff] }
   0x2   :  { %v1575_v1 = vld [vmem:[%s2234_s1 + $0x78] sm:$0xff]  ;;  %650 = vmatpush.bf16.msra.mxu0 %v1567_v0  ;;  %v1574_v5 = vld [vmem:[%s2234_s1 + $0x70] sm:$0xff]  ;;  %v1573_v9 = vld [vmem:[%s2234_s1 + $0x68] sm:$0xff] }
   0x3   :  { %v1583_v2 = vld [vmem:[%s2234_s1 + $0xb8] sm:$0xff]  ;;  %738 = vmatpush.bf16.msra.mxu1 %v1575_v1  ;;  %v1582_v6 = vld [vmem:[%s2234_s1 + $0xb0] sm:$0xff]  ;;  %v1581_v10 = vld [vmem:[%s2234_s1 + $0xa8] sm:$0xff] }
   0x4   :  { %v1591_v3 = vld [vmem:[%s2234_s1 + $0xf8] sm:$0xff]  ;;  %826 = vmatpush.bf16.msra.mxu2 %v1583_v2  ;;  %v1590_v7 = vld [vmem:[%s2234_s1 + $0xf0] sm:$0xff]  ;;  %v1589_v11 = vld [vmem:[%s2234_s1 + $0xe8] sm:$0xff] }
   0x5   :  { %914 = vmatpush.bf16.msra.mxu3 %v1591_v3  ;;  %v1564_v12 = vld [vmem:[%s2234_s1 + $0x20] sm:$0xff]  ;;  %v1563_v16 = vld [vmem:[%s2234_s1 + $0x18] sm:$0xff]  ;;  %v1562_v20 = vld [vmem:[%s2234_s1 + $0x10] sm:$0xff] }
   0x6   :  { %651 = vmatpush.bf16.msra.mxu0 %v1566_v4  ;;  %v1572_v13 = vld [vmem:[%s2234_s1 + $0x60] sm:$0xff]  ;;  %v1571_v17 = vld [vmem:[%s2234_s1 + $0x58] sm:$0xff]  ;;  %v1570_v21 = vld [vmem:[%s2234_s1 + $0x50] sm:$0xff] }
   0x7   :  { %739 = vmatpush.bf16.msra.mxu1 %v1574_v5  ;;  %v1580_v14 = vld [vmem:[%s2234_s1 + $0xa0] sm:$0xff]  ;;  %v1579_v18 = vld [vmem:[%s2234_s1 + $0x98] sm:$0xff]  ;;  %v1578_v22 = vld [vmem:[%s2234_s1 + $0x90] sm:$0xff] }
   0x8   :  { %827 = vmatpush.bf16.msra.mxu2 %v1582_v6  ;;  %v1588_v15 = vld [vmem:[%s2234_s1 + $0xe0] sm:$0xff]  ;;  %v1587_v19 = vld [vmem:[%s2234_s1 + $0xd8] sm:$0xff]  ;;  %v1586_v23 = vld [vmem:[%s2234_s1 + $0xd0] sm:$0xff] }
   0x9   :  { %915 = vmatpush.bf16.msra.mxu3 %v1590_v7  ;;  %v1561_v24 = vld [vmem:[%s2234_s1 + $0x8] sm:$0xff]  ;;  %v1560_v28 = vld [vmem:[%s2234_s1] sm:$0xff]  ;;  %v1502_v33 = vld [vmem:[%s2236_s0 + $0xc] sm:$0xf0] }
   0xa   :  { %652 = vmatpush.bf16.msra.mxu0 %v1565_v8  ;;  %v1569_v25 = vld [vmem:[%s2234_s1 + $0x48] sm:$0xff]  ;;  %v1568_v29 = vld [vmem:[%s2234_s1 + $0x40] sm:$0xff]  ;;  %v1136_v35 = vld [vmem:[%s2236_s0 + $0x10] sm:$0xf0] }
   0xb   :  { %740 = vmatpush.bf16.msra.mxu1 %v1573_v9  ;;  %v1577_v26 = vld [vmem:[%s2234_s1 + $0x88] sm:$0xff]  ;;  %v1576_v30 = vld [vmem:[%s2234_s1 + $0x80] sm:$0xff]  ;;  %v1503_v37 = vld [vmem:[%s2236_s0 + $0x14] sm:$0xf0] }
   0xc   :  { %828 = vmatpush.bf16.msra.mxu2 %v1581_v10  ;;  %v1585_v27 = vld [vmem:[%s2234_s1 + $0xc8] sm:$0xff]  ;;  %v1584_v31 = vld [vmem:[%s2234_s1 + $0xc0] sm:$0xff]  ;;  %v1144_v39 = vld [vmem:[%s2236_s0 + $0x18] sm:$0xf0] }
   0xd   :  { %916 = vmatpush.bf16.msra.mxu3 %v1589_v11  ;;  %v1134_v32 = vld [vmem:[%s2236_s0] sm:$0xf]  ;;  %v1500_v34 = vld [vmem:[%s2236_s0 + $0x4] sm:$0xf]  ;;  %v1142_v36 = vld [vmem:[%s2236_s0 + $0x8] sm:$0xf] }
   0xe   :  { %653 = vmatpush.bf16.msra.mxu0 %v1564_v12  ;;  %v1501_v38 = vld [vmem:[%s2236_s0 + $0xc] sm:$0xf]  ;;  %v1135_v40 = vor.u32 %v1502_v33, %v1134_v32  ;;  %v1139_v41 = vor.u32 %v1500_v34, %v1136_v35  ;;  %v1143_v42 = vor.u32 %v1503_v37, %v1142_v36  ;;  %v1150_v44 = vld [vmem:[%s2236_s0 + $0x20] sm:$0xf]  ;;  %v1506_v45 = vld [vmem:[%s2236_s0 + $0x2c] sm:$0xf0] }
   0xf   :  { %741 = vmatpush.bf16.msra.mxu1 %v1572_v13  ;;  %v1147_v43 = vor.u32 %v1501_v38, %v1144_v39  ;;  %v1504_v46 = vld [vmem:[%s2236_s0 + $0x24] sm:$0xf]  ;;  %v1152_v47 = vld [vmem:[%s2236_s0 + $0x30] sm:$0xf0]  ;;  %v1158_v48 = vld [vmem:[%s2236_s0 + $0x28] sm:$0xf]  ;;  %v1151_v52 = vor.u32 %v1506_v45, %v1150_v44 }
  0x10   :  { %829 = vmatpush.bf16.msra.mxu2 %v1580_v14  ;;  %v1507_v49 = vld [vmem:[%s2236_s0 + $0x34] sm:$0xf0]  ;;  %v1505_v50 = vld [vmem:[%s2236_s0 + $0x2c] sm:$0xf]  ;;  %v1160_v51 = vld [vmem:[%s2236_s0 + $0x38] sm:$0xf0]  ;;  %v1155_v53 = vor.u32 %v1504_v46, %v1152_v47 }
  0x11   :  { %917 = vmatpush.bf16.msra.mxu3 %v1588_v15  ;;  %v1159_v54 = vor.u32 %v1507_v49, %v1158_v48  ;;  %v1163_v55 = vor.u32 %v1505_v50, %v1160_v51  ;;  %v1166_v56 = vld [vmem:[%s2236_s0 + $0x40] sm:$0xf]  ;;  %v1510_v57 = vld [vmem:[%s2236_s0 + $0x4c] sm:$0xf0]  ;;  %v1508_v58 = vld [vmem:[%s2236_s0 + $0x44] sm:$0xf] }
  0x12   :  { %654 = vmatpush.bf16.msra.mxu0 %v1563_v16  ;;  %v1168_v59 = vld [vmem:[%s2236_s0 + $0x50] sm:$0xf0]  ;;  %v1174_v60 = vld [vmem:[%s2236_s0 + $0x48] sm:$0xf]  ;;  %v1511_v61 = vld [vmem:[%s2236_s0 + $0x54] sm:$0xf0]  ;;  %v1167_v0 = vor.u32 %v1510_v57, %v1166_v56 }
  0x13   :  { %742 = vmatpush.bf16.msra.mxu1 %v1571_v17  ;;  %v1509_v62 = vld [vmem:[%s2236_s0 + $0x4c] sm:$0xf]  ;;  %v1176_v63 = vld [vmem:[%s2236_s0 + $0x58] sm:$0xf0]  ;;  %v1171_v1 = vor.u32 %v1508_v58, %v1168_v59  ;;  %v1175_v2 = vor.u32 %v1511_v61, %v1174_v60  ;;  %v1182_v4 = vld [vmem:[%s2236_s0 + $0x60] sm:$0xf] }
  0x14   :  { %830 = vmatpush.bf16.msra.mxu2 %v1579_v18  ;;  %v1179_v3 = vor.u32 %v1509_v62, %v1176_v63  ;;  %v1514_v5 = vld [vmem:[%s2236_s0 + $0x6c] sm:$0xf0]  ;;  %v1512_v6 = vld [vmem:[%s2236_s0 + $0x64] sm:$0xf]  ;;  %v1184_v7 = vld [vmem:[%s2236_s0 + $0x70] sm:$0xf0] }
  0x15   :  { %918 = vmatpush.bf16.msra.mxu3 %v1587_v19  ;;  %v1190_v8 = vld [vmem:[%s2236_s0 + $0x68] sm:$0xf]  ;;  %v1515_v9 = vld [vmem:[%s2236_s0 + $0x74] sm:$0xf0]  ;;  %v1513_v10 = vld [vmem:[%s2236_s0 + $0x6c] sm:$0xf]  ;;  %v1183_v12 = vor.u32 %v1514_v5, %v1182_v4  ;;  %v1187_v13 = vor.u32 %v1512_v6, %v1184_v7 }
  0x16   :  { %655 = vmatpush.bf16.msra.mxu0 %v1562_v20  ;;  %v1192_v11 = vld [vmem:[%s2236_s0 + $0x78] sm:$0xf0]  ;;  %v1191_v14 = vor.u32 %v1515_v9, %v1190_v8  ;;  %v1198_v16 = vld [vmem:[%s2236_s0 + $0x80] sm:$0xf]  ;;  %v1518_v17 = vld [vmem:[%s2236_s0 + $0x8c] sm:$0xf0] }
  0x17   :  { %743 = vmatpush.bf16.msra.mxu1 %v1570_v21  ;;  %v1195_v15 = vor.u32 %v1513_v10, %v1192_v11  ;;  %v1516_v18 = vld [vmem:[%s2236_s0 + $0x84] sm:$0xf]  ;;  %v1200_v19 = vld [vmem:[%s2236_s0 + $0x90] sm:$0xf0]  ;;  %v1206_v20 = vld [vmem:[%s2236_s0 + $0x88] sm:$0xf] }
  0x18   :  { %831 = vmatpush.bf16.msra.mxu2 %v1578_v22  ;;  %v1519_v21 = vld [vmem:[%s2236_s0 + $0x94] sm:$0xf0]  ;;  %v1517_v22 = vld [vmem:[%s2236_s0 + $0x8c] sm:$0xf]  ;;  %v1222_v32 = vld [vmem:[%s2236_s0 + $0xa8] sm:$0xf] }
  0x19   :  { %919 = vmatpush.bf16.msra.mxu3 %v1586_v23  ;;  %v1208_v23 = vld [vmem:[%s2236_s0 + $0x98] sm:$0xf0]  ;;  %v1523_v33 = vld [vmem:[%s2236_s0 + $0xb4] sm:$0xf0]  ;;  %v1521_v34 = vld [vmem:[%s2236_s0 + $0xac] sm:$0xf] }
  0x1a   :  { %656 = vmatpush.bf16.msra.mxu0 %v1561_v24  ;;  %v1199_v24 = vor.u32 %v1518_v17, %v1198_v16  ;;  %v1224_v35 = vld [vmem:[%s2236_s0 + $0xb8] sm:$0xf0]  ;;  %v1223_v38 = vor.u32 %v1523_v33, %v1222_v32  ;;  %v1238_v44 = vld [vmem:[%s2236_s0 + $0xc8] sm:$0xf]  ;;  %v1527_v45 = vld [vmem:[%s2236_s0 + $0xd4] sm:$0xf0] }
  0x1b   :  { %744 = vmatpush.bf16.msra.mxu1 %v1569_v25  ;;  %v1203_v25 = vor.u32 %v1516_v18, %v1200_v19  ;;  %v1227_v39 = vor.u32 %v1521_v34, %v1224_v35  ;;  %v1525_v46 = vld [vmem:[%s2236_s0 + $0xcc] sm:$0xf]  ;;  %v1240_v47 = vld [vmem:[%s2236_s0 + $0xd8] sm:$0xf0]  ;;  %v1239_v50 = vor.u32 %v1527_v45, %v1238_v44  ;;  %v1254_v56 = vld [vmem:[%s2236_s0 + $0xe8] sm:$0xf] }
  0x1c   :  { %832 = vmatpush.bf16.msra.mxu2 %v1577_v26  ;;  %v1207_v26 = vor.u32 %v1519_v21, %v1206_v20  ;;  %v1243_v51 = vor.u32 %v1525_v46, %v1240_v47  ;;  %v1531_v57 = vld [vmem:[%s2236_s0 + $0xf4] sm:$0xf0]  ;;  %v1529_v58 = vld [vmem:[%s2236_s0 + $0xec] sm:$0xf]  ;;  %v1256_v59 = vld [vmem:[%s2236_s0 + $0xf8] sm:$0xf0] }
  0x1d   :  { %920 = vmatpush.bf16.msra.mxu3 %v1585_v27  ;;  %v1211_v27 = vor.u32 %v1517_v22, %v1208_v23  ;;  %v1255_v62 = vor.u32 %v1531_v57, %v1254_v56  ;;  %v1259_v63 = vor.u32 %v1529_v58, %v1256_v59  ;;  %v1264_v4 = vld [vmem:[%s2236_s0 + $0x110] sm:$0xf0]  ;;  %v1270_v5 = vld [vmem:[%s2236_s0 + $0x108] sm:$0xf]  ;;  %v1535_v6 = vld [vmem:[%s2236_s0 + $0x114] sm:$0xf0] }
  0x1e   :  { %657 = vmatpush.bf16.msra.mxu0 %v1560_v28  ;;  %v1214_v28 = vld [vmem:[%s2236_s0 + $0xa0] sm:$0xf]  ;;  %v1533_v7 = vld [vmem:[%s2236_s0 + $0x10c] sm:$0xf]  ;;  %v1272_v8 = vld [vmem:[%s2236_s0 + $0x118] sm:$0xf0] }
  0x1f   :  { %745 = vmatpush.bf16.msra.mxu1 %v1568_v29  ;;  %v1522_v29 = vld [vmem:[%s2236_s0 + $0xac] sm:$0xf0]  ;;  %v1288_v32 = vld [vmem:[%s2236_s0 + $0x138] sm:$0xf0]  ;;  %v1294_v58 = vld [vmem:[%s2236_s0 + $0x140] sm:$0xf] }
  0x20   :  { %833 = vmatpush.bf16.msra.mxu2 %v1576_v30  ;;  %v1520_v30 = vld [vmem:[%s2236_s0 + $0xa4] sm:$0xf]  ;;  %v1215_v36 = vor.u32 %v1522_v29, %v1214_v28  ;;  %v1280_v28 = vld [vmem:[%s2236_s0 + $0x130] sm:$0xf0]  ;;  %v1286_v29 = vld [vmem:[%s2236_s0 + $0x128] sm:$0xf] }
  0x21   :  { %921 = vmatpush.bf16.msra.mxu3 %v1584_v31  ;;  %658 = vmatmul.bf16.vlgmr.msra.gmra.mxu0 %v1135_v40  ;;  %v1216_v31 = vld [vmem:[%s2236_s0 + $0xb0] sm:$0xf0]  ;;  %v1230_v40 = vld [vmem:[%s2236_s0 + $0xc0] sm:$0xf]  ;;  %v1542_v59 = vld [vmem:[%s2236_s0 + $0x14c] sm:$0xf0] }
  0x22   :  { %746 = vmatmul.bf16.vlgmr.msra.gmra.mxu1 %v1139_v41  ;;  %v1219_v37 = vor.u32 %v1520_v30, %v1216_v31  ;;  %v1526_v41 = vld [vmem:[%s2236_s0 + $0xcc] sm:$0xf0]  ;;  %v1539_v30 = vld [vmem:[%s2236_s0 + $0x134] sm:$0xf0]  ;;  %v1537_v31 = vld [vmem:[%s2236_s0 + $0x12c] sm:$0xf] }
  0x23   :  { %834 = vmatmul.bf16.vlgmr.msra.gmra.mxu2 %v1143_v42  ;;  %v1524_v42 = vld [vmem:[%s2236_s0 + $0xc4] sm:$0xf]  ;;  %v1231_v48 = vor.u32 %v1526_v41, %v1230_v40  ;;  %v1291_v44 = vor.u32 %v1537_v31, %v1288_v32 }
  0x24   :  { %922 = vmatmul.bf16.vlgmr.msra.gmra.mxu3 %v1147_v43  ;;  %v1232_v43 = vld [vmem:[%s2236_s0 + $0xd0] sm:$0xf0]  ;;  %v1544_v31 = vld [vmem:[%s2236_s0 + $0x164] sm:$0xf] }
  0x25   :  { %v1235_v49 = vor.u32 %v1524_v42, %v1232_v43  ;;  %v1287_v43 = vor.u32 %v1539_v30, %v1286_v29  ;;  %v1310_v29 = vld [vmem:[%s2236_s0 + $0x160] sm:$0xf]  ;;  %v1546_v30 = vld [vmem:[%s2236_s0 + $0x16c] sm:$0xf0] }
  0x31   :  { %663 = vmatmul.bf16.gmra.mxu0 %v1151_v52  ;;  %v1246_v52 = vld [vmem:[%s2236_s0 + $0xe0] sm:$0xf] }
  0x32   :  { %751 = vmatmul.bf16.gmra.mxu1 %v1155_v53  ;;  %v1530_v53 = vld [vmem:[%s2236_s0 + $0xec] sm:$0xf0] }
  0x33   :  { %839 = vmatmul.bf16.gmra.mxu2 %v1159_v54  ;;  %v1528_v54 = vld [vmem:[%s2236_s0 + $0xe4] sm:$0xf]  ;;  %v1247_v60 = vor.u32 %v1530_v53, %v1246_v52 }
  0x34   :  { %927 = vmatmul.bf16.gmra.mxu3 %v1163_v55  ;;  %v1248_v55 = vld [vmem:[%s2236_s0 + $0xf0] sm:$0xf0] }
  0x35   :  { %v1251_v61 = vor.u32 %v1528_v54, %v1248_v55 }
  0x41   :  { %668 = vmatmul.bf16.gmra.mxu0 %v1167_v0  ;;  %v1904_v0 = vld [vmem:[%s2235_s2] ss:$0 sm:$0xff] }
  0x42   :  { %756 = vmatmul.bf16.gmra.mxu1 %v1171_v1  ;;  %v1262_v1 = vld [vmem:[%s2236_s0 + $0x100] sm:$0xf] }
  0x43   :  { %844 = vmatmul.bf16.gmra.mxu2 %v1175_v2  ;;  %v1534_v2 = vld [vmem:[%s2236_s0 + $0x10c] sm:$0xf0] }
  0x44   :  { %932 = vmatmul.bf16.gmra.mxu3 %v1179_v3  ;;  %v1532_v3 = vld [vmem:[%s2236_s0 + $0x104] sm:$0xf]  ;;  %v1263_v9 = vor.u32 %v1534_v2, %v1262_v1  ;;  %v1543_v1 = vld [vmem:[%s2236_s0 + $0x154] sm:$0xf0]  ;;  %v1541_v2 = vld [vmem:[%s2236_s0 + $0x14c] sm:$0xf] }
  0x45   :  { %v1267_v10 = vor.u32 %v1532_v3, %v1264_v4  ;;  %v1304_v3 = vld [vmem:[%s2236_s0 + $0x158] sm:$0xf0] }
  0x51   :  { %673 = vmatmul.bf16.gmra.mxu0 %v1183_v12 }
  0x52   :  { %761 = vmatmul.bf16.gmra.mxu1 %v1187_v13  ;;  %v1271_v13 = vor.u32 %v1535_v6, %v1270_v5 }
  0x53   :  { %849 = vmatmul.bf16.gmra.mxu2 %v1191_v14  ;;  %v1275_v14 = vor.u32 %v1533_v7, %v1272_v8  ;;  %v1295_v8 = vor.u32 %v1542_v59, %v1294_v58 }
  0x54   :  { %937 = vmatmul.bf16.gmra.mxu3 %v1195_v15 }
  0x61   :  { %678 = vmatmul.bf16.gmra.mxu0 %v1199_v24  ;;  %v1278_v24 = vld [vmem:[%s2236_s0 + $0x120] sm:$0xf] }
  0x62   :  { %766 = vmatmul.bf16.gmra.mxu1 %v1203_v25  ;;  %v1538_v25 = vld [vmem:[%s2236_s0 + $0x12c] sm:$0xf0] }
  0x63   :  { %854 = vmatmul.bf16.gmra.mxu2 %v1207_v26  ;;  %v1536_v26 = vld [vmem:[%s2236_s0 + $0x124] sm:$0xf] }
  0x64   :  { %942 = vmatmul.bf16.gmra.mxu3 %v1211_v27 }
  0x71   :  { %683 = vmatmul.bf16.gmra.mxu0 %v1215_v36 }
  0x72   :  { %771 = vmatmul.bf16.gmra.mxu1 %v1219_v37  ;;  %v1279_v37 = vor.u32 %v1538_v25, %v1278_v24 }
  0x73   :  { %859 = vmatmul.bf16.gmra.mxu2 %v1223_v38  ;;  %v1283_v38 = vor.u32 %v1536_v26, %v1280_v28 }
  0x74   :  { %947 = vmatmul.bf16.gmra.mxu3 %v1227_v39 }
  0x81   :  { %688 = vmatmul.bf16.gmra.mxu0 %v1231_v48 }
  0x82   :  { %776 = vmatmul.bf16.gmra.mxu1 %v1235_v49 }
  0x83   :  { %864 = vmatmul.bf16.gmra.mxu2 %v1239_v50 }
  0x84   :  { %952 = vmatmul.bf16.gmra.mxu3 %v1243_v51 }
  0x91   :  { %693 = vmatmul.bf16.gmra.mxu0 %v1247_v60  ;;  %v1540_v60 = vld [vmem:[%s2236_s0 + $0x144] sm:$0xf] }
  0x92   :  { %781 = vmatmul.bf16.gmra.mxu1 %v1251_v61 }
  0x93   :  { %869 = vmatmul.bf16.gmra.mxu2 %v1255_v62  ;;  %v1296_v62 = vld [vmem:[%s2236_s0 + $0x150] sm:$0xf0] }
  0x94   :  { %957 = vmatmul.bf16.gmra.mxu3 %v1259_v63  ;;  %v1302_v63 = vld [vmem:[%s2236_s0 + $0x148] sm:$0xf] }
  0x9e   :  { %v659_v11 = vpop.f32.mrf.mxu0 }
  0x9f   :  { %v747_v12 = vpop.f32.mrf.mxu1  ;;  %v660_v15 = vadd.f32 %v1904_v0, %v659_v11 }
  0xa1   :  { %698 = vmatmul.bf16.gmra.mxu0 %v1263_v9  ;;  %v748_v16 = vadd.f32 %v747_v12, %v660_v15  ;;  %v1299_v9 = vor.u32 %v1540_v60, %v1296_v62  ;;  %v1307_v15 = vor.u32 %v1541_v2, %v1304_v3  ;;  %v1548_v2 = vld [vmem:[%s2236_s0 + $0x184] sm:$0xf] }
  0xa2   :  { %786 = vmatmul.bf16.gmra.mxu1 %v1267_v10 }
  0xa3   :  { %874 = vmatmul.bf16.gmra.mxu2 %v1271_v13 }
  0xa4   :  { %962 = vmatmul.bf16.gmra.mxu3 %v1275_v14  ;;  %v1303_v14 = vor.u32 %v1543_v1, %v1302_v63  ;;  %v1326_v63 = vld [vmem:[%s2236_s0 + $0x180] sm:$0xf]  ;;  %v1550_v1 = vld [vmem:[%s2236_s0 + $0x18c] sm:$0xf0] }
  0xa6   :  { %v835_v17 = vpop.f32.mrf.mxu2  ;;  %v661_v20 = vpop.f32.mrf.mxu0 }
  0xa7   :  { %v923_v18 = vpop.f32.mrf.mxu3  ;;  %v836_v19 = vadd.f32 %v835_v17, %v748_v16  ;;  %v749_v21 = vpop.f32.mrf.mxu1  ;;  %v662_v23 = vadd.f32 %v1904_v0, %v661_v20 }
  0xa9   :  { %v924_v22 = vadd.f32 %v923_v18, %v836_v19  ;;  %v750_v34 = vadd.f32 %v749_v21, %v662_v23 }
  0xab   :  { %v1002_v27 = vmul.f32 0.2, %v924_v22 }
  0xad   :  { %v1033_v33 = vmax.f32 %v924_v22, %v1002_v27 }
  0xae   :  { %v837_v35 = vpop.f32.mrf.mxu2  ;;  %v664_v41 = vpop.f32.mrf.mxu0 }
  0xaf   :  { %v925_v36 = vpop.f32.mrf.mxu3  ;;  %v1064_v39 = vpack.c.bf16 %v1033_v33, %v1033_v33  ;;  %v838_v40 = vadd.f32 %v837_v35, %v750_v34  ;;  %v752_v42 = vpop.f32.mrf.mxu1  ;;  %v665_v45 = vadd.f32 %v1904_v0, %v664_v41  ;;  %v1312_v33 = vld [vmem:[%s2236_s0 + $0x170] sm:$0xf0]  ;;  %v1318_v34 = vld [vmem:[%s2236_s0 + $0x168] sm:$0xf]  ;;  %v1547_v35 = vld [vmem:[%s2236_s0 + $0x174] sm:$0xf0] }
  0xb1   :  { %1096 = vst.msk [vmem:[%s2237_s3] sm:$0xf] %vm1095_vm0, %v1064_v39  ;;  %v926_v46 = vadd.f32 %v925_v36, %v838_v40  ;;  %703 = vmatmul.bf16.gmra.mxu0 %v1279_v37  ;;  %v753_v48 = vadd.f32 %v752_v42, %v665_v45  ;;  %v1545_v36 = vld [vmem:[%s2236_s0 + $0x16c] sm:$0xf]  ;;  %v1320_v37 = vld [vmem:[%s2236_s0 + $0x178] sm:$0xf0]  ;;  %v1311_v42 = vor.u32 %v1546_v30, %v1310_v29 }
  0xb2   :  { %791 = vmatmul.bf16.gmra.mxu1 %v1283_v38 }
  0xb3   :  { %v1003_v47 = vmul.f32 0.2, %v926_v46  ;;  %879 = vmatmul.bf16.gmra.mxu2 %v1287_v43  ;;  %v1315_v43 = vor.u32 %v1544_v31, %v1312_v33 }
  0xb4   :  { %967 = vmatmul.bf16.gmra.mxu3 %v1291_v44 }
  0xb5   :  { %v1034_v49 = vmax.f32 %v926_v46, %v1003_v47 }
  0xb6   :  { %v840_v50 = vpop.f32.mrf.mxu2  ;;  %v666_v54 = vpop.f32.mrf.mxu0 }
  0xb7   :  { %v928_v51 = vpop.f32.mrf.mxu3  ;;  %v1065_v52 = vpack.c.bf16 %v1034_v49, %v1034_v49  ;;  %v841_v53 = vadd.f32 %v840_v50, %v753_v48  ;;  %v754_v55 = vpop.f32.mrf.mxu1  ;;  %v667_v57 = vadd.f32 %v1904_v0, %v666_v54  ;;  %v1319_v48 = vor.u32 %v1547_v35, %v1318_v34  ;;  %v1342_v34 = vld [vmem:[%s2236_s0 + $0x1a0] sm:$0xf]  ;;  %v1554_v35 = vld [vmem:[%s2236_s0 + $0x1ac] sm:$0xf0] }
  0xb8   :  { %v1323_v49 = vor.u32 %v1545_v36, %v1320_v37  ;;  %v1552_v36 = vld [vmem:[%s2236_s0 + $0x1a4] sm:$0xf] }
  0xb9   :  { %1097 = vst.msk [vmem:[%s2237_s3 + $0x4] sm:$0xf] %vm1095_vm0, %v1065_v52  ;;  %v929_v56 = vadd.f32 %v928_v51, %v841_v53  ;;  %v755_v5 = vadd.f32 %v754_v55, %v667_v57 }
  0xbb   :  { %v1004_v61 = vmul.f32 0.2, %v929_v56 }
  0xbd   :  { %v1035_v4 = vmax.f32 %v929_v56, %v1004_v61 }
  0xbe   :  { %v842_v6 = vpop.f32.mrf.mxu2  ;;  %v669_v12 = vpop.f32.mrf.mxu0 }
  0xbf   :  { %v930_v7 = vpop.f32.mrf.mxu3  ;;  %v1066_v10 = vpack.c.bf16 %v1035_v4, %v1035_v4  ;;  %v843_v11 = vadd.f32 %v842_v6, %v755_v5  ;;  %v757_v13 = vpop.f32.mrf.mxu1  ;;  %v670_v16 = vadd.f32 %v1904_v0, %v669_v12  ;;  %v1328_v4 = vld [vmem:[%s2236_s0 + $0x190] sm:$0xf0]  ;;  %v1334_v5 = vld [vmem:[%s2236_s0 + $0x188] sm:$0xf]  ;;  %v1551_v6 = vld [vmem:[%s2236_s0 + $0x194] sm:$0xf0] }
  0xc1   :  { %1098 = vst.msk [vmem:[%s2237_s3 + $0x8] sm:$0xf] %vm1095_vm0, %v1066_v10  ;;  %v931_v17 = vadd.f32 %v930_v7, %v843_v11  ;;  %708 = vmatmul.bf16.gmra.mxu0 %v1295_v8  ;;  %v758_v19 = vadd.f32 %v757_v13, %v670_v16  ;;  %v1549_v7 = vld [vmem:[%s2236_s0 + $0x18c] sm:$0xf]  ;;  %v1336_v8 = vld [vmem:[%s2236_s0 + $0x198] sm:$0xf0]  ;;  %v1327_v13 = vor.u32 %v1550_v1, %v1326_v63 }
  0xc2   :  { %796 = vmatmul.bf16.gmra.mxu1 %v1299_v9 }
  0xc3   :  { %v1005_v18 = vmul.f32 0.2, %v931_v17  ;;  %884 = vmatmul.bf16.gmra.mxu2 %v1303_v14  ;;  %v1331_v14 = vor.u32 %v1548_v2, %v1328_v4 }
  0xc4   :  { %972 = vmatmul.bf16.gmra.mxu3 %v1307_v15 }
  0xc5   :  { %v1036_v20 = vmax.f32 %v931_v17, %v1005_v18 }
  0xc6   :  { %v845_v21 = vpop.f32.mrf.mxu2  ;;  %v671_v25 = vpop.f32.mrf.mxu0 }
  0xc7   :  { %v933_v22 = vpop.f32.mrf.mxu3  ;;  %v1067_v23 = vpack.c.bf16 %v1036_v20, %v1036_v20  ;;  %v846_v24 = vadd.f32 %v845_v21, %v758_v19  ;;  %v759_v26 = vpop.f32.mrf.mxu1  ;;  %v672_v28 = vadd.f32 %v1904_v0, %v671_v25  ;;  %v1335_v19 = vor.u32 %v1551_v6, %v1334_v5  ;;  %v1358_v5 = vld [vmem:[%s2236_s0 + $0x1c0] sm:$0xf]  ;;  %v1558_v6 = vld [vmem:[%s2236_s0 + $0x1cc] sm:$0xf0] }
  0xc8   :  { %v1339_v20 = vor.u32 %v1549_v7, %v1336_v8  ;;  %v1556_v7 = vld [vmem:[%s2236_s0 + $0x1c4] sm:$0xf] }
  0xc9   :  { %1099 = vst.msk [vmem:[%s2237_s3 + $0xc] sm:$0xf] %vm1095_vm0, %v1067_v23  ;;  %v934_v27 = vadd.f32 %v933_v22, %v846_v24  ;;  %v760_v39 = vadd.f32 %v759_v26, %v672_v28 }
  0xcb   :  { %v1006_v32 = vmul.f32 0.2, %v934_v27 }
  0xcd   :  { %v1037_v38 = vmax.f32 %v934_v27, %v1006_v32 }
  0xce   :  { %v847_v40 = vpop.f32.mrf.mxu2  ;;  %v674_v46 = vpop.f32.mrf.mxu0 }
  0xcf   :  { %v935_v41 = vpop.f32.mrf.mxu3  ;;  %v1068_v44 = vpack.c.bf16 %v1037_v38, %v1037_v38  ;;  %v848_v45 = vadd.f32 %v847_v40, %v760_v39  ;;  %v762_v47 = vpop.f32.mrf.mxu1  ;;  %v675_v50 = vadd.f32 %v1904_v0, %v674_v46  ;;  %v1344_v38 = vld [vmem:[%s2236_s0 + $0x1b0] sm:$0xf0]  ;;  %v1350_v39 = vld [vmem:[%s2236_s0 + $0x1a8] sm:$0xf]  ;;  %v1555_v40 = vld [vmem:[%s2236_s0 + $0x1b4] sm:$0xf0] }
  0xd1   :  { %1100 = vst.msk [vmem:[%s2237_s3 + $0x10] sm:$0xf] %vm1095_vm0, %v1068_v44  ;;  %v936_v51 = vadd.f32 %v935_v41, %v848_v45  ;;  %713 = vmatmul.bf16.gmra.mxu0 %v1311_v42  ;;  %v763_v53 = vadd.f32 %v762_v47, %v675_v50  ;;  %v1553_v41 = vld [vmem:[%s2236_s0 + $0x1ac] sm:$0xf]  ;;  %v1352_v42 = vld [vmem:[%s2236_s0 + $0x1b8] sm:$0xf0]  ;;  %v1343_v47 = vor.u32 %v1554_v35, %v1342_v34 }
  0xd2   :  { %801 = vmatmul.bf16.gmra.mxu1 %v1315_v43 }
  0xd3   :  { %v1007_v52 = vmul.f32 0.2, %v936_v51  ;;  %889 = vmatmul.bf16.gmra.mxu2 %v1319_v48  ;;  %v1347_v48 = vor.u32 %v1552_v36, %v1344_v38  ;;  %v75_v38 = vld [vmem:[%s2236_s0 + $0x1e8] sm:$0x11] }
  0xd4   :  { %977 = vmatmul.bf16.gmra.mxu3 %v1323_v49 }
  0xd5   :  { %v1038_v54 = vmax.f32 %v936_v51, %v1007_v52 }
  0xd6   :  { %v850_v55 = vpop.f32.mrf.mxu2  ;;  %v676_v59 = vpop.f32.mrf.mxu0 }
  0xd7   :  { %v938_v56 = vpop.f32.mrf.mxu3  ;;  %v1069_v57 = vpack.c.bf16 %v1038_v54, %v1038_v54  ;;  %v851_v58 = vadd.f32 %v850_v55, %v763_v53  ;;  %v764_v60 = vpop.f32.mrf.mxu1  ;;  %v677_v62 = vadd.f32 %v1904_v0, %v676_v59  ;;  %v1351_v53 = vor.u32 %v1555_v40, %v1350_v39 }
  0xd8   :  { %v1355_v54 = vor.u32 %v1553_v41, %v1352_v42 }
  0xd9   :  { %1101 = vst.msk [vmem:[%s2237_s3 + $0x14] sm:$0xf] %vm1095_vm0, %v1069_v57  ;;  %v939_v61 = vadd.f32 %v938_v56, %v851_v58  ;;  %v765_v10 = vadd.f32 %v764_v60, %v677_v62 }
  0xdb   :  { %v1008_v3 = vmul.f32 0.2, %v939_v61 }
  0xdd   :  { %v1039_v9 = vmax.f32 %v939_v61, %v1008_v3 }
  0xde   :  { %v852_v11 = vpop.f32.mrf.mxu2  ;;  %v679_v17 = vpop.f32.mrf.mxu0 }
  0xdf   :  { %v940_v12 = vpop.f32.mrf.mxu3  ;;  %v1070_v15 = vpack.c.bf16 %v1039_v9, %v1039_v9  ;;  %v853_v16 = vadd.f32 %v852_v11, %v765_v10  ;;  %v767_v18 = vpop.f32.mrf.mxu1  ;;  %v680_v21 = vadd.f32 %v1904_v0, %v679_v17  ;;  %v1360_v9 = vld [vmem:[%s2236_s0 + $0x1d0] sm:$0xf0]  ;;  %v1366_v10 = vld [vmem:[%s2236_s0 + $0x1c8] sm:$0xf]  ;;  %v1559_v11 = vld [vmem:[%s2236_s0 + $0x1d4] sm:$0xf0] }
  0xe1   :  { %1102 = vst.msk [vmem:[%s2237_s3 + $0x18] sm:$0xf] %vm1095_vm0, %v1070_v15  ;;  %v941_v22 = vadd.f32 %v940_v12, %v853_v16  ;;  %718 = vmatmul.bf16.gmra.mxu0 %v1327_v13  ;;  %v768_v24 = vadd.f32 %v767_v18, %v680_v21  ;;  %v1557_v12 = vld [vmem:[%s2236_s0 + $0x1cc] sm:$0xf]  ;;  %v1368_v13 = vld [vmem:[%s2236_s0 + $0x1d8] sm:$0xf0]  ;;  %v1359_v18 = vor.u32 %v1558_v6, %v1358_v5 }
  0xe2   :  { %806 = vmatmul.bf16.gmra.mxu1 %v1331_v14 }
  0xe3   :  { %v1009_v23 = vmul.f32 0.2, %v941_v22  ;;  %894 = vmatmul.bf16.gmra.mxu2 %v1335_v19  ;;  %v1363_v19 = vor.u32 %v1556_v7, %v1360_v9 }
  0xe4   :  { %982 = vmatmul.bf16.gmra.mxu3 %v1339_v20 }
  0xe5   :  { %v1040_v25 = vmax.f32 %v941_v22, %v1009_v23 }
  0xe6   :  { %v855_v26 = vpop.f32.mrf.mxu2  ;;  %v681_v30 = vpop.f32.mrf.mxu0 }
  0xe7   :  { %v943_v27 = vpop.f32.mrf.mxu3  ;;  %v1071_v28 = vpack.c.bf16 %v1040_v25, %v1040_v25  ;;  %v856_v29 = vadd.f32 %v855_v26, %v768_v24  ;;  %v769_v31 = vpop.f32.mrf.mxu1  ;;  %v682_v33 = vadd.f32 %v1904_v0, %v681_v30  ;;  %v1367_v24 = vor.u32 %v1559_v11, %v1366_v10 }
  0xe8   :  { %v1371_v25 = vor.u32 %v1557_v12, %v1368_v13 }
  0xe9   :  { %1103 = vst.msk [vmem:[%s2237_s3 + $0x1c] sm:$0xf] %vm1095_vm0, %v1071_v28  ;;  %v944_v32 = vadd.f32 %v943_v27, %v856_v29  ;;  %v770_v44 = vadd.f32 %v769_v31, %v682_v33 }
  0xeb   :  { %v1010_v37 = vmul.f32 0.2, %v944_v32 }
  0xed   :  { %v1041_v43 = vmax.f32 %v944_v32, %v1010_v37  ;;  %v74_v37 = vld [vmem:[%s2236_s0 + $0x1e0] sm:$0x11] }
  0xee   :  { %v857_v45 = vpop.f32.mrf.mxu2  ;;  %v684_v51 = vpop.f32.mrf.mxu0  ;;  %v326_v41 = vunpack.c.l.b16 %v74_v37  ;;  %v327_v42 = vunpack.c.h.b16 %v74_v37 }
  0xef   :  { %v945_v46 = vpop.f32.mrf.mxu3  ;;  %v1072_v49 = vpack.c.bf16 %v1041_v43, %v1041_v43  ;;  %v858_v50 = vadd.f32 %v857_v45, %v770_v44  ;;  %v772_v52 = vpop.f32.mrf.mxu1  ;;  %v685_v55 = vadd.f32 %v1904_v0, %v684_v51  ;;  %v328_v44 = vunpack.c.l.b16 %v75_v38 }
  0xf0   :  { %v329_v45 = vunpack.c.h.b16 %v75_v38  ;;  %v391_v51 = vpack.c.b16 %v327_v42, %v327_v42 }
  0xf1   :  { %1104 = vst.msk [vmem:[%s2237_s3 + $0x20] sm:$0xf] %vm1095_vm0, %v1072_v49  ;;  %v946_v56 = vadd.f32 %v945_v46, %v858_v50  ;;  %723 = vmatmul.bf16.gmra.mxu0 %v1343_v47  ;;  %v773_v58 = vadd.f32 %v772_v52, %v685_v55  ;;  %v390_v50 = vpack.c.b16 %v326_v41, %v326_v41 }
  0xf2   :  { %811 = vmatmul.bf16.gmra.mxu1 %v1347_v48 }
  0xf3   :  { %v1011_v57 = vmul.f32 0.2, %v946_v56  ;;  %899 = vmatmul.bf16.gmra.mxu2 %v1351_v53 }
  0xf4   :  { %987 = vmatmul.bf16.gmra.mxu3 %v1355_v54 }
  0xf5   :  { %v1042_v59 = vmax.f32 %v946_v56, %v1011_v57  ;;  %v392_v56 = vpack.c.b16 %v328_v44, %v328_v44  ;;  %v393_v57 = vpack.c.b16 %v329_v45, %v329_v45 }
  0xf6   :  { %v860_v60 = vpop.f32.mrf.mxu2  ;;  %v686_v1 = vpop.f32.mrf.mxu0 }
  0xf7   :  { %v948_v61 = vpop.f32.mrf.mxu3  ;;  %v1073_v62 = vpack.c.bf16 %v1042_v59, %v1042_v59  ;;  %v861_v63 = vadd.f32 %v860_v60, %v773_v58  ;;  %v774_v2 = vpop.f32.mrf.mxu1  ;;  %v687_v4 = vadd.f32 %v1904_v0, %v686_v1 }
  0xf9   :  { %1105 = vst.msk [vmem:[%s2237_s3 + $0x24] sm:$0xf] %vm1095_vm0, %v1073_v62  ;;  %v949_v3 = vadd.f32 %v948_v61, %v861_v63  ;;  %v775_v15 = vadd.f32 %v774_v2, %v687_v4 }
  0xfb   :  { %v1012_v8 = vmul.f32 0.2, %v949_v3 }
  0xfd   :  { %v1043_v14 = vmax.f32 %v949_v3, %v1012_v8 }
  0xfe   :  { %v862_v16 = vpop.f32.mrf.mxu2  ;;  %v689_v22 = vpop.f32.mrf.mxu0 }
  0xff   :  { %v950_v17 = vpop.f32.mrf.mxu3  ;;  %v1074_v20 = vpack.c.bf16 %v1043_v14, %v1043_v14  ;;  %v863_v21 = vadd.f32 %v862_v16, %v775_v15  ;;  %v777_v23 = vpop.f32.mrf.mxu1  ;;  %v690_v26 = vadd.f32 %v1904_v0, %v689_v22 }
 0x101   :  { %1106 = vst.msk [vmem:[%s2237_s3 + $0x28] sm:$0xf] %vm1095_vm0, %v1074_v20  ;;  %v951_v27 = vadd.f32 %v950_v17, %v863_v21  ;;  %728 = vmatmul.bf16.gmra.mxu0 %v1359_v18  ;;  %v778_v29 = vadd.f32 %v777_v23, %v690_v26 }
 0x102   :  { %816 = vmatmul.bf16.gmra.mxu1 %v1363_v19 }
 0x103   :  { %v1013_v28 = vmul.f32 0.2, %v951_v27  ;;  %904 = vmatmul.bf16.gmra.mxu2 %v1367_v24 }
 0x104   :  { %992 = vmatmul.bf16.gmra.mxu3 %v1371_v25 }
 0x105   :  { %v1044_v30 = vmax.f32 %v951_v27, %v1013_v28 }
 0x106   :  { %v865_v31 = vpop.f32.mrf.mxu2  ;;  %v691_v35 = vpop.f32.mrf.mxu0 }
 0x107   :  { %v953_v32 = vpop.f32.mrf.mxu3  ;;  %v1075_v33 = vpack.c.bf16 %v1044_v30, %v1044_v30  ;;  %v866_v34 = vadd.f32 %v865_v31, %v778_v29  ;;  %v779_v36 = vpop.f32.mrf.mxu1  ;;  %v692_v40 = vadd.f32 %v1904_v0, %v691_v35 }
 0x109   :  { %1107 = vst.msk [vmem:[%s2237_s3 + $0x2c] sm:$0xf] %vm1095_vm0, %v1075_v33  ;;  %v954_v39 = vadd.f32 %v953_v32, %v866_v34  ;;  %v780_v47 = vadd.f32 %v779_v36, %v692_v40 }
 0x10b   :  { %v1014_v43 = vmul.f32 0.2, %v954_v39 }
 0x10d   :  { %v1045_v46 = vmax.f32 %v954_v39, %v1014_v43 }
 0x10e   :  { %v867_v48 = vpop.f32.mrf.mxu2  ;;  %v694_v54 = vpop.f32.mrf.mxu0 }
 0x10f   :  { %v955_v49 = vpop.f32.mrf.mxu3  ;;  %v1076_v52 = vpack.c.bf16 %v1045_v46, %v1045_v46  ;;  %v868_v53 = vadd.f32 %v867_v48, %v780_v47  ;;  %v782_v55 = vpop.f32.mrf.mxu1  ;;  %v695_v58 = vadd.f32 %v1904_v0, %v694_v54 }
 0x111   :  { %1108 = vst.msk [vmem:[%s2237_s3 + $0x30] sm:$0xf] %vm1095_vm0, %v1076_v52  ;;  %v956_v59 = vadd.f32 %v955_v49, %v868_v53  ;;  %733 = vmatmul.bf16.gmra.mxu0 %v390_v50  ;;  %v783_v61 = vadd.f32 %v782_v55, %v695_v58 }
 0x112   :  { %821 = vmatmul.bf16.gmra.mxu1 %v391_v51 }
 0x113   :  { %v1015_v60 = vmul.f32 0.2, %v956_v59  ;;  %909 = vmatmul.bf16.gmra.mxu2 %v392_v56 }
 0x114   :  { %997 = vmatmul.bf16.gmra.mxu3 %v393_v57 }
 0x115   :  { %v1046_v62 = vmax.f32 %v956_v59, %v1015_v60 }
 0x116   :  { %v870_v63 = vpop.f32.mrf.mxu2  ;;  %v696_v4 = vpop.f32.mrf.mxu0 }
 0x117   :  { %v958_v1 = vpop.f32.mrf.mxu3  ;;  %v1077_v2 = vpack.c.bf16 %v1046_v62, %v1046_v62  ;;  %v871_v3 = vadd.f32 %v870_v63, %v783_v61  ;;  %v784_v5 = vpop.f32.mrf.mxu1  ;;  %v697_v7 = vadd.f32 %v1904_v0, %v696_v4 }
 0x119   :  { %1109 = vst.msk [vmem:[%s2237_s3 + $0x34] sm:$0xf] %vm1095_vm0, %v1077_v2  ;;  %v959_v6 = vadd.f32 %v958_v1, %v871_v3  ;;  %v785_v10 = vadd.f32 %v784_v5, %v697_v7 }
 0x11b   :  { %v1016_v8 = vmul.f32 0.2, %v959_v6 }
 0x11d   :  { %v1047_v9 = vmax.f32 %v959_v6, %v1016_v8 }
 0x11e   :  { %v872_v11 = vpop.f32.mrf.mxu2  ;;  %v699_v15 = vpop.f32.mrf.mxu0 }
 0x11f   :  { %v960_v12 = vpop.f32.mrf.mxu3  ;;  %v1078_v13 = vpack.c.bf16 %v1047_v9, %v1047_v9  ;;  %v873_v14 = vadd.f32 %v872_v11, %v785_v10  ;;  %v787_v16 = vpop.f32.mrf.mxu1  ;;  %v700_v17 = vadd.f32 %v1904_v0, %v699_v15 }
 0x121   :  { %1110 = vst.msk [vmem:[%s2237_s3 + $0x38] sm:$0xf] %vm1095_vm0, %v1078_v13  ;;  %v961_v18 = vadd.f32 %v960_v12, %v873_v14  ;;  %v788_v20 = vadd.f32 %v787_v16, %v700_v17 }
 0x123   :  { %v1017_v19 = vmul.f32 0.2, %v961_v18 }
 0x125   :  { %v1048_v21 = vmax.f32 %v961_v18, %v1017_v19 }
 0x126   :  { %v875_v22 = vpop.f32.mrf.mxu2  ;;  %v701_v26 = vpop.f32.mrf.mxu0 }
 0x127   :  { %v963_v23 = vpop.f32.mrf.mxu3  ;;  %v1079_v24 = vpack.c.bf16 %v1048_v21, %v1048_v21  ;;  %v876_v25 = vadd.f32 %v875_v22, %v788_v20  ;;  %v789_v27 = vpop.f32.mrf.mxu1  ;;  %v702_v29 = vadd.f32 %v1904_v0, %v701_v26 }
 0x129   :  { %1111 = vst.msk [vmem:[%s2237_s3 + $0x3c] sm:$0xf] %vm1095_vm0, %v1079_v24  ;;  %v964_v28 = vadd.f32 %v963_v23, %v876_v25  ;;  %v790_v32 = vadd.f32 %v789_v27, %v702_v29 }
 0x12b   :  { %v1018_v30 = vmul.f32 0.2, %v964_v28 }
 0x12d   :  { %v1049_v31 = vmax.f32 %v964_v28, %v1018_v30 }
 0x12e   :  { %v877_v33 = vpop.f32.mrf.mxu2  ;;  %v704_v37 = vpop.f32.mrf.mxu0 }
 0x12f   :  { %v965_v34 = vpop.f32.mrf.mxu3  ;;  %v1080_v35 = vpack.c.bf16 %v1049_v31, %v1049_v31  ;;  %v878_v36 = vadd.f32 %v877_v33, %v790_v32  ;;  %v792_v38 = vpop.f32.mrf.mxu1  ;;  %v705_v39 = vadd.f32 %v1904_v0, %v704_v37 }
 0x131   :  { %1112 = vst.msk [vmem:[%s2237_s3 + $0x40] sm:$0xf] %vm1095_vm0, %v1080_v35  ;;  %v966_v40 = vadd.f32 %v965_v34, %v878_v36  ;;  %v793_v42 = vadd.f32 %v792_v38, %v705_v39 }
 0x133   :  { %v1019_v41 = vmul.f32 0.2, %v966_v40 }
 0x135   :  { %v1050_v43 = vmax.f32 %v966_v40, %v1019_v41 }
 0x136   :  { %v880_v44 = vpop.f32.mrf.mxu2  ;;  %v706_v48 = vpop.f32.mrf.mxu0 }
 0x137   :  { %v968_v45 = vpop.f32.mrf.mxu3  ;;  %v1081_v46 = vpack.c.bf16 %v1050_v43, %v1050_v43  ;;  %v881_v47 = vadd.f32 %v880_v44, %v793_v42  ;;  %v794_v49 = vpop.f32.mrf.mxu1  ;;  %v707_v51 = vadd.f32 %v1904_v0, %v706_v48 }
 0x139   :  { %1113 = vst.msk [vmem:[%s2237_s3 + $0x44] sm:$0xf] %vm1095_vm0, %v1081_v46  ;;  %v969_v50 = vadd.f32 %v968_v45, %v881_v47  ;;  %v795_v54 = vadd.f32 %v794_v49, %v707_v51 }
 0x13b   :  { %v1020_v52 = vmul.f32 0.2, %v969_v50 }
 0x13d   :  { %v1051_v53 = vmax.f32 %v969_v50, %v1020_v52 }
 0x13e   :  { %v882_v55 = vpop.f32.mrf.mxu2  ;;  %v709_v59 = vpop.f32.mrf.mxu0 }
 0x13f   :  { %v970_v56 = vpop.f32.mrf.mxu3  ;;  %v1082_v57 = vpack.c.bf16 %v1051_v53, %v1051_v53  ;;  %v883_v58 = vadd.f32 %v882_v55, %v795_v54  ;;  %v797_v60 = vpop.f32.mrf.mxu1  ;;  %v710_v61 = vadd.f32 %v1904_v0, %v709_v59 }
 0x141   :  { %1114 = vst.msk [vmem:[%s2237_s3 + $0x48] sm:$0xf] %vm1095_vm0, %v1082_v57  ;;  %v971_v62 = vadd.f32 %v970_v56, %v883_v58  ;;  %v798_v1 = vadd.f32 %v797_v60, %v710_v61 }
 0x143   :  { %v1021_v63 = vmul.f32 0.2, %v971_v62 }
 0x145   :  { %v1052_v2 = vmax.f32 %v971_v62, %v1021_v63 }
 0x146   :  { %v885_v3 = vpop.f32.mrf.mxu2  ;;  %v711_v7 = vpop.f32.mrf.mxu0 }
 0x147   :  { %v973_v4 = vpop.f32.mrf.mxu3  ;;  %v1083_v5 = vpack.c.bf16 %v1052_v2, %v1052_v2  ;;  %v886_v6 = vadd.f32 %v885_v3, %v798_v1  ;;  %v799_v8 = vpop.f32.mrf.mxu1  ;;  %v712_v10 = vadd.f32 %v1904_v0, %v711_v7 }
 0x149   :  { %1115 = vst.msk [vmem:[%s2237_s3 + $0x4c] sm:$0xf] %vm1095_vm0, %v1083_v5  ;;  %v974_v9 = vadd.f32 %v973_v4, %v886_v6  ;;  %v800_v13 = vadd.f32 %v799_v8, %v712_v10 }
 0x14b   :  { %v1022_v11 = vmul.f32 0.2, %v974_v9 }
 0x14d   :  { %v1053_v12 = vmax.f32 %v974_v9, %v1022_v11 }
 0x14e   :  { %v887_v14 = vpop.f32.mrf.mxu2  ;;  %v714_v18 = vpop.f32.mrf.mxu0 }
 0x14f   :  { %v975_v15 = vpop.f32.mrf.mxu3  ;;  %v1084_v16 = vpack.c.bf16 %v1053_v12, %v1053_v12  ;;  %v888_v17 = vadd.f32 %v887_v14, %v800_v13  ;;  %v802_v19 = vpop.f32.mrf.mxu1  ;;  %v715_v20 = vadd.f32 %v1904_v0, %v714_v18 }
 0x151   :  { %1116 = vst.msk [vmem:[%s2237_s3 + $0x50] sm:$0xf] %vm1095_vm0, %v1084_v16  ;;  %v976_v21 = vadd.f32 %v975_v15, %v888_v17  ;;  %v803_v23 = vadd.f32 %v802_v19, %v715_v20 }
 0x153   :  { %v1023_v22 = vmul.f32 0.2, %v976_v21 }
 0x155   :  { %v1054_v24 = vmax.f32 %v976_v21, %v1023_v22 }
 0x156   :  { %v890_v25 = vpop.f32.mrf.mxu2  ;;  %v716_v29 = vpop.f32.mrf.mxu0 }
 0x157   :  { %v978_v26 = vpop.f32.mrf.mxu3  ;;  %v1085_v27 = vpack.c.bf16 %v1054_v24, %v1054_v24  ;;  %v891_v28 = vadd.f32 %v890_v25, %v803_v23  ;;  %v804_v30 = vpop.f32.mrf.mxu1  ;;  %v717_v32 = vadd.f32 %v1904_v0, %v716_v29 }
 0x159   :  { %1117 = vst.msk [vmem:[%s2237_s3 + $0x54] sm:$0xf] %vm1095_vm0, %v1085_v27  ;;  %v979_v31 = vadd.f32 %v978_v26, %v891_v28  ;;  %v805_v35 = vadd.f32 %v804_v30, %v717_v32 }
 0x15b   :  { %v1024_v33 = vmul.f32 0.2, %v979_v31 }
 0x15d   :  { %v1055_v34 = vmax.f32 %v979_v31, %v1024_v33 }
 0x15e   :  { %v892_v36 = vpop.f32.mrf.mxu2  ;;  %v719_v40 = vpop.f32.mrf.mxu0 }
 0x15f   :  { %v980_v37 = vpop.f32.mrf.mxu3  ;;  %v1086_v38 = vpack.c.bf16 %v1055_v34, %v1055_v34  ;;  %v893_v39 = vadd.f32 %v892_v36, %v805_v35  ;;  %v807_v41 = vpop.f32.mrf.mxu1  ;;  %v720_v42 = vadd.f32 %v1904_v0, %v719_v40 }
 0x161   :  { %1118 = vst.msk [vmem:[%s2237_s3 + $0x58] sm:$0xf] %vm1095_vm0, %v1086_v38  ;;  %v981_v43 = vadd.f32 %v980_v37, %v893_v39  ;;  %v808_v45 = vadd.f32 %v807_v41, %v720_v42 }
 0x163   :  { %v1025_v44 = vmul.f32 0.2, %v981_v43 }
 0x165   :  { %v1056_v46 = vmax.f32 %v981_v43, %v1025_v44 }
 0x166   :  { %v895_v47 = vpop.f32.mrf.mxu2  ;;  %v721_v51 = vpop.f32.mrf.mxu0 }
 0x167   :  { %v983_v48 = vpop.f32.mrf.mxu3  ;;  %v1087_v49 = vpack.c.bf16 %v1056_v46, %v1056_v46  ;;  %v896_v50 = vadd.f32 %v895_v47, %v808_v45  ;;  %v809_v52 = vpop.f32.mrf.mxu1  ;;  %v722_v54 = vadd.f32 %v1904_v0, %v721_v51 }
 0x169   :  { %1119 = vst.msk [vmem:[%s2237_s3 + $0x5c] sm:$0xf] %vm1095_vm0, %v1087_v49  ;;  %v984_v53 = vadd.f32 %v983_v48, %v896_v50  ;;  %v810_v57 = vadd.f32 %v809_v52, %v722_v54 }
 0x16b   :  { %v1026_v55 = vmul.f32 0.2, %v984_v53 }
 0x16d   :  { %v1057_v56 = vmax.f32 %v984_v53, %v1026_v55 }
 0x16e   :  { %v897_v58 = vpop.f32.mrf.mxu2  ;;  %v724_v62 = vpop.f32.mrf.mxu0 }
 0x16f   :  { %v985_v59 = vpop.f32.mrf.mxu3  ;;  %v1088_v60 = vpack.c.bf16 %v1057_v56, %v1057_v56  ;;  %v898_v61 = vadd.f32 %v897_v58, %v810_v57  ;;  %v812_v63 = vpop.f32.mrf.mxu1  ;;  %v725_v1 = vadd.f32 %v1904_v0, %v724_v62 }
 0x171   :  { %1120 = vst.msk [vmem:[%s2237_s3 + $0x60] sm:$0xf] %vm1095_vm0, %v1088_v60  ;;  %v986_v2 = vadd.f32 %v985_v59, %v898_v61  ;;  %v813_v4 = vadd.f32 %v812_v63, %v725_v1 }
 0x173   :  { %v1027_v3 = vmul.f32 0.2, %v986_v2 }
 0x175   :  { %v1058_v5 = vmax.f32 %v986_v2, %v1027_v3 }
 0x176   :  { %v900_v6 = vpop.f32.mrf.mxu2  ;;  %v726_v10 = vpop.f32.mrf.mxu0 }
 0x177   :  { %v988_v7 = vpop.f32.mrf.mxu3  ;;  %v1089_v8 = vpack.c.bf16 %v1058_v5, %v1058_v5  ;;  %v901_v9 = vadd.f32 %v900_v6, %v813_v4  ;;  %v814_v11 = vpop.f32.mrf.mxu1  ;;  %v727_v13 = vadd.f32 %v1904_v0, %v726_v10 }
 0x179   :  { %1121 = vst.msk [vmem:[%s2237_s3 + $0x64] sm:$0xf] %vm1095_vm0, %v1089_v8  ;;  %v989_v12 = vadd.f32 %v988_v7, %v901_v9  ;;  %v815_v16 = vadd.f32 %v814_v11, %v727_v13 }
 0x17b   :  { %v1028_v14 = vmul.f32 0.2, %v989_v12 }
 0x17d   :  { %v1059_v15 = vmax.f32 %v989_v12, %v1028_v14 }
 0x17e   :  { %v902_v17 = vpop.f32.mrf.mxu2  ;;  %v729_v21 = vpop.f32.mrf.mxu0 }
 0x17f   :  { %v990_v18 = vpop.f32.mrf.mxu3  ;;  %v1090_v19 = vpack.c.bf16 %v1059_v15, %v1059_v15  ;;  %v903_v20 = vadd.f32 %v902_v17, %v815_v16  ;;  %v817_v22 = vpop.f32.mrf.mxu1  ;;  %v730_v23 = vadd.f32 %v1904_v0, %v729_v21 }
 0x181   :  { %1122 = vst.msk [vmem:[%s2237_s3 + $0x68] sm:$0xf] %vm1095_vm0, %v1090_v19  ;;  %v991_v24 = vadd.f32 %v990_v18, %v903_v20  ;;  %v818_v26 = vadd.f32 %v817_v22, %v730_v23 }
 0x183   :  { %v1029_v25 = vmul.f32 0.2, %v991_v24 }
 0x185   :  { %v1060_v27 = vmax.f32 %v991_v24, %v1029_v25 }
 0x186   :  { %v905_v28 = vpop.f32.mrf.mxu2  ;;  %v731_v32 = vpop.f32.mrf.mxu0 }
 0x187   :  { %v993_v29 = vpop.f32.mrf.mxu3  ;;  %v1091_v30 = vpack.c.bf16 %v1060_v27, %v1060_v27  ;;  %v906_v31 = vadd.f32 %v905_v28, %v818_v26  ;;  %v819_v33 = vpop.f32.mrf.mxu1  ;;  %v732_v35 = vadd.f32 %v1904_v0, %v731_v32 }
 0x189   :  { %1123 = vst.msk [vmem:[%s2237_s3 + $0x6c] sm:$0xf] %vm1095_vm0, %v1091_v30  ;;  %v994_v34 = vadd.f32 %v993_v29, %v906_v31  ;;  %v820_v38 = vadd.f32 %v819_v33, %v732_v35 }
 0x18b   :  { %v1030_v36 = vmul.f32 0.2, %v994_v34 }
 0x18d   :  { %v1061_v37 = vmax.f32 %v994_v34, %v1030_v36 }
 0x18e   :  { %v907_v39 = vpop.f32.mrf.mxu2  ;;  %v734_v43 = vpop.f32.mrf.mxu0 }
 0x18f   :  { %v995_v40 = vpop.f32.mrf.mxu3  ;;  %v1092_v41 = vpack.c.bf16 %v1061_v37, %v1061_v37  ;;  %v908_v42 = vadd.f32 %v907_v39, %v820_v38  ;;  %v822_v44 = vpop.f32.mrf.mxu1  ;;  %v735_v45 = vadd.f32 %v1904_v0, %v734_v43 }
 0x191   :  { %1124 = vst.msk [vmem:[%s2237_s3 + $0x70] sm:$0xf] %vm1095_vm0, %v1092_v41  ;;  %v996_v46 = vadd.f32 %v995_v40, %v908_v42  ;;  %v823_v48 = vadd.f32 %v822_v44, %v735_v45 }
 0x193   :  { %v1031_v47 = vmul.f32 0.2, %v996_v46 }
 0x195   :  { %v1062_v49 = vmax.f32 %v996_v46, %v1031_v47 }
 0x196   :  { %v910_v50 = vpop.f32.mrf.mxu2  ;;  %v736_v54 = vpop.f32.mrf.mxu0 }
 0x197   :  { %v998_v51 = vpop.f32.mrf.mxu3  ;;  %v1093_v52 = vpack.c.bf16 %v1062_v49, %v1062_v49  ;;  %v911_v53 = vadd.f32 %v910_v50, %v823_v48  ;;  %v824_v55 = vpop.f32.mrf.mxu1 }
 0x199   :  { %1125 = vst.msk [vmem:[%s2237_s3 + $0x74] sm:$0xf] %vm1095_vm0, %v1093_v52  ;;  %v999_v0 = vadd.f32 %v998_v51, %v911_v53 }
 0x19b   :  { %v1032_v56 = vmul.f32 0.2, %v999_v0 }
 0x19d   :  { %v1063_v57 = vmax.f32 %v999_v0, %v1032_v56 }
 0x19e   :  { %v912_v58 = vpop.f32.mrf.mxu2 }
 0x19f   :  { %v1000_v59 = vpop.f32.mrf.mxu3  ;;  %v1094_v60 = vpack.c.bf16 %v1063_v57, %v1063_v57 }
 0x1a1   :  { %1127 = vst.msk [vmem:[%s2237_s3 + $0x78] sm:$0x1] %vm1126_vm1, %v1094_v60 }

// kernel: discriminator_forward.5
= control target key start
LH: loop header
LB: loop body
LE: loop exit
PB: predicated region body
PF: predicated region fallthrough
CT: control target
= control target key end

     0   :  { %s12662_s1 = inlined_call_operand.vmem [shape: bf16[1024,128], index: 1, kind: input, shape index: {}]   ;;  %s12663_s2 = inlined_call_operand.vmem [shape: f32[1,128], index: 2, kind: input, shape index: {}]   ;;  %s12664_s0 = inlined_call_operand.vmem [shape: bf16[50,1024], index: 0, kind: input, shape index: {}]   ;;  %s12665_s3 = inlined_call_operand.vmem [shape: bf16[2048,256], index: 3, kind: input, shape index: {}]   ;;  %s12666_s4 = inlined_call_operand.vmem [shape: f32[1,256], index: 4, kind: input, shape index: {}]   ;;  %s12667_s5 = inlined_call_operand.vmem [shape: bf16[4,256,512], index: 5, kind: input, shape index: {}]   ;;  %s12668_s8 = inlined_call_operand.vmem [shape: f32[1,128], index: 8, kind: input, shape index: {}]   ;;  %s12669_s7 = inlined_call_operand.vmem [shape: bf16[512,128], index: 7, kind: input, shape index: {}]   ;;  %s12670_s6 = inlined_call_operand.vmem [shape: f32[1,512], index: 6, kind: input, shape index: {}]   ;;  %s12671_s9 = inlined_call_operand.vmem [shape: f32[2,128], index: 9, kind: output, shape index: {}]  }
   0x1   :  { %v8172_v0 = vld [vmem:[%s12662_s1 + $0x38] sm:$0xff]  ;;  %v8171_v4 = vld [vmem:[%s12662_s1 + $0x30] sm:$0xff]  ;;  %v8170_v8 = vld [vmem:[%s12662_s1 + $0x28] sm:$0xff] }
   0x2   :  { %v8180_v1 = vld [vmem:[%s12662_s1 + $0x78] sm:$0xff]  ;;  %725 = vmatpush.bf16.msra.mxu0 %v8172_v0  ;;  %v8179_v5 = vld [vmem:[%s12662_s1 + $0x70] sm:$0xff]  ;;  %v8178_v9 = vld [vmem:[%s12662_s1 + $0x68] sm:$0xff] }
   0x3   :  { %v8188_v2 = vld [vmem:[%s12662_s1 + $0xb8] sm:$0xff]  ;;  %753 = vmatpush.bf16.msra.mxu1 %v8180_v1  ;;  %v8187_v6 = vld [vmem:[%s12662_s1 + $0xb0] sm:$0xff]  ;;  %v8186_v10 = vld [vmem:[%s12662_s1 + $0xa8] sm:$0xff] }
   0x4   :  { %v8196_v3 = vld [vmem:[%s12662_s1 + $0xf8] sm:$0xff]  ;;  %781 = vmatpush.bf16.msra.mxu2 %v8188_v2  ;;  %v8195_v7 = vld [vmem:[%s12662_s1 + $0xf0] sm:$0xff]  ;;  %v8194_v11 = vld [vmem:[%s12662_s1 + $0xe8] sm:$0xff] }
   0x5   :  { %809 = vmatpush.bf16.msra.mxu3 %v8196_v3  ;;  %v8169_v12 = vld [vmem:[%s12662_s1 + $0x20] sm:$0xff]  ;;  %v8168_v16 = vld [vmem:[%s12662_s1 + $0x18] sm:$0xff]  ;;  %v8167_v20 = vld [vmem:[%s12662_s1 + $0x10] sm:$0xff] }
   0x6   :  { %726 = vmatpush.bf16.msra.mxu0 %v8171_v4  ;;  %v8177_v13 = vld [vmem:[%s12662_s1 + $0x60] sm:$0xff]  ;;  %v8176_v17 = vld [vmem:[%s12662_s1 + $0x58] sm:$0xff]  ;;  %v8175_v21 = vld [vmem:[%s12662_s1 + $0x50] sm:$0xff] }
   0x7   :  { %754 = vmatpush.bf16.msra.mxu1 %v8179_v5  ;;  %v8185_v14 = vld [vmem:[%s12662_s1 + $0xa0] sm:$0xff]  ;;  %v8184_v18 = vld [vmem:[%s12662_s1 + $0x98] sm:$0xff]  ;;  %v8183_v22 = vld [vmem:[%s12662_s1 + $0x90] sm:$0xff] }
   0x8   :  { %782 = vmatpush.bf16.msra.mxu2 %v8187_v6  ;;  %v8193_v15 = vld [vmem:[%s12662_s1 + $0xe0] sm:$0xff]  ;;  %v8192_v19 = vld [vmem:[%s12662_s1 + $0xd8] sm:$0xff]  ;;  %v8191_v23 = vld [vmem:[%s12662_s1 + $0xd0] sm:$0xff] }
   0x9   :  { %810 = vmatpush.bf16.msra.mxu3 %v8195_v7  ;;  %v8166_v24 = vld [vmem:[%s12662_s1 + $0x8] sm:$0xff]  ;;  %v8165_v28 = vld [vmem:[%s12662_s1] sm:$0xff]  ;;  %v8204_v44 = vld [vmem:[%s12662_s1 + $0x138] sm:$0xff] }
   0xa   :  { %727 = vmatpush.bf16.msra.mxu0 %v8170_v8  ;;  %v8174_v25 = vld [vmem:[%s12662_s1 + $0x48] sm:$0xff]  ;;  %v8173_v29 = vld [vmem:[%s12662_s1 + $0x40] sm:$0xff]  ;;  %v8212_v45 = vld [vmem:[%s12662_s1 + $0x178] sm:$0xff] }
   0xb   :  { %755 = vmatpush.bf16.msra.mxu1 %v8178_v9  ;;  %v8182_v26 = vld [vmem:[%s12662_s1 + $0x88] sm:$0xff]  ;;  %v8181_v30 = vld [vmem:[%s12662_s1 + $0x80] sm:$0xff]  ;;  %v8220_v46 = vld [vmem:[%s12662_s1 + $0x1b8] sm:$0xff] }
   0xc   :  { %783 = vmatpush.bf16.msra.mxu2 %v8186_v10  ;;  %v8190_v27 = vld [vmem:[%s12662_s1 + $0xc8] sm:$0xff]  ;;  %v8189_v31 = vld [vmem:[%s12662_s1 + $0xc0] sm:$0xff]  ;;  %v8228_v47 = vld [vmem:[%s12662_s1 + $0x1f8] sm:$0xff] }
   0xd   :  { %811 = vmatpush.bf16.msra.mxu3 %v8194_v11  ;;  %v5420_v32 = vld [vmem:[%s12664_s0] sm:$0xf]  ;;  %v8141_v34 = vld [vmem:[%s12664_s0 + $0x4] sm:$0xf]  ;;  %v5428_v36 = vld [vmem:[%s12664_s0 + $0x8] sm:$0xf] }
   0xe   :  { %728 = vmatpush.bf16.msra.mxu0 %v8169_v12  ;;  %v8145_v33 = vld [vmem:[%s12664_s0 + $0x1c] sm:$0xf0]  ;;  %v5422_v35 = vld [vmem:[%s12664_s0 + $0x20] sm:$0xf0]  ;;  %v8146_v37 = vld [vmem:[%s12664_s0 + $0x24] sm:$0xf0] }
   0xf   :  { %756 = vmatpush.bf16.msra.mxu1 %v8177_v13  ;;  %v8142_v38 = vld [vmem:[%s12664_s0 + $0xc] sm:$0xf]  ;;  %v5421_v40 = vor.u32 %v8145_v33, %v5420_v32  ;;  %v5425_v41 = vor.u32 %v8141_v34, %v5422_v35  ;;  %v5429_v42 = vor.u32 %v8146_v37, %v5428_v36  ;;  %v8203_v48 = vld [vmem:[%s12662_s1 + $0x130] sm:$0xff]  ;;  %v5452_v54 = vld [vmem:[%s12664_s0 + $0x40] sm:$0xf] }
  0x10   :  { %784 = vmatpush.bf16.msra.mxu2 %v8185_v14  ;;  %v5430_v39 = vld [vmem:[%s12664_s0 + $0x28] sm:$0xf0]  ;;  %v8211_v49 = vld [vmem:[%s12662_s1 + $0x170] sm:$0xff]  ;;  %v8153_v57 = vld [vmem:[%s12664_s0 + $0x5c] sm:$0xf0] }
  0x11   :  { %812 = vmatpush.bf16.msra.mxu3 %v8193_v15  ;;  %v5433_v43 = vor.u32 %v8142_v38, %v5430_v39  ;;  %v8219_v50 = vld [vmem:[%s12662_s1 + $0x1b0] sm:$0xff]  ;;  %v8202_v52 = vld [vmem:[%s12662_s1 + $0x128] sm:$0xff]  ;;  %v8149_v58 = vld [vmem:[%s12664_s0 + $0x44] sm:$0xf]  ;;  %v5453_v4 = vor.u32 %v8153_v57, %v5452_v54 }
  0x12   :  { %729 = vmatpush.bf16.msra.mxu0 %v8168_v16  ;;  %v8227_v51 = vld [vmem:[%s12662_s1 + $0x1f0] sm:$0xff]  ;;  %v8210_v53 = vld [vmem:[%s12662_s1 + $0x168] sm:$0xff]  ;;  %v5454_v59 = vld [vmem:[%s12664_s0 + $0x60] sm:$0xf0] }
  0x13   :  { %757 = vmatpush.bf16.msra.mxu1 %v8176_v17  ;;  %v8218_v55 = vld [vmem:[%s12662_s1 + $0x1a8] sm:$0xff]  ;;  %v8201_v0 = vld [vmem:[%s12662_s1 + $0x120] sm:$0xff]  ;;  %v5457_v5 = vor.u32 %v8149_v58, %v5454_v59  ;;  %v8200_v8 = vld [vmem:[%s12662_s1 + $0x118] sm:$0xff] }
  0x14   :  { %785 = vmatpush.bf16.msra.mxu2 %v8184_v18  ;;  %v8226_v56 = vld [vmem:[%s12662_s1 + $0x1e8] sm:$0xff]  ;;  %v8209_v1 = vld [vmem:[%s12662_s1 + $0x160] sm:$0xff]  ;;  %v8208_v9 = vld [vmem:[%s12662_s1 + $0x158] sm:$0xff] }
  0x15   :  { %813 = vmatpush.bf16.msra.mxu3 %v8192_v19  ;;  %v5460_v60 = vld [vmem:[%s12664_s0 + $0x48] sm:$0xf]  ;;  %v8150_v62 = vld [vmem:[%s12664_s0 + $0x4c] sm:$0xf]  ;;  %v8217_v2 = vld [vmem:[%s12662_s1 + $0x1a0] sm:$0xff] }
  0x16   :  { %730 = vmatpush.bf16.msra.mxu0 %v8167_v20  ;;  %v8154_v61 = vld [vmem:[%s12664_s0 + $0x64] sm:$0xf0]  ;;  %v5462_v63 = vld [vmem:[%s12664_s0 + $0x68] sm:$0xf0]  ;;  %v8225_v3 = vld [vmem:[%s12662_s1 + $0x1e0] sm:$0xff] }
  0x17   :  { %758 = vmatpush.bf16.msra.mxu1 %v8175_v21  ;;  %v5461_v6 = vor.u32 %v8154_v61, %v5460_v60  ;;  %v5465_v7 = vor.u32 %v8150_v62, %v5462_v63  ;;  %v8216_v10 = vld [vmem:[%s12662_s1 + $0x198] sm:$0xff]  ;;  %v8199_v12 = vld [vmem:[%s12662_s1 + $0x110] sm:$0xff]  ;;  %v8198_v16 = vld [vmem:[%s12662_s1 + $0x108] sm:$0xff] }
  0x18   :  { %786 = vmatpush.bf16.msra.mxu2 %v8183_v22  ;;  %v8224_v11 = vld [vmem:[%s12662_s1 + $0x1d8] sm:$0xff]  ;;  %v8207_v13 = vld [vmem:[%s12662_s1 + $0x150] sm:$0xff]  ;;  %v8206_v17 = vld [vmem:[%s12662_s1 + $0x148] sm:$0xff] }
  0x19   :  { %814 = vmatpush.bf16.msra.mxu3 %v8191_v23  ;;  %v8215_v14 = vld [vmem:[%s12662_s1 + $0x190] sm:$0xff]  ;;  %v5484_v18 = vld [vmem:[%s12664_s0 + $0x80] sm:$0xf]  ;;  %v8214_v19 = vld [vmem:[%s12662_s1 + $0x188] sm:$0xff] }
  0x1a   :  { %731 = vmatpush.bf16.msra.mxu0 %v8166_v24  ;;  %v8223_v15 = vld [vmem:[%s12662_s1 + $0x1d0] sm:$0xff]  ;;  %v8222_v20 = vld [vmem:[%s12662_s1 + $0x1c8] sm:$0xff]  ;;  %v8161_v21 = vld [vmem:[%s12664_s0 + $0x9c] sm:$0xf0] }
  0x1b   :  { %759 = vmatpush.bf16.msra.mxu1 %v8174_v25  ;;  %v8157_v22 = vld [vmem:[%s12664_s0 + $0x84] sm:$0xf]  ;;  %v5492_v24 = vld [vmem:[%s12664_s0 + $0x88] sm:$0xf]  ;;  %v5485_v32 = vor.u32 %v8161_v21, %v5484_v18  ;;  %v5468_v58 = vld [vmem:[%s12664_s0 + $0x50] sm:$0xf] }
  0x1c   :  { %787 = vmatpush.bf16.msra.mxu2 %v8182_v26  ;;  %v5486_v23 = vld [vmem:[%s12664_s0 + $0xa0] sm:$0xf0]  ;;  %v8162_v25 = vld [vmem:[%s12664_s0 + $0xa4] sm:$0xf0]  ;;  %v8158_v26 = vld [vmem:[%s12664_s0 + $0x8c] sm:$0xf] }
  0x1d   :  { %815 = vmatpush.bf16.msra.mxu3 %v8190_v27  ;;  %v5494_v27 = vld [vmem:[%s12664_s0 + $0xa8] sm:$0xf0]  ;;  %v5489_v33 = vor.u32 %v8157_v22, %v5486_v23  ;;  %v5493_v34 = vor.u32 %v8162_v25, %v5492_v24  ;;  %v57_v36 = vld [vmem:[%s12664_s0 + $0xc0] sm:$0x11]  ;;  %v8155_v59 = vld [vmem:[%s12664_s0 + $0x6c] sm:$0xf0] }
  0x1e   :  { %732 = vmatpush.bf16.msra.mxu0 %v8165_v28  ;;  %v8197_v28 = vld [vmem:[%s12662_s1 + $0x100] sm:$0xff]  ;;  %v5497_v35 = vor.u32 %v8158_v26, %v5494_v27  ;;  %v58_v37 = vld [vmem:[%s12664_s0 + $0xc8] sm:$0x11]  ;;  %v269_v38 = vunpack.c.l.b16 %v57_v36  ;;  %v270_v39 = vunpack.c.h.b16 %v57_v36  ;;  %v8151_v60 = vld [vmem:[%s12664_s0 + $0x54] sm:$0xf] }
  0x1f   :  { %760 = vmatpush.bf16.msra.mxu1 %v8173_v29  ;;  %v8205_v29 = vld [vmem:[%s12662_s1 + $0x140] sm:$0xff]  ;;  %v5470_v61 = vld [vmem:[%s12664_s0 + $0x70] sm:$0xf0]  ;;  %v5476_v62 = vld [vmem:[%s12664_s0 + $0x58] sm:$0xf] }
  0x20   :  { %788 = vmatpush.bf16.msra.mxu2 %v8181_v30  ;;  %v8213_v30 = vld [vmem:[%s12662_s1 + $0x180] sm:$0xff]  ;;  %v8156_v63 = vld [vmem:[%s12664_s0 + $0x74] sm:$0xf0]  ;;  %v59_v18 = vld [vmem:[%s12664_s0 + $0xd0] sm:$0x11] }
  0x21   :  { %816 = vmatpush.bf16.msra.mxu3 %v8189_v31  ;;  %733 = vmatmul.bf16.vlgmr.msra.gmra.mxu0 %v5421_v40  ;;  %v8221_v31 = vld [vmem:[%s12662_s1 + $0x1c0] sm:$0xff]  ;;  %v271_v40 = vunpack.c.l.b16 %v58_v37  ;;  %v274_v21 = vunpack.c.h.b16 %v59_v18 }
  0x22   :  { %761 = vmatmul.bf16.vlgmr.msra.gmra.mxu1 %v5425_v41  ;;  %837 = vmatpush.bf16.msrb.mxu0 %v8204_v44  ;;  %v272_v41 = vunpack.c.h.b16 %v58_v37 }
  0x23   :  { %789 = vmatmul.bf16.vlgmr.msra.gmra.mxu2 %v5429_v42  ;;  %865 = vmatpush.bf16.msrb.mxu1 %v8212_v45  ;;  %v301_v42 = vpack.c.b16 %v269_v38, %v269_v38  ;;  %v303_v44 = vpack.c.b16 %v271_v40, %v271_v40  ;;  %v306_v25 = vpack.c.b16 %v274_v21, %v274_v21 }
  0x24   :  { %817 = vmatmul.bf16.vlgmr.msra.gmra.mxu3 %v5433_v43  ;;  %893 = vmatpush.bf16.msrb.mxu2 %v8220_v46  ;;  %v302_v43 = vpack.c.b16 %v270_v39, %v270_v39  ;;  %v304_v45 = vpack.c.b16 %v272_v41, %v272_v41  ;;  %v5436_v46 = vld [vmem:[%s12664_s0 + $0x10] sm:$0xf] }
  0x25   :  { %921 = vmatpush.bf16.msrb.mxu3 %v8228_v47  ;;  %v8147_v47 = vld [vmem:[%s12664_s0 + $0x2c] sm:$0xf0] }
  0x26   :  { %838 = vmatpush.bf16.msrb.mxu0 %v8203_v48  ;;  %v8143_v48 = vld [vmem:[%s12664_s0 + $0x14] sm:$0xf]  ;;  %v5437_v54 = vor.u32 %v8147_v47, %v5436_v46  ;;  %v8260_v46 = vld [vmem:[%s12665_s3 + $0xf4] sm:$0xf0]  ;;  %v5959_v47 = vld [vmem:[%s12665_s3 + $0x170] sm:$0xf] }
  0x27   :  { %866 = vmatpush.bf16.msrb.mxu1 %v8211_v49  ;;  %v5438_v49 = vld [vmem:[%s12664_s0 + $0x30] sm:$0xf0] }
  0x28   :  { %894 = vmatpush.bf16.msrb.mxu2 %v8219_v50  ;;  %v5444_v50 = vld [vmem:[%s12664_s0 + $0x18] sm:$0xf] }
  0x29   :  { %922 = vmatpush.bf16.msrb.mxu3 %v8227_v51  ;;  %v8148_v51 = vld [vmem:[%s12664_s0 + $0x34] sm:$0xf0] }
  0x2a   :  { %839 = vmatpush.bf16.msrb.mxu0 %v8202_v52  ;;  %v8144_v52 = vld [vmem:[%s12664_s0 + $0x1c] sm:$0xf] }
  0x2b   :  { %867 = vmatpush.bf16.msrb.mxu1 %v8210_v53  ;;  %v5446_v53 = vld [vmem:[%s12664_s0 + $0x38] sm:$0xf0] }
  0x2c   :  { %895 = vmatpush.bf16.msrb.mxu2 %v8218_v55  ;;  %v5441_v55 = vor.u32 %v8143_v48, %v5438_v49  ;;  %v5449_v57 = vor.u32 %v8144_v52, %v5446_v53  ;;  %v8276_v48 = vld [vmem:[%s12665_s3 + $0x174] sm:$0xf0] }
  0x2d   :  { %923 = vmatpush.bf16.msrb.mxu3 %v8226_v56  ;;  %v5445_v56 = vor.u32 %v8148_v51, %v5444_v50  ;;  %v5960_v50 = vor.u32 %v8276_v48, %v5959_v47  ;;  %v6023_v51 = vld [vmem:[%s12665_s3 + $0x1f0] sm:$0xf]  ;;  %v8292_v52 = vld [vmem:[%s12665_s3 + $0x1f4] sm:$0xf0] }
  0x2e   :  { %840 = vmatpush.bf16.msrb.mxu0 %v8201_v0  ;;  %v8152_v0 = vld [vmem:[%s12664_s0 + $0x5c] sm:$0xf]  ;;  %v6024_v53 = vor.u32 %v8292_v52, %v6023_v51  ;;  %v5799_v48 = vld [vmem:[%s12665_s3 + $0x30] sm:$0xf]  ;;  %v8252_v52 = vld [vmem:[%s12665_s3 + $0xb4] sm:$0xf0] }
  0x2f   :  { %868 = vmatpush.bf16.msrb.mxu1 %v8209_v1  ;;  %v5478_v1 = vld [vmem:[%s12664_s0 + $0x78] sm:$0xf0] }
  0x30   :  { %896 = vmatpush.bf16.msrb.mxu2 %v8217_v2  ;;  %v5469_v2 = vor.u32 %v8155_v59, %v5468_v58  ;;  %v5887_v58 = vld [vmem:[%s12665_s3 + $0xe0] sm:$0xf] }
  0x31   :  { %924 = vmatpush.bf16.msrb.mxu3 %v8225_v3  ;;  %738 = vmatmul.bf16.gmra.mxu0 %v5453_v4  ;;  %v5473_v3 = vor.u32 %v8151_v60, %v5470_v61  ;;  %v5477_v4 = vor.u32 %v8156_v63, %v5476_v62  ;;  %v8258_v62 = vld [vmem:[%s12665_s3 + $0xe4] sm:$0xf0]  ;;  %v5951_v63 = vld [vmem:[%s12665_s3 + $0x160] sm:$0xf] }
  0x32   :  { %766 = vmatmul.bf16.gmra.mxu1 %v5457_v5  ;;  %841 = vmatpush.bf16.msrb.mxu0 %v8200_v8  ;;  %v5481_v5 = vor.u32 %v8152_v0, %v5478_v1  ;;  %v5508_v8 = vld [vmem:[%s12664_s0 + $0x98] sm:$0xf]  ;;  %v8274_v0 = vld [vmem:[%s12665_s3 + $0x164] sm:$0xf0]  ;;  %v5888_v1 = vor.u32 %v8258_v62, %v5887_v58 }
  0x33   :  { %794 = vmatmul.bf16.gmra.mxu2 %v5461_v6  ;;  %869 = vmatpush.bf16.msrb.mxu1 %v8208_v9  ;;  %v5500_v6 = vld [vmem:[%s12664_s0 + $0x90] sm:$0xf]  ;;  %v8159_v9 = vld [vmem:[%s12664_s0 + $0x94] sm:$0xf]  ;;  %v8284_v62 = vld [vmem:[%s12665_s3 + $0x1b4] sm:$0xf0] }
  0x34   :  { %822 = vmatmul.bf16.gmra.mxu3 %v5465_v7  ;;  %897 = vmatpush.bf16.msrb.mxu2 %v8216_v10  ;;  %v8163_v7 = vld [vmem:[%s12664_s0 + $0xac] sm:$0xf0]  ;;  %v5502_v10 = vld [vmem:[%s12664_s0 + $0xb0] sm:$0xf0] }
  0x35   :  { %925 = vmatpush.bf16.msrb.mxu3 %v8224_v11  ;;  %v8164_v11 = vld [vmem:[%s12664_s0 + $0xb4] sm:$0xf0] }
  0x36   :  { %842 = vmatpush.bf16.msrb.mxu0 %v8199_v12  ;;  %v8160_v12 = vld [vmem:[%s12664_s0 + $0x9c] sm:$0xf] }
  0x37   :  { %870 = vmatpush.bf16.msrb.mxu1 %v8207_v13  ;;  %v5510_v13 = vld [vmem:[%s12664_s0 + $0xb8] sm:$0xf0] }
  0x38   :  { %898 = vmatpush.bf16.msrb.mxu2 %v8215_v14  ;;  %v5501_v14 = vor.u32 %v8163_v7, %v5500_v6  ;;  %v5815_v6 = vld [vmem:[%s12665_s3 + $0x50] sm:$0xf]  ;;  %v8240_v7 = vld [vmem:[%s12665_s3 + $0x54] sm:$0xf0] }
  0x39   :  { %926 = vmatpush.bf16.msrb.mxu3 %v8223_v15  ;;  %v5505_v15 = vor.u32 %v8159_v9, %v5502_v10  ;;  %v5816_v9 = vor.u32 %v8240_v7, %v5815_v6  ;;  %v8256_v10 = vld [vmem:[%s12665_s3 + $0xd4] sm:$0xf0]  ;;  %v8234_v6 = vld [vmem:[%s12665_s3 + $0x24] sm:$0xf0]  ;;  %v8780_v7 = vmov 0  }
  0x3a   :  { %843 = vmatpush.bf16.msrb.mxu0 %v8198_v16  ;;  %v5509_v16 = vor.u32 %v8164_v11, %v5508_v8  ;;  %v5879_v8 = vld [vmem:[%s12665_s3 + $0xd0] sm:$0xf]  ;;  %974 = vst [vmem:[#allocation2 + $0x20] sm:$0xff] %v8780_v7 }
  0x3b   :  { %871 = vmatpush.bf16.msrb.mxu1 %v8206_v17  ;;  %v5513_v17 = vor.u32 %v8160_v12, %v5510_v13  ;;  %v5943_v11 = vld [vmem:[%s12665_s3 + $0x150] sm:$0xf]  ;;  %v8272_v12 = vld [vmem:[%s12665_s3 + $0x154] sm:$0xf0]  ;;  %v5880_v13 = vor.u32 %v8256_v10, %v5879_v8  ;;  %v8250_v10 = vld [vmem:[%s12665_s3 + $0xa4] sm:$0xf0] }
  0x3c   :  { %899 = vmatpush.bf16.msrb.mxu2 %v8214_v19  ;;  %v60_v19 = vld [vmem:[%s12664_s0 + $0xd8] sm:$0x11]  ;;  %975 = vst [vmem:[#allocation2 + $0x28] sm:$0xff] %v8780_v7 }
  0x3d   :  { %927 = vmatpush.bf16.msrb.mxu3 %v8222_v20  ;;  %v273_v20 = vunpack.c.l.b16 %v59_v18  ;;  %v275_v22 = vunpack.c.l.b16 %v60_v19  ;;  %v276_v23 = vunpack.c.h.b16 %v60_v19  ;;  %970 = vst [vmem:[#allocation2] sm:$0xff] %v8780_v7 }
  0x3e   :  { %844 = vmatpush.bf16.msrb.mxu0 %v8197_v28  ;;  %971 = vst [vmem:[#allocation2 + $0x8] sm:$0xff] %v8780_v7 }
  0x3f   :  { %872 = vmatpush.bf16.msrb.mxu1 %v8205_v29  ;;  %v305_v24 = vpack.c.b16 %v273_v20, %v273_v20  ;;  %v307_v26 = vpack.c.b16 %v275_v22, %v275_v22  ;;  %v308_v27 = vpack.c.b16 %v276_v23, %v276_v23  ;;  %v5807_v22 = vld [vmem:[%s12665_s3 + $0x40] sm:$0xf]  ;;  %v8238_v23 = vld [vmem:[%s12665_s3 + $0x44] sm:$0xf0]  ;;  %972 = vst [vmem:[#allocation2 + $0x10] sm:$0xff] %v8780_v7 }
  0x40   :  { %900 = vmatpush.bf16.msrb.mxu2 %v8213_v30  ;;  %973 = vst [vmem:[#allocation2 + $0x18] sm:$0xff] %v8780_v7 }
  0x41   :  { %928 = vmatpush.bf16.msrb.mxu3 %v8221_v31  ;;  %743 = vmatmul.bf16.gmra.mxu0 %v5485_v32  ;;  %976 = vst [vmem:[#allocation2 + $0x30] sm:$0xff] %v8780_v7 }
  0x42   :  { %771 = vmatmul.bf16.gmra.mxu1 %v5489_v33  ;;  %977 = vst [vmem:[#allocation2 + $0x38] sm:$0xff] %v8780_v7 }
  0x43   :  { %799 = vmatmul.bf16.gmra.mxu2 %v5493_v34 }
  0x44   :  { %827 = vmatmul.bf16.gmra.mxu3 %v5497_v35  ;;  %2679 = vmatpush.bf16.msra.mxu2 %v5960_v50  ;;  %v5863_v50 = vld [vmem:[%s12665_s3 + $0xb0] sm:$0xf] }
  0x45   :  { %2692 = vmatpush.bf16.msra.mxu3 %v6024_v53  ;;  %v5927_v53 = vld [vmem:[%s12665_s3 + $0x130] sm:$0xf] }
  0x51   :  { %748 = vmatmul.bf16.gmra.mxu0 %v301_v42  ;;  %v5831_v42 = vld [vmem:[%s12665_s3 + $0x70] sm:$0xf] }
  0x52   :  { %776 = vmatmul.bf16.gmra.mxu1 %v302_v43  ;;  %v8244_v43 = vld [vmem:[%s12665_s3 + $0x74] sm:$0xf0] }
  0x53   :  { %804 = vmatmul.bf16.gmra.mxu2 %v303_v44  ;;  %v5895_v44 = vld [vmem:[%s12665_s3 + $0xf0] sm:$0xf] }
  0x54   :  { %832 = vmatmul.bf16.gmra.mxu3 %v304_v45  ;;  %v5832_v45 = vor.u32 %v8244_v43, %v5831_v42  ;;  %v5896_v49 = vor.u32 %v8260_v46, %v5895_v44  ;;  %v8270_v42 = vld [vmem:[%s12665_s3 + $0x144] sm:$0xf0] }
  0x55   :  { %v8286_v46 = vld [vmem:[%s12665_s3 + $0x1c4] sm:$0xf0] }
  0x56   :  { %2653 = vmatpush.bf16.msra.mxu0 %v5832_v45  ;;  %2666 = vmatpush.bf16.msra.mxu1 %v5896_v49  ;;  %v5999_v45 = vld [vmem:[%s12665_s3 + $0x1c0] sm:$0xf]  ;;  %v8236_v49 = vld [vmem:[%s12665_s3 + $0x34] sm:$0xf0] }
  0x57   :  { %v6000_v47 = vor.u32 %v8286_v46, %v5999_v45  ;;  %v5800_v51 = vor.u32 %v8236_v49, %v5799_v48  ;;  %v8280_v48 = vld [vmem:[%s12665_s3 + $0x194] sm:$0xf0] }
  0x5a   :  { %2667 = vmatpush.bf16.msra.mxu1 %v5888_v1 }
  0x5e   :  { %2668 = vmatpush.bf16.msra.mxu1 %v5880_v13  ;;  %v8266_v13 = vld [vmem:[%s12665_s3 + $0x124] sm:$0xf0] }
  0x61   :  { %845 = vmatmul.bf16.vlgmr.msrb.gmra.mxu0 %v5437_v54 }
  0x62   :  { %873 = vmatmul.bf16.vlgmr.msrb.gmra.mxu1 %v5441_v55 }
  0x63   :  { %901 = vmatmul.bf16.vlgmr.msrb.gmra.mxu2 %v5445_v56  ;;  %v5823_v56 = vld [vmem:[%s12665_s3 + $0x60] sm:$0xf] }
  0x64   :  { %929 = vmatmul.bf16.vlgmr.msrb.gmra.mxu3 %v5449_v57  ;;  %v8242_v57 = vld [vmem:[%s12665_s3 + $0x64] sm:$0xf0] }
  0x65   :  { %v5824_v61 = vor.u32 %v8242_v57, %v5823_v56  ;;  %v8268_v56 = vld [vmem:[%s12665_s3 + $0x134] sm:$0xf0]  ;;  %v5864_v57 = vor.u32 %v8252_v52, %v5863_v50 }
  0x66   :  { %v5928_v58 = vor.u32 %v8268_v56, %v5927_v53  ;;  %v5775_v53 = vld [vmem:[%s12665_s3] sm:$0xf]  ;;  %v8230_v56 = vld [vmem:[%s12665_s3 + $0x4] sm:$0xf0] }
  0x67   :  { %2654 = vmatpush.bf16.msra.mxu0 %v5824_v61  ;;  %v5991_v61 = vld [vmem:[%s12665_s3 + $0x1b0] sm:$0xf] }
  0x6b   :  { %2655 = vmatpush.bf16.msra.mxu0 %v5816_v9  ;;  %v5855_v9 = vld [vmem:[%s12665_s3 + $0xa0] sm:$0xf] }
  0x71   :  { %850 = vmatmul.bf16.gmra.mxu0 %v5469_v2  ;;  %v5952_v2 = vor.u32 %v8274_v0, %v5951_v63  ;;  %v9346_v63 = vld [vmem:[%s12663_s2] ss:$0 sm:$0xff] }
  0x72   :  { %878 = vmatmul.bf16.gmra.mxu1 %v5473_v3  ;;  %v6015_v3 = vld [vmem:[%s12665_s3 + $0x1e0] sm:$0xf] }
  0x73   :  { %906 = vmatmul.bf16.gmra.mxu2 %v5477_v4  ;;  %v8290_v4 = vld [vmem:[%s12665_s3 + $0x1e4] sm:$0xf0] }
  0x74   :  { %934 = vmatmul.bf16.gmra.mxu3 %v5481_v5  ;;  %v6016_v5 = vor.u32 %v8290_v4, %v6015_v3  ;;  %2680 = vmatpush.bf16.msra.mxu2 %v5952_v2  ;;  %v5992_v2 = vor.u32 %v8284_v62, %v5991_v61  ;;  %v5903_v61 = vld [vmem:[%s12665_s3 + $0x100] sm:$0xf] }
  0x76   :  { %2693 = vmatpush.bf16.msra.mxu3 %v6016_v5  ;;  %v5791_v5 = vld [vmem:[%s12665_s3 + $0x20] sm:$0xf] }
  0x77   :  { %v5792_v8 = vor.u32 %v8234_v6, %v5791_v5  ;;  %v5967_v5 = vld [vmem:[%s12665_s3 + $0x180] sm:$0xf]  ;;  %v8278_v6 = vld [vmem:[%s12665_s3 + $0x184] sm:$0xf0] }
  0x81   :  { %855 = vmatmul.bf16.gmra.mxu0 %v5501_v14  ;;  %v5944_v14 = vor.u32 %v8272_v12, %v5943_v11  ;;  %v5856_v11 = vor.u32 %v8250_v10, %v5855_v9  ;;  %v5919_v12 = vld [vmem:[%s12665_s3 + $0x120] sm:$0xf]  ;;  %v6087_v9 = vld [vmem:[%s12665_s3 + $0x270] sm:$0xf]  ;;  %v8308_v10 = vld [vmem:[%s12665_s3 + $0x274] sm:$0xf0] }
  0x82   :  { %883 = vmatmul.bf16.gmra.mxu1 %v5505_v15  ;;  %v6007_v15 = vld [vmem:[%s12665_s3 + $0x1d0] sm:$0xf] }
  0x83   :  { %911 = vmatmul.bf16.gmra.mxu2 %v5509_v16  ;;  %v8288_v16 = vld [vmem:[%s12665_s3 + $0x1d4] sm:$0xf0] }
  0x84   :  { %939 = vmatmul.bf16.gmra.mxu3 %v5513_v17  ;;  %v6008_v17 = vor.u32 %v8288_v16, %v6007_v15  ;;  %2681 = vmatpush.bf16.msra.mxu2 %v5944_v14  ;;  %v5920_v14 = vor.u32 %v8266_v13, %v5919_v12  ;;  %v5983_v15 = vld [vmem:[%s12665_s3 + $0x1a0] sm:$0xf]  ;;  %v8282_v16 = vld [vmem:[%s12665_s3 + $0x1a4] sm:$0xf0]  ;;  %v6088_v13 = vor.u32 %v8308_v10, %v6087_v9 }
  0x86   :  { %2694 = vmatpush.bf16.msra.mxu3 %v6008_v17 }
  0x8a   :  { %2695 = vmatpush.bf16.msra.mxu3 %v6000_v47  ;;  %v5975_v47 = vld [vmem:[%s12665_s3 + $0x190] sm:$0xf] }
  0x8b   :  { %v5976_v52 = vor.u32 %v8280_v48, %v5975_v47  ;;  %v6207_v47 = vld [vmem:[%s12665_s3 + $0x360] sm:$0xf]  ;;  %v8338_v48 = vld [vmem:[%s12665_s3 + $0x364] sm:$0xf0] }
  0x8e   :  { %2696 = vmatpush.bf16.msra.mxu3 %v5992_v2  ;;  %v8262_v2 = vld [vmem:[%s12665_s3 + $0x104] sm:$0xf0] }
  0x8f   :  { %v5904_v7 = vor.u32 %v8262_v2, %v5903_v61  ;;  %v6135_v2 = vld [vmem:[%s12665_s3 + $0x2d0] sm:$0xf] }
  0x91   :  { %860 = vmatmul.bf16.gmra.mxu0 %v305_v24  ;;  %v5871_v24 = vld [vmem:[%s12665_s3 + $0xc0] sm:$0xf] }
  0x92   :  { %888 = vmatmul.bf16.gmra.mxu1 %v306_v25  ;;  %v5808_v25 = vor.u32 %v8238_v23, %v5807_v22  ;;  %v5984_v22 = vor.u32 %v8282_v16, %v5983_v15  ;;  %v5783_v23 = vld [vmem:[%s12665_s3 + $0x10] sm:$0xf]  ;;  %v8340_v16 = vld [vmem:[%s12665_s3 + $0x374] sm:$0xf0] }
  0x93   :  { %916 = vmatmul.bf16.gmra.mxu2 %v307_v26  ;;  %v8254_v26 = vld [vmem:[%s12665_s3 + $0xc4] sm:$0xf0]  ;;  %v6215_v15 = vld [vmem:[%s12665_s3 + $0x370] sm:$0xf] }
  0x94   :  { %944 = vmatmul.bf16.gmra.mxu3 %v308_v27  ;;  %v5935_v27 = vld [vmem:[%s12665_s3 + $0x140] sm:$0xf]  ;;  %v5872_v43 = vor.u32 %v8254_v26, %v5871_v24  ;;  %2656 = vmatpush.bf16.msra.mxu0 %v5808_v25  ;;  %v8232_v24 = vld [vmem:[%s12665_s3 + $0x14] sm:$0xf0]  ;;  %v5847_v26 = vld [vmem:[%s12665_s3 + $0x90] sm:$0xf] }
  0x95   :  { %v5936_v44 = vor.u32 %v8270_v42, %v5935_v27  ;;  %v5784_v25 = vor.u32 %v8232_v24, %v5783_v23  ;;  %2697 = vmatpush.bf16.msra.mxu3 %v5984_v22  ;;  %v5911_v42 = vld [vmem:[%s12665_s3 + $0x110] sm:$0xf]  ;;  %v6216_v22 = vor.u32 %v8340_v16, %v6215_v15  ;;  %v8356_v23 = vld [vmem:[%s12665_s3 + $0x3f4] sm:$0xf0]  ;;  %v6063_v15 = vld [vmem:[%s12665_s3 + $0x240] sm:$0xf] }
  0x96   :  { %2669 = vmatpush.bf16.msra.mxu1 %v5872_v43  ;;  %v8264_v43 = vld [vmem:[%s12665_s3 + $0x114] sm:$0xf0]  ;;  %v6127_v16 = vld [vmem:[%s12665_s3 + $0x2c0] sm:$0xf] }
  0x97   :  { %2682 = vmatpush.bf16.msra.mxu2 %v5936_v44  ;;  %v5912_v46 = vor.u32 %v8264_v43, %v5911_v42 }
  0x98   :  { %2657 = vmatpush.bf16.msra.mxu0 %v5800_v51 }
  0x99   :  { %2698 = vmatpush.bf16.msra.mxu3 %v5976_v52 }
  0x9a   :  { %2670 = vmatpush.bf16.msra.mxu1 %v5864_v57  ;;  %v5776_v57 = vor.u32 %v8230_v56, %v5775_v53  ;;  %v6208_v53 = vor.u32 %v8338_v48, %v6207_v47  ;;  %v6271_v56 = vld [vmem:[%s12665_s3 + $0x3e0] sm:$0xf]  ;;  %v8350_v47 = vld [vmem:[%s12665_s3 + $0x3c4] sm:$0xf0] }
  0x9b   :  { %2683 = vmatpush.bf16.msra.mxu2 %v5928_v58  ;;  %v5839_v58 = vld [vmem:[%s12665_s3 + $0x80] sm:$0xf] }
  0x9c   :  { %2658 = vmatpush.bf16.msra.mxu0 %v5792_v8  ;;  %v5968_v8 = vor.u32 %v8278_v6, %v5967_v5  ;;  %v8320_v6 = vld [vmem:[%s12665_s3 + $0x2d4] sm:$0xf0] }
  0x9d   :  { %v6136_v10 = vor.u32 %v8320_v6, %v6135_v2  ;;  %v8348_v2 = vld [vmem:[%s12665_s3 + $0x3b4] sm:$0xf0] }
  0x9e   :  { %v9179_v28 = vpop.f32.mrf.mxu0  ;;  %2671 = vmatpush.bf16.msra.mxu1 %v5856_v11  ;;  %v6151_v11 = vld [vmem:[%s12665_s3 + $0x2f0] sm:$0xf]  ;;  %2699 = vmatpush.bf16.msra.mxu3 %v5968_v8  ;;  %v8336_v8 = vld [vmem:[%s12665_s3 + $0x354] sm:$0xf0] }
  0x9f   :  { %v9181_v29 = vpop.f32.mrf.mxu1  ;;  %v735_v17 = vadd.f32 %v9346_v63, %v9179_v28  ;;  %2684 = vmatpush.bf16.msra.mxu2 %v5920_v14  ;;  %v8248_v28 = vld [vmem:[%s12665_s3 + $0x94] sm:$0xf0] }
  0xa0   :  { %v5848_v27 = vor.u32 %v8248_v28, %v5847_v26  ;;  %2659 = vmatpush.bf16.msra.mxu0 %v5784_v25  ;;  %v8324_v14 = vld [vmem:[%s12665_s3 + $0x2f4] sm:$0xf0]  ;;  %v6079_v26 = vld [vmem:[%s12665_s3 + $0x260] sm:$0xf]  ;;  %v8306_v28 = vld [vmem:[%s12665_s3 + $0x264] sm:$0xf0] }
  0xa1   :  { %v763_v49 = vadd.f32 %v9181_v29, %v735_v17  ;;  %v8246_v29 = vld [vmem:[%s12665_s3 + $0x84] sm:$0xf0]  ;;  %v6152_v17 = vor.u32 %v8324_v14, %v6151_v11  ;;  %v6263_v11 = vld [vmem:[%s12665_s3 + $0x3d0] sm:$0xf] }
  0xa2   :  { %2672 = vmatpush.bf16.msra.mxu1 %v5848_v27  ;;  %v5840_v62 = vor.u32 %v8246_v29, %v5839_v58  ;;  %v6143_v27 = vld [vmem:[%s12665_s3 + $0x2e0] sm:$0xf] }
  0xa3   :  { %2685 = vmatpush.bf16.msra.mxu2 %v5912_v46  ;;  %v8322_v46 = vld [vmem:[%s12665_s3 + $0x2e4] sm:$0xf0] }
  0xa4   :  { %2660 = vmatpush.bf16.msra.mxu0 %v5776_v57  ;;  %v6144_v52 = vor.u32 %v8322_v46, %v6143_v27  ;;  %v8354_v57 = vld [vmem:[%s12665_s3 + $0x3e4] sm:$0xf0]  ;;  %v6255_v46 = vld [vmem:[%s12665_s3 + $0x3c0] sm:$0xf] }
  0xa5   :  { %v6272_v58 = vor.u32 %v8354_v57, %v6271_v56  ;;  %v6256_v48 = vor.u32 %v8350_v47, %v6255_v46  ;;  %v8316_v57 = vld [vmem:[%s12665_s3 + $0x2b4] sm:$0xf0]  ;;  %v6103_v47 = vld [vmem:[%s12665_s3 + $0x290] sm:$0xf] }
  0xa6   :  { %v9183_v30 = vpop.f32.mrf.mxu2  ;;  %v9187_v32 = vpop.f32.mrf.mxu0  ;;  %2673 = vmatpush.bf16.msra.mxu1 %v5840_v62  ;;  %v8304_v62 = vld [vmem:[%s12665_s3 + $0x254] sm:$0xf0] }
  0xa7   :  { %v9185_v31 = vpop.f32.mrf.mxu3  ;;  %v9189_v33 = vpop.f32.mrf.mxu1  ;;  %v791_v12 = vadd.f32 %v9183_v30, %v763_v49  ;;  %2686 = vmatpush.bf16.msra.mxu2 %v5904_v7  ;;  %v6279_v30 = vld [vmem:[%s12665_s3 + $0x3f0] sm:$0xf]  ;;  %v737_v24 = vadd.f32 %v9346_v63, %v9187_v32  ;;  %v6080_v32 = vor.u32 %v8306_v28, %v6079_v26  ;;  %v8334_v26 = vld [vmem:[%s12665_s3 + $0x344] sm:$0xf0] }
  0xa8   :  { %2705 = vmatpush.bf16.msrb.mxu0 %v6088_v13  ;;  %v6280_v25 = vor.u32 %v8356_v23, %v6279_v30  ;;  %v6199_v7 = vld [vmem:[%s12665_s3 + $0x350] sm:$0xf] }
  0xa9   :  { %v819_v49 = vadd.f32 %v9185_v31, %v791_v12  ;;  %v765_v29 = vadd.f32 %v9189_v33, %v737_v24  ;;  %v6071_v31 = vld [vmem:[%s12665_s3 + $0x250] sm:$0xf]  ;;  %v8352_v12 = vld [vmem:[%s12665_s3 + $0x3d4] sm:$0xf0]  ;;  %v8318_v24 = vld [vmem:[%s12665_s3 + $0x2c4] sm:$0xf0] }
  0xaa   :  { %2718 = vmatpush.bf16.msrb.mxu1 %v6152_v17  ;;  %2744 = vmatpush.bf16.msrb.mxu3 %v6280_v25  ;;  %v6072_v33 = vor.u32 %v8304_v62, %v6071_v31  ;;  %v6264_v13 = vor.u32 %v8352_v12, %v6263_v11  ;;  %v6191_v25 = vld [vmem:[%s12665_s3 + $0x340] sm:$0xf] }
  0xab   :  { %2731 = vmatpush.bf16.msrb.mxu2 %v6216_v22 }
  0xac   :  { %2706 = vmatpush.bf16.msrb.mxu0 %v6080_v32  ;;  %v6192_v32 = vor.u32 %v8334_v26, %v6191_v25 }
  0xae   :  { %v9191_v34 = vpop.f32.mrf.mxu2  ;;  %v9195_v36 = vpop.f32.mrf.mxu0  ;;  %2719 = vmatpush.bf16.msrb.mxu1 %v6144_v52  ;;  %2745 = vmatpush.bf16.msrb.mxu3 %v6272_v58  ;;  %v6119_v52 = vld [vmem:[%s12665_s3 + $0x2b0] sm:$0xf] }
  0xaf   :  { %v9193_v35 = vpop.f32.mrf.mxu3  ;;  %v9197_v37 = vpop.f32.mrf.mxu1  ;;  %v740_v5 = vadd.f32 %v9346_v63, %v9195_v36  ;;  %2732 = vmatpush.bf16.msrb.mxu2 %v6208_v53  ;;  %v793_v9 = vadd.f32 %v9191_v34, %v765_v29  ;;  %v6200_v36 = vor.u32 %v8336_v8, %v6199_v7  ;;  %v8302_v34 = vld [vmem:[%s12665_s3 + $0x244] sm:$0xf0]  ;;  %v6183_v58 = vld [vmem:[%s12665_s3 + $0x330] sm:$0xf]  ;;  %v8332_v29 = vld [vmem:[%s12665_s3 + $0x334] sm:$0xf0]  ;;  %v6120_v31 = vor.u32 %v8316_v57, %v6119_v52 }
  0xb0   :  { %2707 = vmatpush.bf16.msrb.mxu0 %v6072_v33  ;;  %v6064_v23 = vor.u32 %v8302_v34, %v6063_v15  ;;  %v6184_v62 = vor.u32 %v8332_v29, %v6183_v58  ;;  %v6047_v8 = vld [vmem:[%s12665_s3 + $0x220] sm:$0xf]  ;;  %v8330_v15 = vld [vmem:[%s12665_s3 + $0x324] sm:$0xf0]  ;;  %v6231_v52 = vld [vmem:[%s12665_s3 + $0x390] sm:$0xf] }
  0xb1   :  { %v768_v17 = vadd.f32 %v9197_v37, %v740_v5  ;;  %v821_v28 = vadd.f32 %v9193_v35, %v793_v9  ;;  %v6055_v35 = vld [vmem:[%s12665_s3 + $0x230] sm:$0xf]  ;;  %v8298_v9 = vld [vmem:[%s12665_s3 + $0x224] sm:$0xf0]  ;;  %v8344_v58 = vld [vmem:[%s12665_s3 + $0x394] sm:$0xf0] }
  0xb2   :  { %2720 = vmatpush.bf16.msrb.mxu1 %v6136_v10  ;;  %2746 = vmatpush.bf16.msrb.mxu3 %v6264_v13  ;;  %v6111_v10 = vld [vmem:[%s12665_s3 + $0x2a0] sm:$0xf]  ;;  %v6048_v12 = vor.u32 %v8298_v9, %v6047_v8  ;;  %v8314_v13 = vld [vmem:[%s12665_s3 + $0x2a4] sm:$0xf0] }
  0xb3   :  { %2733 = vmatpush.bf16.msrb.mxu2 %v6200_v36  ;;  %v6031_v29 = vld [vmem:[%s12665_s3 + $0x200] sm:$0xf] }
  0xb4   :  { %2708 = vmatpush.bf16.msrb.mxu0 %v6064_v23  ;;  %v6239_v23 = vld [vmem:[%s12665_s3 + $0x3a0] sm:$0xf] }
  0xb6   :  { %v9199_v38 = vpop.f32.mrf.mxu2  ;;  %v9203_v40 = vpop.f32.mrf.mxu0  ;;  %2747 = vmatpush.bf16.msrb.mxu3 %v6256_v48  ;;  %v8312_v48 = vld [vmem:[%s12665_s3 + $0x294] sm:$0xf0] }
  0xb7   :  { %v9201_v39 = vpop.f32.mrf.mxu3  ;;  %v9205_v41 = vpop.f32.mrf.mxu1  ;;  %v796_v53 = vadd.f32 %v9199_v38, %v768_v17  ;;  %2734 = vmatpush.bf16.msrb.mxu2 %v6192_v32  ;;  %v6247_v38 = vld [vmem:[%s12665_s3 + $0x3b0] sm:$0xf]  ;;  %v742_v5 = vadd.f32 %v9346_v63, %v9203_v40 }
  0xb8   :  { %v6248_v33 = vor.u32 %v8348_v2, %v6247_v38  ;;  %v6232_v38 = vor.u32 %v8344_v58, %v6231_v52  ;;  %v8294_v2 = vld [vmem:[%s12665_s3 + $0x204] sm:$0xf0] }
  0xb9   :  { %v824_v36 = vadd.f32 %v9201_v39, %v796_v53  ;;  %v770_v25 = vadd.f32 %v9205_v41, %v742_v5  ;;  %v8296_v41 = vld [vmem:[%s12665_s3 + $0x214] sm:$0xf0]  ;;  %v6095_v5 = vld [vmem:[%s12665_s3 + $0x280] sm:$0xf] }
  0xba   :  { %2748 = vmatpush.bf16.msrb.mxu3 %v6248_v33 }
  0xbb   :  { %2735 = vmatpush.bf16.msrb.mxu2 %v6184_v62 }
  0xbe   :  { %v9231_v54 = vpop.f32.mrf.mxu2  ;;  %v9244_v59 = vpop.f32.mrf.mxu0 }
  0xbf   :  { %v9233_v55 = vpop.f32.mrf.mxu3  ;;  %v9246_v60 = vpop.f32.mrf.mxu1  ;;  %v798_v32 = vadd.f32 %v9231_v54, %v770_v25  ;;  %v745_v46 = vadd.f32 %v9346_v63, %v9244_v59  ;;  %v6104_v59 = vor.u32 %v8312_v48, %v6103_v47 }
  0xc1   :  { %v773_v33 = vadd.f32 %v9246_v60, %v745_v46 }
  0xc6   :  { %v9287_v18 = vpop.f32.mrf.mxu2  ;;  %v9291_v20 = vpop.f32.mrf.mxu0 }
  0xc7   :  { %v9289_v19 = vpop.f32.mrf.mxu3  ;;  %v9293_v21 = vpop.f32.mrf.mxu1 }
  0xce   :  { %v9348_v0 = vpop.f32.mrf.mxu2  ;;  %v9352_v3 = vpop.f32.mrf.mxu0 }
  0xcf   :  { %v9350_v1 = vpop.f32.mrf.mxu3  ;;  %v9354_v4 = vpop.f32.mrf.mxu1 }
  0xd6   :  { %v9400_v44 = vpop.f32.mrf.mxu2  ;;  %v751_v50 = vpop.f32.mrf.mxu0 }
  0xd7   :  { %v9402_v45 = vpop.f32.mrf.mxu3  ;;  %v779_v51 = vpop.f32.mrf.mxu1 }
  0xde   :  { %v807_v42 = vpop.f32.mrf.mxu2  ;;  %v846_v50 = vpop.f32.mrf.mxu0 }
  0xdf   :  { %v835_v43 = vpop.f32.mrf.mxu3  ;;  %v874_v51 = vpop.f32.mrf.mxu1  ;;  %v847_v61 = vadd.f32 %v846_v50, %v819_v49 }
  0xe0   :  { %v6128_v43 = vor.u32 %v8318_v24, %v6127_v16  ;;  %v8346_v24 = vld [vmem:[%s12665_s3 + $0x3a4] sm:$0xf0] }
  0xe1   :  { %v875_v14 = vadd.f32 %v874_v51, %v847_v61  ;;  %v8300_v51 = vld [vmem:[%s12665_s3 + $0x234] sm:$0xf0]  ;;  %v6240_v26 = vor.u32 %v8346_v24, %v6239_v23  ;;  %v747_v24 = vadd.f32 %v9346_v63, %v9291_v20 }
  0xe2   :  { %2721 = vmatpush.bf16.msrb.mxu1 %v6128_v43  ;;  %v6056_v56 = vor.u32 %v8300_v51, %v6055_v35  ;;  %v6039_v43 = vld [vmem:[%s12665_s3 + $0x210] sm:$0xf]  ;;  %v8328_v51 = vld [vmem:[%s12665_s3 + $0x314] sm:$0xf0] }
  0xe3   :  { %2749 = vmatpush.bf16.msrb.mxu3 %v6240_v26  ;;  %v6167_v35 = vld [vmem:[%s12665_s3 + $0x310] sm:$0xf]  ;;  %v775_v46 = vadd.f32 %v9293_v21, %v747_v24 }
  0xe4   :  { %2709 = vmatpush.bf16.msrb.mxu0 %v6056_v56  ;;  %v6168_v57 = vor.u32 %v8328_v51, %v6167_v35 }
  0xe6   :  { %v902_v22 = vpop.f32.mrf.mxu2  ;;  %v848_v27 = vpop.f32.mrf.mxu0  ;;  %2722 = vmatpush.bf16.msrb.mxu1 %v6120_v31 }
  0xe7   :  { %v930_v30 = vpop.f32.mrf.mxu3  ;;  %v903_v37 = vadd.f32 %v902_v22, %v875_v14  ;;  %v876_v42 = vpop.f32.mrf.mxu1  ;;  %v849_v50 = vadd.f32 %v848_v27, %v821_v28  ;;  %v6175_v14 = vld [vmem:[%s12665_s3 + $0x320] sm:$0xf]  ;;  %v6112_v22 = vor.u32 %v8314_v13, %v6111_v10  ;;  %v8310_v10 = vld [vmem:[%s12665_s3 + $0x284] sm:$0xf0]  ;;  %2750 = vmatpush.bf16.msrb.mxu3 %v6232_v38 }
  0xe8   :  { %2710 = vmatpush.bf16.msrb.mxu0 %v6048_v12  ;;  %v6096_v60 = vor.u32 %v8310_v10, %v6095_v5  ;;  %v6223_v13 = vld [vmem:[%s12665_s3 + $0x380] sm:$0xf]  ;;  %v6407_v10 = vld [vmem:[%s12665_s3 + $0x4f0] sm:$0xf] }
  0xe9   :  { %v931_v49 = vadd.f32 %v930_v30, %v903_v37  ;;  %v877_v7 = vadd.f32 %v876_v42, %v849_v50  ;;  %v6176_v30 = vor.u32 %v8330_v15, %v6175_v14  ;;  %v6040_v50 = vor.u32 %v8296_v41, %v6039_v43  ;;  %v8342_v14 = vld [vmem:[%s12665_s3 + $0x384] sm:$0xf0] }
  0xea   :  { %2723 = vmatpush.bf16.msrb.mxu1 %v6112_v22  ;;  %v801_v22 = vadd.f32 %v9287_v18, %v773_v33 }
  0xeb   :  { %v949_v61 = vmul.f32 0.2, %v931_v49  ;;  %2736 = vmatpush.bf16.msrb.mxu2 %v6176_v30 }
  0xec   :  { %2711 = vmatpush.bf16.msrb.mxu0 %v6040_v50 }
  0xed   :  { %v956_v6 = vmax.f32 %v931_v49, %v949_v61  ;;  %v826_v61 = vadd.f32 %v9233_v55, %v798_v32  ;;  %v6032_v55 = vor.u32 %v8294_v2, %v6031_v29 }
  0xee   :  { %v904_v11 = vpop.f32.mrf.mxu2  ;;  %v851_v39 = vpop.f32.mrf.mxu0  ;;  %2724 = vmatpush.bf16.msrb.mxu1 %v6104_v59 }
  0xef   :  { %v932_v40 = vpop.f32.mrf.mxu3  ;;  %v963_v34 = vpack.c.bf16 %v956_v6, %v956_v6  ;;  %v905_v16 = vadd.f32 %v904_v11, %v877_v7  ;;  %v879_v17 = vpop.f32.mrf.mxu1  ;;  %v852_v42 = vadd.f32 %v851_v39, %v824_v36  ;;  %2737 = vmatpush.bf16.msrb.mxu2 %v6168_v57  ;;  %v6159_v36 = vld [vmem:[%s12665_s3 + $0x300] sm:$0xf]  ;;  %v8326_v11 = vld [vmem:[%s12665_s3 + $0x304] sm:$0xf0] }
  0xf0   :  { %v6160_v12 = vor.u32 %v8326_v11, %v6159_v36  ;;  %2712 = vmatpush.bf16.msrb.mxu0 %v6032_v55  ;;  %v8372_v55 = vld [vmem:[%s12665_s3 + $0x474] sm:$0xf0] }
  0xf1   :  { %978 = vst [vmem:[#allocation2 + $0x28] sm:$0x1] %v963_v34  ;;  %v980_v28 = vrot.slane %v963_v34, 5  ;;  %v5770_v37 = vrot.slane %v963_v34, 10  ;;  %v933_v27 = vadd.f32 %v932_v40, %v905_v16  ;;  %v880_v56 = vadd.f32 %v879_v17, %v852_v42 }
  0xf2   :  { %2725 = vmatpush.bf16.msrb.mxu1 %v6096_v60  ;;  %v6224_v17 = vor.u32 %v8342_v14, %v6223_v13  ;;  %v8404_v13 = vld [vmem:[%s12665_s3 + $0x574] sm:$0xf0]  ;;  %v6535_v14 = vld [vmem:[%s12665_s3 + $0x5f0] sm:$0xf] }
  0xf3   :  { %v981_v49 = vrot.slane %v980_v28, 4  ;;  %988 = vst [vmem:[#allocation2 + $0x24] sm:$0x2] %v5770_v37  ;;  %v950_v54 = vmul.f32 0.2, %v933_v27  ;;  %2738 = vmatpush.bf16.msrb.mxu2 %v6160_v12 }
  0xf4   :  { %2751 = vmatpush.bf16.msrb.mxu3 %v6224_v17  ;;  %v6471_v12 = vld [vmem:[%s12665_s3 + $0x570] sm:$0xf] }
  0xf5   :  { %983 = vst [vmem:[#allocation2 + $0x2c] sm:$0x1] %v981_v49  ;;  %v957_v53 = vmax.f32 %v933_v27, %v950_v54  ;;  %v829_v27 = vadd.f32 %v9289_v19, %v801_v22  ;;  %v750_v54 = vadd.f32 %v9346_v63, %v9352_v3 }
  0xf6   :  { %984 = vst [vmem:[#allocation2 + $0x20] sm:$0x2] %v981_v49  ;;  %v907_v31 = vpop.f32.mrf.mxu2  ;;  %v853_v8 = vpop.f32.mrf.mxu0  ;;  %v803_v49 = vadd.f32 %v9348_v0, %v775_v46  ;;  %v6335_v46 = vld [vmem:[%s12665_s3 + $0x460] sm:$0xf] }
  0xf7   :  { %v935_v62 = vpop.f32.mrf.mxu3  ;;  %v964_v6 = vpack.c.bf16 %v957_v53, %v957_v53  ;;  %v908_v7 = vadd.f32 %v907_v31, %v880_v56  ;;  %v881_v9 = vpop.f32.mrf.mxu1  ;;  %v854_v40 = vadd.f32 %v853_v8, %v826_v61  ;;  %v778_v52 = vadd.f32 %v9354_v4, %v750_v54  ;;  %v6399_v54 = vld [vmem:[%s12665_s3 + $0x4e0] sm:$0xf] }
  0xf8   :  { %v831_v35 = vadd.f32 %v9350_v1, %v803_v49 }
  0xf9   :  { %v990_v15 = vrot.slane %v964_v6, 7  ;;  %v5771_v34 = vrot.slane %v964_v6, 9  ;;  %v997_v16 = vrot.slane %v964_v6, 6  ;;  %v936_v39 = vadd.f32 %v935_v62, %v908_v7 }
  0xfa   :  { %v882_v26 = vadd.f32 %v881_v9, %v854_v40  ;;  %v806_v3 = vadd.f32 %v9400_v44, %v778_v52  ;;  %v6343_v44 = vld [vmem:[%s12665_s3 + $0x470] sm:$0xf]  ;;  %v8418_v52 = vld [vmem:[%s12665_s3 + $0x5e4] sm:$0xf0] }
  0xfb   :  { %992 = vst [vmem:[#allocation2 + $0x28] sm:$0x2] %v990_v15  ;;  %v998_v30 = vrot.slane %v997_v16, 4  ;;  %v951_v23 = vmul.f32 0.2, %v936_v39 }
  0xfc   :  { %996 = vst [vmem:[#allocation2 + $0x38] sm:$0x1] %v5771_v34  ;;  %v834_v33 = vadd.f32 %v9402_v45, %v806_v3  ;;  %v8388_v45 = vld [vmem:[%s12665_s3 + $0x4f4] sm:$0xf0]  ;;  %v6455_v3 = vld [vmem:[%s12665_s3 + $0x550] sm:$0xf] }
  0xfd   :  { %1000 = vst [vmem:[#allocation2 + $0x3c] sm:$0x1] %v998_v30  ;;  %v958_v25 = vmax.f32 %v936_v39, %v951_v23  ;;  %v8420_v15 = vld [vmem:[%s12665_s3 + $0x5f4] sm:$0xf0]  ;;  %v6408_v23 = vor.u32 %v8388_v45, %v6407_v10 }
  0xfe   :  { %1001 = vst [vmem:[#allocation2 + $0x30] sm:$0x2] %v998_v30  ;;  %v909_v28 = vpop.f32.mrf.mxu2  ;;  %v856_v18 = vpop.f32.mrf.mxu0  ;;  %v6344_v30 = vor.u32 %v8372_v55, %v6343_v44  ;;  %v6383_v44 = vld [vmem:[%s12665_s3 + $0x4c0] sm:$0xf]  ;;  %v8382_v55 = vld [vmem:[%s12665_s3 + $0x4c4] sm:$0xf0] }
  0xff   :  { %v937_v37 = vpop.f32.mrf.mxu3  ;;  %v965_v42 = vpack.c.bf16 %v958_v25, %v958_v25  ;;  %v910_v43 = vadd.f32 %v909_v28, %v882_v26  ;;  %v884_v32 = vpop.f32.mrf.mxu1  ;;  %v857_v48 = vadd.f32 %v856_v18, %v829_v27  ;;  %v6536_v18 = vor.u32 %v8420_v15, %v6535_v14  ;;  %v6511_v14 = vld [vmem:[%s12665_s3 + $0x5c0] sm:$0xf]  ;;  %v8414_v15 = vld [vmem:[%s12665_s3 + $0x5c4] sm:$0xf0] }
 0x101   :  { %v1003_v41 = vrot.slane %v965_v42, 7  ;;  %1006 = vst [vmem:[#allocation2 + $0x38] sm:$0x2] %v965_v42  ;;  %v5772_v47 = vrot.slane %v965_v42, 9  ;;  %v938_v20 = vadd.f32 %v937_v37, %v910_v43  ;;  %v885_v59 = vadd.f32 %v884_v32, %v857_v48 }
 0x102   :  { %1007 = vst [vmem:[#allocation2 + $0x8] sm:$0x4] %v965_v42  ;;  %v6472_v43 = vor.u32 %v8404_v13, %v6471_v12  ;;  %v8398_v12 = vld [vmem:[%s12665_s3 + $0x544] sm:$0xf0] }
 0x103   :  { %1005 = vst [vmem:[#allocation2 + $0x34] sm:$0x2] %v1003_v41  ;;  %v952_v50 = vmul.f32 0.2, %v938_v20  ;;  %v8370_v41 = vld [vmem:[%s12665_s3 + $0x464] sm:$0xf0] }
 0x104   :  { %1011 = vst [vmem:[#allocation2 + $0xc] sm:$0x4] %v5772_v47 }
 0x105   :  { %v959_v19 = vmax.f32 %v938_v20, %v952_v50  ;;  %v8386_v50 = vld [vmem:[%s12665_s3 + $0x4e4] sm:$0xf0] }
 0x106   :  { %v912_v51 = vpop.f32.mrf.mxu2  ;;  %v858_v57 = vpop.f32.mrf.mxu0 }
 0x107   :  { %v940_v21 = vpop.f32.mrf.mxu3  ;;  %v966_v53 = vpack.c.bf16 %v959_v19, %v959_v19  ;;  %v913_v56 = vadd.f32 %v912_v51, %v885_v59  ;;  %v886_v58 = vpop.f32.mrf.mxu1  ;;  %v859_v0 = vadd.f32 %v858_v57, %v831_v35  ;;  %v6463_v19 = vld [vmem:[%s12665_s3 + $0x560] sm:$0xf]  ;;  %v8402_v51 = vld [vmem:[%s12665_s3 + $0x564] sm:$0xf0] }
 0x109   :  { %v1013_v29 = vrot.slane %v966_v53, 5  ;;  %v1016_v61 = vrot.slane %v966_v53, 6  ;;  %v1019_v31 = vrot.slane %v966_v53, 7  ;;  %v941_v63 = vadd.f32 %v940_v21, %v913_v56  ;;  %v6527_v21 = vld [vmem:[%s12665_s3 + $0x5e0] sm:$0xf] }
 0x10a   :  { %v887_v2 = vadd.f32 %v886_v58, %v859_v0  ;;  %v6327_v58 = vld [vmem:[%s12665_s3 + $0x450] sm:$0xf]  ;;  %v8368_v0 = vld [vmem:[%s12665_s3 + $0x454] sm:$0xf0] }
 0x10b   :  { %1015 = vst [vmem:[#allocation2] sm:$0x8] %v1013_v29  ;;  %v1022_v62 = vrot.slane %v1013_v29, 4  ;;  %v953_v38 = vmul.f32 0.2, %v941_v63  ;;  %v6336_v29 = vor.u32 %v8370_v41, %v6335_v46 }
 0x10c   :  { %1018 = vst [vmem:[#allocation2 + $0x4] sm:$0x8] %v1016_v61  ;;  %v6400_v61 = vor.u32 %v8386_v50, %v6399_v54  ;;  %v8396_v46 = vld [vmem:[%s12665_s3 + $0x534] sm:$0xf0]  ;;  %v6503_v41 = vld [vmem:[%s12665_s3 + $0x5b0] sm:$0xf] }
 0x10d   :  { %1021 = vst [vmem:[#allocation2 + $0x8] sm:$0x8] %v1019_v31  ;;  %v960_v1 = vmax.f32 %v941_v63, %v953_v38  ;;  %v6391_v31 = vld [vmem:[%s12665_s3 + $0x4d0] sm:$0xf]  ;;  %v8384_v63 = vld [vmem:[%s12665_s3 + $0x4d4] sm:$0xf0]  ;;  %v6464_v38 = vor.u32 %v8402_v51, %v6463_v19 }
 0x10e   :  { %1024 = vst [vmem:[#allocation2 + $0x18] sm:$0x4] %v1022_v62  ;;  %v914_v4 = vpop.f32.mrf.mxu2  ;;  %v861_v8 = vpop.f32.mrf.mxu0  ;;  %v8362_v51 = vld [vmem:[%s12665_s3 + $0x424] sm:$0xf0] }
 0x10f   :  { %v942_v5 = vpop.f32.mrf.mxu3  ;;  %v967_v6 = vpack.c.bf16 %v960_v1, %v960_v1  ;;  %v915_v7 = vadd.f32 %v914_v4, %v887_v2  ;;  %v889_v9 = vpop.f32.mrf.mxu1  ;;  %v862_v40 = vadd.f32 %v861_v8, %v834_v33  ;;  %v6528_v1 = vor.u32 %v8418_v52, %v6527_v21  ;;  %v8400_v2 = vld [vmem:[%s12665_s3 + $0x554] sm:$0xf0]  ;;  %v6519_v4 = vld [vmem:[%s12665_s3 + $0x5d0] sm:$0xf] }
 0x110   :  { %v6392_v8 = vor.u32 %v8384_v63, %v6391_v31 }
 0x111   :  { %v1026_v36 = vrot.slane %v967_v6, 6  ;;  %v1030_v11 = vrot.slane %v967_v6, 7  ;;  %1033 = vst [vmem:[#allocation2 + $0x18] sm:$0x8] %v967_v6  ;;  %v943_v60 = vadd.f32 %v942_v5, %v915_v7  ;;  %v890_v25 = vadd.f32 %v889_v9, %v862_v40  ;;  %v8416_v5 = vld [vmem:[%s12665_s3 + $0x5d4] sm:$0xf0] }
 0x112   :  { %v6319_v6 = vld [vmem:[%s12665_s3 + $0x440] sm:$0xf]  ;;  %v6328_v7 = vor.u32 %v8368_v0, %v6327_v58  ;;  %v8366_v9 = vld [vmem:[%s12665_s3 + $0x444] sm:$0xf0]  ;;  %v6520_v40 = vor.u32 %v8416_v5, %v6519_v4  ;;  %v8376_v4 = vld [vmem:[%s12665_s3 + $0x494] sm:$0xf0] }
 0x113   :  { %1028 = vst [vmem:[#allocation2 + $0x1c] sm:$0x4] %v1026_v36  ;;  %v954_v34 = vmul.f32 0.2, %v943_v60  ;;  %v1047_v16 = vld [vmem:[#allocation2] sm:$0xff] }
 0x114   :  { %1029 = vst [vmem:[#allocation2 + $0x10] sm:$0x8] %v1026_v36  ;;  %v1325_v39 = vunpack.c.l.b16 %v1047_v16  ;;  %v1326_v17 = vunpack.c.h.b16 %v1047_v16  ;;  %v1048_v22 = vld [vmem:[#allocation2 + $0x8] sm:$0xff]  ;;  %v6431_v58 = vld [vmem:[%s12665_s3 + $0x520] sm:$0xf] }
 0x115   :  { %1032 = vst [vmem:[#allocation2 + $0x14] sm:$0x8] %v1030_v11  ;;  %v961_v24 = vmax.f32 %v943_v60, %v954_v34  ;;  %v1327_v26 = vunpack.c.l.b16 %v1048_v22  ;;  %v1328_v28 = vunpack.c.h.b16 %v1048_v22  ;;  %v6456_v11 = vor.u32 %v8400_v2, %v6455_v3  ;;  %v6447_v60 = vld [vmem:[%s12665_s3 + $0x540] sm:$0xf]  ;;  %v8394_v0 = vld [vmem:[%s12665_s3 + $0x524] sm:$0xf0] }
 0x116   :  { %v917_v37 = vpop.f32.mrf.mxu2  ;;  %v9683_v27 = vpack.c.b16 %v1325_v39, %v1325_v39  ;;  %v9685_v42 = vpack.c.b16 %v1326_v17, %v1326_v17  ;;  %v863_v59 = vpop.f32.mrf.mxu0  ;;  %v6311_v39 = vld [vmem:[%s12665_s3 + $0x430] sm:$0xf]  ;;  %v6320_v17 = vor.u32 %v8366_v9, %v6319_v6  ;;  %v6384_v22 = vor.u32 %v8382_v55, %v6383_v44  ;;  %v8358_v9 = vld [vmem:[%s12665_s3 + $0x404] sm:$0xf0]  ;;  %v6351_v44 = vld [vmem:[%s12665_s3 + $0x480] sm:$0xf] }
 0x117   :  { %v945_v32 = vpop.f32.mrf.mxu3  ;;  %v968_v47 = vpack.c.bf16 %v961_v24, %v961_v24  ;;  %v918_v20 = vadd.f32 %v917_v37, %v890_v25  ;;  %v9693_v48 = vpack.c.b16 %v1327_v26, %v1327_v26  ;;  %v9695_v49 = vpack.c.b16 %v1328_v28, %v1328_v28  ;;  %v891_v35 = vpop.f32.mrf.mxu1  ;;  %v8364_v24 = vld [vmem:[%s12665_s3 + $0x434] sm:$0xf0]  ;;  %v6375_v25 = vld [vmem:[%s12665_s3 + $0x4b0] sm:$0xf] }
 0x118   :  { %2661 = vmatmul.bf16.vlgmr.msra.gmra.mxu0 %v9683_v27  ;;  %2674 = vmatmul.bf16.vlgmr.msra.gmra.mxu1 %v9685_v42  ;;  %v8380_v26 = vld [vmem:[%s12665_s3 + $0x4b4] sm:$0xf0]  ;;  %v6448_v28 = vor.u32 %v8398_v12, %v6447_v60  ;;  %v6512_v37 = vor.u32 %v8414_v15, %v6511_v14  ;;  %v6303_v35 = vld [vmem:[%s12665_s3 + $0x420] sm:$0xf]  ;;  %v6295_v3 = vld [vmem:[%s12665_s3 + $0x410] sm:$0xf] }
 0x119   :  { %v1035_v53 = vrot.slane %v968_v47, 6  ;;  %v1038_v56 = vrot.slane %v968_v47, 7  ;;  %1042 = vst [vmem:[#allocation2 + $0x24] sm:$0x8] %v968_v47  ;;  %2687 = vmatmul.bf16.vlgmr.msra.gmra.mxu2 %v9693_v48  ;;  %2700 = vmatmul.bf16.vlgmr.msra.gmra.mxu3 %v9695_v49  ;;  %v946_v57 = vadd.f32 %v945_v32, %v918_v20  ;;  %v6439_v32 = vld [vmem:[%s12665_s3 + $0x530] sm:$0xf]  ;;  %v6312_v20 = vor.u32 %v8364_v24, %v6311_v39 }
 0x11a   :  { %2757 = vmatpush.bf16.msra.mxu0 %v6344_v30  ;;  %2770 = vmatpush.bf16.msra.mxu1 %v6408_v23  ;;  %v1050_v34 = vld [vmem:[#allocation2 + $0x18] sm:$0xff]  ;;  %v6376_v54 = vor.u32 %v8380_v26, %v6375_v25  ;;  %v6440_v59 = vor.u32 %v8396_v46, %v6439_v32  ;;  %v6304_v31 = vor.u32 %v8362_v51, %v6303_v35  ;;  %v6359_v2 = vld [vmem:[%s12665_s3 + $0x490] sm:$0xf]  ;;  %v6479_v12 = vld [vmem:[%s12665_s3 + $0x580] sm:$0xf] }
 0x11b   :  { %1037 = vst [vmem:[#allocation2 + $0x28] sm:$0x4] %v1035_v53  ;;  %2783 = vmatpush.bf16.msra.mxu2 %v6472_v43  ;;  %2796 = vmatpush.bf16.msra.mxu3 %v6536_v18  ;;  %v955_v62 = vmul.f32 0.2, %v946_v57  ;;  %v1331_v43 = vunpack.c.l.b16 %v1050_v34  ;;  %v1332_v18 = vunpack.c.h.b16 %v1050_v34  ;;  %v8412_v47 = vld [vmem:[%s12665_s3 + $0x5b4] sm:$0xf0] }
 0x11c   :  { %1040 = vst [vmem:[#allocation2 + $0x2c] sm:$0x4] %v1038_v56  ;;  %v1049_v13 = vld [vmem:[#allocation2 + $0x10] sm:$0xff]  ;;  %v6504_v53 = vor.u32 %v8412_v47, %v6503_v41  ;;  %v8436_v15 = vld [vmem:[%s12665_s3 + $0x674] sm:$0xf0] }
 0x11d   :  { %1041 = vst [vmem:[#allocation2 + $0x20] sm:$0x8] %v1038_v56  ;;  %v962_v33 = vmax.f32 %v946_v57, %v955_v62  ;;  %v1329_v30 = vunpack.c.l.b16 %v1049_v13  ;;  %v1330_v23 = vunpack.c.h.b16 %v1049_v13  ;;  %v9801_v21 = vpack.c.b16 %v1331_v43, %v1331_v43  ;;  %v6367_v56 = vld [vmem:[%s12665_s3 + $0x4a0] sm:$0xf]  ;;  %v8378_v57 = vld [vmem:[%s12665_s3 + $0x4a4] sm:$0xf0] }
 0x11e   :  { %2758 = vmatpush.bf16.msra.mxu0 %v6336_v29  ;;  %2771 = vmatpush.bf16.msra.mxu1 %v6400_v61  ;;  %v919_v10 = vpop.f32.mrf.mxu2  ;;  %v9803_v52 = vpack.c.b16 %v1332_v18, %v1332_v18  ;;  %v6495_v29 = vld [vmem:[%s12665_s3 + $0x5a0] sm:$0xf]  ;;  %v8410_v61 = vld [vmem:[%s12665_s3 + $0x5a4] sm:$0xf0]  ;;  %v6368_v63 = vor.u32 %v8378_v57, %v6367_v56  ;;  %v8360_v62 = vld [vmem:[%s12665_s3 + $0x414] sm:$0xf0] }
 0x11f   :  { %v947_v45 = vpop.f32.mrf.mxu3  ;;  %v969_v36 = vpack.c.bf16 %v962_v33, %v962_v33  ;;  %2784 = vmatpush.bf16.msra.mxu2 %v6464_v38  ;;  %2797 = vmatpush.bf16.msra.mxu3 %v6528_v1  ;;  %v9791_v50 = vpack.c.b16 %v1329_v30, %v1329_v30  ;;  %v9793_v19 = vpack.c.b16 %v1330_v23, %v1330_v23  ;;  %v6423_v5 = vld [vmem:[%s12665_s3 + $0x510] sm:$0xf]  ;;  %v8392_v33 = vld [vmem:[%s12665_s3 + $0x514] sm:$0xf0]  ;;  %v8406_v13 = vld [vmem:[%s12665_s3 + $0x584] sm:$0xf0] }
 0x120   :  { %v6432_v38 = vor.u32 %v8394_v0, %v6431_v58  ;;  %v6496_v1 = vor.u32 %v8410_v61, %v6495_v29  ;;  %v6487_v6 = vld [vmem:[%s12665_s3 + $0x590] sm:$0xf]  ;;  %v6296_v55 = vor.u32 %v8360_v62, %v6295_v3  ;;  %v6360_v10 = vor.u32 %v8376_v4, %v6359_v2  ;;  %v8374_v45 = vld [vmem:[%s12665_s3 + $0x484] sm:$0xf0]  ;;  %v8484_v25 = vld [vmem:[%s12665_s3 + $0x7f4] sm:$0xf0] }
 0x121   :  { %v1044_v16 = vrot.slane %v969_v36, 5  ;;  %v6415_v36 = vld [vmem:[%s12665_s3 + $0x500] sm:$0xf]  ;;  %v6599_v14 = vld [vmem:[%s12665_s3 + $0x670] sm:$0xf]  ;;  %v6352_v23 = vor.u32 %v8374_v45, %v6351_v44 }
 0x122   :  { %2759 = vmatpush.bf16.msra.mxu0 %v6328_v7  ;;  %2772 = vmatpush.bf16.msra.mxu1 %v6392_v8  ;;  %v8408_v7 = vld [vmem:[%s12665_s3 + $0x594] sm:$0xf0]  ;;  %v6287_v8 = vld [vmem:[%s12665_s3 + $0x400] sm:$0xf]  ;;  %v6663_v34 = vld [vmem:[%s12665_s3 + $0x6f0] sm:$0xf]  ;;  %v6600_v18 = vor.u32 %v8436_v15, %v6599_v14 }
 0x123   :  { %1046 = vst [vmem:[#allocation2 + $0x28] sm:$0x8] %v1044_v16  ;;  %2785 = vmatpush.bf16.msra.mxu2 %v6456_v11  ;;  %2798 = vmatpush.bf16.msra.mxu3 %v6520_v40  ;;  %v8390_v11 = vld [vmem:[%s12665_s3 + $0x504] sm:$0xf0]  ;;  %v6424_v40 = vor.u32 %v8392_v33, %v6423_v5  ;;  %v6488_v60 = vor.u32 %v8408_v7, %v6487_v6  ;;  %v8452_v16 = vld [vmem:[%s12665_s3 + $0x6f4] sm:$0xf0] }
 0x124   :  { %v6727_v39 = vld [vmem:[%s12665_s3 + $0x770] sm:$0xf]  ;;  %v6288_v30 = vor.u32 %v8358_v9, %v6287_v8  ;;  %v6591_v43 = vld [vmem:[%s12665_s3 + $0x660] sm:$0xf]  ;;  %v6664_v32 = vor.u32 %v8452_v16, %v6663_v34  ;;  %v8434_v47 = vld [vmem:[%s12665_s3 + $0x664] sm:$0xf0] }
 0x125   :  { %v6791_v24 = vld [vmem:[%s12665_s3 + $0x7f0] sm:$0xf]  ;;  %v6719_v56 = vld [vmem:[%s12665_s3 + $0x760] sm:$0xf]  ;;  %v8466_v57 = vld [vmem:[%s12665_s3 + $0x764] sm:$0xf0]  ;;  %v6592_v29 = vor.u32 %v8434_v47, %v6591_v43 }
 0x126   :  { %2760 = vmatpush.bf16.msra.mxu0 %v6320_v17  ;;  %2773 = vmatpush.bf16.msra.mxu1 %v6384_v22  ;;  %v8468_v17 = vld [vmem:[%s12665_s3 + $0x774] sm:$0xf0]  ;;  %v1051_v22 = vld [vmem:[#allocation2 + $0x20] sm:$0xff]  ;;  %v6792_v35 = vor.u32 %v8484_v25, %v6791_v24  ;;  %v8482_v0 = vld [vmem:[%s12665_s3 + $0x7e4] sm:$0xf0]  ;;  %v6720_v3 = vor.u32 %v8466_v57, %v6719_v56 }
 0x127   :  { %2786 = vmatpush.bf16.msra.mxu2 %v6448_v28  ;;  %2799 = vmatpush.bf16.msra.mxu3 %v6512_v37  ;;  %v6416_v28 = vor.u32 %v8390_v11, %v6415_v36  ;;  %v6480_v37 = vor.u32 %v8406_v13, %v6479_v12  ;;  %v1333_v46 = vunpack.c.l.b16 %v1051_v22  ;;  %v1334_v41 = vunpack.c.h.b16 %v1051_v22  ;;  %v6783_v58 = vld [vmem:[%s12665_s3 + $0x7e0] sm:$0xf]  ;;  %v6583_v62 = vld [vmem:[%s12665_s3 + $0x650] sm:$0xf]  ;;  %v8448_v33 = vld [vmem:[%s12665_s3 + $0x6d4] sm:$0xf0] }
 0x128   :  { %2713 = vmatmul.bf16.vlgmr.msrb.gmra.mxu0 %v9791_v50  ;;  %2726 = vmatmul.bf16.vlgmr.msrb.gmra.mxu1 %v9793_v19  ;;  %v6784_v4 = vor.u32 %v8482_v0, %v6783_v58  ;;  %v6647_v5 = vld [vmem:[%s12665_s3 + $0x6d0] sm:$0xf]  ;;  %v8464_v7 = vld [vmem:[%s12665_s3 + $0x754] sm:$0xf0]  ;;  %v8430_v45 = vld [vmem:[%s12665_s3 + $0x644] sm:$0xf0] }
 0x129   :  { %2739 = vmatmul.bf16.vlgmr.msrb.gmra.mxu2 %v9801_v21  ;;  %2752 = vmatmul.bf16.vlgmr.msrb.gmra.mxu3 %v9803_v52  ;;  %v6711_v6 = vld [vmem:[%s12665_s3 + $0x750] sm:$0xf]  ;;  %v8480_v9 = vld [vmem:[%s12665_s3 + $0x7d4] sm:$0xf0]  ;;  %v6703_v12 = vld [vmem:[%s12665_s3 + $0x740] sm:$0xf] }
 0x12a   :  { %2761 = vmatpush.bf16.msra.mxu0 %v6312_v20  ;;  %2774 = vmatpush.bf16.msra.mxu1 %v6376_v54  ;;  %v1052_v26 = vld [vmem:[#allocation2 + $0x28] sm:$0xff]  ;;  %v6655_v20 = vld [vmem:[%s12665_s3 + $0x6e0] sm:$0xf]  ;;  %v6775_v8 = vld [vmem:[%s12665_s3 + $0x7d0] sm:$0xf]  ;;  %v6712_v36 = vor.u32 %v8464_v7, %v6711_v6 }
 0x12b   :  { %2787 = vmatpush.bf16.msra.mxu2 %v6440_v59  ;;  %2800 = vmatpush.bf16.msra.mxu3 %v6504_v53  ;;  %v8450_v54 = vld [vmem:[%s12665_s3 + $0x6e4] sm:$0xf0]  ;;  %v6728_v59 = vor.u32 %v8468_v17, %v6727_v39  ;;  %v1335_v51 = vunpack.c.l.b16 %v1052_v26  ;;  %v1336_v53 = vunpack.c.h.b16 %v1052_v26  ;;  %v6776_v11 = vor.u32 %v8480_v9, %v6775_v8  ;;  %v6767_v14 = vld [vmem:[%s12665_s3 + $0x7c0] sm:$0xf]  ;;  %v6567_v39 = vld [vmem:[%s12665_s3 + $0x630] sm:$0xf] }
 0x12c   :  { %v6656_v61 = vor.u32 %v8450_v54, %v6655_v20  ;;  %v8462_v13 = vld [vmem:[%s12665_s3 + $0x744] sm:$0xf0]  ;;  %v8428_v17 = vld [vmem:[%s12665_s3 + $0x634] sm:$0xf0]  ;;  %v6695_v25 = vld [vmem:[%s12665_s3 + $0x730] sm:$0xf] }
 0x12d   :  { %v9935_v2 = vpack.c.b16 %v1336_v53, %v1336_v53  ;;  %v8478_v15 = vld [vmem:[%s12665_s3 + $0x7c4] sm:$0xf0]  ;;  %v6704_v22 = vor.u32 %v8462_v13, %v6703_v12  ;;  %v8444_v24 = vld [vmem:[%s12665_s3 + $0x6b4] sm:$0xf0]  ;;  %v6568_v43 = vor.u32 %v8428_v17, %v6567_v39  ;;  %v6623_v20 = vld [vmem:[%s12665_s3 + $0x6a0] sm:$0xf] }
 0x12e   :  { %2762 = vmatpush.bf16.msra.mxu0 %v6304_v31  ;;  %2775 = vmatpush.bf16.msra.mxu1 %v6368_v63  ;;  %v9923_v31 = vpack.c.b16 %v1333_v46, %v1333_v46  ;;  %v9925_v63 = vpack.c.b16 %v1334_v41, %v1334_v41  ;;  %v8460_v26 = vld [vmem:[%s12665_s3 + $0x734] sm:$0xf0]  ;;  %v8426_v46 = vld [vmem:[%s12665_s3 + $0x624] sm:$0xf0]  ;;  %v6551_v58 = vld [vmem:[%s12665_s3 + $0x610] sm:$0xf] }
 0x12f   :  { %2788 = vmatpush.bf16.msra.mxu2 %v6432_v38  ;;  %2801 = vmatpush.bf16.msra.mxu3 %v6496_v1  ;;  %v8432_v38 = vld [vmem:[%s12665_s3 + $0x654] sm:$0xf0]  ;;  %v9933_v1 = vpack.c.b16 %v1335_v51, %v1335_v51  ;;  %v6696_v41 = vor.u32 %v8460_v26, %v6695_v25  ;;  %v8442_v54 = vld [vmem:[%s12665_s3 + $0x6a4] sm:$0xf0]  ;;  %v6751_v51 = vld [vmem:[%s12665_s3 + $0x7a0] sm:$0xf] }
 0x130   :  { %v6584_v44 = vor.u32 %v8432_v38, %v6583_v62  ;;  %v8474_v53 = vld [vmem:[%s12665_s3 + $0x7a4] sm:$0xf0]  ;;  %v6624_v57 = vor.u32 %v8442_v54, %v6623_v20  ;;  %v8424_v0 = vld [vmem:[%s12665_s3 + $0x614] sm:$0xf0]  ;;  %v6679_v38 = vld [vmem:[%s12665_s3 + $0x710] sm:$0xf] }
 0x131   :  { %v8440_v62 = vld [vmem:[%s12665_s3 + $0x694] sm:$0xf0]  ;;  %v6543_v6 = vld [vmem:[%s12665_s3 + $0x600] sm:$0xf]  ;;  %v6552_v7 = vor.u32 %v8424_v0, %v6551_v58  ;;  %v8422_v9 = vld [vmem:[%s12665_s3 + $0x604] sm:$0xf0] }
 0x132   :  { %2763 = vmatpush.bf16.msra.mxu0 %v6296_v55  ;;  %2776 = vmatpush.bf16.msra.mxu1 %v6360_v10  ;;  %v6648_v55 = vor.u32 %v8448_v33, %v6647_v5  ;;  %v6575_v10 = vld [vmem:[%s12665_s3 + $0x640] sm:$0xf]  ;;  %v6743_v5 = vld [vmem:[%s12665_s3 + $0x790] sm:$0xf]  ;;  %v8472_v33 = vld [vmem:[%s12665_s3 + $0x794] sm:$0xf0]  ;;  %v6544_v17 = vor.u32 %v8422_v9, %v6543_v6 }
 0x133   :  { %2789 = vmatpush.bf16.msra.mxu2 %v6424_v40  ;;  %2802 = vmatpush.bf16.msra.mxu3 %v6488_v60  ;;  %v6639_v40 = vld [vmem:[%s12665_s3 + $0x6c0] sm:$0xf]  ;;  %v8446_v60 = vld [vmem:[%s12665_s3 + $0x6c4] sm:$0xf0]  ;;  %v6576_v34 = vor.u32 %v8430_v45, %v6575_v10  ;;  %v1053_v10 = vld [vmem:[#allocation2 + $0x30] sm:$0xff] }
 0x134   :  { %v6640_v16 = vor.u32 %v8446_v60, %v6639_v40  ;;  %v1054_v45 = vld [vmem:[#allocation2 + $0x38] sm:$0xff]  ;;  %v6671_v40 = vld [vmem:[%s12665_s3 + $0x700] sm:$0xf]  ;;  %v8454_v60 = vld [vmem:[%s12665_s3 + $0x704] sm:$0xf0] }
 0x135   :  { %v6735_v12 = vld [vmem:[%s12665_s3 + $0x780] sm:$0xf]  ;;  %v8470_v13 = vld [vmem:[%s12665_s3 + $0x784] sm:$0xf0]  ;;  %v8275_v39 = vld [vmem:[%s12665_s3 + $0x174] sm:$0xf]  ;;  %v6672_v25 = vor.u32 %v8454_v60, %v6671_v40  ;;  %v1340_v54 = vunpack.c.h.b16 %v1054_v45 }
 0x136   :  { %2764 = vmatpush.bf16.msra.mxu0 %v6288_v30  ;;  %2777 = vmatpush.bf16.msra.mxu1 %v6352_v23  ;;  %v6768_v30 = vor.u32 %v8478_v15, %v6767_v14  ;;  %v6631_v23 = vld [vmem:[%s12665_s3 + $0x6b0] sm:$0xf]  ;;  %v8243_v14 = vld [vmem:[%s12665_s3 + $0x74] sm:$0xf]  ;;  %v5833_v15 = vld [vmem:[%s12665_s3 + $0x78] sm:$0xf0]  ;;  %v6736_v26 = vor.u32 %v8470_v13, %v6735_v12 }
 0x137   :  { %2790 = vmatpush.bf16.msra.mxu2 %v6416_v28  ;;  %2803 = vmatpush.bf16.msra.mxu3 %v6480_v37  ;;  %v6759_v28 = vld [vmem:[%s12665_s3 + $0x7b0] sm:$0xf]  ;;  %v8476_v37 = vld [vmem:[%s12665_s3 + $0x7b4] sm:$0xf0]  ;;  %v8255_v6 = vld [vmem:[%s12665_s3 + $0xd4] sm:$0xf] }
 0x138   :  { %v6760_v47 = vor.u32 %v8476_v37, %v6759_v28  ;;  %v1337_v28 = vunpack.c.l.b16 %v1053_v10  ;;  %v1339_v37 = vunpack.c.l.b16 %v1054_v45  ;;  %v5945_v9 = vld [vmem:[%s12665_s3 + $0x158] sm:$0xf0]  ;;  %v8253_v12 = vld [vmem:[%s12665_s3 + $0xc4] sm:$0xf]  ;;  %v5873_v13 = vld [vmem:[%s12665_s3 + $0xc8] sm:$0xf0] }
 0x139   :  { %2765 = vmatmul.bf16.vlgmr.msra.gmra.mxu0 %v9923_v31  ;;  %2778 = vmatmul.bf16.vlgmr.msra.gmra.mxu1 %v9925_v63 }
 0x13a   :  { %2809 = vmatpush.bf16.msrb.mxu0 %v6600_v18  ;;  %2822 = vmatpush.bf16.msrb.mxu1 %v6664_v32  ;;  %v6632_v18 = vor.u32 %v8444_v24, %v6631_v23  ;;  %v6559_v32 = vld [vmem:[%s12665_s3 + $0x620] sm:$0xf]  ;;  %v8291_v23 = vld [vmem:[%s12665_s3 + $0x1f4] sm:$0xf]  ;;  %v6025_v24 = vld [vmem:[%s12665_s3 + $0x1f8] sm:$0xf0]  ;;  %v10127_v58 = vpack.c.b16 %v1337_v28, %v1337_v28  ;;  %v10129_v0 = vpack.c.b16 %v1339_v37, %v1339_v37 }
 0x13b   :  { %2835 = vmatpush.bf16.msrb.mxu2 %v6728_v59  ;;  %2848 = vmatpush.bf16.msrb.mxu3 %v6792_v35  ;;  %v6687_v59 = vld [vmem:[%s12665_s3 + $0x720] sm:$0xf]  ;;  %v8458_v35 = vld [vmem:[%s12665_s3 + $0x724] sm:$0xf0]  ;;  %v6560_v56 = vor.u32 %v8426_v46, %v6559_v32  ;;  %v1338_v32 = vunpack.c.h.b16 %v1053_v10  ;;  %v8241_v46 = vld [vmem:[%s12665_s3 + $0x64] sm:$0xf]  ;;  %v6028_v20 = vor.u32 %v8291_v23, %v6025_v24 }
 0x13c   :  { %2791 = vmatmul.bf16.vlgmr.msra.gmra.mxu2 %v9933_v1  ;;  %2804 = vmatmul.bf16.vlgmr.msra.gmra.mxu3 %v9935_v2  ;;  %v8267_v28 = vld [vmem:[%s12665_s3 + $0x134] sm:$0xf]  ;;  %v5929_v37 = vld [vmem:[%s12665_s3 + $0x138] sm:$0xf0] }
 0x13e   :  { %2810 = vmatpush.bf16.msrb.mxu0 %v6592_v29  ;;  %2823 = vmatpush.bf16.msrb.mxu1 %v6656_v61  ;;  %v6688_v29 = vor.u32 %v8458_v35, %v6687_v59  ;;  %v6752_v61 = vor.u32 %v8474_v53, %v6751_v51  ;;  %v8257_v59 = vld [vmem:[%s12665_s3 + $0xe4] sm:$0xf]  ;;  %v5889_v35 = vld [vmem:[%s12665_s3 + $0xe8] sm:$0xf0] }
 0x13f   :  { %2836 = vmatpush.bf16.msrb.mxu2 %v6720_v3  ;;  %2849 = vmatpush.bf16.msrb.mxu3 %v6784_v4  ;;  %v6615_v3 = vld [vmem:[%s12665_s3 + $0x690] sm:$0xf]  ;;  %v8456_v4 = vld [vmem:[%s12665_s3 + $0x714] sm:$0xf0]  ;;  %v8273_v51 = vld [vmem:[%s12665_s3 + $0x164] sm:$0xf] }
 0x140   :  { %v6616_v8 = vor.u32 %v8440_v62, %v6615_v3  ;;  %v5953_v53 = vld [vmem:[%s12665_s3 + $0x168] sm:$0xf0]  ;;  %v5892_v3 = vor.u32 %v8257_v59, %v5889_v35  ;;  %v8239_v62 = vld [vmem:[%s12665_s3 + $0x54] sm:$0xf]  ;;  %v8249_v59 = vld [vmem:[%s12665_s3 + $0xa4] sm:$0xf] }
 0x141   :  { %v5857_v35 = vld [vmem:[%s12665_s3 + $0xa8] sm:$0xf0] }
 0x142   :  { %2811 = vmatpush.bf16.msrb.mxu0 %v6584_v44  ;;  %2824 = vmatpush.bf16.msrb.mxu1 %v6648_v55  ;;  %v6607_v44 = vld [vmem:[%s12665_s3 + $0x680] sm:$0xf]  ;;  %v8438_v55 = vld [vmem:[%s12665_s3 + $0x684] sm:$0xf0] }
 0x143   :  { %2837 = vmatpush.bf16.msrb.mxu2 %v6712_v36  ;;  %2850 = vmatpush.bf16.msrb.mxu3 %v6776_v11  ;;  %v6680_v36 = vor.u32 %v8456_v4, %v6679_v38  ;;  %v6744_v11 = vor.u32 %v8472_v33, %v6743_v5  ;;  %v5817_v38 = vld [vmem:[%s12665_s3 + $0x58] sm:$0xf0]  ;;  %v10139_v4 = vpack.c.b16 %v1340_v54, %v1340_v54 }
 0x144   :  { %v5956_v5 = vor.u32 %v8273_v51, %v5953_v53  ;;  %v5820_v10 = vor.u32 %v8239_v62, %v5817_v38  ;;  %v8265_v51 = vld [vmem:[%s12665_s3 + $0x124] sm:$0xf]  ;;  %v5921_v53 = vld [vmem:[%s12665_s3 + $0x128] sm:$0xf0]  ;;  %v8231_v62 = vld [vmem:[%s12665_s3 + $0x14] sm:$0xf] }
 0x145   :  { %v5785_v38 = vld [vmem:[%s12665_s3 + $0x18] sm:$0xf0] }
 0x146   :  { %2812 = vmatpush.bf16.msrb.mxu0 %v6576_v34  ;;  %2825 = vmatpush.bf16.msrb.mxu1 %v6640_v16  ;;  %v8259_v34 = vld [vmem:[%s12665_s3 + $0xf4] sm:$0xf]  ;;  %v5897_v16 = vld [vmem:[%s12665_s3 + $0xf8] sm:$0xf0] }
 0x147   :  { %2838 = vmatpush.bf16.msrb.mxu2 %v6704_v22  ;;  %2851 = vmatpush.bf16.msrb.mxu3 %v6768_v30  ;;  %v6608_v22 = vor.u32 %v8438_v55, %v6607_v44  ;;  %v5961_v30 = vld [vmem:[%s12665_s3 + $0x178] sm:$0xf0]  ;;  %v8287_v44 = vld [vmem:[%s12665_s3 + $0x1d4] sm:$0xf] }
 0x148   :  { %v6009_v55 = vld [vmem:[%s12665_s3 + $0x1d8] sm:$0xf0] }
 0x149   :  { %v6012_v60 = vor.u32 %v8287_v44, %v6009_v55  ;;  %v8279_v44 = vld [vmem:[%s12665_s3 + $0x194] sm:$0xf]  ;;  %v5977_v55 = vld [vmem:[%s12665_s3 + $0x198] sm:$0xf0] }
 0x14a   :  { %2813 = vmatpush.bf16.msrb.mxu0 %v6568_v43  ;;  %2826 = vmatpush.bf16.msrb.mxu1 %v6632_v18  ;;  %v5836_v43 = vor.u32 %v8243_v14, %v5833_v15  ;;  %v5900_v18 = vor.u32 %v8259_v34, %v5897_v16  ;;  %v8269_v14 = vld [vmem:[%s12665_s3 + $0x144] sm:$0xf]  ;;  %v5937_v15 = vld [vmem:[%s12665_s3 + $0x148] sm:$0xf0] }
 0x14b   :  { %2839 = vmatpush.bf16.msrb.mxu2 %v6696_v41  ;;  %2852 = vmatpush.bf16.msrb.mxu3 %v6760_v47  ;;  %v5825_v41 = vld [vmem:[%s12665_s3 + $0x68] sm:$0xf0]  ;;  %v5964_v47 = vor.u32 %v8275_v39, %v5961_v30  ;;  %v8285_v34 = vld [vmem:[%s12665_s3 + $0x1c4] sm:$0xf]  ;;  %v5801_v30 = vld [vmem:[%s12665_s3 + $0x38] sm:$0xf0]  ;;  %v5940_v23 = vor.u32 %v8269_v14, %v5937_v15 }
 0x14c   :  { %v6001_v16 = vld [vmem:[%s12665_s3 + $0x1c8] sm:$0xf0]  ;;  %v8261_v14 = vld [vmem:[%s12665_s3 + $0x104] sm:$0xf] }
 0x14d   :  { %v6004_v24 = vor.u32 %v8285_v34, %v6001_v16  ;;  %v5905_v15 = vld [vmem:[%s12665_s3 + $0x108] sm:$0xf0]  ;;  %v8277_v34 = vld [vmem:[%s12665_s3 + $0x184] sm:$0xf] }
 0x14e   :  { %2814 = vmatpush.bf16.msrb.mxu0 %v6560_v56  ;;  %2827 = vmatpush.bf16.msrb.mxu1 %v6624_v57  ;;  %v8289_v56 = vld [vmem:[%s12665_s3 + $0x1e4] sm:$0xf]  ;;  %v6017_v57 = vld [vmem:[%s12665_s3 + $0x1e8] sm:$0xf0] }
 0x14f   :  { %2840 = vmatpush.bf16.msrb.mxu2 %v6688_v29  ;;  %2853 = vmatpush.bf16.msrb.mxu3 %v6752_v61  ;;  %v10131_v29 = vpack.c.b16 %v1338_v32, %v1338_v32  ;;  %v5828_v61 = vor.u32 %v8241_v46, %v5825_v41  ;;  %v6020_v33 = vor.u32 %v8289_v56, %v6017_v57  ;;  %v8233_v41 = vld [vmem:[%s12665_s3 + $0x24] sm:$0xf]  ;;  %v5985_v57 = vld [vmem:[%s12665_s3 + $0x1a8] sm:$0xf0] }
 0x150   :  { %v8281_v56 = vld [vmem:[%s12665_s3 + $0x1a4] sm:$0xf]  ;;  %v5969_v16 = vld [vmem:[%s12665_s3 + $0x188] sm:$0xf0] }
 0x152   :  { %2815 = vmatpush.bf16.msrb.mxu0 %v6552_v7  ;;  %2828 = vmatpush.bf16.msrb.mxu1 %v6616_v8  ;;  %v5881_v7 = vld [vmem:[%s12665_s3 + $0xd8] sm:$0xf0]  ;;  %v8271_v8 = vld [vmem:[%s12665_s3 + $0x154] sm:$0xf] }
 0x153   :  { %2841 = vmatpush.bf16.msrb.mxu2 %v6680_v36  ;;  %2854 = vmatpush.bf16.msrb.mxu3 %v6744_v11  ;;  %v5884_v45 = vor.u32 %v8255_v6, %v5881_v7  ;;  %v8237_v36 = vld [vmem:[%s12665_s3 + $0x44] sm:$0xf]  ;;  %v5809_v11 = vld [vmem:[%s12665_s3 + $0x48] sm:$0xf0]  ;;  %v5948_v40 = vor.u32 %v8271_v8, %v5945_v9  ;;  %v8247_v6 = vld [vmem:[%s12665_s3 + $0x94] sm:$0xf] }
 0x154   :  { %v5812_v39 = vor.u32 %v8237_v36, %v5809_v11  ;;  %v5849_v7 = vld [vmem:[%s12665_s3 + $0x98] sm:$0xf0]  ;;  %v8263_v8 = vld [vmem:[%s12665_s3 + $0x114] sm:$0xf]  ;;  %v5777_v11 = vld [vmem:[%s12665_s3 + $0x8] sm:$0xf0] }
 0x155   :  { %v5913_v9 = vld [vmem:[%s12665_s3 + $0x118] sm:$0xf0]  ;;  %v5852_v36 = vor.u32 %v8247_v6, %v5849_v7  ;;  %v8319_v6 = vld [vmem:[%s12665_s3 + $0x2d4] sm:$0xf] }
 0x156   :  { %2816 = vmatpush.bf16.msrb.mxu0 %v6544_v17  ;;  %2829 = vmatpush.bf16.msrb.mxu1 %v6608_v22  ;;  %v5876_v17 = vor.u32 %v8253_v12, %v5873_v13  ;;  %v8235_v22 = vld [vmem:[%s12665_s3 + $0x34] sm:$0xf]  ;;  %v5916_v12 = vor.u32 %v8263_v8, %v5913_v9  ;;  %v5980_v13 = vor.u32 %v8279_v44, %v5977_v55  ;;  %v6137_v7 = vld [vmem:[%s12665_s3 + $0x2d8] sm:$0xf0] }
 0x157   :  { %2842 = vmatpush.bf16.msrb.mxu2 %v6672_v25  ;;  %2855 = vmatpush.bf16.msrb.mxu3 %v6736_v26  ;;  %v8251_v25 = vld [vmem:[%s12665_s3 + $0xb4] sm:$0xf]  ;;  %v5865_v26 = vld [vmem:[%s12665_s3 + $0xb8] sm:$0xf0]  ;;  %v5804_v32 = vor.u32 %v8235_v22, %v5801_v30 }
 0x158   :  { %v5868_v46 = vor.u32 %v8251_v25, %v5865_v26  ;;  %v8323_v22 = vld [vmem:[%s12665_s3 + $0x2f4] sm:$0xf]  ;;  %v6153_v30 = vld [vmem:[%s12665_s3 + $0x2f8] sm:$0xf0] }
 0x159   :  { %2817 = vmatmul.bf16.vlgmr.msrb.gmra.mxu0 %v10127_v58  ;;  %2830 = vmatmul.bf16.vlgmr.msrb.gmra.mxu1 %v10131_v29  ;;  %v6217_v26 = vld [vmem:[%s12665_s3 + $0x378] sm:$0xf0]  ;;  %v8335_v8 = vld [vmem:[%s12665_s3 + $0x354] sm:$0xf] }
 0x15a   :  { %2861 = vmatpush.bf16.msra.mxu0 %v5836_v43  ;;  %2874 = vmatpush.bf16.msra.mxu1 %v5900_v18  ;;  %v8283_v43 = vld [vmem:[%s12665_s3 + $0x1b4] sm:$0xf]  ;;  %v5993_v18 = vld [vmem:[%s12665_s3 + $0x1b8] sm:$0xf0] }
 0x15b   :  { %2887 = vmatpush.bf16.msra.mxu2 %v5964_v47  ;;  %2900 = vmatpush.bf16.msra.mxu3 %v6028_v20  ;;  %v5793_v47 = vld [vmem:[%s12665_s3 + $0x28] sm:$0xf0]  ;;  %v5932_v20 = vor.u32 %v8267_v28, %v5929_v37  ;;  %v5996_v54 = vor.u32 %v8283_v43, %v5993_v18  ;;  %v8355_v28 = vld [vmem:[%s12665_s3 + $0x3f4] sm:$0xf]  ;;  %v6281_v37 = vld [vmem:[%s12665_s3 + $0x3f8] sm:$0xf0]  ;;  %v5908_v43 = vor.u32 %v8261_v14, %v5905_v15 }
 0x15c   :  { %2843 = vmatmul.bf16.vlgmr.msrb.gmra.mxu2 %v10129_v0  ;;  %2856 = vmatmul.bf16.vlgmr.msrb.gmra.mxu3 %v10139_v4  ;;  %v5972_v18 = vor.u32 %v8277_v34, %v5969_v16  ;;  %v6201_v9 = vld [vmem:[%s12665_s3 + $0x358] sm:$0xf0]  ;;  %v8351_v44 = vld [vmem:[%s12665_s3 + $0x3d4] sm:$0xf] }
 0x15d   :  { %v6265_v55 = vld [vmem:[%s12665_s3 + $0x3d8] sm:$0xf0]  ;;  %v8299_v34 = vld [vmem:[%s12665_s3 + $0x234] sm:$0xf] }
 0x15e   :  { %2862 = vmatpush.bf16.msra.mxu0 %v5828_v61  ;;  %2875 = vmatpush.bf16.msra.mxu1 %v5892_v3  ;;  %v5796_v61 = vor.u32 %v8233_v41, %v5793_v47  ;;  %v5860_v3 = vor.u32 %v8249_v59, %v5857_v35  ;;  %v8305_v41 = vld [vmem:[%s12665_s3 + $0x264] sm:$0xf]  ;;  %v6081_v47 = vld [vmem:[%s12665_s3 + $0x268] sm:$0xf0]  ;;  %v6057_v16 = vld [vmem:[%s12665_s3 + $0x238] sm:$0xf0] }
 0x15f   :  { %2888 = vmatpush.bf16.msra.mxu2 %v5956_v5  ;;  %2901 = vmatpush.bf16.msra.mxu3 %v6020_v33  ;;  %v5924_v5 = vor.u32 %v8265_v51, %v5921_v53  ;;  %v5988_v33 = vor.u32 %v8281_v56, %v5985_v57  ;;  %v8321_v59 = vld [vmem:[%s12665_s3 + $0x2e4] sm:$0xf]  ;;  %v6145_v35 = vld [vmem:[%s12665_s3 + $0x2e8] sm:$0xf0] }
 0x160   :  { %v8337_v51 = vld [vmem:[%s12665_s3 + $0x364] sm:$0xf]  ;;  %v6209_v53 = vld [vmem:[%s12665_s3 + $0x368] sm:$0xf0] }
 0x161   :  { %v8353_v56 = vld [vmem:[%s12665_s3 + $0x3e4] sm:$0xf]  ;;  %v6273_v57 = vld [vmem:[%s12665_s3 + $0x3e8] sm:$0xf0] }
 0x162   :  { %2863 = vmatpush.bf16.msra.mxu0 %v5820_v10  ;;  %2876 = vmatpush.bf16.msra.mxu1 %v5884_v45  ;;  %v8229_v10 = vld [vmem:[%s12665_s3 + $0x4] sm:$0xf]  ;;  %v5788_v45 = vor.u32 %v8231_v62, %v5785_v38  ;;  %v8303_v62 = vld [vmem:[%s12665_s3 + $0x254] sm:$0xf]  ;;  %v6073_v38 = vld [vmem:[%s12665_s3 + $0x258] sm:$0xf0] }
 0x163   :  { %2889 = vmatpush.bf16.msra.mxu2 %v5948_v40  ;;  %2902 = vmatpush.bf16.msra.mxu3 %v6012_v60  ;;  %v8245_v40 = vld [vmem:[%s12665_s3 + $0x84] sm:$0xf]  ;;  %v5841_v60 = vld [vmem:[%s12665_s3 + $0x88] sm:$0xf0] }
 0x164   :  { %v5844_v25 = vor.u32 %v8245_v40, %v5841_v60  ;;  %v8333_v40 = vld [vmem:[%s12665_s3 + $0x344] sm:$0xf]  ;;  %v6193_v60 = vld [vmem:[%s12665_s3 + $0x348] sm:$0xf0] }
 0x166   :  { %2864 = vmatpush.bf16.msra.mxu0 %v5812_v39  ;;  %2877 = vmatpush.bf16.msra.mxu1 %v5876_v17  ;;  %v8307_v39 = vld [vmem:[%s12665_s3 + $0x274] sm:$0xf]  ;;  %v6089_v17 = vld [vmem:[%s12665_s3 + $0x278] sm:$0xf0] }
 0x167   :  { %2890 = vmatpush.bf16.msra.mxu2 %v5940_v23  ;;  %2903 = vmatpush.bf16.msra.mxu3 %v6004_v24  ;;  %v8339_v23 = vld [vmem:[%s12665_s3 + $0x374] sm:$0xf]  ;;  %v5780_v24 = vor.u32 %v8229_v10, %v5777_v11  ;;  %v8301_v10 = vld [vmem:[%s12665_s3 + $0x244] sm:$0xf]  ;;  %v6268_v11 = vor.u32 %v8351_v44, %v6265_v55  ;;  %v6033_v55 = vld [vmem:[%s12665_s3 + $0x208] sm:$0xf0] }
 0x16a   :  { %2865 = vmatpush.bf16.msra.mxu0 %v5804_v32  ;;  %2878 = vmatpush.bf16.msra.mxu1 %v5868_v46  ;;  %v6092_v32 = vor.u32 %v8307_v39, %v6089_v17  ;;  %v6156_v46 = vor.u32 %v8323_v22, %v6153_v30  ;;  %v6196_v39 = vor.u32 %v8333_v40, %v6193_v60  ;;  %v8315_v22 = vld [vmem:[%s12665_s3 + $0x2b4] sm:$0xf]  ;;  %v6121_v30 = vld [vmem:[%s12665_s3 + $0x2b8] sm:$0xf0] }
 0x16b   :  { %2891 = vmatpush.bf16.msra.mxu2 %v5932_v20  ;;  %2904 = vmatpush.bf16.msra.mxu3 %v5996_v54  ;;  %v6220_v20 = vor.u32 %v8339_v23, %v6217_v26  ;;  %v6284_v54 = vor.u32 %v8355_v28, %v6281_v37  ;;  %v8331_v23 = vld [vmem:[%s12665_s3 + $0x334] sm:$0xf]  ;;  %v6249_v26 = vld [vmem:[%s12665_s3 + $0x3b8] sm:$0xf0]  ;;  %v6060_v28 = vor.u32 %v8299_v34, %v6057_v16 }
 0x16c   :  { %v6124_v37 = vor.u32 %v8315_v22, %v6121_v30  ;;  %v8371_v40 = vld [vmem:[%s12665_s3 + $0x474] sm:$0xf]  ;;  %v6345_v60 = vld [vmem:[%s12665_s3 + $0x478] sm:$0xf0] }
 0x16d   :  { %v6473_v16 = vld [vmem:[%s12665_s3 + $0x578] sm:$0xf0] }
 0x16e   :  { %2866 = vmatpush.bf16.msra.mxu0 %v5796_v61  ;;  %2879 = vmatpush.bf16.msra.mxu1 %v5860_v3  ;;  %v6084_v61 = vor.u32 %v8305_v41, %v6081_v47  ;;  %v6148_v3 = vor.u32 %v8321_v59, %v6145_v35  ;;  %v8313_v41 = vld [vmem:[%s12665_s3 + $0x2a4] sm:$0xf]  ;;  %v6113_v47 = vld [vmem:[%s12665_s3 + $0x2a8] sm:$0xf0] }
 0x16f   :  { %2892 = vmatpush.bf16.msra.mxu2 %v5924_v5  ;;  %2905 = vmatpush.bf16.msra.mxu3 %v5988_v33  ;;  %v6212_v5 = vor.u32 %v8337_v51, %v6209_v53  ;;  %v6276_v33 = vor.u32 %v8353_v56, %v6273_v57  ;;  %v8345_v59 = vld [vmem:[%s12665_s3 + $0x3a4] sm:$0xf]  ;;  %v6241_v35 = vld [vmem:[%s12665_s3 + $0x3a8] sm:$0xf0]  ;;  %v6116_v53 = vor.u32 %v8313_v41, %v6113_v47  ;;  %v8295_v56 = vld [vmem:[%s12665_s3 + $0x214] sm:$0xf] }
 0x170   :  { %v6041_v57 = vld [vmem:[%s12665_s3 + $0x218] sm:$0xf0]  ;;  %v6465_v41 = vld [vmem:[%s12665_s3 + $0x568] sm:$0xf0]  ;;  %v8417_v47 = vld [vmem:[%s12665_s3 + $0x5e4] sm:$0xf] }
 0x172   :  { %2867 = vmatpush.bf16.msra.mxu0 %v5788_v45  ;;  %2880 = vmatpush.bf16.msra.mxu1 %v5852_v36  ;;  %v6065_v45 = vld [vmem:[%s12665_s3 + $0x248] sm:$0xf0]  ;;  %v6204_v36 = vor.u32 %v8335_v8, %v6201_v9  ;;  %v8293_v8 = vld [vmem:[%s12665_s3 + $0x204] sm:$0xf]  ;;  %v6044_v9 = vor.u32 %v8295_v56, %v6041_v57 }
 0x173   :  { %2893 = vmatpush.bf16.msra.mxu2 %v5916_v12  ;;  %2906 = vmatpush.bf16.msra.mxu3 %v5980_v13  ;;  %v8349_v12 = vld [vmem:[%s12665_s3 + $0x3c4] sm:$0xf]  ;;  %v6257_v13 = vld [vmem:[%s12665_s3 + $0x3c8] sm:$0xf0]  ;;  %v6068_v14 = vor.u32 %v8301_v10, %v6065_v45 }
 0x174   :  { %v6260_v17 = vor.u32 %v8349_v12, %v6257_v13  ;;  %v8387_v12 = vld [vmem:[%s12665_s3 + $0x4f4] sm:$0xf]  ;;  %v6409_v13 = vld [vmem:[%s12665_s3 + $0x4f8] sm:$0xf0] }
 0x176   :  { %2868 = vmatpush.bf16.msra.mxu0 %v5780_v24  ;;  %2881 = vmatpush.bf16.msra.mxu1 %v5844_v25  ;;  %v6185_v24 = vld [vmem:[%s12665_s3 + $0x338] sm:$0xf0]  ;;  %v8347_v25 = vld [vmem:[%s12665_s3 + $0x3b4] sm:$0xf] }
 0x177   :  { %2894 = vmatpush.bf16.msra.mxu2 %v5908_v43  ;;  %2907 = vmatpush.bf16.msra.mxu3 %v5972_v18  ;;  %v8297_v43 = vld [vmem:[%s12665_s3 + $0x224] sm:$0xf]  ;;  %v6049_v18 = vld [vmem:[%s12665_s3 + $0x228] sm:$0xf0] }
 0x178   :  { %v6052_v51 = vor.u32 %v8297_v43, %v6049_v18  ;;  %v6401_v18 = vld [vmem:[%s12665_s3 + $0x4e8] sm:$0xf0] }
 0x179   :  { %2869 = vmatmul.bf16.vlgmr.msra.gmra.mxu0 %v9683_v27  ;;  %2882 = vmatmul.bf16.vlgmr.msra.gmra.mxu1 %v9685_v42  ;;  %v6076_v27 = vor.u32 %v8303_v62, %v6073_v38  ;;  %v6140_v42 = vor.u32 %v8319_v6, %v6137_v7  ;;  %v8311_v62 = vld [vmem:[%s12665_s3 + $0x294] sm:$0xf]  ;;  %v6105_v38 = vld [vmem:[%s12665_s3 + $0x298] sm:$0xf0] }
 0x17a   :  { %2913 = vmatpush.bf16.msrb.mxu0 %v6092_v32  ;;  %2926 = vmatpush.bf16.msrb.mxu1 %v6156_v46  ;;  %v6188_v32 = vor.u32 %v8331_v23, %v6185_v24  ;;  %v6252_v46 = vor.u32 %v8347_v25, %v6249_v26  ;;  %v8343_v6 = vld [vmem:[%s12665_s3 + $0x394] sm:$0xf]  ;;  %v6233_v7 = vld [vmem:[%s12665_s3 + $0x398] sm:$0xf0]  ;;  %v6108_v44 = vor.u32 %v8311_v62, %v6105_v38  ;;  %v8369_v25 = vld [vmem:[%s12665_s3 + $0x464] sm:$0xf] }
 0x17b   :  { %2939 = vmatpush.bf16.msrb.mxu2 %v6220_v20  ;;  %2952 = vmatpush.bf16.msrb.mxu3 %v6284_v54  ;;  %v8329_v20 = vld [vmem:[%s12665_s3 + $0x324] sm:$0xf]  ;;  %v6177_v54 = vld [vmem:[%s12665_s3 + $0x328] sm:$0xf0]  ;;  %v6236_v45 = vor.u32 %v8343_v6, %v6233_v7  ;;  %v6348_v23 = vor.u32 %v8371_v40, %v6345_v60  ;;  %v6412_v24 = vor.u32 %v8387_v12, %v6409_v13  ;;  %v8399_v62 = vld [vmem:[%s12665_s3 + $0x554] sm:$0xf] }
 0x17c   :  { %2895 = vmatmul.bf16.vlgmr.msra.gmra.mxu2 %v9693_v48  ;;  %2908 = vmatmul.bf16.vlgmr.msra.gmra.mxu3 %v9695_v49  ;;  %v8317_v48 = vld [vmem:[%s12665_s3 + $0x2c4] sm:$0xf]  ;;  %v6129_v49 = vld [vmem:[%s12665_s3 + $0x2c8] sm:$0xf0]  ;;  %v6457_v38 = vld [vmem:[%s12665_s3 + $0x558] sm:$0xf0] }
 0x17d   :  { %v6132_v15 = vor.u32 %v8317_v48, %v6129_v49  ;;  %v8341_v48 = vld [vmem:[%s12665_s3 + $0x384] sm:$0xf]  ;;  %v6225_v49 = vld [vmem:[%s12665_s3 + $0x388] sm:$0xf0]  ;;  %v8363_v40 = vld [vmem:[%s12665_s3 + $0x434] sm:$0xf] }
 0x17e   :  { %2914 = vmatpush.bf16.msrb.mxu0 %v6084_v61  ;;  %2927 = vmatpush.bf16.msrb.mxu1 %v6148_v3  ;;  %v6180_v61 = vor.u32 %v8329_v20, %v6177_v54  ;;  %v6244_v3 = vor.u32 %v8345_v59, %v6241_v35  ;;  %v6228_v30 = vor.u32 %v8341_v48, %v6225_v49  ;;  %v6337_v26 = vld [vmem:[%s12665_s3 + $0x468] sm:$0xf0]  ;;  %v8367_v35 = vld [vmem:[%s12665_s3 + $0x454] sm:$0xf]  ;;  %v6313_v60 = vld [vmem:[%s12665_s3 + $0x438] sm:$0xf0] }
 0x17f   :  { %2940 = vmatpush.bf16.msrb.mxu2 %v6212_v5  ;;  %2953 = vmatpush.bf16.msrb.mxu3 %v6276_v33  ;;  %v8327_v5 = vld [vmem:[%s12665_s3 + $0x314] sm:$0xf]  ;;  %v6169_v33 = vld [vmem:[%s12665_s3 + $0x318] sm:$0xf0]  ;;  %v6529_v20 = vld [vmem:[%s12665_s3 + $0x5e8] sm:$0xf0]  ;;  %v6340_v54 = vor.u32 %v8369_v25, %v6337_v26  ;;  %v6316_v26 = vor.u32 %v8363_v40, %v6313_v60 }
 0x180   :  { %v6172_v10 = vor.u32 %v8327_v5, %v6169_v33  ;;  %v6532_v57 = vor.u32 %v8417_v47, %v6529_v20  ;;  %v8415_v5 = vld [vmem:[%s12665_s3 + $0x5d4] sm:$0xf]  ;;  %v6521_v33 = vld [vmem:[%s12665_s3 + $0x5d8] sm:$0xf0]  ;;  %v8377_v47 = vld [vmem:[%s12665_s3 + $0x4a4] sm:$0xf] }
 0x181   :  { %v6369_v20 = vld [vmem:[%s12665_s3 + $0x4a8] sm:$0xf0]  ;;  %v8405_v40 = vld [vmem:[%s12665_s3 + $0x584] sm:$0xf] }
 0x182   :  { %2915 = vmatpush.bf16.msrb.mxu0 %v6076_v27  ;;  %2928 = vmatpush.bf16.msrb.mxu1 %v6140_v42  ;;  %v8309_v27 = vld [vmem:[%s12665_s3 + $0x284] sm:$0xf]  ;;  %v6097_v42 = vld [vmem:[%s12665_s3 + $0x288] sm:$0xf0] }
 0x183   :  { %2941 = vmatpush.bf16.msrb.mxu2 %v6204_v36  ;;  %2954 = vmatpush.bf16.msrb.mxu3 %v6268_v11  ;;  %v8325_v36 = vld [vmem:[%s12665_s3 + $0x304] sm:$0xf]  ;;  %v6161_v11 = vld [vmem:[%s12665_s3 + $0x308] sm:$0xf0]  ;;  %v6100_v34 = vor.u32 %v8309_v27, %v6097_v42 }
 0x184   :  { %v6164_v22 = vor.u32 %v8325_v36, %v6161_v11  ;;  %v6385_v27 = vld [vmem:[%s12665_s3 + $0x4c8] sm:$0xf0]  ;;  %v8397_v42 = vld [vmem:[%s12665_s3 + $0x544] sm:$0xf] }
 0x185   :  { %v8413_v36 = vld [vmem:[%s12665_s3 + $0x5c4] sm:$0xf]  ;;  %v6513_v11 = vld [vmem:[%s12665_s3 + $0x5c8] sm:$0xf0] }
 0x186   :  { %2916 = vmatpush.bf16.msrb.mxu0 %v6068_v14  ;;  %2929 = vmatpush.bf16.msrb.mxu1 %v6132_v15  ;;  %v8403_v14 = vld [vmem:[%s12665_s3 + $0x574] sm:$0xf]  ;;  %v6036_v15 = vor.u32 %v8293_v8, %v6033_v55  ;;  %v6524_v55 = vor.u32 %v8415_v5, %v6521_v33  ;;  %v6516_v13 = vor.u32 %v8413_v36, %v6513_v11  ;;  %v6361_v5 = vld [vmem:[%s12665_s3 + $0x498] sm:$0xf0] }
 0x187   :  { %2942 = vmatpush.bf16.msrb.mxu2 %v6196_v39  ;;  %2955 = vmatpush.bf16.msrb.mxu3 %v6260_v17  ;;  %v8419_v39 = vld [vmem:[%s12665_s3 + $0x5f4] sm:$0xf]  ;;  %v6537_v17 = vld [vmem:[%s12665_s3 + $0x5f8] sm:$0xf0] }
 0x188   :  { %v6540_v43 = vor.u32 %v8419_v39, %v6537_v17  ;;  %v6441_v17 = vld [vmem:[%s12665_s3 + $0x538] sm:$0xf0]  ;;  %v8391_v33 = vld [vmem:[%s12665_s3 + $0x514] sm:$0xf] }
 0x18a   :  { %2917 = vmatpush.bf16.msrb.mxu0 %v6060_v28  ;;  %2930 = vmatpush.bf16.msrb.mxu1 %v6124_v37  ;;  %v8385_v28 = vld [vmem:[%s12665_s3 + $0x4e4] sm:$0xf]  ;;  %v6476_v37 = vor.u32 %v8403_v14, %v6473_v16  ;;  %v8379_v14 = vld [vmem:[%s12665_s3 + $0x4b4] sm:$0xf] }
 0x18b   :  { %2943 = vmatpush.bf16.msrb.mxu2 %v6188_v32  ;;  %2956 = vmatpush.bf16.msrb.mxu3 %v6252_v46  ;;  %v8401_v32 = vld [vmem:[%s12665_s3 + $0x564] sm:$0xf]  ;;  %v10521_v46 = vld [vmem:[%s12666_s4] sm:$0x3]  ;;  %v6404_v59 = vor.u32 %v8385_v28, %v6401_v18 }
 0x18c   :  { %v6468_v56 = vor.u32 %v8401_v32, %v6465_v41 }
 0x18e   :  { %2918 = vmatpush.bf16.msrb.mxu0 %v6052_v51  ;;  %2931 = vmatpush.bf16.msrb.mxu1 %v6116_v53  ;;  %v6329_v51 = vld [vmem:[%s12665_s3 + $0x458] sm:$0xf0]  ;;  %v1313_v53 = vperm.slane %v10521_v46, 0 }
 0x18f   :  { %2944 = vmatpush.bf16.msrb.mxu2 %v6180_v61  ;;  %2957 = vmatpush.bf16.msrb.mxu3 %v6244_v3  ;;  %v8383_v61 = vld [vmem:[%s12665_s3 + $0x4d4] sm:$0xf]  ;;  %v6393_v3 = vld [vmem:[%s12665_s3 + $0x4d8] sm:$0xf0] }
 0x190   :  { %v6396_v7 = vor.u32 %v8383_v61, %v6393_v3  ;;  %v6297_v61 = vld [vmem:[%s12665_s3 + $0x418] sm:$0xf0] }
 0x192   :  { %2919 = vmatpush.bf16.msrb.mxu0 %v6044_v9  ;;  %2932 = vmatpush.bf16.msrb.mxu1 %v6108_v44  ;;  %v8365_v9 = vld [vmem:[%s12665_s3 + $0x444] sm:$0xf]  ;;  %v6321_v44 = vld [vmem:[%s12665_s3 + $0x448] sm:$0xf0] }
 0x193   :  { %2945 = vmatpush.bf16.msrb.mxu2 %v6172_v10  ;;  %2958 = vmatpush.bf16.msrb.mxu3 %v6236_v45  ;;  %v6449_v45 = vld [vmem:[%s12665_s3 + $0x548] sm:$0xf0]  ;;  %v6324_v48 = vor.u32 %v8365_v9, %v6321_v44 }
 0x194   :  { %v6452_v12 = vor.u32 %v8397_v42, %v6449_v45  ;;  %v6289_v42 = vld [vmem:[%s12665_s3 + $0x408] sm:$0xf0] }
 0x195   :  { %v2662_v6 = vpop.f32.mrf.mxu0  ;;  %v6353_v45 = vld [vmem:[%s12665_s3 + $0x488] sm:$0xf0] }
 0x196   :  { %2920 = vmatpush.bf16.msrb.mxu0 %v6036_v15  ;;  %2933 = vmatpush.bf16.msrb.mxu1 %v6100_v34  ;;  %v2663_v8 = vadd.f32 %v2662_v6, %v1313_v53  ;;  %v6377_v15 = vld [vmem:[%s12665_s3 + $0x4b8] sm:$0xf0]  ;;  %v8395_v34 = vld [vmem:[%s12665_s3 + $0x534] sm:$0xf] }
 0x197   :  { %2946 = vmatpush.bf16.msrb.mxu2 %v6164_v22  ;;  %2959 = vmatpush.bf16.msrb.mxu3 %v6228_v30  ;;  %v8411_v22 = vld [vmem:[%s12665_s3 + $0x5b4] sm:$0xf]  ;;  %v6505_v30 = vld [vmem:[%s12665_s3 + $0x5b8] sm:$0xf0]  ;;  %v6380_v28 = vor.u32 %v8379_v14, %v6377_v15  ;;  %v6444_v32 = vor.u32 %v8395_v34, %v6441_v17 }
 0x198   :  { %v6508_v41 = vor.u32 %v8411_v22, %v6505_v30  ;;  %v6601_v14 = vld [vmem:[%s12665_s3 + $0x678] sm:$0xf0]  ;;  %v8451_v15 = vld [vmem:[%s12665_s3 + $0x6f4] sm:$0xf] }
 0x199   :  { %2921 = vmatmul.bf16.vlgmr.msrb.gmra.mxu0 %v9791_v50  ;;  %2934 = vmatmul.bf16.vlgmr.msrb.gmra.mxu1 %v9793_v19  ;;  %v2675_v50 = vpop.f32.mrf.mxu1  ;;  %v6332_v19 = vor.u32 %v8367_v35, %v6329_v51  ;;  %v8409_v35 = vld [vmem:[%s12665_s3 + $0x5a4] sm:$0xf]  ;;  %v6497_v51 = vld [vmem:[%s12665_s3 + $0x5a8] sm:$0xf0]  ;;  %v6665_v34 = vld [vmem:[%s12665_s3 + $0x6f8] sm:$0xf0] }
 0x19a   :  { %2965 = vmatpush.bf16.msra.mxu0 %v6348_v23  ;;  %2978 = vmatpush.bf16.msra.mxu1 %v6412_v24  ;;  %v2676_v10 = vadd.f32 %v2675_v50, %v2663_v8  ;;  %v6489_v8 = vld [vmem:[%s12665_s3 + $0x598] sm:$0xf0]  ;;  %v8483_v30 = vld [vmem:[%s12665_s3 + $0x7f4] sm:$0xf] }
 0x19b   :  { %2991 = vmatpush.bf16.msra.mxu2 %v6476_v37  ;;  %3004 = vmatpush.bf16.msra.mxu3 %v6540_v43  ;;  %v8361_v37 = vld [vmem:[%s12665_s3 + $0x424] sm:$0xf]  ;;  %v6305_v43 = vld [vmem:[%s12665_s3 + $0x428] sm:$0xf0]  ;;  %v6729_v22 = vld [vmem:[%s12665_s3 + $0x778] sm:$0xf0] }
 0x19c   :  { %2947 = vmatmul.bf16.vlgmr.msrb.gmra.mxu2 %v9801_v21  ;;  %2960 = vmatmul.bf16.vlgmr.msrb.gmra.mxu3 %v9803_v52  ;;  %v6460_v21 = vor.u32 %v8399_v62, %v6457_v38  ;;  %v8381_v52 = vld [vmem:[%s12665_s3 + $0x4c4] sm:$0xf]  ;;  %v2688_v16 = vpop.f32.mrf.mxu2  ;;  %v2701_v39 = vpop.f32.mrf.mxu3  ;;  %v6308_v53 = vor.u32 %v8361_v37, %v6305_v43  ;;  %v6500_v62 = vor.u32 %v8409_v35, %v6497_v51  ;;  %v8375_v38 = vld [vmem:[%s12665_s3 + $0x494] sm:$0xf]  ;;  %v6657_v51 = vld [vmem:[%s12665_s3 + $0x6e8] sm:$0xf0] }
 0x19d   :  { %v6388_v49 = vor.u32 %v8381_v52, %v6385_v27  ;;  %v2689_v23 = vadd.f32 %v2688_v16, %v2676_v10  ;;  %v2664_v24 = vpop.f32.mrf.mxu0  ;;  %v6364_v52 = vor.u32 %v8375_v38, %v6361_v5  ;;  %v8373_v10 = vld [vmem:[%s12665_s3 + $0x484] sm:$0xf]  ;;  %v8467_v16 = vld [vmem:[%s12665_s3 + $0x774] sm:$0xf] }
 0x19e   :  { %2966 = vmatpush.bf16.msra.mxu0 %v6340_v54  ;;  %2979 = vmatpush.bf16.msra.mxu1 %v6404_v59  ;;  %v8393_v54 = vld [vmem:[%s12665_s3 + $0x524] sm:$0xf]  ;;  %v6433_v59 = vld [vmem:[%s12665_s3 + $0x528] sm:$0xf0]  ;;  %v6356_v17 = vor.u32 %v8373_v10, %v6353_v45  ;;  %v8431_v5 = vld [vmem:[%s12665_s3 + $0x654] sm:$0xf] }
 0x19f   :  { %2992 = vmatpush.bf16.msra.mxu2 %v6468_v56  ;;  %3005 = vmatpush.bf16.msra.mxu3 %v6532_v57  ;;  %v2702_v18 = vadd.f32 %v2701_v39, %v2689_v23  ;;  %v6372_v56 = vor.u32 %v8377_v47, %v6369_v20  ;;  %v8359_v57 = vld [vmem:[%s12665_s3 + $0x414] sm:$0xf]  ;;  %v6436_v3 = vor.u32 %v8393_v54, %v6433_v59  ;;  %v6793_v23 = vld [vmem:[%s12665_s3 + $0x7f8] sm:$0xf0]  ;;  %v8449_v35 = vld [vmem:[%s12665_s3 + $0x6e4] sm:$0xf] }
 0x1a0   :  { %v6796_v47 = vor.u32 %v8483_v30, %v6793_v23  ;;  %v6660_v38 = vor.u32 %v8449_v35, %v6657_v51  ;;  %v6641_v45 = vld [vmem:[%s12665_s3 + $0x6c8] sm:$0xf0]  ;;  %v8459_v30 = vld [vmem:[%s12665_s3 + $0x734] sm:$0xf] }
 0x1a1   :  { %v2677_v25 = vpop.f32.mrf.mxu1  ;;  %v6689_v51 = vld [vmem:[%s12665_s3 + $0x728] sm:$0xf0] }
 0x1a2   :  { %2967 = vmatpush.bf16.msra.mxu0 %v6332_v19  ;;  %2980 = vmatpush.bf16.msra.mxu1 %v6396_v7  ;;  %v6425_v19 = vld [vmem:[%s12665_s3 + $0x518] sm:$0xf0]  ;;  %v8407_v7 = vld [vmem:[%s12665_s3 + $0x594] sm:$0xf] }
 0x1a3   :  { %2993 = vmatpush.bf16.msra.mxu2 %v6460_v21  ;;  %3006 = vmatpush.bf16.msra.mxu3 %v6524_v55  ;;  %v8357_v21 = vld [vmem:[%s12665_s3 + $0x404] sm:$0xf]  ;;  %v6300_v55 = vor.u32 %v8359_v57, %v6297_v61  ;;  %v6428_v36 = vor.u32 %v8391_v33, %v6425_v19  ;;  %v6492_v11 = vor.u32 %v8407_v7, %v6489_v8  ;;  %v6785_v61 = vld [vmem:[%s12665_s3 + $0x7e8] sm:$0xf0]  ;;  %v6585_v33 = vld [vmem:[%s12665_s3 + $0x658] sm:$0xf0] }
 0x1a4   :  { %v2690_v6 = vpop.f32.mrf.mxu2  ;;  %v2703_v50 = vpop.f32.mrf.mxu3  ;;  %v6292_v39 = vor.u32 %v8357_v21, %v6289_v42  ;;  %v8481_v57 = vld [vmem:[%s12665_s3 + $0x7e4] sm:$0xf]  ;;  %v8447_v19 = vld [vmem:[%s12665_s3 + $0x6d4] sm:$0xf]  ;;  %v6649_v7 = vld [vmem:[%s12665_s3 + $0x6d8] sm:$0xf0] }
 0x1a5   :  { %v2714_v9 = vpop.f32.mrf.mxu0  ;;  %v6788_v50 = vor.u32 %v8481_v57, %v6785_v61  ;;  %v8463_v8 = vld [vmem:[%s12665_s3 + $0x754] sm:$0xf]  ;;  %v6777_v21 = vld [vmem:[%s12665_s3 + $0x7d8] sm:$0xf0]  ;;  %v6577_v42 = vld [vmem:[%s12665_s3 + $0x648] sm:$0xf0] }
 0x1a6   :  { %2968 = vmatpush.bf16.msra.mxu0 %v6324_v48  ;;  %2981 = vmatpush.bf16.msra.mxu1 %v6388_v49  ;;  %v2715_v27 = vadd.f32 %v2714_v9, %v2702_v18  ;;  %v8389_v48 = vld [vmem:[%s12665_s3 + $0x504] sm:$0xf]  ;;  %v6417_v49 = vld [vmem:[%s12665_s3 + $0x508] sm:$0xf0]  ;;  %v6713_v9 = vld [vmem:[%s12665_s3 + $0x758] sm:$0xf0] }
 0x1a7   :  { %2994 = vmatpush.bf16.msra.mxu2 %v6452_v12  ;;  %3007 = vmatpush.bf16.msra.mxu3 %v6516_v13  ;;  %v6481_v12 = vld [vmem:[%s12665_s3 + $0x588] sm:$0xf0]  ;;  %v8435_v13 = vld [vmem:[%s12665_s3 + $0x674] sm:$0xf]  ;;  %v6420_v24 = vor.u32 %v8389_v48, %v6417_v49  ;;  %v8433_v18 = vld [vmem:[%s12665_s3 + $0x664] sm:$0xf]  ;;  %v6716_v10 = vor.u32 %v8463_v8, %v6713_v9 }
 0x1a8   :  { %v6484_v25 = vor.u32 %v8405_v40, %v6481_v12  ;;  %v8477_v48 = vld [vmem:[%s12665_s3 + $0x7c4] sm:$0xf]  ;;  %v6769_v49 = vld [vmem:[%s12665_s3 + $0x7c8] sm:$0xf0]  ;;  %v6617_v8 = vld [vmem:[%s12665_s3 + $0x698] sm:$0xf0] }
 0x1a9   :  { %v2727_v44 = vpop.f32.mrf.mxu1  ;;  %v8455_v9 = vld [vmem:[%s12665_s3 + $0x714] sm:$0xf] }
 0x1aa   :  { %2969 = vmatpush.bf16.msra.mxu0 %v6316_v26  ;;  %2982 = vmatpush.bf16.msra.mxu1 %v6380_v28  ;;  %v2728_v60 = vadd.f32 %v2727_v44, %v2715_v27  ;;  %v6604_v26 = vor.u32 %v8435_v13, %v6601_v14  ;;  %v6668_v28 = vor.u32 %v8451_v15, %v6665_v34  ;;  %v8479_v44 = vld [vmem:[%s12665_s3 + $0x7d4] sm:$0xf]  ;;  %v8429_v27 = vld [vmem:[%s12665_s3 + $0x644] sm:$0xf]  ;;  %v6569_v34 = vld [vmem:[%s12665_s3 + $0x638] sm:$0xf0] }
 0x1ab   :  { %2995 = vmatpush.bf16.msra.mxu2 %v6444_v32  ;;  %3008 = vmatpush.bf16.msra.mxu3 %v6508_v41  ;;  %v6593_v32 = vld [vmem:[%s12665_s3 + $0x668] sm:$0xf0]  ;;  %v6732_v41 = vor.u32 %v8467_v16, %v6729_v22  ;;  %v6580_v13 = vor.u32 %v8429_v27, %v6577_v42  ;;  %v8427_v15 = vld [vmem:[%s12665_s3 + $0x634] sm:$0xf]  ;;  %v6633_v22 = vld [vmem:[%s12665_s3 + $0x6b8] sm:$0xf0] }
 0x1ac   :  { %v2740_v37 = vpop.f32.mrf.mxu2  ;;  %v2753_v43 = vpop.f32.mrf.mxu3  ;;  %v6545_v27 = vld [vmem:[%s12665_s3 + $0x608] sm:$0xf0] }
 0x1ad   :  { %v2741_v20 = vadd.f32 %v2740_v37, %v2728_v60  ;;  %v2716_v54 = vpop.f32.mrf.mxu0 }
 0x1ae   :  { %2970 = vmatpush.bf16.msra.mxu0 %v6308_v53  ;;  %2983 = vmatpush.bf16.msra.mxu1 %v6372_v56  ;;  %v8465_v53 = vld [vmem:[%s12665_s3 + $0x764] sm:$0xf]  ;;  %v6721_v56 = vld [vmem:[%s12665_s3 + $0x768] sm:$0xf0] }
 0x1af   :  { %2996 = vmatpush.bf16.msra.mxu2 %v6436_v3  ;;  %3009 = vmatpush.bf16.msra.mxu3 %v6500_v62  ;;  %v2754_v3 = vadd.f32 %v2753_v43, %v2741_v20  ;;  %v6596_v62 = vor.u32 %v8433_v18, %v6593_v32  ;;  %v6724_v6 = vor.u32 %v8465_v53, %v6721_v56  ;;  %v8425_v43 = vld [vmem:[%s12665_s3 + $0x624] sm:$0xf]  ;;  %v6561_v18 = vld [vmem:[%s12665_s3 + $0x628] sm:$0xf0] }
 0x1b0   :  { %v6625_v20 = vld [vmem:[%s12665_s3 + $0x6a8] sm:$0xf0]  ;;  %v8457_v54 = vld [vmem:[%s12665_s3 + $0x724] sm:$0xf] }
 0x1b1   :  { %v2729_v59 = vpop.f32.mrf.mxu1  ;;  %v8473_v53 = vld [vmem:[%s12665_s3 + $0x7a4] sm:$0xf]  ;;  %v6753_v56 = vld [vmem:[%s12665_s3 + $0x7a8] sm:$0xf0] }
 0x1b2   :  { %2971 = vmatpush.bf16.msra.mxu0 %v6300_v55  ;;  %2984 = vmatpush.bf16.msra.mxu1 %v6364_v52 }
 0x1b3   :  { %2997 = vmatpush.bf16.msra.mxu2 %v6428_v36  ;;  %3010 = vmatpush.bf16.msra.mxu3 %v6492_v11  ;;  %v8461_v36 = vld [vmem:[%s12665_s3 + $0x744] sm:$0xf]  ;;  %v6705_v11 = vld [vmem:[%s12665_s3 + $0x748] sm:$0xf0] }
 0x1b4   :  { %v2742_v55 = vpop.f32.mrf.mxu2  ;;  %v2755_v52 = vpop.f32.mrf.mxu3  ;;  %v6708_v16 = vor.u32 %v8461_v36, %v6705_v11 }
 0x1b5   :  { %v8421_v52 = vld [vmem:[%s12665_s3 + $0x604] sm:$0xf] }
 0x1b6   :  { %2972 = vmatpush.bf16.msra.mxu0 %v6292_v39  ;;  %2985 = vmatpush.bf16.msra.mxu1 %v6356_v17  ;;  %v2766_v40 = vpop.f32.mrf.mxu0  ;;  %v6772_v39 = vor.u32 %v8477_v48, %v6769_v49  ;;  %v8443_v17 = vld [vmem:[%s12665_s3 + $0x6b4] sm:$0xf]  ;;  %v6673_v48 = vld [vmem:[%s12665_s3 + $0x708] sm:$0xf0]  ;;  %v8469_v49 = vld [vmem:[%s12665_s3 + $0x784] sm:$0xf] }
 0x1b7   :  { %2998 = vmatpush.bf16.msra.mxu2 %v6420_v24  ;;  %3011 = vmatpush.bf16.msra.mxu3 %v6484_v25  ;;  %v2767_v12 = vadd.f32 %v2766_v40, %v2754_v3  ;;  %v6697_v24 = vld [vmem:[%s12665_s3 + $0x738] sm:$0xf0]  ;;  %v8475_v25 = vld [vmem:[%s12665_s3 + $0x7b4] sm:$0xf]  ;;  %v6636_v37 = vor.u32 %v8443_v17, %v6633_v22  ;;  %v6737_v40 = vld [vmem:[%s12665_s3 + $0x788] sm:$0xf0] }
 0x1b8   :  { %v6700_v32 = vor.u32 %v8459_v30, %v6697_v24 }
 0x1b9   :  { %2973 = vmatmul.bf16.vlgmr.msra.gmra.mxu0 %v9923_v31  ;;  %2986 = vmatmul.bf16.vlgmr.msra.gmra.mxu1 %v9925_v63  ;;  %v6588_v31 = vor.u32 %v8431_v5, %v6585_v33  ;;  %v6652_v63 = vor.u32 %v8447_v19, %v6649_v7  ;;  %v2779_v60 = vpop.f32.mrf.mxu1  ;;  %v8423_v5 = vld [vmem:[%s12665_s3 + $0x614] sm:$0xf]  ;;  %v6553_v33 = vld [vmem:[%s12665_s3 + $0x618] sm:$0xf0]  ;;  %v6756_v19 = vor.u32 %v8473_v53, %v6753_v56  ;;  %v8577_v53 = vld [vmem:[%s12667_s5 + $0x2e4] sm:$0xf] }
 0x1ba   :  { %3017 = vmatpush.bf16.msrb.mxu0 %v6604_v26  ;;  %3030 = vmatpush.bf16.msrb.mxu1 %v6668_v28  ;;  %v2780_v23 = vadd.f32 %v2779_v60, %v2767_v12  ;;  %v6761_v26 = vld [vmem:[%s12665_s3 + $0x7b8] sm:$0xf0]  ;;  %v6572_v28 = vor.u32 %v8427_v15, %v6569_v34  ;;  %v8439_v7 = vld [vmem:[%s12665_s3 + $0x694] sm:$0xf]  ;;  %v6548_v60 = vor.u32 %v8421_v52, %v6545_v27  ;;  %v6943_v27 = vld [vmem:[%s12667_s5 + $0x2a0] sm:$0xf] }
 0x1bb   :  { %3043 = vmatpush.bf16.msrb.mxu2 %v6732_v41  ;;  %3056 = vmatpush.bf16.msrb.mxu3 %v6796_v47  ;;  %v6764_v41 = vor.u32 %v8475_v25, %v6761_v26  ;;  %v8441_v47 = vld [vmem:[%s12665_s3 + $0x6a4] sm:$0xf]  ;;  %v6620_v55 = vor.u32 %v8439_v7, %v6617_v8  ;;  %v6977_v56 = vld [vmem:[%s12667_s5 + $0x2f0] sm:$0xf0]  ;;  %v8607_v7 = vld [vmem:[%s12667_s5 + $0x3cc] sm:$0xf0] }
 0x1bc   :  { %2999 = vmatmul.bf16.vlgmr.msra.gmra.mxu2 %v9933_v1  ;;  %3012 = vmatmul.bf16.vlgmr.msra.gmra.mxu3 %v9935_v2  ;;  %v6780_v1 = vor.u32 %v8479_v44, %v6777_v21  ;;  %v8445_v2 = vld [vmem:[%s12665_s3 + $0x6c4] sm:$0xf]  ;;  %v6681_v44 = vld [vmem:[%s12665_s3 + $0x718] sm:$0xf0]  ;;  %v8471_v21 = vld [vmem:[%s12665_s3 + $0x794] sm:$0xf] }
 0x1bd   :  { %v6644_v14 = vor.u32 %v8445_v2, %v6641_v45  ;;  %v6684_v42 = vor.u32 %v8455_v9, %v6681_v44  ;;  %v6609_v2 = vld [vmem:[%s12665_s3 + $0x688] sm:$0xf0]  ;;  %v8453_v45 = vld [vmem:[%s12665_s3 + $0x704] sm:$0xf] }
 0x1be   :  { %3018 = vmatpush.bf16.msrb.mxu0 %v6596_v62  ;;  %3031 = vmatpush.bf16.msrb.mxu1 %v6660_v38  ;;  %v2768_v61 = vpop.f32.mrf.mxu0  ;;  %v6564_v62 = vor.u32 %v8425_v43, %v6561_v18  ;;  %v6628_v38 = vor.u32 %v8441_v47, %v6625_v20  ;;  %v8573_v44 = vld [vmem:[%s12667_s5 + $0x2c4] sm:$0xf] }
 0x1bf   :  { %3044 = vmatpush.bf16.msrb.mxu2 %v6724_v6  ;;  %3057 = vmatpush.bf16.msrb.mxu3 %v6788_v50  ;;  %v2792_v59 = vpop.f32.mrf.mxu2  ;;  %v2805_v35 = vpop.f32.mrf.mxu3  ;;  %v6692_v50 = vor.u32 %v8457_v54, %v6689_v51  ;;  %v6975_v54 = vld [vmem:[%s12667_s5 + $0x2e0] sm:$0xf]  ;;  %v8611_v51 = vld [vmem:[%s12667_s5 + $0x3ec] sm:$0xf0] }
 0x1c0   :  { %v2793_v57 = vadd.f32 %v2792_v59, %v2780_v23  ;;  %v8579_v59 = vld [vmem:[%s12667_s5 + $0x2ec] sm:$0xf0] }
 0x1c1   :  { %v2781_v3 = vpop.f32.mrf.mxu1 }
 0x1c2   :  { %3019 = vmatpush.bf16.msrb.mxu0 %v6588_v31  ;;  %3032 = vmatpush.bf16.msrb.mxu1 %v6652_v63  ;;  %v2806_v6 = vadd.f32 %v2805_v35, %v2793_v57  ;;  %v6745_v31 = vld [vmem:[%s12665_s3 + $0x798] sm:$0xf0]  ;;  %v6556_v63 = vor.u32 %v8423_v5, %v6553_v33  ;;  %v6976_v35 = vor.u32 %v8579_v59, %v6975_v54  ;;  %v7105_v5 = vld [vmem:[%s12667_s5 + $0x3f0] sm:$0xf0]  ;;  %v6959_v33 = vld [vmem:[%s12667_s5 + $0x2c0] sm:$0xf] }
 0x1c3   :  { %3045 = vmatpush.bf16.msrb.mxu2 %v6716_v10  ;;  %3058 = vmatpush.bf16.msrb.mxu3 %v6780_v1  ;;  %v6748_v10 = vor.u32 %v8471_v21, %v6745_v31  ;;  %v8437_v1 = vld [vmem:[%s12665_s3 + $0x684] sm:$0xf]  ;;  %v6961_v21 = vld [vmem:[%s12667_s5 + $0x2d0] sm:$0xf0] }
 0x1c4   :  { %v6612_v12 = vor.u32 %v8437_v1, %v6609_v2  ;;  %v8605_v31 = vld [vmem:[%s12667_s5 + $0x3c4] sm:$0xf]  ;;  %v8603_v2 = vld [vmem:[%s12667_s5 + $0x3ac] sm:$0xf0] }
 0x1c6   :  { %3020 = vmatpush.bf16.msrb.mxu0 %v6580_v13  ;;  %3033 = vmatpush.bf16.msrb.mxu1 %v6644_v14  ;;  %v6676_v13 = vor.u32 %v8453_v45, %v6673_v48  ;;  %v6740_v14 = vor.u32 %v8469_v49, %v6737_v40  ;;  %v8569_v45 = vld [vmem:[%s12667_s5 + $0x2a4] sm:$0xf] }
 0x1c7   :  { %3046 = vmatpush.bf16.msrb.mxu2 %v6708_v16  ;;  %3059 = vmatpush.bf16.msrb.mxu3 %v6772_v39  ;;  %v2794_v36 = vpop.f32.mrf.mxu2  ;;  %v2807_v11 = vpop.f32.mrf.mxu3 }
 0x1c8   :  { %v6945_v36 = vld [vmem:[%s12667_s5 + $0x2b0] sm:$0xf0] }
 0x1c9   :  { %v6948_v40 = vor.u32 %v8569_v45, %v6945_v36  ;;  %v6863_v45 = vld [vmem:[%s12667_s5 + $0x200] sm:$0xf] }
 0x1ca   :  { %3021 = vmatpush.bf16.msrb.mxu0 %v6572_v28  ;;  %3034 = vmatpush.bf16.msrb.mxu1 %v6636_v37 }
 0x1cb   :  { %3047 = vmatpush.bf16.msrb.mxu2 %v6700_v32  ;;  %3060 = vmatpush.bf16.msrb.mxu3 %v6764_v41 }
 0x1ce   :  { %3022 = vmatpush.bf16.msrb.mxu0 %v6564_v62  ;;  %3035 = vmatpush.bf16.msrb.mxu1 %v6628_v38  ;;  %v6980_v62 = vor.u32 %v8577_v53, %v6977_v56  ;;  %v8609_v38 = vld [vmem:[%s12667_s5 + $0x3e4] sm:$0xf]  ;;  %v6895_v56 = vld [vmem:[%s12667_s5 + $0x240] sm:$0xf] }
 0x1cf   :  { %3048 = vmatpush.bf16.msrb.mxu2 %v6692_v50  ;;  %3061 = vmatpush.bf16.msrb.mxu3 %v6756_v19  ;;  %v8575_v50 = vld [vmem:[%s12667_s5 + $0x2cc] sm:$0xf0]  ;;  %v7087_v19 = vld [vmem:[%s12667_s5 + $0x3c0] sm:$0xf] }
 0x1d0   :  { %v6960_v8 = vor.u32 %v8575_v50, %v6959_v33  ;;  %v7088_v9 = vor.u32 %v8607_v7, %v7087_v19  ;;  %v8589_v50 = vld [vmem:[%s12667_s5 + $0x344] sm:$0xf]  ;;  %v7025_v19 = vld [vmem:[%s12667_s5 + $0x350] sm:$0xf0] }
 0x1d1   :  { %v7028_v7 = vor.u32 %v8589_v50, %v7025_v19  ;;  %v8570_v50 = vld [vmem:[%s12667_s5 + $0x2ac] sm:$0xf]  ;;  %v6953_v19 = vld [vmem:[%s12667_s5 + $0x2b8] sm:$0xf0] }
 0x1d2   :  { %3023 = vmatpush.bf16.msrb.mxu0 %v6556_v63  ;;  %3036 = vmatpush.bf16.msrb.mxu1 %v6620_v55  ;;  %v6964_v63 = vor.u32 %v8573_v44, %v6961_v21  ;;  %v7089_v55 = vld [vmem:[%s12667_s5 + $0x3d0] sm:$0xf0]  ;;  %v7007_v44 = vld [vmem:[%s12667_s5 + $0x320] sm:$0xf] }
 0x1d3   :  { %3049 = vmatpush.bf16.msrb.mxu2 %v6684_v42  ;;  %3062 = vmatpush.bf16.msrb.mxu3 %v6748_v10  ;;  %v7092_v52 = vor.u32 %v8605_v31, %v7089_v55  ;;  %v8571_v42 = vld [vmem:[%s12667_s5 + $0x2ac] sm:$0xf0]  ;;  %v7071_v10 = vld [vmem:[%s12667_s5 + $0x3a0] sm:$0xf]  ;;  %v6881_v55 = vld [vmem:[%s12667_s5 + $0x230] sm:$0xf0] }
 0x1d4   :  { %v6944_v1 = vor.u32 %v8571_v42, %v6943_v27  ;;  %v7072_v49 = vor.u32 %v8603_v2, %v7071_v10  ;;  %v8587_v31 = vld [vmem:[%s12667_s5 + $0x32c] sm:$0xf0]  ;;  %v7009_v2 = vld [vmem:[%s12667_s5 + $0x330] sm:$0xf0] }
 0x1d5   :  { %v7008_v42 = vor.u32 %v8587_v31, %v7007_v44  ;;  %v7081_v44 = vld [vmem:[%s12667_s5 + $0x3b8] sm:$0xf0] }
 0x1d6   :  { %3024 = vmatpush.bf16.msrb.mxu0 %v6548_v60  ;;  %3037 = vmatpush.bf16.msrb.mxu1 %v6612_v12  ;;  %v2818_v15 = vpop.f32.mrf.mxu0  ;;  %v2831_v34 = vpop.f32.mrf.mxu1  ;;  %v8601_v60 = vld [vmem:[%s12667_s5 + $0x3a4] sm:$0xf]  ;;  %v7073_v12 = vld [vmem:[%s12667_s5 + $0x3b0] sm:$0xf0] }
 0x1d7   :  { %3050 = vmatpush.bf16.msrb.mxu2 %v6676_v13  ;;  %3063 = vmatpush.bf16.msrb.mxu3 %v6740_v14  ;;  %v2819_v16 = vadd.f32 %v2818_v15, %v2806_v6  ;;  %v7108_v6 = vor.u32 %v8609_v38, %v7105_v5  ;;  %v7076_v13 = vor.u32 %v8601_v60, %v7073_v12  ;;  %v6927_v14 = vld [vmem:[%s12667_s5 + $0x280] sm:$0xf]  ;;  %v8567_v15 = vld [vmem:[%s12667_s5 + $0x28c] sm:$0xf0]  ;;  %v8557_v38 = vld [vmem:[%s12667_s5 + $0x244] sm:$0xf] }
 0x1d8   :  { %v6897_v5 = vld [vmem:[%s12667_s5 + $0x250] sm:$0xf0]  ;;  %v8583_v60 = vld [vmem:[%s12667_s5 + $0x30c] sm:$0xf0] }
 0x1d9   :  { %3025 = vmatmul.bf16.vlgmr.msrb.gmra.mxu0 %v10127_v58  ;;  %3038 = vmatmul.bf16.vlgmr.msrb.gmra.mxu1 %v10131_v29  ;;  %v2832_v39 = vadd.f32 %v2831_v34, %v2819_v16  ;;  %v1314_v58 = vperm.slane %v10521_v46, 1  ;;  %v7103_v46 = vld [vmem:[%s12667_s5 + $0x3e0] sm:$0xf]  ;;  %v6928_v16 = vor.u32 %v8567_v15, %v6927_v14  ;;  %v6865_v14 = vld [vmem:[%s12667_s5 + $0x210] sm:$0xf0] }
 0x1da   :  { %3051 = vmatmul.bf16.vlgmr.msrb.gmra.mxu2 %v10129_v0  ;;  %3064 = vmatmul.bf16.vlgmr.msrb.gmra.mxu3 %v10139_v4  ;;  %v7104_v3 = vor.u32 %v8611_v51, %v7103_v46  ;;  %v7055_v34 = vld [vmem:[%s12667_s5 + $0x380] sm:$0xf]  ;;  %v7041_v51 = vld [vmem:[%s12667_s5 + $0x370] sm:$0xf0]  ;;  %v8581_v15 = vld [vmem:[%s12667_s5 + $0x304] sm:$0xf] }
 0x1db   :  { %3532 = vmatpush.bf16.msra.mxu0 %v6976_v35  ;;  %3558 = vmatpush.bf16.msra.mxu2 %v6980_v62  ;;  %v8593_v35 = vld [vmem:[%s12667_s5 + $0x364] sm:$0xf]  ;;  %v8591_v62 = vld [vmem:[%s12667_s5 + $0x34c] sm:$0xf0] }
 0x1dc   :  { %3545 = vmatpush.bf16.msra.mxu1 %v7104_v3  ;;  %3571 = vmatpush.bf16.msra.mxu3 %v7108_v6  ;;  %v7044_v53 = vor.u32 %v8593_v35, %v7041_v51  ;;  %v6900_v6 = vor.u32 %v8557_v38, %v6897_v5  ;;  %v6969_v35 = vld [vmem:[%s12667_s5 + $0x2d8] sm:$0xf0]  ;;  %v8572_v38 = vld [vmem:[%s12667_s5 + $0x2b4] sm:$0xf0]  ;;  %v7079_v5 = vld [vmem:[%s12667_s5 + $0x3a8] sm:$0xf] }
 0x1de   :  { %v2820_v23 = vpop.f32.mrf.mxu0  ;;  %v2833_v24 = vpop.f32.mrf.mxu1 }
 0x1df   :  { %v2844_v17 = vpop.f32.mrf.mxu2  ;;  %v2857_v22 = vpop.f32.mrf.mxu3  ;;  %3533 = vmatpush.bf16.msra.mxu0 %v6960_v8  ;;  %3559 = vmatpush.bf16.msra.mxu2 %v6964_v63  ;;  %v8597_v24 = vld [vmem:[%s12667_s5 + $0x384] sm:$0xf]  ;;  %v6879_v8 = vld [vmem:[%s12667_s5 + $0x220] sm:$0xf] }
 0x1e0   :  { %v2845_v30 = vadd.f32 %v2844_v17, %v2832_v39  ;;  %3546 = vmatpush.bf16.msra.mxu1 %v7088_v9  ;;  %3572 = vmatpush.bf16.msra.mxu3 %v7092_v52  ;;  %v8599_v39 = vld [vmem:[%s12667_s5 + $0x38c] sm:$0xf0]  ;;  %v8565_v17 = vld [vmem:[%s12667_s5 + $0x284] sm:$0xf] }
 0x1e1   :  { %v8555_v9 = vld [vmem:[%s12667_s5 + $0x22c] sm:$0xf0]  ;;  %v8553_v63 = vld [vmem:[%s12667_s5 + $0x224] sm:$0xf] }
 0x1e2   :  { %v10881_v25 = vadd.f32 %v2857_v22, %v2845_v30  ;;  %v6929_v22 = vld [vmem:[%s12667_s5 + $0x290] sm:$0xf0]  ;;  %v7056_v30 = vor.u32 %v8599_v39, %v7055_v34  ;;  %v6880_v21 = vor.u32 %v8555_v9, %v6879_v8  ;;  %v6884_v10 = vor.u32 %v8553_v63, %v6881_v55  ;;  %v8602_v9 = vld [vmem:[%s12667_s5 + $0x3ac] sm:$0xf]  ;;  %v6935_v55 = vld [vmem:[%s12667_s5 + $0x288] sm:$0xf] }
 0x1e3   :  { %3534 = vmatpush.bf16.msra.mxu0 %v6944_v1  ;;  %3560 = vmatpush.bf16.msra.mxu2 %v6948_v40  ;;  %v6932_v23 = vor.u32 %v8565_v17, %v6929_v22  ;;  %v8585_v1 = vld [vmem:[%s12667_s5 + $0x324] sm:$0xf]  ;;  %v6991_v40 = vld [vmem:[%s12667_s5 + $0x300] sm:$0xf]  ;;  %v6993_v39 = vld [vmem:[%s12667_s5 + $0x310] sm:$0xf0]  ;;  %v6956_v8 = vor.u32 %v8570_v50, %v6953_v19  ;;  %v7084_v63 = vor.u32 %v8602_v9, %v7081_v44 }
 0x1e4   :  { %3547 = vmatpush.bf16.msra.mxu1 %v7072_v49  ;;  %3573 = vmatpush.bf16.msra.mxu3 %v7076_v13  ;;  %v7012_v36 = vor.u32 %v8585_v1, %v7009_v2  ;;  %v8551_v49 = vld [vmem:[%s12667_s5 + $0x20c] sm:$0xf0]  ;;  %v8549_v13 = vld [vmem:[%s12667_s5 + $0x204] sm:$0xf]  ;;  %v6992_v34 = vor.u32 %v8583_v60, %v6991_v40  ;;  %v6983_v17 = vld [vmem:[%s12667_s5 + $0x2e8] sm:$0xf] }
 0x1e5   :  { %v6864_v12 = vor.u32 %v8551_v49, %v6863_v45  ;;  %v8580_v22 = vld [vmem:[%s12667_s5 + $0x2f4] sm:$0xf0]  ;;  %v8566_v1 = vld [vmem:[%s12667_s5 + $0x28c] sm:$0xf]  ;;  %v6937_v2 = vld [vmem:[%s12667_s5 + $0x298] sm:$0xf0] }
 0x1e6   :  { %v8598_v49 = vld [vmem:[%s12667_s5 + $0x38c] sm:$0xf]  ;;  %v7065_v40 = vld [vmem:[%s12667_s5 + $0x398] sm:$0xf0]  ;;  %v6871_v44 = vld [vmem:[%s12667_s5 + $0x208] sm:$0xf] }
 0x1e7   :  { %v2846_v26 = vpop.f32.mrf.mxu2  ;;  %v2859_v28 = vpop.f32.mrf.mxu3  ;;  %3535 = vmatpush.bf16.msra.mxu0 %v6928_v16  ;;  %3561 = vmatpush.bf16.msra.mxu2 %v6932_v23  ;;  %v6868_v16 = vor.u32 %v8549_v13, %v6865_v14  ;;  %v6984_v23 = vor.u32 %v8580_v22, %v6983_v17  ;;  %v7068_v60 = vor.u32 %v8598_v49, %v7065_v40  ;;  %v8564_v13 = vld [vmem:[%s12667_s5 + $0x274] sm:$0xf0]  ;;  %v7047_v14 = vld [vmem:[%s12667_s5 + $0x368] sm:$0xf]  ;;  %v8586_v19 = vld [vmem:[%s12667_s5 + $0x32c] sm:$0xf] }
 0x1e8   :  { %v7057_v26 = vld [vmem:[%s12667_s5 + $0x390] sm:$0xf0]  ;;  %3548 = vmatpush.bf16.msra.mxu1 %v7056_v30  ;;  %v6996_v30 = vor.u32 %v8581_v15, %v6993_v39  ;;  %v6921_v39 = vld [vmem:[%s12667_s5 + $0x278] sm:$0xf0] }
 0x1e9   :  { %v7060_v28 = vor.u32 %v8597_v24, %v7057_v26  ;;  %v7111_v24 = vld [vmem:[%s12667_s5 + $0x3e8] sm:$0xf]  ;;  %v8612_v26 = vld [vmem:[%s12667_s5 + $0x3f4] sm:$0xf0] }
 0x1eb   :  { %3574 = vmatpush.bf16.msra.mxu3 %v7060_v28  ;;  %v8578_v28 = vld [vmem:[%s12667_s5 + $0x2ec] sm:$0xf] }
 0x1ef   :  { %3575 = vmatpush.bf16.msra.mxu3 %v7044_v53  ;;  %v8606_v53 = vld [vmem:[%s12667_s5 + $0x3cc] sm:$0xf] }
 0x1f3   :  { %3576 = vmatpush.bf16.msra.mxu3 %v7028_v7 }
 0x1f6   :  { %v2870_v29 = vpop.f32.mrf.mxu0  ;;  %v2883_v37 = vpop.f32.mrf.mxu1 }
 0x1f7   :  { %v2871_v0 = vadd.f32 %v2870_v29, %v1314_v58  ;;  %v6911_v58 = vld [vmem:[%s12667_s5 + $0x260] sm:$0xf]  ;;  %v8563_v29 = vld [vmem:[%s12667_s5 + $0x26c] sm:$0xf0]  ;;  %3577 = vmatpush.bf16.msra.mxu3 %v7012_v36  ;;  %v6940_v36 = vor.u32 %v8566_v1, %v6937_v2 }
 0x1f9   :  { %v2884_v43 = vadd.f32 %v2883_v37, %v2871_v0  ;;  %v7039_v37 = vld [vmem:[%s12667_s5 + $0x360] sm:$0xf] }
 0x1fb   :  { %3578 = vmatpush.bf16.msra.mxu3 %v6996_v30 }
 0x1fe   :  { %v2872_v41 = vpop.f32.mrf.mxu0  ;;  %v2885_v47 = vpop.f32.mrf.mxu1 }
 0x1ff   :  { %v2896_v4 = vpop.f32.mrf.mxu2  ;;  %v2909_v18 = vpop.f32.mrf.mxu3  ;;  %v6913_v41 = vld [vmem:[%s12667_s5 + $0x270] sm:$0xf0] }
 0x200   :  { %v2897_v32 = vadd.f32 %v2896_v4, %v2884_v43  ;;  %v6912_v4 = vor.u32 %v8563_v29, %v6911_v58  ;;  %v7112_v58 = vor.u32 %v8612_v26, %v7111_v24  ;;  %v6985_v29 = vld [vmem:[%s12667_s5 + $0x2f8] sm:$0xf0]  ;;  %v8594_v26 = vld [vmem:[%s12667_s5 + $0x36c] sm:$0xf] }
 0x202   :  { %v10884_v20 = vadd.f32 %v2909_v18, %v2897_v32  ;;  %v8595_v18 = vld [vmem:[%s12667_s5 + $0x36c] sm:$0xf0]  ;;  %v8561_v32 = vld [vmem:[%s12667_s5 + $0x264] sm:$0xf]  ;;  %3536 = vmatpush.bf16.msra.mxu0 %v6912_v4  ;;  %v7113_v4 = vld [vmem:[%s12667_s5 + $0x3f8] sm:$0xf0] }
 0x203   :  { %v7040_v59 = vor.u32 %v8595_v18, %v7039_v37  ;;  %v6916_v46 = vor.u32 %v8561_v32, %v6913_v41  ;;  %v8610_v37 = vld [vmem:[%s12667_s5 + $0x3ec] sm:$0xf]  ;;  %v6988_v18 = vor.u32 %v8578_v28, %v6985_v29  ;;  %v6967_v41 = vld [vmem:[%s12667_s5 + $0x2c8] sm:$0xf]  ;;  %v7049_v28 = vld [vmem:[%s12667_s5 + $0x378] sm:$0xf0] }
 0x204   :  { %v7116_v32 = vor.u32 %v8610_v37, %v7113_v4  ;;  %v7052_v37 = vor.u32 %v8594_v26, %v7049_v28  ;;  %v7031_v4 = vld [vmem:[%s12667_s5 + $0x348] sm:$0xf] }
 0x205   :  { %3549 = vmatpush.bf16.msra.mxu1 %v7040_v59  ;;  %3562 = vmatpush.bf16.msra.mxu2 %v6916_v46  ;;  %v8608_v59 = vld [vmem:[%s12667_s5 + $0x3d4] sm:$0xf0]  ;;  %v8574_v46 = vld [vmem:[%s12667_s5 + $0x2cc] sm:$0xf] }
 0x206   :  { %3623 = vmatpush.bf16.msrb.mxu3 %v7116_v32  ;;  %v8592_v32 = vld [vmem:[%s12667_s5 + $0x354] sm:$0xf0] }
 0x207   :  { %v2898_v57 = vpop.f32.mrf.mxu2  ;;  %v2911_v61 = vpop.f32.mrf.mxu3 }
 0x208   :  { %v8559_v57 = vld [vmem:[%s12667_s5 + $0x24c] sm:$0xf0]  ;;  %v7023_v61 = vld [vmem:[%s12667_s5 + $0x340] sm:$0xf] }
 0x209   :  { %v6896_v3 = vor.u32 %v8559_v57, %v6895_v56  ;;  %v7024_v33 = vor.u32 %v8591_v62, %v7023_v61  ;;  %3563 = vmatpush.bf16.msra.mxu2 %v6900_v6  ;;  %v7097_v56 = vld [vmem:[%s12667_s5 + $0x3d8] sm:$0xf0]  ;;  %v6972_v61 = vor.u32 %v8574_v46, %v6969_v35  ;;  %v6951_v62 = vld [vmem:[%s12667_s5 + $0x2a8] sm:$0xf]  ;;  %v8604_v6 = vld [vmem:[%s12667_s5 + $0x3b4] sm:$0xf0] }
 0x20a   :  { %v7080_v7 = vor.u32 %v8604_v6, %v7079_v5  ;;  %v8590_v35 = vld [vmem:[%s12667_s5 + $0x34c] sm:$0xf] }
 0x20b   :  { %3537 = vmatpush.bf16.msra.mxu0 %v6896_v3  ;;  %3550 = vmatpush.bf16.msra.mxu1 %v7024_v33  ;;  %v7100_v3 = vor.u32 %v8606_v53, %v7097_v56  ;;  %v6952_v33 = vor.u32 %v8572_v38, %v6951_v62  ;;  %v8554_v62 = vld [vmem:[%s12667_s5 + $0x22c] sm:$0xf]  ;;  %v6889_v38 = vld [vmem:[%s12667_s5 + $0x238] sm:$0xf0] }
 0x20c   :  { %v6892_v50 = vor.u32 %v8554_v62, %v6889_v38  ;;  %v8543_v62 = vld [vmem:[%s12667_s5 + $0x1cc] sm:$0xf0]  ;;  %v8509_v38 = vld [vmem:[%s12667_s5 + $0xc4] sm:$0xf] }
 0x20d   :  { %3564 = vmatpush.bf16.msra.mxu2 %v6884_v10  ;;  %3624 = vmatpush.bf16.msrb.mxu3 %v7100_v3  ;;  %v8600_v10 = vld [vmem:[%s12667_s5 + $0x394] sm:$0xf0] }
 0x20f   :  { %3538 = vmatpush.bf16.msra.mxu0 %v6880_v21  ;;  %3551 = vmatpush.bf16.msra.mxu1 %v7008_v42 }
 0x211   :  { %3565 = vmatpush.bf16.msra.mxu2 %v6868_v16  ;;  %3625 = vmatpush.bf16.msrb.mxu3 %v7084_v63  ;;  %v8562_v16 = vld [vmem:[%s12667_s5 + $0x26c] sm:$0xf]  ;;  %v8552_v63 = vld [vmem:[%s12667_s5 + $0x214] sm:$0xf0] }
 0x212   :  { %v6924_v24 = vor.u32 %v8562_v16, %v6921_v39 }
 0x213   :  { %3539 = vmatpush.bf16.msra.mxu0 %v6864_v12  ;;  %3552 = vmatpush.bf16.msra.mxu1 %v6992_v34  ;;  %v6919_v12 = vld [vmem:[%s12667_s5 + $0x268] sm:$0xf]  ;;  %v8596_v34 = vld [vmem:[%s12667_s5 + $0x374] sm:$0xf0] }
 0x214   :  { %v6920_v15 = vor.u32 %v8564_v13, %v6919_v12 }
 0x215   :  { %3610 = vmatpush.bf16.msrb.mxu2 %v6988_v18  ;;  %3626 = vmatpush.bf16.msrb.mxu3 %v7068_v60 }
 0x216   :  { %v10952_v11 = vpop.f32.mrf.mxu0  ;;  %v10954_v48 = vpop.f32.mrf.mxu1 }
 0x217   :  { %3584 = vmatpush.bf16.msrb.mxu0 %v6984_v23  ;;  %3597 = vmatpush.bf16.msrb.mxu1 %v7112_v58  ;;  %v2923_v17 = vadd.f32 %v10952_v11, %v10884_v20  ;;  %v7048_v23 = vor.u32 %v8596_v34, %v7047_v14  ;;  %v6903_v20 = vld [vmem:[%s12667_s5 + $0x248] sm:$0xf]  ;;  %v8560_v11 = vld [vmem:[%s12667_s5 + $0x254] sm:$0xf0] }
 0x218   :  { %v6904_v18 = vor.u32 %v8560_v11, %v6903_v20  ;;  %v7231_v11 = vld [vmem:[%s12667_s5 + $0xe0] sm:$0xf] }
 0x219   :  { %3611 = vmatpush.bf16.msrb.mxu2 %v6972_v61  ;;  %3627 = vmatpush.bf16.msrb.mxu3 %v7052_v37  ;;  %v7015_v61 = vld [vmem:[%s12667_s5 + $0x328] sm:$0xf] }
 0x21d   :  { %3612 = vmatpush.bf16.msrb.mxu2 %v6956_v8 }
 0x21e   :  { %v2924_v47 = vpop.f32.mrf.mxu0  ;;  %v2937_v54 = vpop.f32.mrf.mxu1 }
 0x21f   :  { %v10995_v0 = vpop.f32.mrf.mxu2  ;;  %v10997_v43 = vpop.f32.mrf.mxu3  ;;  %v8576_v47 = vld [vmem:[%s12667_s5 + $0x2d4] sm:$0xf0]  ;;  %v7095_v54 = vld [vmem:[%s12667_s5 + $0x3c8] sm:$0xf] }
 0x220   :  { %v6968_v51 = vor.u32 %v8576_v47, %v6967_v41  ;;  %v7096_v57 = vor.u32 %v8608_v59, %v7095_v54  ;;  %v8558_v41 = vld [vmem:[%s12667_s5 + $0x24c] sm:$0xf]  ;;  %v6905_v47 = vld [vmem:[%s12667_s5 + $0x258] sm:$0xf0]  ;;  %v2936_v54 = vadd.f32 %v10954_v48, %v2923_v17  ;;  %v7032_v59 = vor.u32 %v8592_v32, %v7031_v4  ;;  %v8556_v48 = vld [vmem:[%s12667_s5 + $0x234] sm:$0xf0] }
 0x221   :  { %3613 = vmatpush.bf16.msrb.mxu2 %v6940_v36  ;;  %v6908_v46 = vor.u32 %v8558_v41, %v6905_v47  ;;  %v7001_v36 = vld [vmem:[%s12667_s5 + $0x318] sm:$0xf0]  ;;  %v8515_v4 = vld [vmem:[%s12667_s5 + $0xec] sm:$0xf0]  ;;  %v8513_v32 = vld [vmem:[%s12667_s5 + $0xe4] sm:$0xf] }
 0x222   :  { %3585 = vmatpush.bf16.msrb.mxu0 %v6968_v51  ;;  %3598 = vmatpush.bf16.msrb.mxu1 %v7096_v57  ;;  %v7033_v51 = vld [vmem:[%s12667_s5 + $0x358] sm:$0xf0]  ;;  %v2949_v56 = vadd.f32 %v10995_v0, %v2936_v54  ;;  %v6887_v57 = vld [vmem:[%s12667_s5 + $0x228] sm:$0xf]  ;;  %v8588_v0 = vld [vmem:[%s12667_s5 + $0x334] sm:$0xf0] }
 0x223   :  { %v7036_v53 = vor.u32 %v8590_v35, %v7033_v51  ;;  %v6888_v3 = vor.u32 %v8556_v48, %v6887_v57  ;;  %v7016_v6 = vor.u32 %v8588_v0, %v7015_v61  ;;  %v7233_v54 = vld [vmem:[%s12667_s5 + $0xf0] sm:$0xf0]  ;;  %v7215_v57 = vld [vmem:[%s12667_s5 + $0xc0] sm:$0xf]  ;;  %v8511_v48 = vld [vmem:[%s12667_s5 + $0xcc] sm:$0xf0] }
 0x224   :  { %v2962_v9 = vadd.f32 %v10997_v43, %v2949_v56  ;;  %v8584_v43 = vld [vmem:[%s12667_s5 + $0x314] sm:$0xf0]  ;;  %v7236_v61 = vor.u32 %v8513_v32, %v7233_v54  ;;  %v7343_v0 = vld [vmem:[%s12667_s5 + $0x1c0] sm:$0xf]  ;;  %v8493_v32 = vld [vmem:[%s12667_s5 + $0x44] sm:$0xf] }
 0x225   :  { %3614 = vmatpush.bf16.msrb.mxu2 %v6924_v24  ;;  %3628 = vmatpush.bf16.msrb.mxu3 %v7036_v53  ;;  %v3069_v24 = vmul.f32 0.2, %v10881_v25  ;;  %v7232_v53 = vor.u32 %v8515_v4, %v7231_v11  ;;  %v7153_v54 = vld [vmem:[%s12667_s5 + $0x50] sm:$0xf0] }
 0x226   :  { %3586 = vmatpush.bf16.msrb.mxu0 %v6952_v33  ;;  %3599 = vmatpush.bf16.msrb.mxu1 %v7080_v7  ;;  %v7017_v7 = vld [vmem:[%s12667_s5 + $0x338] sm:$0xf0] }
 0x227   :  { %v2950_v52 = vpop.f32.mrf.mxu2  ;;  %v2963_v27 = vpop.f32.mrf.mxu3  ;;  %v7020_v8 = vor.u32 %v8586_v19, %v7017_v7  ;;  %v7344_v19 = vor.u32 %v8543_v62, %v7343_v0  ;;  %v7199_v7 = vld [vmem:[%s12667_s5 + $0xa0] sm:$0xf]  ;;  %v8489_v0 = vld [vmem:[%s12667_s5 + $0x24] sm:$0xf]  ;;  %v7137_v62 = vld [vmem:[%s12667_s5 + $0x30] sm:$0xf0] }
 0x228   :  { %v8568_v52 = vld [vmem:[%s12667_s5 + $0x294] sm:$0xf0]  ;;  %v7063_v27 = vld [vmem:[%s12667_s5 + $0x388] sm:$0xf] }
 0x229   :  { %v6936_v42 = vor.u32 %v8568_v52, %v6935_v55  ;;  %v7064_v45 = vor.u32 %v8600_v10, %v7063_v27  ;;  %3615 = vmatpush.bf16.msrb.mxu2 %v6908_v46  ;;  %v6999_v55 = vld [vmem:[%s12667_s5 + $0x308] sm:$0xf]  ;;  %v6872_v52 = vor.u32 %v8552_v63, %v6871_v44  ;;  %v8550_v27 = vld [vmem:[%s12667_s5 + $0x20c] sm:$0xf]  ;;  %3629 = vmatpush.bf16.msrb.mxu3 %v7020_v8  ;;  %v7361_v46 = vld [vmem:[%s12667_s5 + $0x1f0] sm:$0xf0] }
 0x22a   :  { %v7000_v1 = vor.u32 %v8584_v43, %v6999_v55  ;;  %v8507_v8 = vld [vmem:[%s12667_s5 + $0xac] sm:$0xf0]  ;;  %v7327_v63 = vld [vmem:[%s12667_s5 + $0x1a0] sm:$0xf]  ;;  %v7201_v43 = vld [vmem:[%s12667_s5 + $0xb0] sm:$0xf0] }
 0x22b   :  { %3587 = vmatpush.bf16.msrb.mxu0 %v6936_v42  ;;  %3600 = vmatpush.bf16.msrb.mxu1 %v7064_v45  ;;  %v6873_v42 = vld [vmem:[%s12667_s5 + $0x218] sm:$0xf0]  ;;  %v8582_v45 = vld [vmem:[%s12667_s5 + $0x30c] sm:$0xf]  ;;  %v8539_v55 = vld [vmem:[%s12667_s5 + $0x1ac] sm:$0xf0] }
 0x22c   :  { %v6876_v2 = vor.u32 %v8550_v27, %v6873_v42  ;;  %v7004_v49 = vor.u32 %v8582_v45, %v7001_v36  ;;  %v8537_v27 = vld [vmem:[%s12667_s5 + $0x1a4] sm:$0xf]  ;;  %v7329_v42 = vld [vmem:[%s12667_s5 + $0x1b0] sm:$0xf0]  ;;  %v8503_v45 = vld [vmem:[%s12667_s5 + $0x8c] sm:$0xf0] }
 0x22d   :  { %3616 = vmatpush.bf16.msrb.mxu2 %v6892_v50  ;;  %v7216_v50 = vor.u32 %v8511_v48, %v7215_v57  ;;  %v7135_v57 = vld [vmem:[%s12667_s5 + $0x20] sm:$0xf]  ;;  %v8491_v48 = vld [vmem:[%s12667_s5 + $0x2c] sm:$0xf0] }
 0x22e   :  { %3630 = vmatpush.bf16.msrb.mxu3 %v7004_v49  ;;  %v7332_v49 = vor.u32 %v8537_v27, %v7329_v42  ;;  %v7239_v27 = vld [vmem:[%s12667_s5 + $0xe8] sm:$0xf]  ;;  %v8516_v42 = vld [vmem:[%s12667_s5 + $0xf4] sm:$0xf0] }
 0x22f   :  { %3588 = vmatpush.bf16.msrb.mxu0 %v6920_v15  ;;  %3601 = vmatpush.bf16.msrb.mxu1 %v7048_v23 }
 0x231   :  { %3617 = vmatpush.bf16.msrb.mxu2 %v6876_v2  ;;  %v7183_v2 = vld [vmem:[%s12667_s5 + $0x80] sm:$0xf] }
 0x233   :  { %3589 = vmatpush.bf16.msrb.mxu0 %v6904_v18  ;;  %3602 = vmatpush.bf16.msrb.mxu1 %v7032_v59  ;;  %v7359_v18 = vld [vmem:[%s12667_s5 + $0x1e0] sm:$0xf]  ;;  %v8545_v59 = vld [vmem:[%s12667_s5 + $0x1e4] sm:$0xf] }
 0x236   :  { %v11158_v21 = vpop.f32.mrf.mxu0  ;;  %v11160_v31 = vpop.f32.mrf.mxu1 }
 0x237   :  { %3590 = vmatpush.bf16.msrb.mxu0 %v6888_v3  ;;  %3603 = vmatpush.bf16.msrb.mxu1 %v7016_v6  ;;  %v2975_v10 = vadd.f32 %v11158_v21, %v2962_v9  ;;  %v7364_v3 = vor.u32 %v8545_v59, %v7361_v46  ;;  %v7345_v6 = vld [vmem:[%s12667_s5 + $0x1d0] sm:$0xf0]  ;;  %v8525_v59 = vld [vmem:[%s12667_s5 + $0x144] sm:$0xf] }
 0x238   :  { %v7281_v46 = vld [vmem:[%s12667_s5 + $0x150] sm:$0xf0] }
 0x239   :  { %v2988_v40 = vadd.f32 %v11160_v31, %v2975_v10  ;;  %v3071_v31 = vmax.f32 %v10881_v25, %v3069_v24  ;;  %v8547_v25 = vld [vmem:[%s12667_s5 + $0x1ec] sm:$0xf0]  ;;  %v7200_v10 = vor.u32 %v8507_v8, %v7199_v7  ;;  %v7295_v24 = vld [vmem:[%s12667_s5 + $0x160] sm:$0xf] }
 0x23a   :  { %v7360_v56 = vor.u32 %v8547_v25, %v7359_v18  ;;  %v7279_v18 = vld [vmem:[%s12667_s5 + $0x140] sm:$0xf]  ;;  %v8527_v25 = vld [vmem:[%s12667_s5 + $0x14c] sm:$0xf0] }
 0x23b   :  { %3591 = vmatpush.bf16.msrb.mxu0 %v6872_v52  ;;  %3604 = vmatpush.bf16.msrb.mxu1 %v7000_v1  ;;  %v8505_v52 = vld [vmem:[%s12667_s5 + $0xa4] sm:$0xf]  ;;  %v7328_v1 = vor.u32 %v8539_v55, %v7327_v63  ;;  %v7247_v7 = vld [vmem:[%s12667_s5 + $0x100] sm:$0xf]  ;;  %v8519_v8 = vld [vmem:[%s12667_s5 + $0x10c] sm:$0xf0] }
 0x23c   :  { %v7204_v36 = vor.u32 %v8505_v52, %v7201_v43  ;;  %v8485_v63 = vld [vmem:[%s12667_s5 + $0x4] sm:$0xf]  ;;  %v7121_v55 = vld [vmem:[%s12667_s5 + $0x10] sm:$0xf0] }
 0x23d   :  { %v8517_v52 = vld [vmem:[%s12667_s5 + $0x104] sm:$0xf]  ;;  %v7249_v43 = vld [vmem:[%s12667_s5 + $0x110] sm:$0xf0] }
 0x23e   :  { %v2976_v58 = vpop.f32.mrf.mxu0  ;;  %v2989_v29 = vpop.f32.mrf.mxu1 }
 0x23f   :  { %v11206_v22 = vpop.f32.mrf.mxu2  ;;  %v11208_v30 = vpop.f32.mrf.mxu3 }
 0x240   :  { %v3001_v21 = vadd.f32 %v11206_v22, %v2988_v40  ;;  %v7311_v40 = vld [vmem:[%s12667_s5 + $0x180] sm:$0xf] }
 0x242   :  { %v3014_v60 = vadd.f32 %v11208_v30, %v3001_v21  ;;  %v8535_v21 = vld [vmem:[%s12667_s5 + $0x18c] sm:$0xf0] }
 0x247   :  { %v3002_v5 = vpop.f32.mrf.mxu2  ;;  %v3015_v33 = vpop.f32.mrf.mxu3 }
 0x248   :  { %v7217_v5 = vld [vmem:[%s12667_s5 + $0xd0] sm:$0xf0]  ;;  %v8541_v33 = vld [vmem:[%s12667_s5 + $0x1c4] sm:$0xf] }
 0x249   :  { %v7220_v9 = vor.u32 %v8509_v38, %v7217_v5  ;;  %v7348_v44 = vor.u32 %v8541_v33, %v7345_v6  ;;  %v8521_v38 = vld [vmem:[%s12667_s5 + $0x124] sm:$0xf]  ;;  %v7265_v5 = vld [vmem:[%s12667_s5 + $0x130] sm:$0xf0]  ;;  %v7119_v33 = vld [vmem:[%s12667_s5] sm:$0xf]  ;;  %v7136_v6 = vor.u32 %v8491_v48, %v7135_v57 }
 0x256   :  { %v3026_v12 = vpop.f32.mrf.mxu0  ;;  %v3039_v13 = vpop.f32.mrf.mxu1 }
 0x257   :  { %v3027_v14 = vadd.f32 %v3026_v12, %v3014_v60  ;;  %v8501_v60 = vld [vmem:[%s12667_s5 + $0x84] sm:$0xf]  ;;  %v7185_v12 = vld [vmem:[%s12667_s5 + $0x90] sm:$0xf0] }
 0x259   :  { %v3040_v15 = vadd.f32 %v3039_v13, %v3027_v14  ;;  %v8533_v13 = vld [vmem:[%s12667_s5 + $0x184] sm:$0xf]  ;;  %v7313_v14 = vld [vmem:[%s12667_s5 + $0x190] sm:$0xf0] }
 0x25d   :  { %v3052_v34 = vpop.f32.mrf.mxu2  ;;  %v3065_v16 = vpop.f32.mrf.mxu3 }
 0x25e   :  { %v3053_v39 = vadd.f32 %v3052_v34, %v3040_v15  ;;  %v3028_v17 = vpop.f32.mrf.mxu0  ;;  %v3041_v23 = vpop.f32.mrf.mxu1  ;;  %v7184_v15 = vor.u32 %v8503_v45, %v7183_v2  ;;  %v7312_v34 = vor.u32 %v8535_v21, %v7311_v40  ;;  %v8514_v2 = vld [vmem:[%s12667_s5 + $0xec] sm:$0xf]  ;;  %v7369_v21 = vld [vmem:[%s12667_s5 + $0x1f8] sm:$0xf0] }
 0x25f   :  { %v7188_v17 = vor.u32 %v8501_v60, %v7185_v12  ;;  %v7316_v23 = vor.u32 %v8533_v13, %v7313_v14  ;;  %v8546_v40 = vld [vmem:[%s12667_s5 + $0x1ec] sm:$0xf]  ;;  %v7124_v60 = vor.u32 %v8485_v63, %v7121_v55  ;;  %v7252_v12 = vor.u32 %v8517_v52, %v7249_v43  ;;  %v7305_v55 = vld [vmem:[%s12667_s5 + $0x178] sm:$0xf0] }
 0x260   :  { %v3066_v26 = vadd.f32 %v3065_v16, %v3053_v39  ;;  %v7167_v16 = vld [vmem:[%s12667_s5 + $0x60] sm:$0xf]  ;;  %v8499_v39 = vld [vmem:[%s12667_s5 + $0x6c] sm:$0xf0]  ;;  %v7240_v13 = vor.u32 %v8516_v42, %v7239_v27  ;;  %v8530_v63 = vld [vmem:[%s12667_s5 + $0x16c] sm:$0xf] }
 0x261   :  { %v7159_v27 = vld [vmem:[%s12667_s5 + $0x48] sm:$0xf]  ;;  %v8496_v42 = vld [vmem:[%s12667_s5 + $0x54] sm:$0xf0] }
 0x262   :  { %v3070_v28 = vmul.f32 0.2, %v3066_v26 }
 0x264   :  { %v3072_v58 = vmax.f32 %v3066_v26, %v3070_v28  ;;  %v8531_v26 = vld [vmem:[%s12667_s5 + $0x16c] sm:$0xf0]  ;;  %v8497_v28 = vld [vmem:[%s12667_s5 + $0x64] sm:$0xf] }
 0x265   :  { %v3054_v29 = vpop.f32.mrf.mxu2  ;;  %v3067_v22 = vpop.f32.mrf.mxu3 }
 0x266   :  { %v3073_v37 = vpack.c.bf16 %v3072_v58, %v3071_v31  ;;  %v7169_v31 = vld [vmem:[%s12667_s5 + $0x70] sm:$0xf0]  ;;  %v8529_v58 = vld [vmem:[%s12667_s5 + $0x164] sm:$0xf]  ;;  %v7168_v22 = vor.u32 %v8499_v39, %v7167_v16  ;;  %v7372_v39 = vor.u32 %v8546_v40, %v7369_v21  ;;  %v8526_v40 = vld [vmem:[%s12667_s5 + $0x14c] sm:$0xf] }
 0x267   :  { %v7297_v29 = vld [vmem:[%s12667_s5 + $0x170] sm:$0xf0]  ;;  %v7172_v11 = vor.u32 %v8497_v28, %v7169_v31  ;;  %v8542_v28 = vld [vmem:[%s12667_s5 + $0x1cc] sm:$0xf]  ;;  %v7353_v31 = vld [vmem:[%s12667_s5 + $0x1d8] sm:$0xf0] }
 0x268   :  { %v3204_v30 = vunpack.c.l.b16 %v3073_v37  ;;  %v3205_v20 = vunpack.c.h.b16 %v3073_v37  ;;  %v7296_v37 = vor.u32 %v8531_v26, %v7295_v24  ;;  %v7300_v4 = vor.u32 %v8529_v58, %v7297_v29  ;;  %v8510_v24 = vld [vmem:[%s12667_s5 + $0xcc] sm:$0xf]  ;;  %v7225_v26 = vld [vmem:[%s12667_s5 + $0xd8] sm:$0xf0] }
 0x269   :  { %v7289_v21 = vld [vmem:[%s12667_s5 + $0x158] sm:$0xf0] }
 0x26a   :  { %v11312_v41 = vpack.c.b16 %v3204_v30, %v3204_v30  ;;  %v11314_v47 = vpack.c.b16 %v3205_v20, %v3205_v20  ;;  %v7151_v30 = vld [vmem:[%s12667_s5 + $0x40] sm:$0xf]  ;;  %v8495_v20 = vld [vmem:[%s12667_s5 + $0x4c] sm:$0xf0] }
 0x26c   :  { %v11326_v35 = vrot.slane %v11312_v41, 1  ;;  %v11329_v51 = vrot.slane %v11314_v47, 1 }
 0x26e   :  { %3540 = vmatmul.bf16.vlgmr.msra.gmra.mxu0 %v11326_v35  ;;  %3553 = vmatmul.bf16.vlgmr.msra.gmra.mxu1 %v11329_v51 }
 0x26f   :  { %3566 = vmatmul.bf16.vlgmr.msra.gmra.mxu2 %v11326_v35  ;;  %3579 = vmatmul.bf16.vlgmr.msra.gmra.mxu3 %v11329_v51 }
 0x270   :  { %3958 = vmatpush.bf16.msra.mxu0 %v7232_v53  ;;  %3971 = vmatpush.bf16.msra.mxu1 %v7360_v56  ;;  %v7152_v53 = vor.u32 %v8495_v20, %v7151_v30  ;;  %v7280_v56 = vor.u32 %v8527_v25, %v7279_v18  ;;  %v7228_v30 = vor.u32 %v8510_v24, %v7225_v26  ;;  %v8506_v18 = vld [vmem:[%s12667_s5 + $0xac] sm:$0xf]  ;;  %v7209_v25 = vld [vmem:[%s12667_s5 + $0xb8] sm:$0xf0] }
 0x271   :  { %3984 = vmatpush.bf16.msra.mxu2 %v7236_v61  ;;  %3997 = vmatpush.bf16.msra.mxu3 %v7364_v3  ;;  %v7156_v61 = vor.u32 %v8493_v32, %v7153_v54  ;;  %v7284_v3 = vor.u32 %v8525_v59, %v7281_v46  ;;  %v7356_v20 = vor.u32 %v8542_v28, %v7353_v31  ;;  %v8538_v32 = vld [vmem:[%s12667_s5 + $0x1ac] sm:$0xf]  ;;  %v7337_v54 = vld [vmem:[%s12667_s5 + $0x1b8] sm:$0xf0]  ;;  %v7127_v28 = vld [vmem:[%s12667_s5 + $0x8] sm:$0xf] }
 0x272   :  { %v7212_v57 = vor.u32 %v8506_v18, %v7209_v25  ;;  %v7340_v48 = vor.u32 %v8538_v32, %v7337_v54  ;;  %v8522_v24 = vld [vmem:[%s12667_s5 + $0x12c] sm:$0xf]  ;;  %v7273_v26 = vld [vmem:[%s12667_s5 + $0x138] sm:$0xf0]  ;;  %v7551_v32 = vld [vmem:[%s12667_s5 + $0x4e0] sm:$0xf] }
 0x273   :  { %v8518_v18 = vld [vmem:[%s12667_s5 + $0x10c] sm:$0xf]  ;;  %v7257_v25 = vld [vmem:[%s12667_s5 + $0x118] sm:$0xf0]  ;;  %v8643_v54 = vld [vmem:[%s12667_s5 + $0x4ec] sm:$0xf0] }
 0x274   :  { %3959 = vmatpush.bf16.msra.mxu0 %v7216_v50  ;;  %3972 = vmatpush.bf16.msra.mxu1 %v7344_v19  ;;  %v8487_v19 = vld [vmem:[%s12667_s5 + $0xc] sm:$0xf0] }
 0x275   :  { %3985 = vmatpush.bf16.msra.mxu2 %v7220_v9  ;;  %3998 = vmatpush.bf16.msra.mxu3 %v7348_v44  ;;  %v7140_v9 = vor.u32 %v8489_v0, %v7137_v62  ;;  %v7268_v44 = vor.u32 %v8521_v38, %v7265_v5  ;;  %v7120_v45 = vor.u32 %v8487_v19, %v7119_v33  ;;  %v8534_v0 = vld [vmem:[%s12667_s5 + $0x18c] sm:$0xf]  ;;  %v7321_v62 = vld [vmem:[%s12667_s5 + $0x198] sm:$0xf0]  ;;  %v7175_v33 = vld [vmem:[%s12667_s5 + $0x68] sm:$0xf] }
 0x276   :  { %v7324_v19 = vor.u32 %v8534_v0, %v7321_v62  ;;  %v7552_v0 = vor.u32 %v8643_v54, %v7551_v32  ;;  %v7471_v32 = vld [vmem:[%s12667_s5 + $0x440] sm:$0xf]  ;;  %v8623_v54 = vld [vmem:[%s12667_s5 + $0x44c] sm:$0xf0] }
 0x278   :  { %3960 = vmatpush.bf16.msra.mxu0 %v7200_v10  ;;  %3973 = vmatpush.bf16.msra.mxu1 %v7328_v1  ;;  %v7367_v10 = vld [vmem:[%s12667_s5 + $0x1e8] sm:$0xf]  ;;  %v8548_v1 = vld [vmem:[%s12667_s5 + $0x1f4] sm:$0xf0] }
 0x279   :  { %3986 = vmatpush.bf16.msra.mxu2 %v7204_v36  ;;  %3999 = vmatpush.bf16.msra.mxu3 %v7332_v49  ;;  %v7248_v36 = vor.u32 %v8519_v8, %v7247_v7  ;;  %v7241_v49 = vld [vmem:[%s12667_s5 + $0xf8] sm:$0xf0]  ;;  %v7368_v14 = vor.u32 %v8548_v1, %v7367_v10  ;;  %v7303_v7 = vld [vmem:[%s12667_s5 + $0x168] sm:$0xf]  ;;  %v8532_v8 = vld [vmem:[%s12667_s5 + $0x174] sm:$0xf0]  ;;  %v7308_v1 = vor.u32 %v8530_v63, %v7305_v55 }
 0x27a   :  { %v7244_v16 = vor.u32 %v8514_v2, %v7241_v49  ;;  %v7304_v43 = vor.u32 %v8532_v8, %v7303_v7  ;;  %v7287_v2 = vld [vmem:[%s12667_s5 + $0x148] sm:$0xf]  ;;  %v7161_v49 = vld [vmem:[%s12667_s5 + $0x58] sm:$0xf0]  ;;  %v8637_v7 = vld [vmem:[%s12667_s5 + $0x4c4] sm:$0xf] }
 0x27b   :  { %v7537_v8 = vld [vmem:[%s12667_s5 + $0x4d0] sm:$0xf0] }
 0x27c   :  { %3961 = vmatpush.bf16.msra.mxu0 %v7184_v15  ;;  %3974 = vmatpush.bf16.msra.mxu1 %v7312_v34  ;;  %v7223_v15 = vld [vmem:[%s12667_s5 + $0xc8] sm:$0xf]  ;;  %v8512_v34 = vld [vmem:[%s12667_s5 + $0xd4] sm:$0xf0] }
 0x27d   :  { %3987 = vmatpush.bf16.msra.mxu2 %v7188_v17  ;;  %4000 = vmatpush.bf16.msra.mxu3 %v7316_v23  ;;  %v7351_v17 = vld [vmem:[%s12667_s5 + $0x1c8] sm:$0xf]  ;;  %v8544_v23 = vld [vmem:[%s12667_s5 + $0x1d4] sm:$0xf0]  ;;  %v7224_v58 = vor.u32 %v8512_v34, %v7223_v15  ;;  %v7292_v34 = vor.u32 %v8526_v40, %v7289_v21 }
 0x27e   :  { %3592 = vmatmul.bf16.vlgmr.msrb.gmra.mxu0 %v11326_v35  ;;  %3605 = vmatmul.bf16.vlgmr.msrb.gmra.mxu1 %v11329_v51  ;;  %v7352_v29 = vor.u32 %v8544_v23, %v7351_v17  ;;  %v8490_v17 = vld [vmem:[%s12667_s5 + $0x2c] sm:$0xf]  ;;  %v7145_v23 = vld [vmem:[%s12667_s5 + $0x38] sm:$0xf0] }
 0x27f   :  { %3618 = vmatmul.bf16.vlgmr.msrb.gmra.mxu2 %v11326_v35  ;;  %3631 = vmatmul.bf16.vlgmr.msrb.gmra.mxu3 %v11329_v51  ;;  %v7263_v35 = vld [vmem:[%s12667_s5 + $0x120] sm:$0xf]  ;;  %v8523_v51 = vld [vmem:[%s12667_s5 + $0x12c] sm:$0xf0] }
 0x280   :  { %3962 = vmatpush.bf16.msra.mxu0 %v7168_v22  ;;  %3975 = vmatpush.bf16.msra.mxu1 %v7296_v37  ;;  %v7264_v50 = vor.u32 %v8523_v51, %v7263_v35  ;;  %v7207_v22 = vld [vmem:[%s12667_s5 + $0xa8] sm:$0xf]  ;;  %v8508_v37 = vld [vmem:[%s12667_s5 + $0xb4] sm:$0xf0]  ;;  %v8502_v35 = vld [vmem:[%s12667_s5 + $0x8c] sm:$0xf] }
 0x281   :  { %3988 = vmatpush.bf16.msra.mxu2 %v7172_v11  ;;  %4001 = vmatpush.bf16.msra.mxu3 %v7300_v4  ;;  %v7335_v11 = vld [vmem:[%s12667_s5 + $0x1a8] sm:$0xf]  ;;  %v8540_v4 = vld [vmem:[%s12667_s5 + $0x1b4] sm:$0xf0]  ;;  %v7208_v59 = vor.u32 %v8508_v37, %v7207_v22  ;;  %v7193_v51 = vld [vmem:[%s12667_s5 + $0x98] sm:$0xf0] }
 0x282   :  { %v7336_v46 = vor.u32 %v8540_v4, %v7335_v11  ;;  %v7255_v22 = vld [vmem:[%s12667_s5 + $0x108] sm:$0xf]  ;;  %v8520_v37 = vld [vmem:[%s12667_s5 + $0x114] sm:$0xf0]  ;;  %v8486_v11 = vld [vmem:[%s12667_s5 + $0xc] sm:$0xf] }
 0x283   :  { %v7129_v4 = vld [vmem:[%s12667_s5 + $0x18] sm:$0xf0] }
 0x284   :  { %3963 = vmatpush.bf16.msra.mxu0 %v7152_v53  ;;  %3976 = vmatpush.bf16.msra.mxu1 %v7280_v56  ;;  %v7191_v53 = vld [vmem:[%s12667_s5 + $0x88] sm:$0xf]  ;;  %v8504_v56 = vld [vmem:[%s12667_s5 + $0x94] sm:$0xf0] }
 0x285   :  { %3989 = vmatpush.bf16.msra.mxu2 %v7156_v61  ;;  %4002 = vmatpush.bf16.msra.mxu3 %v7284_v3  ;;  %v7319_v61 = vld [vmem:[%s12667_s5 + $0x188] sm:$0xf]  ;;  %v8536_v3 = vld [vmem:[%s12667_s5 + $0x194] sm:$0xf0]  ;;  %v7192_v38 = vor.u32 %v8504_v56, %v7191_v53  ;;  %v8641_v53 = vld [vmem:[%s12667_s5 + $0x4e4] sm:$0xf] }
 0x286   :  { %v7320_v5 = vor.u32 %v8536_v3, %v7319_v61  ;;  %v8673_v61 = vld [vmem:[%s12667_s5 + $0x5e4] sm:$0xf]  ;;  %v7681_v3 = vld [vmem:[%s12667_s5 + $0x5f0] sm:$0xf0] }
 0x288   :  { %3964 = vmatpush.bf16.msra.mxu0 %v7136_v6  ;;  %3977 = vmatpush.bf16.msra.mxu1 %v7264_v50  ;;  %v8500_v6 = vld [vmem:[%s12667_s5 + $0x74] sm:$0xf0]  ;;  %v7196_v50 = vor.u32 %v8502_v35, %v7193_v51  ;;  %v7132_v35 = vor.u32 %v8486_v11, %v7129_v4  ;;  %v7260_v51 = vor.u32 %v8518_v18, %v7257_v25  ;;  %v8657_v11 = vld [vmem:[%s12667_s5 + $0x564] sm:$0xf]  ;;  %v7617_v4 = vld [vmem:[%s12667_s5 + $0x570] sm:$0xf0] }
 0x289   :  { %3990 = vmatpush.bf16.msra.mxu2 %v7140_v9  ;;  %4003 = vmatpush.bf16.msra.mxu3 %v7268_v44  ;;  %v8498_v9 = vld [vmem:[%s12667_s5 + $0x6c] sm:$0xf]  ;;  %v7177_v44 = vld [vmem:[%s12667_s5 + $0x78] sm:$0xf0]  ;;  %v7176_v52 = vor.u32 %v8500_v6, %v7175_v33  ;;  %v7684_v6 = vor.u32 %v8673_v61, %v7681_v3  ;;  %v8653_v61 = vld [vmem:[%s12667_s5 + $0x544] sm:$0xf] }
 0x28a   :  { %v7180_v10 = vor.u32 %v8498_v9, %v7177_v44  ;;  %v8669_v9 = vld [vmem:[%s12667_s5 + $0x5c4] sm:$0xf]  ;;  %v7665_v44 = vld [vmem:[%s12667_s5 + $0x5d0] sm:$0xf0] }
 0x28b   :  { %v7601_v3 = vld [vmem:[%s12667_s5 + $0x550] sm:$0xf0] }
 0x28c   :  { %3965 = vmatpush.bf16.msra.mxu0 %v7120_v45  ;;  %3978 = vmatpush.bf16.msra.mxu1 %v7248_v36  ;;  %v8528_v45 = vld [vmem:[%s12667_s5 + $0x154] sm:$0xf0]  ;;  %v8494_v36 = vld [vmem:[%s12667_s5 + $0x4c] sm:$0xf] }
 0x28d   :  { %3991 = vmatpush.bf16.msra.mxu2 %v7124_v60  ;;  %4004 = vmatpush.bf16.msra.mxu3 %v7252_v12  ;;  %v7160_v60 = vor.u32 %v8496_v42, %v7159_v27  ;;  %v7288_v12 = vor.u32 %v8528_v45, %v7287_v2  ;;  %v7164_v15 = vor.u32 %v8494_v36, %v7161_v49  ;;  %v8633_v2 = vld [vmem:[%s12667_s5 + $0x4a4] sm:$0xf]  ;;  %v7521_v45 = vld [vmem:[%s12667_s5 + $0x4b0] sm:$0xf0] }
 0x28e   :  { %v7540_v27 = vor.u32 %v8637_v7, %v7537_v8  ;;  %v7668_v42 = vor.u32 %v8669_v9, %v7665_v44  ;;  %v8665_v36 = vld [vmem:[%s12667_s5 + $0x5a4] sm:$0xf]  ;;  %v7649_v49 = vld [vmem:[%s12667_s5 + $0x5b0] sm:$0xf0]  ;;  %v7439_v9 = vld [vmem:[%s12667_s5 + $0x400] sm:$0xf] }
 0x28f   :  { %3966 = vmatmul.bf16.vlgmr.msra.gmra.mxu0 %v11312_v41  ;;  %3979 = vmatmul.bf16.vlgmr.msra.gmra.mxu1 %v11314_v47  ;;  %v8649_v7 = vld [vmem:[%s12667_s5 + $0x524] sm:$0xf]  ;;  %v7585_v8 = vld [vmem:[%s12667_s5 + $0x530] sm:$0xf0] }
 0x290   :  { %4010 = vmatpush.bf16.msrb.mxu0 %v7240_v13  ;;  %4023 = vmatpush.bf16.msrb.mxu1 %v7368_v14  ;;  %v7143_v13 = vld [vmem:[%s12667_s5 + $0x28] sm:$0xf]  ;;  %v8492_v14 = vld [vmem:[%s12667_s5 + $0x34] sm:$0xf0] }
 0x291   :  { %4036 = vmatpush.bf16.msrb.mxu2 %v7244_v16  ;;  %4049 = vmatpush.bf16.msrb.mxu3 %v7372_v39  ;;  %v7271_v16 = vld [vmem:[%s12667_s5 + $0x128] sm:$0xf]  ;;  %v8524_v39 = vld [vmem:[%s12667_s5 + $0x134] sm:$0xf0]  ;;  %v7144_v31 = vor.u32 %v8492_v14, %v7143_v13  ;;  %v7524_v13 = vor.u32 %v8633_v2, %v7521_v45  ;;  %v7652_v14 = vor.u32 %v8665_v36, %v7649_v49  ;;  %v8645_v2 = vld [vmem:[%s12667_s5 + $0x504] sm:$0xf] }
 0x292   :  { %3992 = vmatmul.bf16.vlgmr.msra.gmra.mxu2 %v11312_v41  ;;  %4005 = vmatmul.bf16.vlgmr.msra.gmra.mxu3 %v11314_v47  ;;  %v7569_v45 = vld [vmem:[%s12667_s5 + $0x510] sm:$0xf0]  ;;  %v7559_v36 = vld [vmem:[%s12667_s5 + $0x4e8] sm:$0xf]  ;;  %v8644_v49 = vld [vmem:[%s12667_s5 + $0x4f4] sm:$0xf0] }
 0x294   :  { %4011 = vmatpush.bf16.msrb.mxu0 %v7224_v58  ;;  %4024 = vmatpush.bf16.msrb.mxu1 %v7352_v29  ;;  %v7272_v58 = vor.u32 %v8524_v39, %v7271_v16  ;;  %v8488_v29 = vld [vmem:[%s12667_s5 + $0x14] sm:$0xf0]  ;;  %v8629_v16 = vld [vmem:[%s12667_s5 + $0x484] sm:$0xf]  ;;  %v7505_v39 = vld [vmem:[%s12667_s5 + $0x490] sm:$0xf0] }
 0x295   :  { %4037 = vmatpush.bf16.msrb.mxu2 %v7228_v30  ;;  %4050 = vmatpush.bf16.msrb.mxu3 %v7356_v20  ;;  %v7148_v30 = vor.u32 %v8490_v17, %v7145_v23  ;;  %v7276_v20 = vor.u32 %v8522_v24, %v7273_v26  ;;  %v7128_v56 = vor.u32 %v8488_v29, %v7127_v28  ;;  %v8661_v17 = vld [vmem:[%s12667_s5 + $0x584] sm:$0xf]  ;;  %v7633_v23 = vld [vmem:[%s12667_s5 + $0x590] sm:$0xf0]  ;;  %v7487_v28 = vld [vmem:[%s12667_s5 + $0x460] sm:$0xf] }
 0x296   :  { %v7636_v29 = vor.u32 %v8661_v17, %v7633_v23  ;;  %v7560_v17 = vor.u32 %v8644_v49, %v7559_v36 }
 0x298   :  { %4012 = vmatpush.bf16.msrb.mxu0 %v7208_v59  ;;  %4025 = vmatpush.bf16.msrb.mxu1 %v7336_v46  ;;  %v7679_v59 = vld [vmem:[%s12667_s5 + $0x5e0] sm:$0xf]  ;;  %v8675_v46 = vld [vmem:[%s12667_s5 + $0x5ec] sm:$0xf0] }
 0x299   :  { %4038 = vmatpush.bf16.msrb.mxu2 %v7212_v57  ;;  %4051 = vmatpush.bf16.msrb.mxu3 %v7340_v48  ;;  %v7256_v57 = vor.u32 %v8520_v37, %v7255_v22  ;;  %v7553_v48 = vld [vmem:[%s12667_s5 + $0x4f0] sm:$0xf0]  ;;  %v7680_v62 = vor.u32 %v8675_v46, %v7679_v59  ;;  %v7615_v22 = vld [vmem:[%s12667_s5 + $0x560] sm:$0xf]  ;;  %v8659_v37 = vld [vmem:[%s12667_s5 + $0x56c] sm:$0xf0]  ;;  %v7620_v46 = vor.u32 %v8657_v11, %v7617_v4 }
 0x29a   :  { %v7556_v33 = vor.u32 %v8641_v53, %v7553_v48  ;;  %v7616_v25 = vor.u32 %v8659_v37, %v7615_v22  ;;  %v7599_v53 = vld [vmem:[%s12667_s5 + $0x540] sm:$0xf]  ;;  %v7473_v48 = vld [vmem:[%s12667_s5 + $0x450] sm:$0xf0]  ;;  %v8638_v22 = vld [vmem:[%s12667_s5 + $0x4cc] sm:$0xf] }
 0x29b   :  { %v7545_v37 = vld [vmem:[%s12667_s5 + $0x4d8] sm:$0xf0]  ;;  %v11948_v11 = vrot.slane %v11312_v41, 2  ;;  %v11951_v4 = vrot.slane %v11314_v47, 2 }
 0x29c   :  { %4013 = vmatpush.bf16.msrb.mxu0 %v7192_v38  ;;  %4026 = vmatpush.bf16.msrb.mxu1 %v7320_v5  ;;  %v7535_v38 = vld [vmem:[%s12667_s5 + $0x4c0] sm:$0xf]  ;;  %v8639_v5 = vld [vmem:[%s12667_s5 + $0x4cc] sm:$0xf0] }
 0x29d   :  { %4039 = vmatpush.bf16.msrb.mxu2 %v7196_v50  ;;  %4052 = vmatpush.bf16.msrb.mxu3 %v7324_v19  ;;  %v7663_v50 = vld [vmem:[%s12667_s5 + $0x5c0] sm:$0xf]  ;;  %v8671_v19 = vld [vmem:[%s12667_s5 + $0x5cc] sm:$0xf0]  ;;  %v7536_v63 = vor.u32 %v8639_v5, %v7535_v38  ;;  %v7604_v5 = vor.u32 %v8653_v61, %v7601_v3  ;;  %v8666_v61 = vld [vmem:[%s12667_s5 + $0x5ac] sm:$0xf] }
 0x29e   :  { %v7664_v55 = vor.u32 %v8671_v19, %v7663_v50  ;;  %v8617_v50 = vld [vmem:[%s12667_s5 + $0x424] sm:$0xf]  ;;  %v7457_v19 = vld [vmem:[%s12667_s5 + $0x430] sm:$0xf0]  ;;  %v7657_v3 = vld [vmem:[%s12667_s5 + $0x5b8] sm:$0xf0] }
 0x2a0   :  { %4014 = vmatpush.bf16.msrb.mxu0 %v7176_v52  ;;  %4027 = vmatpush.bf16.msrb.mxu1 %v7304_v43  ;;  %v7519_v52 = vld [vmem:[%s12667_s5 + $0x4a0] sm:$0xf]  ;;  %v8635_v43 = vld [vmem:[%s12667_s5 + $0x4ac] sm:$0xf0] }
 0x2a1   :  { %4040 = vmatpush.bf16.msrb.mxu2 %v7180_v10  ;;  %4053 = vmatpush.bf16.msrb.mxu3 %v7308_v1  ;;  %v7647_v10 = vld [vmem:[%s12667_s5 + $0x5a0] sm:$0xf]  ;;  %v8667_v1 = vld [vmem:[%s12667_s5 + $0x5ac] sm:$0xf0]  ;;  %v7520_v40 = vor.u32 %v8635_v43, %v7519_v52 }
 0x2a2   :  { %v7648_v21 = vor.u32 %v8667_v1, %v7647_v10  ;;  %v7567_v52 = vld [vmem:[%s12667_s5 + $0x500] sm:$0xf]  ;;  %v8647_v43 = vld [vmem:[%s12667_s5 + $0x50c] sm:$0xf0]  ;;  %v8613_v10 = vld [vmem:[%s12667_s5 + $0x404] sm:$0xf] }
 0x2a3   :  { %v7441_v1 = vld [vmem:[%s12667_s5 + $0x410] sm:$0xf0] }
 0x2a4   :  { %4015 = vmatpush.bf16.msrb.mxu0 %v7160_v60  ;;  %4028 = vmatpush.bf16.msrb.mxu1 %v7288_v12  ;;  %v7503_v60 = vld [vmem:[%s12667_s5 + $0x480] sm:$0xf]  ;;  %v8631_v12 = vld [vmem:[%s12667_s5 + $0x48c] sm:$0xf0] }
 0x2a5   :  { %4041 = vmatpush.bf16.msrb.mxu2 %v7164_v15  ;;  %4054 = vmatpush.bf16.msrb.mxu3 %v7292_v34  ;;  %v7631_v15 = vld [vmem:[%s12667_s5 + $0x580] sm:$0xf]  ;;  %v8663_v34 = vld [vmem:[%s12667_s5 + $0x58c] sm:$0xf0]  ;;  %v7504_v24 = vor.u32 %v8631_v12, %v7503_v60  ;;  %v8642_v60 = vld [vmem:[%s12667_s5 + $0x4ec] sm:$0xf] }
 0x2a6   :  { %v7632_v26 = vor.u32 %v8663_v34, %v7631_v15  ;;  %v8674_v15 = vld [vmem:[%s12667_s5 + $0x5ec] sm:$0xf]  ;;  %v7689_v34 = vld [vmem:[%s12667_s5 + $0x5f8] sm:$0xf0] }
 0x2a8   :  { %4016 = vmatpush.bf16.msrb.mxu0 %v7144_v31  ;;  %4029 = vmatpush.bf16.msrb.mxu1 %v7272_v58  ;;  %v8627_v31 = vld [vmem:[%s12667_s5 + $0x46c] sm:$0xf0]  ;;  %v7508_v58 = vor.u32 %v8629_v16, %v7505_v39  ;;  %v7444_v16 = vor.u32 %v8613_v10, %v7441_v1  ;;  %v7572_v39 = vor.u32 %v8645_v2, %v7569_v45  ;;  %v8626_v10 = vld [vmem:[%s12667_s5 + $0x46c] sm:$0xf]  ;;  %v7497_v1 = vld [vmem:[%s12667_s5 + $0x478] sm:$0xf0] }
 0x2a9   :  { %4042 = vmatpush.bf16.msrb.mxu2 %v7148_v30  ;;  %4055 = vmatpush.bf16.msrb.mxu3 %v7276_v20  ;;  %v8625_v30 = vld [vmem:[%s12667_s5 + $0x464] sm:$0xf]  ;;  %v7489_v20 = vld [vmem:[%s12667_s5 + $0x470] sm:$0xf0]  ;;  %v7488_v18 = vor.u32 %v8627_v31, %v7487_v28  ;;  %v7692_v31 = vor.u32 %v8674_v15, %v7689_v34  ;;  %v8658_v2 = vld [vmem:[%s12667_s5 + $0x56c] sm:$0xf] }
 0x2aa   :  { %v7492_v59 = vor.u32 %v8625_v30, %v7489_v20  ;;  %v8670_v30 = vld [vmem:[%s12667_s5 + $0x5cc] sm:$0xf]  ;;  %v7673_v20 = vld [vmem:[%s12667_s5 + $0x5d8] sm:$0xf0] }
 0x2ab   :  { %v7625_v45 = vld [vmem:[%s12667_s5 + $0x578] sm:$0xf0]  ;;  %v8622_v15 = vld [vmem:[%s12667_s5 + $0x44c] sm:$0xf] }
 0x2ac   :  { %4017 = vmatpush.bf16.msrb.mxu0 %v7128_v56  ;;  %4030 = vmatpush.bf16.msrb.mxu1 %v7256_v57  ;;  %v8655_v56 = vld [vmem:[%s12667_s5 + $0x54c] sm:$0xf0]  ;;  %v8621_v57 = vld [vmem:[%s12667_s5 + $0x444] sm:$0xf]  ;;  %v7481_v34 = vld [vmem:[%s12667_s5 + $0x458] sm:$0xf0] }
 0x2ad   :  { %4043 = vmatpush.bf16.msrb.mxu2 %v7132_v35  ;;  %4056 = vmatpush.bf16.msrb.mxu3 %v7260_v51  ;;  %v7472_v35 = vor.u32 %v8623_v54, %v7471_v32  ;;  %v7600_v51 = vor.u32 %v8655_v56, %v7599_v53  ;;  %v7476_v38 = vor.u32 %v8621_v57, %v7473_v48  ;;  %v7527_v32 = vld [vmem:[%s12667_s5 + $0x4a8] sm:$0xf]  ;;  %v8636_v54 = vld [vmem:[%s12667_s5 + $0x4b4] sm:$0xf0]  ;;  %v8634_v57 = vld [vmem:[%s12667_s5 + $0x4ac] sm:$0xf] }
 0x2ae   :  { %v7655_v53 = vld [vmem:[%s12667_s5 + $0x5a8] sm:$0xf]  ;;  %v8668_v56 = vld [vmem:[%s12667_s5 + $0x5b4] sm:$0xf0]  ;;  %v7529_v48 = vld [vmem:[%s12667_s5 + $0x4b8] sm:$0xf0] }
 0x2af   :  { %4018 = vmatmul.bf16.vlgmr.msrb.gmra.mxu0 %v11312_v41  ;;  %4031 = vmatmul.bf16.vlgmr.msrb.gmra.mxu1 %v11314_v47 }
 0x2b0   :  { %4451 = vmatpush.bf16.msra.mxu0 %v7552_v0  ;;  %4464 = vmatpush.bf16.msra.mxu1 %v7680_v62  ;;  %v7455_v0 = vld [vmem:[%s12667_s5 + $0x420] sm:$0xf]  ;;  %v8619_v62 = vld [vmem:[%s12667_s5 + $0x42c] sm:$0xf0] }
 0x2b1   :  { %4477 = vmatpush.bf16.msra.mxu2 %v7556_v33  ;;  %4490 = vmatpush.bf16.msra.mxu3 %v7684_v6  ;;  %v7583_v33 = vld [vmem:[%s12667_s5 + $0x520] sm:$0xf]  ;;  %v8651_v6 = vld [vmem:[%s12667_s5 + $0x52c] sm:$0xf0]  ;;  %v7456_v44 = vor.u32 %v8619_v62, %v7455_v0  ;;  %v7511_v0 = vld [vmem:[%s12667_s5 + $0x488] sm:$0xf] }
 0x2b2   :  { %4044 = vmatmul.bf16.vlgmr.msrb.gmra.mxu2 %v11312_v41  ;;  %4057 = vmatmul.bf16.vlgmr.msrb.gmra.mxu3 %v11314_v47  ;;  %v8632_v62 = vld [vmem:[%s12667_s5 + $0x494] sm:$0xf0] }
 0x2b4   :  { %4452 = vmatpush.bf16.msra.mxu0 %v7536_v63  ;;  %4465 = vmatpush.bf16.msra.mxu1 %v7664_v55  ;;  %v7584_v63 = vor.u32 %v8651_v6, %v7583_v33  ;;  %v8615_v55 = vld [vmem:[%s12667_s5 + $0x40c] sm:$0xf0]  ;;  %v7639_v33 = vld [vmem:[%s12667_s5 + $0x588] sm:$0xf]  ;;  %v8664_v6 = vld [vmem:[%s12667_s5 + $0x594] sm:$0xf0] }
 0x2b5   :  { %4478 = vmatpush.bf16.msra.mxu2 %v7540_v27  ;;  %4491 = vmatpush.bf16.msra.mxu3 %v7668_v42  ;;  %v7460_v27 = vor.u32 %v8617_v50, %v7457_v19  ;;  %v7588_v42 = vor.u32 %v8649_v7, %v7585_v8  ;;  %v7440_v12 = vor.u32 %v8615_v55, %v7439_v9  ;;  %v8630_v50 = vld [vmem:[%s12667_s5 + $0x48c] sm:$0xf]  ;;  %v7513_v19 = vld [vmem:[%s12667_s5 + $0x498] sm:$0xf0]  ;;  %v8628_v55 = vld [vmem:[%s12667_s5 + $0x474] sm:$0xf0] }
 0x2b6   :  { %v8662_v7 = vld [vmem:[%s12667_s5 + $0x58c] sm:$0xf]  ;;  %v7641_v8 = vld [vmem:[%s12667_s5 + $0x598] sm:$0xf0]  ;;  %v7512_v9 = vor.u32 %v8632_v62, %v7511_v0  ;;  %v7999_v0 = vld [vmem:[%s12667_s5 + $0x7e0] sm:$0xf] }
 0x2b7   :  { %v8739_v62 = vld [vmem:[%s12667_s5 + $0x7ec] sm:$0xf0] }
 0x2b8   :  { %4453 = vmatpush.bf16.msra.mxu0 %v7520_v40  ;;  %4466 = vmatpush.bf16.msra.mxu1 %v7648_v21  ;;  %v7687_v40 = vld [vmem:[%s12667_s5 + $0x5e8] sm:$0xf]  ;;  %v8676_v21 = vld [vmem:[%s12667_s5 + $0x5f4] sm:$0xf0] }
 0x2b9   :  { %4479 = vmatpush.bf16.msra.mxu2 %v7524_v13  ;;  %4492 = vmatpush.bf16.msra.mxu3 %v7652_v14  ;;  %v7568_v13 = vor.u32 %v8647_v43, %v7567_v52  ;;  %v7561_v14 = vld [vmem:[%s12667_s5 + $0x4f8] sm:$0xf0]  ;;  %v7688_v23 = vor.u32 %v8676_v21, %v7687_v40  ;;  %v7516_v52 = vor.u32 %v8630_v50, %v7513_v19  ;;  %v7479_v40 = vld [vmem:[%s12667_s5 + $0x448] sm:$0xf]  ;;  %v8624_v21 = vld [vmem:[%s12667_s5 + $0x454] sm:$0xf0] }
 0x2ba   :  { %v7564_v28 = vor.u32 %v8642_v60, %v7561_v14  ;;  %v7644_v43 = vor.u32 %v8662_v7, %v7641_v8  ;;  %v7500_v60 = vor.u32 %v8626_v10, %v7497_v1  ;;  %v8656_v14 = vld [vmem:[%s12667_s5 + $0x554] sm:$0xf0]  ;;  %v8737_v50 = vld [vmem:[%s12667_s5 + $0x7e4] sm:$0xf]  ;;  %v8001_v19 = vld [vmem:[%s12667_s5 + $0x7f0] sm:$0xf0] }
 0x2bb   :  { %v8701_v10 = vld [vmem:[%s12667_s5 + $0x6c4] sm:$0xf]  ;;  %v7857_v1 = vld [vmem:[%s12667_s5 + $0x6d0] sm:$0xf0] }
 0x2bc   :  { %4454 = vmatpush.bf16.msra.mxu0 %v7504_v24  ;;  %4467 = vmatpush.bf16.msra.mxu1 %v7632_v26  ;;  %v7543_v24 = vld [vmem:[%s12667_s5 + $0x4c8] sm:$0xf]  ;;  %v8640_v26 = vld [vmem:[%s12667_s5 + $0x4d4] sm:$0xf0] }
 0x2bd   :  { %4480 = vmatpush.bf16.msra.mxu2 %v7508_v58  ;;  %4493 = vmatpush.bf16.msra.mxu3 %v7636_v29  ;;  %v7671_v58 = vld [vmem:[%s12667_s5 + $0x5c8] sm:$0xf]  ;;  %v8672_v29 = vld [vmem:[%s12667_s5 + $0x5d4] sm:$0xf0] }
 0x2c0   :  { %4455 = vmatpush.bf16.msra.mxu0 %v7488_v18  ;;  %4468 = vmatpush.bf16.msra.mxu1 %v7616_v25  ;;  %v7544_v18 = vor.u32 %v8640_v26, %v7543_v24  ;;  %v7672_v25 = vor.u32 %v8672_v29, %v7671_v58  ;;  %v7463_v24 = vld [vmem:[%s12667_s5 + $0x428] sm:$0xf]  ;;  %v8620_v26 = vld [vmem:[%s12667_s5 + $0x434] sm:$0xf0] }
 0x2c1   :  { %4481 = vmatpush.bf16.msra.mxu2 %v7492_v59  ;;  %4494 = vmatpush.bf16.msra.mxu3 %v7620_v46  ;;  %v7548_v59 = vor.u32 %v8638_v22, %v7545_v37  ;;  %v7676_v46 = vor.u32 %v8670_v30, %v7673_v20  ;;  %v7591_v58 = vld [vmem:[%s12667_s5 + $0x528] sm:$0xf]  ;;  %v8652_v29 = vld [vmem:[%s12667_s5 + $0x534] sm:$0xf0]  ;;  %v8618_v22 = vld [vmem:[%s12667_s5 + $0x42c] sm:$0xf] }
 0x2c2   :  { %v7465_v37 = vld [vmem:[%s12667_s5 + $0x438] sm:$0xf0]  ;;  %v8650_v30 = vld [vmem:[%s12667_s5 + $0x52c] sm:$0xf] }
 0x2c3   :  { %v7593_v20 = vld [vmem:[%s12667_s5 + $0x538] sm:$0xf0] }
 0x2c4   :  { %4456 = vmatpush.bf16.msra.mxu0 %v7472_v35  ;;  %4469 = vmatpush.bf16.msra.mxu1 %v7600_v51  ;;  %v7528_v35 = vor.u32 %v8636_v54, %v7527_v32  ;;  %v7656_v51 = vor.u32 %v8668_v56, %v7655_v53  ;;  %v7592_v32 = vor.u32 %v8652_v29, %v7591_v58  ;;  %v8616_v54 = vld [vmem:[%s12667_s5 + $0x414] sm:$0xf0]  ;;  %v8695_v58 = vld [vmem:[%s12667_s5 + $0x68c] sm:$0xf0]  ;;  %v7951_v29 = vld [vmem:[%s12667_s5 + $0x780] sm:$0xf] }
 0x2c5   :  { %4482 = vmatpush.bf16.msra.mxu2 %v7476_v38  ;;  %4495 = vmatpush.bf16.msra.mxu3 %v7604_v5  ;;  %v7532_v38 = vor.u32 %v8634_v57, %v7529_v48  ;;  %v7660_v5 = vor.u32 %v8666_v61, %v7657_v3  ;;  %v7468_v53 = vor.u32 %v8618_v22, %v7465_v37  ;;  %v8614_v57 = vld [vmem:[%s12667_s5 + $0x40c] sm:$0xf]  ;;  %v7449_v48 = vld [vmem:[%s12667_s5 + $0x418] sm:$0xf0]  ;;  %v8727_v22 = vld [vmem:[%s12667_s5 + $0x78c] sm:$0xf0] }
 0x2c6   :  { %v7596_v56 = vor.u32 %v8650_v30, %v7593_v20  ;;  %v8646_v61 = vld [vmem:[%s12667_s5 + $0x50c] sm:$0xf]  ;;  %v7577_v3 = vld [vmem:[%s12667_s5 + $0x518] sm:$0xf0]  ;;  %v7452_v7 = vor.u32 %v8614_v57, %v7449_v48  ;;  %v8693_v37 = vld [vmem:[%s12667_s5 + $0x684] sm:$0xf] }
 0x2c7   :  { %v7580_v8 = vor.u32 %v8646_v61, %v7577_v3  ;;  %v7825_v30 = vld [vmem:[%s12667_s5 + $0x690] sm:$0xf0]  ;;  %v8725_v20 = vld [vmem:[%s12667_s5 + $0x784] sm:$0xf]  ;;  %v8723_v57 = vld [vmem:[%s12667_s5 + $0x76c] sm:$0xf0] }
 0x2c8   :  { %4457 = vmatpush.bf16.msra.mxu0 %v7456_v44  ;;  %4470 = vmatpush.bf16.msra.mxu1 %v7584_v63  ;;  %v7640_v44 = vor.u32 %v8664_v6, %v7639_v33  ;;  %v7495_v63 = vld [vmem:[%s12667_s5 + $0x468] sm:$0xf]  ;;  %v7873_v6 = vld [vmem:[%s12667_s5 + $0x6f0] sm:$0xf0]  ;;  %v8689_v48 = vld [vmem:[%s12667_s5 + $0x664] sm:$0xf] }
 0x2c9   :  { %4483 = vmatpush.bf16.msra.mxu2 %v7460_v27  ;;  %4496 = vmatpush.bf16.msra.mxu3 %v7588_v42  ;;  %v7623_v27 = vld [vmem:[%s12667_s5 + $0x568] sm:$0xf]  ;;  %v8660_v42 = vld [vmem:[%s12667_s5 + $0x574] sm:$0xf0]  ;;  %v7496_v36 = vor.u32 %v8628_v55, %v7495_v63  ;;  %v7855_v63 = vld [vmem:[%s12667_s5 + $0x6c0] sm:$0xf] }
 0x2ca   :  { %v7624_v49 = vor.u32 %v8660_v42, %v7623_v27  ;;  %v8703_v55 = vld [vmem:[%s12667_s5 + $0x6cc] sm:$0xf0]  ;;  %v7983_v27 = vld [vmem:[%s12667_s5 + $0x7c0] sm:$0xf] }
 0x2cb   :  { %v8735_v42 = vld [vmem:[%s12667_s5 + $0x7cc] sm:$0xf0] }
 0x2cc   :  { %4458 = vmatpush.bf16.msra.mxu0 %v7440_v12  ;;  %4471 = vmatpush.bf16.msra.mxu1 %v7568_v13  ;;  %v7628_v12 = vor.u32 %v8658_v2, %v7625_v45  ;;  %v7607_v13 = vld [vmem:[%s12667_s5 + $0x548] sm:$0xf]  ;;  %v8733_v2 = vld [vmem:[%s12667_s5 + $0x7c4] sm:$0xf]  ;;  %v7985_v45 = vld [vmem:[%s12667_s5 + $0x7d0] sm:$0xf0] }
 0x2cd   :  { %4484 = vmatpush.bf16.msra.mxu2 %v7444_v16  ;;  %4497 = vmatpush.bf16.msra.mxu3 %v7572_v39  ;;  %v8654_v16 = vld [vmem:[%s12667_s5 + $0x54c] sm:$0xf]  ;;  %v7609_v39 = vld [vmem:[%s12667_s5 + $0x558] sm:$0xf0] }
 0x2cf   :  { %4459 = vmatmul.bf16.vlgmr.msra.gmra.mxu0 %v11948_v11  ;;  %4472 = vmatmul.bf16.vlgmr.msra.gmra.mxu1 %v11951_v4 }
 0x2d0   :  { %4503 = vmatpush.bf16.msrb.mxu0 %v7560_v17  ;;  %4516 = vmatpush.bf16.msrb.mxu1 %v7688_v23  ;;  %v7480_v17 = vor.u32 %v8624_v21, %v7479_v40  ;;  %v7608_v23 = vor.u32 %v8656_v14, %v7607_v13  ;;  %v7839_v40 = vld [vmem:[%s12667_s5 + $0x6a0] sm:$0xf]  ;;  %v8699_v21 = vld [vmem:[%s12667_s5 + $0x6ac] sm:$0xf0] }
 0x2d1   :  { %4529 = vmatpush.bf16.msrb.mxu2 %v7564_v28  ;;  %4542 = vmatpush.bf16.msrb.mxu3 %v7692_v31  ;;  %v7484_v28 = vor.u32 %v8622_v15, %v7481_v34  ;;  %v7612_v31 = vor.u32 %v8654_v16, %v7609_v39  ;;  %v7967_v13 = vld [vmem:[%s12667_s5 + $0x7a0] sm:$0xf]  ;;  %v8731_v14 = vld [vmem:[%s12667_s5 + $0x7ac] sm:$0xf0]  ;;  %v8697_v15 = vld [vmem:[%s12667_s5 + $0x6a4] sm:$0xf] }
 0x2d2   :  { %4485 = vmatmul.bf16.vlgmr.msra.gmra.mxu2 %v11948_v11  ;;  %4498 = vmatmul.bf16.vlgmr.msra.gmra.mxu3 %v11951_v4  ;;  %v7841_v34 = vld [vmem:[%s12667_s5 + $0x6b0] sm:$0xf0]  ;;  %v8729_v16 = vld [vmem:[%s12667_s5 + $0x7a4] sm:$0xf] }
 0x2d3   :  { %v7969_v39 = vld [vmem:[%s12667_s5 + $0x7b0] sm:$0xf0] }
 0x2d4   :  { %4504 = vmatpush.bf16.msrb.mxu0 %v7544_v18  ;;  %4517 = vmatpush.bf16.msrb.mxu1 %v7672_v25  ;;  %v7447_v18 = vld [vmem:[%s12667_s5 + $0x408] sm:$0xf]  ;;  %v7464_v25 = vor.u32 %v8620_v26, %v7463_v24  ;;  %v7840_v24 = vor.u32 %v8699_v21, %v7839_v40  ;;  %v7968_v26 = vor.u32 %v8731_v14, %v7967_v13  ;;  %v8681_v40 = vld [vmem:[%s12667_s5 + $0x624] sm:$0xf]  ;;  %v7905_v14 = vld [vmem:[%s12667_s5 + $0x730] sm:$0xf0] }
 0x2d5   :  { %4530 = vmatpush.bf16.msrb.mxu2 %v7548_v59  ;;  %4543 = vmatpush.bf16.msrb.mxu3 %v7676_v46  ;;  %v7575_v59 = vld [vmem:[%s12667_s5 + $0x508] sm:$0xf]  ;;  %v8648_v46 = vld [vmem:[%s12667_s5 + $0x514] sm:$0xf0]  ;;  %v8713_v13 = vld [vmem:[%s12667_s5 + $0x724] sm:$0xf] }
 0x2d6   :  { %v7576_v33 = vor.u32 %v8648_v46, %v7575_v59  ;;  %v8691_v59 = vld [vmem:[%s12667_s5 + $0x66c] sm:$0xf0]  ;;  %v7828_v46 = vor.u32 %v8693_v37, %v7825_v30  ;;  %v7889_v37 = vld [vmem:[%s12667_s5 + $0x710] sm:$0xf0]  ;;  %v7879_v30 = vld [vmem:[%s12667_s5 + $0x6e8] sm:$0xf] }
 0x2d8   :  { %4505 = vmatpush.bf16.msrb.mxu0 %v7528_v35  ;;  %4518 = vmatpush.bf16.msrb.mxu1 %v7656_v51  ;;  %v7871_v35 = vld [vmem:[%s12667_s5 + $0x6e0] sm:$0xf]  ;;  %v8707_v51 = vld [vmem:[%s12667_s5 + $0x6ec] sm:$0xf0] }
 0x2d9   :  { %4531 = vmatpush.bf16.msrb.mxu2 %v7532_v38  ;;  %4544 = vmatpush.bf16.msrb.mxu3 %v7660_v5  ;;  %v8705_v38 = vld [vmem:[%s12667_s5 + $0x6e4] sm:$0xf]  ;;  %v7448_v5 = vor.u32 %v8616_v54, %v7447_v18  ;;  %v7953_v18 = vld [vmem:[%s12667_s5 + $0x790] sm:$0xf0]  ;;  %v7807_v54 = vld [vmem:[%s12667_s5 + $0x660] sm:$0xf] }
 0x2dc   :  { %4506 = vmatpush.bf16.msrb.mxu0 %v7512_v9  ;;  %4519 = vmatpush.bf16.msrb.mxu1 %v7640_v44  ;;  %v7872_v9 = vor.u32 %v8707_v51, %v7871_v35  ;;  %v8000_v44 = vor.u32 %v8739_v62, %v7999_v0  ;;  %v7809_v35 = vld [vmem:[%s12667_s5 + $0x670] sm:$0xf0]  ;;  %v8721_v51 = vld [vmem:[%s12667_s5 + $0x764] sm:$0xf] }
 0x2dd   :  { %4532 = vmatpush.bf16.msrb.mxu2 %v7516_v52  ;;  %4545 = vmatpush.bf16.msrb.mxu3 %v7644_v43  ;;  %v7876_v52 = vor.u32 %v8705_v38, %v7873_v6  ;;  %v8004_v43 = vor.u32 %v8737_v50, %v8001_v19  ;;  %v7937_v0 = vld [vmem:[%s12667_s5 + $0x770] sm:$0xf0]  ;;  %v7791_v50 = vld [vmem:[%s12667_s5 + $0x640] sm:$0xf]  ;;  %v8687_v19 = vld [vmem:[%s12667_s5 + $0x64c] sm:$0xf0] }
 0x2e0   :  { %4507 = vmatpush.bf16.msrb.mxu0 %v7496_v36  ;;  %4520 = vmatpush.bf16.msrb.mxu1 %v7624_v49  ;;  %v7856_v36 = vor.u32 %v8703_v55, %v7855_v63  ;;  %v7984_v49 = vor.u32 %v8735_v42, %v7983_v27  ;;  %v8685_v63 = vld [vmem:[%s12667_s5 + $0x644] sm:$0xf]  ;;  %v7793_v55 = vld [vmem:[%s12667_s5 + $0x650] sm:$0xf0]  ;;  %v7792_v27 = vor.u32 %v8687_v19, %v7791_v50 }
 0x2e1   :  { %4533 = vmatpush.bf16.msrb.mxu2 %v7500_v60  ;;  %4546 = vmatpush.bf16.msrb.mxu3 %v7628_v12  ;;  %v7860_v60 = vor.u32 %v8701_v10, %v7857_v1  ;;  %v7988_v12 = vor.u32 %v8733_v2, %v7985_v45  ;;  %v7775_v10 = vld [vmem:[%s12667_s5 + $0x620] sm:$0xf]  ;;  %v8683_v1 = vld [vmem:[%s12667_s5 + $0x62c] sm:$0xf0]  ;;  %v7796_v2 = vor.u32 %v8685_v63, %v7793_v55  ;;  %v8734_v63 = vld [vmem:[%s12667_s5 + $0x7cc] sm:$0xf] }
 0x2e2   :  { %v7993_v55 = vld [vmem:[%s12667_s5 + $0x7d8] sm:$0xf0] }
 0x2e4   :  { %4508 = vmatpush.bf16.msrb.mxu0 %v7480_v17  ;;  %4521 = vmatpush.bf16.msrb.mxu1 %v7608_v23 }
 0x2e5   :  { %4534 = vmatpush.bf16.msrb.mxu2 %v7484_v28  ;;  %4547 = vmatpush.bf16.msrb.mxu3 %v7612_v31  ;;  %v7823_v31 = vld [vmem:[%s12667_s5 + $0x680] sm:$0xf] }
 0x2e8   :  { %4509 = vmatpush.bf16.msrb.mxu0 %v7464_v25  ;;  %4522 = vmatpush.bf16.msrb.mxu1 %v7592_v32  ;;  %v7824_v25 = vor.u32 %v8695_v58, %v7823_v31  ;;  %v7952_v32 = vor.u32 %v8727_v22, %v7951_v29  ;;  %v8711_v31 = vld [vmem:[%s12667_s5 + $0x70c] sm:$0xf0]  ;;  %v7761_v29 = vld [vmem:[%s12667_s5 + $0x610] sm:$0xf0]  ;;  %v8709_v22 = vld [vmem:[%s12667_s5 + $0x704] sm:$0xf] }
 0x2e9   :  { %4535 = vmatpush.bf16.msrb.mxu2 %v7468_v53  ;;  %4548 = vmatpush.bf16.msrb.mxu3 %v7596_v56  ;;  %v7956_v53 = vor.u32 %v8725_v20, %v7953_v18  ;;  %v7935_v56 = vld [vmem:[%s12667_s5 + $0x760] sm:$0xf]  ;;  %v8708_v20 = vld [vmem:[%s12667_s5 + $0x6f4] sm:$0xf0]  ;;  %v8007_v18 = vld [vmem:[%s12667_s5 + $0x7e8] sm:$0xf] }
 0x2ea   :  { %v7936_v6 = vor.u32 %v8723_v57, %v7935_v56  ;;  %v8009_v56 = vld [vmem:[%s12667_s5 + $0x7f8] sm:$0xf0] }
 0x2eb   :  { %v3541_v17 = vpop.f32.mrf.mxu0  ;;  %v3554_v23 = vpop.f32.mrf.mxu1 }
 0x2ec   :  { %4510 = vmatpush.bf16.msrb.mxu0 %v7448_v5  ;;  %4523 = vmatpush.bf16.msrb.mxu1 %v7576_v33  ;;  %v12177_v28 = vadd.f32 %v3554_v23, %v3541_v17  ;;  %v7808_v33 = vor.u32 %v8691_v59, %v7807_v54 }
 0x2ed   :  { %4536 = vmatpush.bf16.msrb.mxu2 %v7452_v7  ;;  %4549 = vmatpush.bf16.msrb.mxu3 %v7580_v8  ;;  %v7812_v7 = vor.u32 %v8689_v48, %v7809_v35  ;;  %v7940_v8 = vor.u32 %v8721_v51, %v7937_v0  ;;  %v7892_v48 = vor.u32 %v8709_v22, %v7889_v37  ;;  %v7863_v0 = vld [vmem:[%s12667_s5 + $0x6c8] sm:$0xf] }
 0x2ef   :  { %4511 = vmatmul.bf16.vlgmr.msrb.gmra.mxu0 %v11948_v11  ;;  %4524 = vmatmul.bf16.vlgmr.msrb.gmra.mxu1 %v11951_v4 }
 0x2f0   :  { %4948 = vmatpush.bf16.msra.mxu0 %v7872_v9  ;;  %4961 = vmatpush.bf16.msra.mxu1 %v8000_v44  ;;  %v7919_v9 = vld [vmem:[%s12667_s5 + $0x740] sm:$0xf]  ;;  %v8719_v44 = vld [vmem:[%s12667_s5 + $0x74c] sm:$0xf0] }
 0x2f1   :  { %4974 = vmatpush.bf16.msra.mxu2 %v7876_v52  ;;  %4987 = vmatpush.bf16.msra.mxu3 %v8004_v43  ;;  %v8717_v52 = vld [vmem:[%s12667_s5 + $0x744] sm:$0xf]  ;;  %v7921_v43 = vld [vmem:[%s12667_s5 + $0x750] sm:$0xf0]  ;;  %v7920_v42 = vor.u32 %v8719_v44, %v7919_v9  ;;  %v8702_v9 = vld [vmem:[%s12667_s5 + $0x6cc] sm:$0xf] }
 0x2f2   :  { %4537 = vmatmul.bf16.vlgmr.msrb.gmra.mxu2 %v11948_v11  ;;  %4550 = vmatmul.bf16.vlgmr.msrb.gmra.mxu3 %v11951_v4  ;;  %v7844_v11 = vor.u32 %v8697_v15, %v7841_v34  ;;  %v7972_v4 = vor.u32 %v8729_v16, %v7969_v39  ;;  %v3567_v61 = vpop.f32.mrf.mxu2  ;;  %v3580_v3 = vpop.f32.mrf.mxu3  ;;  %v7924_v45 = vor.u32 %v8717_v52, %v7921_v43  ;;  %v7759_v16 = vld [vmem:[%s12667_s5 + $0x600] sm:$0xf]  ;;  %v7865_v44 = vld [vmem:[%s12667_s5 + $0x6d8] sm:$0xf0]  ;;  %v12354_v52 = vrot.slane %v11312_v41, 3 }
 0x2f3   :  { %v12227_v62 = vadd.f32 %v3580_v3, %v3567_v61  ;;  %v3543_v38 = vpop.f32.mrf.mxu0  ;;  %v3556_v5 = vpop.f32.mrf.mxu1  ;;  %v7776_v39 = vor.u32 %v8683_v1, %v7775_v10  ;;  %v7880_v61 = vor.u32 %v8708_v20, %v7879_v30  ;;  %v12357_v43 = vrot.slane %v11314_v47, 3  ;;  %v7847_v10 = vld [vmem:[%s12667_s5 + $0x6a8] sm:$0xf]  ;;  %v8700_v1 = vld [vmem:[%s12667_s5 + $0x6b4] sm:$0xf0] }
 0x2f4   :  { %4949 = vmatpush.bf16.msra.mxu0 %v7856_v36  ;;  %4962 = vmatpush.bf16.msra.mxu1 %v7984_v49  ;;  %v7903_v36 = vld [vmem:[%s12667_s5 + $0x720] sm:$0xf]  ;;  %v8715_v49 = vld [vmem:[%s12667_s5 + $0x72c] sm:$0xf0]  ;;  %v8704_v38 = vld [vmem:[%s12667_s5 + $0x6d4] sm:$0xf0] }
 0x2f5   :  { %4975 = vmatpush.bf16.msra.mxu2 %v7860_v60  ;;  %4988 = vmatpush.bf16.msra.mxu3 %v7988_v12  ;;  %v7777_v12 = vld [vmem:[%s12667_s5 + $0x630] sm:$0xf0]  ;;  %v7904_v17 = vor.u32 %v8715_v49, %v7903_v36  ;;  %v7975_v41 = vld [vmem:[%s12667_s5 + $0x7a8] sm:$0xf]  ;;  %v8732_v47 = vld [vmem:[%s12667_s5 + $0x7b4] sm:$0xf0] }
 0x2f6   :  { %v7780_v58 = vor.u32 %v8681_v40, %v7777_v12  ;;  %v8698_v36 = vld [vmem:[%s12667_s5 + $0x6ac] sm:$0xf]  ;;  %v7849_v49 = vld [vmem:[%s12667_s5 + $0x6b8] sm:$0xf0]  ;;  %v7976_v12 = vor.u32 %v8732_v47, %v7975_v41  ;;  %v7815_v20 = vld [vmem:[%s12667_s5 + $0x668] sm:$0xf] }
 0x2f7   :  { %v8730_v40 = vld [vmem:[%s12667_s5 + $0x7ac] sm:$0xf]  ;;  %v7911_v41 = vld [vmem:[%s12667_s5 + $0x728] sm:$0xf]  ;;  %v8716_v47 = vld [vmem:[%s12667_s5 + $0x734] sm:$0xf0] }
 0x2f8   :  { %4950 = vmatpush.bf16.msra.mxu0 %v7840_v24  ;;  %4963 = vmatpush.bf16.msra.mxu1 %v7968_v26  ;;  %v8679_v24 = vld [vmem:[%s12667_s5 + $0x60c] sm:$0xf0]  ;;  %v7887_v26 = vld [vmem:[%s12667_s5 + $0x700] sm:$0xf] }
 0x2f9   :  { %4976 = vmatpush.bf16.msra.mxu2 %v7844_v11  ;;  %4989 = vmatpush.bf16.msra.mxu3 %v7972_v4  ;;  %v7908_v11 = vor.u32 %v8713_v13, %v7905_v14  ;;  %v8677_v4 = vld [vmem:[%s12667_s5 + $0x604] sm:$0xf]  ;;  %v7760_v54 = vor.u32 %v8679_v24, %v7759_v16  ;;  %v7888_v59 = vor.u32 %v8711_v31, %v7887_v26  ;;  %v8728_v24 = vld [vmem:[%s12667_s5 + $0x794] sm:$0xf0]  ;;  %v8694_v26 = vld [vmem:[%s12667_s5 + $0x68c] sm:$0xf] }
 0x2fa   :  { %v3569_v21 = vpop.f32.mrf.mxu2  ;;  %v3582_v60 = vpop.f32.mrf.mxu3  ;;  %v7764_v57 = vor.u32 %v8677_v4, %v7761_v29  ;;  %v7852_v16 = vor.u32 %v8698_v36, %v7849_v49  ;;  %v7833_v31 = vld [vmem:[%s12667_s5 + $0x698] sm:$0xf0]  ;;  %v8682_v36 = vld [vmem:[%s12667_s5 + $0x62c] sm:$0xf] }
 0x2fb   :  { %v3593_v15 = vpop.f32.mrf.mxu0  ;;  %v3606_v34 = vpop.f32.mrf.mxu1  ;;  %v7977_v21 = vld [vmem:[%s12667_s5 + $0x7b8] sm:$0xf0]  ;;  %v7848_v60 = vor.u32 %v8700_v1, %v7847_v10  ;;  %v7783_v10 = vld [vmem:[%s12667_s5 + $0x628] sm:$0xf]  ;;  %v8684_v1 = vld [vmem:[%s12667_s5 + $0x634] sm:$0xf0] }
 0x2fc   :  { %4951 = vmatpush.bf16.msra.mxu0 %v7824_v25  ;;  %4964 = vmatpush.bf16.msra.mxu1 %v7952_v32  ;;  %v12280_v23 = vadd.f32 %v3606_v34, %v3593_v15  ;;  %v8740_v25 = vld [vmem:[%s12667_s5 + $0x7f4] sm:$0xf0]  ;;  %v8706_v32 = vld [vmem:[%s12667_s5 + $0x6ec] sm:$0xf]  ;;  %v7831_v15 = vld [vmem:[%s12667_s5 + $0x688] sm:$0xf] }
 0x2fd   :  { %4977 = vmatpush.bf16.msra.mxu2 %v7828_v46  ;;  %4990 = vmatpush.bf16.msra.mxu3 %v7956_v53  ;;  %v7881_v46 = vld [vmem:[%s12667_s5 + $0x6f8] sm:$0xf0]  ;;  %v8738_v53 = vld [vmem:[%s12667_s5 + $0x7ec] sm:$0xf]  ;;  %v8008_v3 = vor.u32 %v8740_v25, %v8007_v18  ;;  %v8696_v34 = vld [vmem:[%s12667_s5 + $0x694] sm:$0xf0]  ;;  %v7836_v25 = vor.u32 %v8694_v26, %v7833_v31 }
 0x2fe   :  { %v7884_v5 = vor.u32 %v8706_v32, %v7881_v46  ;;  %v7832_v37 = vor.u32 %v8696_v34, %v7831_v15  ;;  %v8692_v18 = vld [vmem:[%s12667_s5 + $0x674] sm:$0xf0]  ;;  %v7785_v49 = vld [vmem:[%s12667_s5 + $0x638] sm:$0xf0] }
 0x2ff   :  { %v7788_v15 = vor.u32 %v8682_v36, %v7785_v49  ;;  %v7769_v31 = vld [vmem:[%s12667_s5 + $0x618] sm:$0xf0]  ;;  %v8750_v49 = vld [vmem:[%s12669_s7 + $0x48] sm:$0xff] }
 0x300   :  { %4952 = vmatpush.bf16.msra.mxu0 %v7808_v33  ;;  %4965 = vmatpush.bf16.msra.mxu1 %v7936_v6  ;;  %v8012_v33 = vor.u32 %v8738_v53, %v8009_v56  ;;  %v7817_v53 = vld [vmem:[%s12667_s5 + $0x678] sm:$0xf0]  ;;  %v8722_v56 = vld [vmem:[%s12667_s5 + $0x76c] sm:$0xf] }
 0x301   :  { %4978 = vmatpush.bf16.msra.mxu2 %v7812_v7  ;;  %4991 = vmatpush.bf16.msra.mxu3 %v7940_v8  ;;  %v7991_v7 = vld [vmem:[%s12667_s5 + $0x7c8] sm:$0xf]  ;;  %v8736_v8 = vld [vmem:[%s12667_s5 + $0x7d4] sm:$0xf0] }
 0x302   :  { %v3619_v35 = vpop.f32.mrf.mxu2  ;;  %v3632_v51 = vpop.f32.mrf.mxu3  ;;  %v8764_v36 = vld [vmem:[%s12669_s7 + $0xb8] sm:$0xff] }
 0x303   :  { %v12333_v6 = vadd.f32 %v3632_v51, %v3619_v35  ;;  %v3595_v50 = vpop.f32.mrf.mxu0  ;;  %v3608_v19 = vpop.f32.mrf.mxu1  ;;  %v8688_v35 = vld [vmem:[%s12667_s5 + $0x654] sm:$0xf0] }
 0x304   :  { %4953 = vmatpush.bf16.msra.mxu0 %v7792_v27  ;;  %4966 = vmatpush.bf16.msra.mxu1 %v7920_v42  ;;  %v7864_v27 = vor.u32 %v8704_v38, %v7863_v0  ;;  %v7992_v42 = vor.u32 %v8736_v8, %v7991_v7  ;;  %v7927_v38 = vld [vmem:[%s12667_s5 + $0x748] sm:$0xf]  ;;  %v7801_v7 = vld [vmem:[%s12667_s5 + $0x658] sm:$0xf0]  ;;  %v8718_v8 = vld [vmem:[%s12667_s5 + $0x74c] sm:$0xf] }
 0x305   :  { %4979 = vmatpush.bf16.msra.mxu2 %v7796_v2  ;;  %4992 = vmatpush.bf16.msra.mxu3 %v7924_v45  ;;  %v7868_v2 = vor.u32 %v8702_v9, %v7865_v44  ;;  %v7996_v45 = vor.u32 %v8734_v63, %v7993_v55  ;;  %v7929_v9 = vld [vmem:[%s12667_s5 + $0x758] sm:$0xf0] }
 0x308   :  { %4954 = vmatpush.bf16.msra.mxu0 %v7776_v39  ;;  %4967 = vmatpush.bf16.msra.mxu1 %v7904_v17  ;;  %v7980_v39 = vor.u32 %v8730_v40, %v7977_v21  ;;  %v7959_v17 = vld [vmem:[%s12667_s5 + $0x788] sm:$0xf]  ;;  %v8714_v40 = vld [vmem:[%s12667_s5 + $0x72c] sm:$0xf]  ;;  %v7913_v21 = vld [vmem:[%s12667_s5 + $0x738] sm:$0xf0] }
 0x309   :  { %4980 = vmatpush.bf16.msra.mxu2 %v7780_v58  ;;  %4993 = vmatpush.bf16.msra.mxu3 %v7908_v11  ;;  %v8726_v58 = vld [vmem:[%s12667_s5 + $0x78c] sm:$0xf]  ;;  %v7961_v11 = vld [vmem:[%s12667_s5 + $0x798] sm:$0xf0]  ;;  %v7960_v30 = vor.u32 %v8728_v24, %v7959_v17  ;;  %v7916_v34 = vor.u32 %v8714_v40, %v7913_v21  ;;  %v8763_v40 = vld [vmem:[%s12669_s7 + $0xb0] sm:$0xff] }
 0x30a   :  { %v3621_v13 = vpop.f32.mrf.mxu2  ;;  %v3634_v14 = vpop.f32.mrf.mxu3  ;;  %v7964_v32 = vor.u32 %v8726_v58, %v7961_v11  ;;  %v8678_v17 = vld [vmem:[%s12667_s5 + $0x60c] sm:$0xf]  ;;  %v7897_v11 = vld [vmem:[%s12667_s5 + $0x718] sm:$0xf0]  ;;  %v8749_v21 = vld [vmem:[%s12669_s7 + $0x40] sm:$0xff] }
 0x30b   :  { %v7767_v13 = vld [vmem:[%s12667_s5 + $0x608] sm:$0xf]  ;;  %v8680_v14 = vld [vmem:[%s12667_s5 + $0x614] sm:$0xf0]  ;;  %v8710_v58 = vld [vmem:[%s12667_s5 + $0x70c] sm:$0xf] }
 0x30c   :  { %4955 = vmatpush.bf16.msra.mxu0 %v7760_v54  ;;  %4968 = vmatpush.bf16.msra.mxu1 %v7888_v59  ;;  %v3967_v4 = vpop.f32.mrf.mxu0  ;;  %v3980_v29 = vpop.f32.mrf.mxu1  ;;  %v7943_v54 = vld [vmem:[%s12667_s5 + $0x768] sm:$0xf]  ;;  %v8690_v59 = vld [vmem:[%s12667_s5 + $0x66c] sm:$0xf] }
 0x30d   :  { %4981 = vmatpush.bf16.msra.mxu2 %v7764_v57  ;;  %4994 = vmatpush.bf16.msra.mxu3 %v7892_v48  ;;  %v3968_v22 = vadd.f32 %v3967_v4, %v12177_v28  ;;  %v8724_v28 = vld [vmem:[%s12667_s5 + $0x774] sm:$0xf0]  ;;  %v7945_v57 = vld [vmem:[%s12667_s5 + $0x778] sm:$0xf0]  ;;  %v7816_v48 = vor.u32 %v8692_v18, %v7815_v20  ;;  %v7820_v51 = vor.u32 %v8690_v59, %v7817_v53 }
 0x30e   :  { %v7948_v0 = vor.u32 %v8722_v56, %v7945_v57  ;;  %v7768_v4 = vor.u32 %v8680_v14, %v7767_v13  ;;  %v8762_v14 = vld [vmem:[%s12669_s7 + $0xa8] sm:$0xff] }
 0x30f   :  { %4956 = vmatmul.bf16.vlgmr.msra.gmra.mxu0 %v12354_v52  ;;  %4969 = vmatmul.bf16.vlgmr.msra.gmra.mxu1 %v12357_v43  ;;  %v12427_v46 = vadd.f32 %v3980_v29, %v3968_v22  ;;  %v7772_v22 = vor.u32 %v8678_v17, %v7769_v31  ;;  %v8769_v17 = vld [vmem:[%s12669_s7 + $0xe0] sm:$0xff]  ;;  %v8759_v31 = vld [vmem:[%s12669_s7 + $0x90] sm:$0xff] }
 0x310   :  { %5000 = vmatpush.bf16.msrb.mxu0 %v7880_v61  ;;  %5013 = vmatpush.bf16.msrb.mxu1 %v8008_v3  ;;  %v7944_v61 = vor.u32 %v8724_v28, %v7943_v54  ;;  %v7799_v3 = vld [vmem:[%s12667_s5 + $0x648] sm:$0xf] }
 0x311   :  { %5026 = vmatpush.bf16.msrb.mxu2 %v7884_v5  ;;  %5039 = vmatpush.bf16.msrb.mxu3 %v8012_v33  ;;  %v8720_v5 = vld [vmem:[%s12667_s5 + $0x754] sm:$0xf0]  ;;  %v8686_v33 = vld [vmem:[%s12667_s5 + $0x64c] sm:$0xf] }
 0x312   :  { %4982 = vmatmul.bf16.vlgmr.msra.gmra.mxu2 %v12354_v52  ;;  %4995 = vmatmul.bf16.vlgmr.msra.gmra.mxu3 %v12357_v43 }
 0x314   :  { %5001 = vmatpush.bf16.msrb.mxu0 %v7864_v27  ;;  %5014 = vmatpush.bf16.msrb.mxu1 %v7992_v42  ;;  %v3969_v63 = vpop.f32.mrf.mxu0  ;;  %v3982_v55 = vpop.f32.mrf.mxu1  ;;  %v7800_v27 = vor.u32 %v8688_v35, %v7799_v3  ;;  %v7928_v42 = vor.u32 %v8720_v5, %v7927_v38 }
 0x315   :  { %5027 = vmatpush.bf16.msrb.mxu2 %v7868_v2  ;;  %5040 = vmatpush.bf16.msrb.mxu3 %v7996_v45  ;;  %v3993_v50 = vpop.f32.mrf.mxu2  ;;  %v4006_v19 = vpop.f32.mrf.mxu3  ;;  %v7804_v45 = vor.u32 %v8686_v33, %v7801_v7  ;;  %v8746_v33 = vld [vmem:[%s12669_s7 + $0x28] sm:$0xff] }
 0x316   :  { %v3994_v44 = vadd.f32 %v3993_v50, %v12227_v62  ;;  %v7932_v62 = vor.u32 %v8718_v8, %v7929_v9  ;;  %v8755_v50 = vld [vmem:[%s12669_s7 + $0x70] sm:$0xff]  ;;  %v8754_v7 = vld [vmem:[%s12669_s7 + $0x68] sm:$0xff]  ;;  %v8744_v8 = vld [vmem:[%s12669_s7 + $0x18] sm:$0xff] }
 0x317   :  { %v8753_v9 = vld [vmem:[%s12669_s7 + $0x60] sm:$0xff] }
 0x318   :  { %5002 = vmatpush.bf16.msrb.mxu0 %v7848_v60  ;;  %5015 = vmatpush.bf16.msrb.mxu1 %v7976_v12  ;;  %v12469_v2 = vadd.f32 %v4006_v19, %v3994_v44  ;;  %v7784_v60 = vor.u32 %v8684_v1, %v7783_v10  ;;  %v7912_v12 = vor.u32 %v8716_v47, %v7911_v41  ;;  %v8745_v19 = vld [vmem:[%s12669_s7 + $0x20] sm:$0xff]  ;;  %v8743_v44 = vld [vmem:[%s12669_s7 + $0x10] sm:$0xff] }
 0x319   :  { %5028 = vmatpush.bf16.msrb.mxu2 %v7852_v16  ;;  %5041 = vmatpush.bf16.msrb.mxu3 %v7980_v39  ;;  %v7895_v16 = vld [vmem:[%s12667_s5 + $0x708] sm:$0xf]  ;;  %v8712_v39 = vld [vmem:[%s12667_s5 + $0x714] sm:$0xf0]  ;;  %v8751_v10 = vld [vmem:[%s12669_s7 + $0x50] sm:$0xff] }
 0x31a   :  { %v7896_v29 = vor.u32 %v8712_v39, %v7895_v16  ;;  %v8770_v16 = vld [vmem:[%s12669_s7 + $0xe8] sm:$0xff]  ;;  %v8760_v39 = vld [vmem:[%s12669_s7 + $0x98] sm:$0xff] }
 0x31c   :  { %5003 = vmatpush.bf16.msrb.mxu0 %v7832_v37  ;;  %5016 = vmatpush.bf16.msrb.mxu1 %v7960_v30  ;;  %v7900_v37 = vor.u32 %v8710_v58, %v7897_v11 }
 0x31d   :  { %5029 = vmatpush.bf16.msrb.mxu2 %v7836_v25  ;;  %5042 = vmatpush.bf16.msrb.mxu3 %v7964_v32  ;;  %v3995_v24 = vpop.f32.mrf.mxu2  ;;  %v4008_v26 = vpop.f32.mrf.mxu3 }
 0x31e   :  { %v12619_v26 = vld [vmem:[%s12670_s6] sm:$0xf] }
 0x320   :  { %5004 = vmatpush.bf16.msrb.mxu0 %v7816_v48  ;;  %5017 = vmatpush.bf16.msrb.mxu1 %v7944_v61 }
 0x321   :  { %5030 = vmatpush.bf16.msrb.mxu2 %v7820_v51  ;;  %5043 = vmatpush.bf16.msrb.mxu3 %v7948_v0  ;;  %v8747_v51 = vld [vmem:[%s12669_s7 + $0x30] sm:$0xff]  ;;  %v8756_v0 = vld [vmem:[%s12669_s7 + $0x78] sm:$0xff] }
 0x324   :  { %5005 = vmatpush.bf16.msrb.mxu0 %v7800_v27  ;;  %5018 = vmatpush.bf16.msrb.mxu1 %v7928_v42  ;;  %v8752_v27 = vld [vmem:[%s12669_s7 + $0x58] sm:$0xff]  ;;  %v8742_v42 = vld [vmem:[%s12669_s7 + $0x8] sm:$0xff] }
 0x325   :  { %5031 = vmatpush.bf16.msrb.mxu2 %v7804_v45  ;;  %5044 = vmatpush.bf16.msrb.mxu3 %v7932_v62  ;;  %v8741_v62 = vld [vmem:[%s12669_s7] sm:$0xff] }
 0x328   :  { %5006 = vmatpush.bf16.msrb.mxu0 %v7784_v60  ;;  %5019 = vmatpush.bf16.msrb.mxu1 %v7912_v12  ;;  %v8772_v60 = vld [vmem:[%s12669_s7 + $0xf8] sm:$0xff] }
 0x329   :  { %5032 = vmatpush.bf16.msrb.mxu2 %v7788_v15  ;;  %5045 = vmatpush.bf16.msrb.mxu3 %v7916_v34  ;;  %v8771_v15 = vld [vmem:[%s12669_s7 + $0xf0] sm:$0xff]  ;;  %v8761_v34 = vld [vmem:[%s12669_s7 + $0xa0] sm:$0xff] }
 0x32c   :  { %5007 = vmatpush.bf16.msrb.mxu0 %v7768_v4  ;;  %5020 = vmatpush.bf16.msrb.mxu1 %v7896_v29  ;;  %v4019_v30 = vpop.f32.mrf.mxu0  ;;  %v4032_v20 = vpop.f32.mrf.mxu1  ;;  %v8768_v4 = vld [vmem:[%s12669_s7 + $0xd8] sm:$0xff] }
 0x32d   :  { %5033 = vmatpush.bf16.msrb.mxu2 %v7772_v22  ;;  %5046 = vmatpush.bf16.msrb.mxu3 %v7900_v37  ;;  %v4020_v18 = vadd.f32 %v4019_v30, %v12280_v23  ;;  %v5058_v37 = vperm.slane %v12619_v26, 0  ;;  %v8758_v30 = vld [vmem:[%s12669_s7 + $0x88] sm:$0xff] }
 0x32f   :  { %5008 = vmatmul.bf16.vlgmr.msrb.gmra.mxu0 %v12354_v52  ;;  %5021 = vmatmul.bf16.vlgmr.msrb.gmra.mxu1 %v12357_v43  ;;  %v12518_v25 = vadd.f32 %v4032_v20, %v4020_v18 }
 0x330   :  { %5034 = vmatmul.bf16.vlgmr.msrb.gmra.mxu2 %v12354_v52  ;;  %5047 = vmatmul.bf16.vlgmr.msrb.gmra.mxu3 %v12357_v43 }
 0x331   :  { %5355 = vmatpush.bf16.msra.mxu1 %v8756_v0  ;;  %5368 = vmatpush.bf16.msra.mxu2 %v8764_v36  ;;  %v8765_v0 = vld [vmem:[%s12669_s7 + $0xc0] sm:$0xff] }
 0x332   :  { %5381 = vmatpush.bf16.msra.mxu3 %v8772_v60 }
 0x334   :  { %v4021_v59 = vpop.f32.mrf.mxu0  ;;  %v4034_v53 = vpop.f32.mrf.mxu1 }
 0x335   :  { %v4045_v32 = vpop.f32.mrf.mxu2  ;;  %v4058_v54 = vpop.f32.mrf.mxu3  ;;  %5356 = vmatpush.bf16.msra.mxu1 %v8755_v50  ;;  %5369 = vmatpush.bf16.msra.mxu2 %v8763_v40 }
 0x336   :  { %v4046_v28 = vadd.f32 %v4045_v32, %v12333_v6  ;;  %v8748_v6 = vld [vmem:[%s12669_s7 + $0x38] sm:$0xff]  ;;  %5382 = vmatpush.bf16.msra.mxu3 %v8771_v15  ;;  %v8767_v32 = vld [vmem:[%s12669_s7 + $0xd0] sm:$0xff] }
 0x337   :  { %5342 = vmatpush.bf16.msra.mxu0 %v8748_v6 }
 0x338   :  { %v12521_v56 = vadd.f32 %v4058_v54, %v4046_v28 }
 0x339   :  { %5357 = vmatpush.bf16.msra.mxu1 %v8754_v7  ;;  %5370 = vmatpush.bf16.msra.mxu2 %v8762_v14 }
 0x33a   :  { %5383 = vmatpush.bf16.msra.mxu3 %v8770_v16 }
 0x33b   :  { %5343 = vmatpush.bf16.msra.mxu0 %v8747_v51 }
 0x33d   :  { %v4047_v57 = vpop.f32.mrf.mxu2  ;;  %v4060_v48 = vpop.f32.mrf.mxu3  ;;  %5358 = vmatpush.bf16.msra.mxu1 %v8753_v9  ;;  %5371 = vmatpush.bf16.msra.mxu2 %v8761_v34 }
 0x33e   :  { %5384 = vmatpush.bf16.msra.mxu3 %v8769_v17 }
 0x33f   :  { %5344 = vmatpush.bf16.msra.mxu0 %v8746_v33 }
 0x341   :  { %5359 = vmatpush.bf16.msra.mxu1 %v8752_v27  ;;  %5372 = vmatpush.bf16.msra.mxu2 %v8760_v39  ;;  %v5060_v27 = vperm.slane %v12619_v26, 2 }
 0x342   :  { %5385 = vmatpush.bf16.msra.mxu3 %v8768_v4 }
 0x343   :  { %5345 = vmatpush.bf16.msra.mxu0 %v8745_v19 }
 0x345   :  { %5360 = vmatpush.bf16.msra.mxu1 %v8751_v10  ;;  %5373 = vmatpush.bf16.msra.mxu2 %v8759_v31 }
 0x346   :  { %5386 = vmatpush.bf16.msra.mxu3 %v8767_v32 }
 0x347   :  { %5346 = vmatpush.bf16.msra.mxu0 %v8744_v8 }
 0x349   :  { %5361 = vmatpush.bf16.msra.mxu1 %v8750_v49  ;;  %5374 = vmatpush.bf16.msra.mxu2 %v8758_v30 }
 0x34b   :  { %5347 = vmatpush.bf16.msra.mxu0 %v8743_v44 }
 0x34c   :  { %v12523_v61 = vpop.f32.mrf.mxu0  ;;  %v12525_v52 = vpop.f32.mrf.mxu1 }
 0x34d   :  { %5362 = vmatpush.bf16.msra.mxu1 %v8749_v21  ;;  %v4474_v24 = vadd.f32 %v12525_v52, %v12523_v61  ;;  %v5059_v61 = vperm.slane %v12619_v26, 1 }
 0x34f   :  { %5348 = vmatpush.bf16.msra.mxu0 %v8742_v42  ;;  %v4555_v29 = vadd.f32 %v4474_v24, %v12427_v46  ;;  %v8757_v46 = vld [vmem:[%s12669_s7 + $0x80] sm:$0xff] }
 0x350   :  { %5375 = vmatpush.bf16.msra.mxu2 %v8757_v46  ;;  %v8775_v24 = vld [vmem:[%s12668_s8] ss:$0 sm:$0xff] }
 0x353   :  { %5349 = vmatpush.bf16.msra.mxu0 %v8741_v62 }
 0x354   :  { %v4462_v23 = vpop.f32.mrf.mxu0  ;;  %v4475_v35 = vpop.f32.mrf.mxu1 }
 0x355   :  { %v12527_v43 = vpop.f32.mrf.mxu2  ;;  %v12529_v3 = vpop.f32.mrf.mxu3 }
 0x356   :  { %v4500_v18 = vadd.f32 %v12529_v3, %v12527_v43  ;;  %v8766_v3 = vld [vmem:[%s12669_s7 + $0xc8] sm:$0xff] }
 0x357   :  { %5387 = vmatpush.bf16.msra.mxu3 %v8766_v3 }
 0x358   :  { %v4556_v57 = vadd.f32 %v4500_v18, %v12469_v2 }
 0x35b   :  { %5388 = vmatpush.bf16.msra.mxu3 %v8765_v0 }
 0x35d   :  { %v4488_v38 = vpop.f32.mrf.mxu2  ;;  %v4501_v5 = vpop.f32.mrf.mxu3 }
 0x36c   :  { %v12561_v63 = vpop.f32.mrf.mxu0  ;;  %v12563_v55 = vpop.f32.mrf.mxu1 }
 0x36d   :  { %v4526_v19 = vadd.f32 %v12563_v55, %v12561_v63  ;;  %v5061_v63 = vperm.slane %v12619_v26, 3 }
 0x36f   :  { %v4557_v9 = vadd.f32 %v4526_v19, %v12518_v25 }
 0x374   :  { %v4514_v41 = vpop.f32.mrf.mxu0  ;;  %v4527_v47 = vpop.f32.mrf.mxu1 }
 0x375   :  { %v12574_v1 = vpop.f32.mrf.mxu2  ;;  %v12576_v45 = vpop.f32.mrf.mxu3 }
 0x376   :  { %v4552_v10 = vadd.f32 %v12576_v45, %v12574_v1 }
 0x378   :  { %v4558_v49 = vadd.f32 %v4552_v10, %v12521_v56 }
 0x37d   :  { %v4540_v12 = vpop.f32.mrf.mxu2  ;;  %v4553_v13 = vpop.f32.mrf.mxu3 }
 0x38c   :  { %v4957_v58 = vpop.f32.mrf.mxu0  ;;  %v4970_v11 = vpop.f32.mrf.mxu1 }
 0x38d   :  { %v4971_v22 = vadd.f32 %v4970_v11, %v4957_v58 }
 0x38f   :  { %v5052_v20 = vadd.f32 %v4971_v22, %v4555_v29 }
 0x391   :  { %v5066_v54 = vadd.f32 %v5058_v37, %v5052_v20 }
 0x393   :  { %v5070_v28 = vmul.f32 0.2, %v5066_v54 }
 0x394   :  { %v4959_v52 = vpop.f32.mrf.mxu0  ;;  %v4972_v43 = vpop.f32.mrf.mxu1 }
 0x395   :  { %v4983_v59 = vpop.f32.mrf.mxu2  ;;  %v4996_v53 = vpop.f32.mrf.mxu3  ;;  %v5074_v23 = vmax.f32 %v5066_v54, %v5070_v28 }
 0x396   :  { %v4997_v48 = vadd.f32 %v4996_v53, %v4983_v59 }
 0x397   :  { %v5078_v6 = vpack.c.bf16 %v5074_v23, %v5074_v23 }
 0x398   :  { %v5053_v35 = vadd.f32 %v4997_v48, %v4556_v57 }
 0x399   :  { %5350 = vmatmul.bf16.vlgmr.msra.gmra.mxu0 %v5078_v6 }
 0x39a   :  { %v5067_v51 = vadd.f32 %v5059_v61, %v5053_v35 }
 0x39c   :  { %v5071_v2 = vmul.f32 0.2, %v5067_v51 }
 0x39d   :  { %v4985_v38 = vpop.f32.mrf.mxu2  ;;  %v4998_v5 = vpop.f32.mrf.mxu3 }
 0x39e   :  { %v5075_v33 = vmax.f32 %v5067_v51, %v5071_v2 }
 0x3a0   :  { %v5079_v50 = vpack.c.bf16 %v5075_v33, %v5075_v33 }
 0x3a2   :  { %5363 = vmatmul.bf16.vlgmr.msra.gmra.mxu1 %v5079_v50 }
 0x3ac   :  { %v5009_v7 = vpop.f32.mrf.mxu0  ;;  %v5022_v8 = vpop.f32.mrf.mxu1 }
 0x3ad   :  { %v5023_v44 = vadd.f32 %v5022_v8, %v5009_v7 }
 0x3af   :  { %v5054_v42 = vadd.f32 %v5023_v44, %v4557_v9 }
 0x3b1   :  { %v5068_v62 = vadd.f32 %v5060_v27, %v5054_v42 }
 0x3b3   :  { %v5072_v41 = vmul.f32 0.2, %v5068_v62  ;;  %v5035_v47 = vpop.f32.mrf.mxu2  ;;  %v5048_v36 = vpop.f32.mrf.mxu3 }
 0x3b4   :  { %v5049_v40 = vadd.f32 %v5048_v36, %v5035_v47  ;;  %v5011_v55 = vpop.f32.mrf.mxu0  ;;  %v5024_v21 = vpop.f32.mrf.mxu1 }
 0x3b5   :  { %v5076_v60 = vmax.f32 %v5068_v62, %v5072_v41 }
 0x3b6   :  { %v5055_v25 = vadd.f32 %v5049_v40, %v4558_v49 }
 0x3b7   :  { %v5080_v12 = vpack.c.bf16 %v5076_v60, %v5076_v60 }
 0x3b8   :  { %v5069_v13 = vadd.f32 %v5061_v63, %v5055_v25 }
 0x3b9   :  { %5376 = vmatmul.bf16.vlgmr.msra.gmra.mxu2 %v5080_v12 }
 0x3ba   :  { %v5073_v14 = vmul.f32 0.2, %v5069_v13 }
 0x3bb   :  { %v5037_v15 = vpop.f32.mrf.mxu2  ;;  %v5050_v34 = vpop.f32.mrf.mxu3 }
 0x3bc   :  { %v5077_v1 = vmax.f32 %v5069_v13, %v5073_v14 }
 0x3be   :  { %v5081_v45 = vpack.c.bf16 %v5077_v1, %v5077_v1 }
 0x3c0   :  { %5389 = vmatmul.bf16.vlgmr.msra.gmra.mxu3 %v5081_v45 }
 0x416   :  { %v5351_v16 = vpop.f32.mrf.mxu0 }
 0x417   :  { %v5352_v31 = vadd.f32 %v8775_v24, %v5351_v16 }
 0x41e   :  { %v5353_v17 = vpop.f32.mrf.mxu0 }
 0x41f   :  { %v5364_v39 = vpop.f32.mrf.mxu1 }
 0x420   :  { %v5365_v58 = vadd.f32 %v5364_v39, %v5352_v31 }
 0x427   :  { %v5366_v56 = vpop.f32.mrf.mxu1 }
 0x43c   :  { %v5377_v26 = vpop.f32.mrf.mxu2 }
 0x43d   :  { %v5378_v11 = vadd.f32 %v5377_v26, %v5365_v58 }
 0x443   :  { %v5390_v4 = vpop.f32.mrf.mxu3 }
 0x444   :  { %v5391_v29 = vadd.f32 %v5390_v4, %v5378_v11  ;;  %v5379_v22 = vpop.f32.mrf.mxu2 }
 0x446   :  { %v5394_v37 = vsub.f32 0.0, %v5391_v29 }
 0x448   :  { %v5395_v30 = vmul.f32 1.442695, %v5394_v37 }
 0x44a   :  { %8776 = vpow2.f32 %v5395_v30 }
 0x44b   :  { %v5392_v20 = vpop.f32.mrf.mxu3 }
 0x450   :  { %v8777_v18 = vpop.eup %8776 }
 0x451   :  { %v5397_v32 = vadd.f32 1.0, %v8777_v18 }
 0x453   :  { %8778 = vrcp.f32 %v5397_v32  ;;  %v5409_v59 = vand.u32 2147483648, %v5397_v32  ;;  %v5407_v57 = vand.u32 2147483647, %v5397_v32  ;;  %vm5403_vm1 = vweird.f32 %v5397_v32 }
 0x455   :  { %v5410_v61 = vor.u32 1.1754944e-38, %v5409_v59  ;;  %vm5408_vm3 = vcmp.eq.f32.partialorder %v5407_v57, 8.507059e+37 }
 0x459   :  { %v8779_v54 = vpop.eup %8778 }
 0x45a   :  { %v5399_v46 = vmul.f32 %v8779_v54, %v5397_v32  ;;  %vm5404_vm0 = vweird.f32 %v8779_v54 }
 0x45b   :  { %vm5405_vm2 = vmor %vm5403_vm1, %vm5404_vm0 }
 0x45c   :  { %v5400_v28 = vsub.f32 1.0, %v5399_v46 }
 0x45e   :  { %v5401_v53 = vmul.f32 %v8779_v54, %v5400_v28 }
 0x460   :  { %v5402_v48 = vadd.f32 %v8779_v54, %v5401_v53 }
 0x462   :  { %v5406_v52 = vsel %vm5405_vm2, %v8779_v54, %v5402_v48 }
 0x463   :  { %v5411_v43 = vsel %vm5408_vm3, %v5410_v61, %v5406_v52 }
 0x464   :  { %5413 = vst [vmem:[%s12671_s9] sm:$0x3] %v5411_v43 }

</bundles_post_ra>
